<compile_context>
chip_gen: v6e
topology: v6e:2x2x1
jax: 0.10.0
libtpu: 0.0.40
codegen_flags: <defaults>
</compile_context>

<pallas_src>
import jax
import jax.numpy as jnp
from jax import lax
from jax.experimental import pallas as pl
from jax.experimental.pallas import tpu as pltpu

NEG_SLOPE = 0.01          # LeakyReLU(negative_slope=0.01)
NUM_CLASSES = 10

# TODO(synk): the reference module's channel counts are internally inconsistent
# (sa1 outputs 64+128=192 channels but sa2's MLPs expect 128-channel input, and
# fc1 expects 768 inputs but would receive 768*128 after flattening). The
# structure (2-scale MSG SA layers, 3-layer shared MLPs + folded BN + LeakyReLU,
# max-pool over neighbors, FC head with log_softmax) is kept but point/channel
# counts are scaled down to a small, self-consistent config.
SA1 = dict(npoint=16, radii=(0.2, 0.4), nsample=(8, 16),
           down_conv_nn=((3, 16, 16, 32), (3, 32, 32, 64)))
SA1_OUT = 32 + 64                        # 96
SA2_CIN_RAW = 3 + SA1_OUT                # 99
SA2_CIN = 128                            # zero-padded to a full lane group
SA2 = dict(npoint=8, radii=(0.4, 0.8), nsample=(16, 32),
           down_conv_nn=((SA2_CIN_RAW, 32, 32, 64), (SA2_CIN_RAW, 64, 64, 128)))
SA2_OUT = 64 + 128                       # 192
FC_DIMS = (SA2_OUT * SA2["npoint"], 64, 32, NUM_CLASSES)

_VMEM_FULL = pl.BlockSpec(memory_space=pltpu.MemorySpace.VMEM)  # whole array, VMEM


# ---------------------------------------------------------------------------
# Pallas kernel 1: one MSG SA layer, both scales fused in a single grid step.
# Three 1x1 convs per scale (BN scale pre-folded into the bf16 weights) +
# additive BN shift + LeakyReLU, then max-pool over the neighbor axis; the
# two pooled scale outputs are concatenated along lanes and stored once.
# ---------------------------------------------------------------------------
def _sa_msg_kernel(x_ref,
                   w1a_ref, t1a_ref, w2a_ref, t2a_ref, w3a_ref, t3a_ref,
                   w1b_ref, t1b_ref, w2b_ref, t2b_ref, w3b_ref, t3b_ref,
                   o_ref):
    _, P, K, Cin = x_ref.shape

    def scale_mlp(x, w1, t1, w2, t2, w3, t3):
        h = jnp.dot(x, w1[...], preferred_element_type=jnp.float32) + t1[...]
        h = jnp.maximum(h, NEG_SLOPE * h)                       # LeakyReLU
        h = jnp.dot(h.astype(jnp.bfloat16), w2[...],
                    preferred_element_type=jnp.float32) + t2[...]
        h = jnp.maximum(h, NEG_SLOPE * h)
        h = jnp.dot(h.astype(jnp.bfloat16), w3[...],
                    preferred_element_type=jnp.float32) + t3[...]
        h = jnp.maximum(h, NEG_SLOPE * h)
        c = w3.shape[1]
        return jnp.max(h.reshape(P, K, c), axis=1)              # F.max_pool2d over K

    xa = x_ref[0].reshape(P * K, Cin)            # bf16, rows = points*neighbors
    xb = x_ref[1].reshape(P * K, Cin)
    ya = scale_mlp(xa, w1a_ref, t1a_ref, w2a_ref, t2a_ref, w3a_ref, t3a_ref)
    yb = scale_mlp(xb, w1b_ref, t1b_ref, w2b_ref, t2b_ref, w3b_ref, t3b_ref)
    o_ref[...] = jnp.concatenate([ya, yb], axis=-1).astype(o_ref.dtype)


def sa_msg_layer(feats, layers):
    """feats: (num_scales=2, P, Kmax, Cin) bf16.
       layers: per-scale tuple of three (w_bf16[(cin,cout)], shift_f32[(1,cout)]).
       Returns pooled features (P, sum of last-layer widths) bf16."""
    nsc, P, K, Cin = feats.shape
    assert nsc == 2
    sc_a, sc_b = layers
    (w1a, t1a), (w2a, t2a), (w3a, t3a) = sc_a
    (w1b, t1b), (w2b, t2b), (w3b, t3b) = sc_b
    ctot = w3a.shape[1] + w3b.shape[1]
    params = (w1a, t1a, w2a, t2a, w3a, t3a, w1b, t1b, w2b, t2b, w3b, t3b)
    # NOTE: at real PointNet++ sizes a "parallel" point-tile grid axis would be
    # added (megacore sharding + double-buffered grouped-input DMA); at these
    # shapes everything fits VMEM in one shot.
    return pl.pallas_call(
        _sa_msg_kernel,
        out_shape=jax.ShapeDtypeStruct((P, ctot), jnp.bfloat16),
        in_specs=[_VMEM_FULL] * (1 + len(params)),
        out_specs=_VMEM_FULL,
    )(feats, *params)


# ---------------------------------------------------------------------------
# Pallas kernel 2: fc1 -> relu -> fc2 -> relu -> fc3 -> log_softmax
# ---------------------------------------------------------------------------
def _fc_head_kernel(x_ref, w1_ref, b1_ref, w2_ref, b2_ref, w3_ref, b3_ref, o_ref):
    x = x_ref[...]                                               # bf16
    h = jnp.dot(x, w1_ref[...], preferred_element_type=jnp.float32) + b1_ref[...]
    h = jnp.maximum(h, 0.0).astype(jnp.bfloat16)
    h = jnp.dot(h, w2_ref[...], preferred_element_type=jnp.float32) + b2_ref[...]
    h = jnp.maximum(h, 0.0).astype(jnp.bfloat16)
    logits = jnp.dot(h, w3_ref[...], preferred_element_type=jnp.float32) + b3_ref[...]
    m = jnp.max(logits, axis=-1, keepdims=True)
    z = logits - m
    lse = jnp.log(jnp.sum(jnp.exp(z), axis=-1, keepdims=True))
    o_ref[...] = z - lse


def fc_head(x, fc1, fc2, fc3):
    # TODO(synk): at B=2 this launch is overhead-bound; it could be folded into
    # the SA2 kernel (flatten-in-kernel) or left to XLA entirely.
    B = x.shape[0]
    (w1, b1), (w2, b2), (w3, b3) = fc1, fc2, fc3
    C = w3.shape[1]
    return pl.pallas_call(
        _fc_head_kernel,
        out_shape=jax.ShapeDtypeStruct((B, C), jnp.float32),
        in_specs=[_VMEM_FULL] * 7,
        out_specs=_VMEM_FULL,
    )(x, w1, b1, w2, b2, w3, b3)


# ---------------------------------------------------------------------------
# Plain-JAX glue: FPS sampling, ball-query, grouping (gather).
# TODO(synk): this glue is the end-to-end bottleneck; a PrefetchScalarGridSpec
# gather kernel (idx as scalar prefetch, DMA neighborhoods straight into the
# MLP kernel's VMEM tiles) would remove the (B,S,K,C) HBM intermediate.
# ---------------------------------------------------------------------------
def farthest_point_sample(pos, npoint):
    B, N, _ = pos.shape

    def body(i, state):
        idxs, dists, farthest = state
        idxs = idxs.at[:, i].set(farthest)
        centroid = jnp.take_along_axis(pos, farthest[:, None, None], axis=1)  # (B,1,3)
        d = jnp.sum((pos - centroid) ** 2, axis=-1)                           # (B,N)
        dists = jnp.minimum(dists, d)
        farthest = jnp.argmax(dists, axis=-1).astype(jnp.int32)
        return idxs, dists, farthest

    init = (jnp.zeros((B, npoint), jnp.int32),
            jnp.full((B, N), 1e10, jnp.float32),
            jnp.zeros((B,), jnp.int32))
    idxs, _, _ = lax.fori_loop(0, npoint, body, init)
    return idxs


def ball_query(radius, nsample, pos, new_pos):
    """pos: (B,N,3), new_pos: (B,S,3) -> idx (B,S,nsample) int32."""
    N = pos.shape[1]
    d2 = jnp.sum((new_pos[:, :, None, :] - pos[:, None, :, :]) ** 2, axis=-1)  # (B,S,N)
    cand = jnp.where(d2 < radius * radius,
                     jnp.arange(N, dtype=jnp.int32)[None, None, :],
                     jnp.int32(N))
    cand = jnp.sort(cand, axis=-1)
    if nsample <= N:
        idx = cand[..., :nsample]
    else:
        pad = jnp.full(cand.shape[:-1] + (nsample - N,), N, jnp.int32)
        idx = jnp.concatenate([cand, pad], axis=-1)
    first = idx[..., :1]                    # pad misses with first valid index
    idx = jnp.where(idx >= N, first, idx)
    idx = jnp.minimum(idx, N - 1)           # guard any surviving sentinel
    return idx


def _group(arr, idx):
    """arr: (B,N,C), idx: (B,S,K) -> (B,S,K,C)."""
    return jax.vmap(lambda a, i: a[i])(arr, idx)


def sa_msg_down(x, pos, npoint, radii, nsamples, layers,
                cin_pad=None, use_xyz=True, normalize_xyz=False):
    """x: (B,N,C) bf16 or None; pos: (B,N,3) f32.
       Returns new_pos (B,S,3) f32, pooled feats (B,S,Ctot) bf16."""
    B = pos.shape[0]
    kmax = max(nsamples)
    fps_idx = farthest_point_sample(pos, npoint)                  # (B,S)
    new_pos = jax.vmap(lambda p, i: p[i])(pos, fps_idx)           # (B,S,3)

    scale_feats = []
    for r, ns in zip(radii, nsamples):
        idx = ball_query(r, ns, pos, new_pos)                     # (B,S,ns)
        grouped_pos = _group(pos, idx) - new_pos[:, :, None, :]   # (B,S,ns,3)
        if normalize_xyz:
            grouped_pos = grouped_pos / r
        if x is not None:
            grouped_feat = _group(x, idx)                         # (B,S,ns,C)
            feats = (jnp.concatenate(
                [grouped_pos.astype(grouped_feat.dtype), grouped_feat], axis=-1)
                if use_xyz else grouped_feat)
        else:
            feats = grouped_pos
        if ns < kmax:
            # pad neighbor axis by replicating the first neighbor; a no-op
            # under the subsequent max-pool.
            pad = jnp.broadcast_to(feats[:, :, :1, :],
                                   feats.shape[:2] + (kmax - ns,) + feats.shape[3:])
            feats = jnp.concatenate([feats, pad], axis=2)
        if cin_pad is not None and feats.shape[-1] < cin_pad:
            feats = jnp.pad(
                feats, ((0, 0), (0, 0), (0, 0), (0, cin_pad - feats.shape[-1])))
        scale_feats.append(feats.reshape(B * npoint, kmax, -1))
    stacked = jnp.stack(scale_feats, axis=0).astype(jnp.bfloat16)  # (2,P,K,Cin)
    out = sa_msg_layer(stacked, layers)                            # (P, Ctot) bf16
    return new_pos, out.reshape(B, npoint, -1)


# ---------------------------------------------------------------------------
# Parameter init (deterministic, synthetic); BN folded into weights here.
# ---------------------------------------------------------------------------
def init_params(key):
    eps = 1e-5

    def conv_mlp(key, dims, pad_cin=None):
        layers = []
        for li, (cin, cout) in enumerate(zip(dims[:-1], dims[1:])):
            key, kw, kg, kb = jax.random.split(key, 4)
            w = jax.random.normal(kw, (cin, cout), jnp.float32) / jnp.sqrt(float(cin))
            gamma = 1.0 + 0.1 * jax.random.normal(kg, (1, cout), jnp.float32)
            beta = 0.1 * jax.random.normal(kb, (1, cout), jnp.float32)
            # eval-mode BatchNorm2d (running_mean=0, running_var=1) folded into
            # the conv weight; only the additive shift (beta) survives.
            w = w * (gamma / jnp.sqrt(1.0 + eps))
            if li == 0 and pad_cin is not None and cin < pad_cin:
                w = jnp.pad(w, ((0, pad_cin - cin), (0, 0)))       # zero rows
            layers.append((w.astype(jnp.bfloat16), beta))
        return key, tuple(layers)

    def linear(key, cin, cout, row_perm=None):
        key, kw, kb = jax.random.split(key, 3)
        w = jax.random.normal(kw, (cin, cout), jnp.float32) / jnp.sqrt(float(cin))
        if row_perm is not None:
            w = w[row_perm]
        b = 0.1 * jax.random.normal(kb, (1, cout), jnp.float32)
        return key, (w.astype(jnp.bfloat16), b)

    sa1, sa2 = [], []
    for dims in SA1["down_conv_nn"]:
        key, layers = conv_mlp(key, dims)
        sa1.append(layers)
    for dims in SA2["down_conv_nn"]:
        key, layers = conv_mlp(key, dims, pad_cin=SA2_CIN)
        sa2.append(layers)

    # PyTorch flattens [B, C, npoint] channel-major (index = c*S + s); we feed
    # the FC head the natural (B, S*C) flatten, so permute fc1's weight rows at
    # init instead of transposing activations between kernels.
    S, C = SA2["npoint"], SA2_OUT
    nat = jnp.arange(S * C)
    row_perm = (nat % C) * S + (nat // C)
    key, fc1 = linear(key, FC_DIMS[0], FC_DIMS[1], row_perm=row_perm)
    key, fc2 = linear(key, FC_DIMS[1], FC_DIMS[2])
    key, fc3 = linear(key, FC_DIMS[2], FC_DIMS[3])
    return dict(sa1=tuple(sa1), sa2=tuple(sa2), fc1=fc1, fc2=fc2, fc3=fc3)


# ---------------------------------------------------------------------------
# Full forward (matches PointNetPP.forward structure)
# ---------------------------------------------------------------------------
@jax.jit
def pointnetpp_forward(params, x):
    B = x.shape[0]
    pos = x[..., :3]
    new_pos, feats = sa_msg_down(None, pos, SA1["npoint"], SA1["radii"],
                                 SA1["nsample"], params["sa1"])
    new_pos, feats = sa_msg_down(feats, new_pos, SA2["npoint"], SA2["radii"],
                                 SA2["nsample"], params["sa2"], cin_pad=SA2_CIN)
    flat = feats.reshape(B, -1)      # natural (B, S*C) order; fc1 rows permuted
    return fc_head(flat, params["fc1"], params["fc2"], params["fc3"])


if __name__ == "__main__":
    key = jax.random.PRNGKey(0)
    kparam, kx = jax.random.split(key)
    params = init_params(kparam)
    x = jax.random.uniform(kx, (2, 64, 3), jnp.float32)   # (batch, num_points, xyz)

    out = pointnetpp_forward(params, x)
    out = jax.block_until_ready(out)

    assert out.shape == (2, NUM_CLASSES), out.shape
    assert bool(jnp.all(jnp.isfinite(out)))
    # log_softmax rows should exponentiate-sum to 1
    assert bool(jnp.allclose(jnp.sum(jnp.exp(out), axis=-1), 1.0, atol=1e-4))
    print("KERNEL_OK")
</pallas_src>

<mosaic_0001>
module attributes {stable_mosaic.version = 11 : i64} {
  func.func @_sa_msg_kernel(%arg0: memref<2x32x16x3xbf16, #tpu.memory_space<vmem>>, %arg1: memref<3x16xbf16, #tpu.memory_space<vmem>>, %arg2: memref<1x16xf32, #tpu.memory_space<vmem>>, %arg3: memref<16x16xbf16, #tpu.memory_space<vmem>>, %arg4: memref<1x16xf32, #tpu.memory_space<vmem>>, %arg5: memref<16x32xbf16, #tpu.memory_space<vmem>>, %arg6: memref<1x32xf32, #tpu.memory_space<vmem>>, %arg7: memref<3x32xbf16, #tpu.memory_space<vmem>>, %arg8: memref<1x32xf32, #tpu.memory_space<vmem>>, %arg9: memref<32x32xbf16, #tpu.memory_space<vmem>>, %arg10: memref<1x32xf32, #tpu.memory_space<vmem>>, %arg11: memref<32x64xbf16, #tpu.memory_space<vmem>>, %arg12: memref<1x64xf32, #tpu.memory_space<vmem>>, %arg13: memref<32x96xbf16, #tpu.memory_space<vmem>>) attributes {dimension_semantics = [], scalar_prefetch = 0 : i64, scratch_operands = 0 : i64, tpu.core_type = #tpu.core_type<tc>} {
    %c0 = arith.constant 0 : index
    %c0_0 = arith.constant 0 : index
    %c0_1 = arith.constant 0 : index
    %c0_2 = arith.constant 0 : index
    %0 = vector.load %arg0[%c0, %c0_0, %c0_1, %c0_2] : memref<2x32x16x3xbf16, #tpu.memory_space<vmem>>, vector<1x32x16x3xbf16>
    %1 = vector.shape_cast %0 : vector<1x32x16x3xbf16> to vector<32x16x3xbf16>
    %2 = vector.shape_cast %1 : vector<32x16x3xbf16> to vector<512x3xbf16>
    %c1 = arith.constant 1 : index
    %c0_3 = arith.constant 0 : index
    %c0_4 = arith.constant 0 : index
    %c0_5 = arith.constant 0 : index
    %3 = vector.load %arg0[%c1, %c0_3, %c0_4, %c0_5] : memref<2x32x16x3xbf16, #tpu.memory_space<vmem>>, vector<1x32x16x3xbf16>
    %4 = vector.shape_cast %3 : vector<1x32x16x3xbf16> to vector<32x16x3xbf16>
    %5 = vector.shape_cast %4 : vector<32x16x3xbf16> to vector<512x3xbf16>
    %c0_6 = arith.constant 0 : index
    %c0_7 = arith.constant 0 : index
    %6 = vector.load %arg1[%c0_6, %c0_7] : memref<3x16xbf16, #tpu.memory_space<vmem>>, vector<3x16xbf16>
    %cst = arith.constant dense<0.000000e+00> : vector<512x16xf32>
    %7 = tpu.matmul %2, %6, %cst {dimension_numbers = #tpu.dot_dimension_numbers<[1], [0], [0], [1], [0, 0, 1, 1], [], []>} : vector<512x3xbf16>, vector<3x16xbf16>, vector<512x16xf32> -> vector<512x16xf32>
    %c0_8 = arith.constant 0 : index
    %c0_9 = arith.constant 0 : index
    %8 = vector.load %arg2[%c0_8, %c0_9] : memref<1x16xf32, #tpu.memory_space<vmem>>, vector<1x16xf32>
    %9 = vector.broadcast %8 : vector<1x16xf32> to vector<512x16xf32>
    %10 = arith.addf %7, %9 : vector<512x16xf32>
    %cst_10 = arith.constant 0.00999999977 : f32
    %11 = vector.broadcast %cst_10 : f32 to vector<512x16xf32>
    %12 = arith.mulf %11, %10 : vector<512x16xf32>
    %13 = arith.maximumf %10, %12 : vector<512x16xf32>
    %14 = arith.truncf %13 : vector<512x16xf32> to vector<512x16xbf16>
    %c0_11 = arith.constant 0 : index
    %c0_12 = arith.constant 0 : index
    %15 = vector.load %arg3[%c0_11, %c0_12] : memref<16x16xbf16, #tpu.memory_space<vmem>>, vector<16x16xbf16>
    %cst_13 = arith.constant dense<0.000000e+00> : vector<512x16xf32>
    %16 = tpu.matmul %14, %15, %cst_13 {dimension_numbers = #tpu.dot_dimension_numbers<[1], [0], [0], [1], [0, 0, 1, 1], [], []>} : vector<512x16xbf16>, vector<16x16xbf16>, vector<512x16xf32> -> vector<512x16xf32>
    %c0_14 = arith.constant 0 : index
    %c0_15 = arith.constant 0 : index
    %17 = vector.load %arg4[%c0_14, %c0_15] : memref<1x16xf32, #tpu.memory_space<vmem>>, vector<1x16xf32>
    %18 = vector.broadcast %17 : vector<1x16xf32> to vector<512x16xf32>
    %19 = arith.addf %16, %18 : vector<512x16xf32>
    %cst_16 = arith.constant 0.00999999977 : f32
    %20 = vector.broadcast %cst_16 : f32 to vector<512x16xf32>
    %21 = arith.mulf %20, %19 : vector<512x16xf32>
    %22 = arith.maximumf %19, %21 : vector<512x16xf32>
    %23 = arith.truncf %22 : vector<512x16xf32> to vector<512x16xbf16>
    %c0_17 = arith.constant 0 : index
    %c0_18 = arith.constant 0 : index
    %24 = vector.load %arg5[%c0_17, %c0_18] : memref<16x32xbf16, #tpu.memory_space<vmem>>, vector<16x32xbf16>
    %cst_19 = arith.constant dense<0.000000e+00> : vector<512x32xf32>
    %25 = tpu.matmul %23, %24, %cst_19 {dimension_numbers = #tpu.dot_dimension_numbers<[1], [0], [0], [1], [0, 0, 1, 1], [], []>} : vector<512x16xbf16>, vector<16x32xbf16>, vector<512x32xf32> -> vector<512x32xf32>
    %c0_20 = arith.constant 0 : index
    %c0_21 = arith.constant 0 : index
    %26 = vector.load %arg6[%c0_20, %c0_21] : memref<1x32xf32, #tpu.memory_space<vmem>>, vector<1x32xf32>
    %27 = vector.broadcast %26 : vector<1x32xf32> to vector<512x32xf32>
    %28 = arith.addf %25, %27 : vector<512x32xf32>
    %cst_22 = arith.constant 0.00999999977 : f32
    %29 = vector.broadcast %cst_22 : f32 to vector<512x32xf32>
    %30 = arith.mulf %29, %28 : vector<512x32xf32>
    %31 = arith.maximumf %28, %30 : vector<512x32xf32>
    %32 = vector.shape_cast %31 : vector<512x32xf32> to vector<32x16x32xf32>
    %cst_23 = arith.constant dense<0xFF800000> : vector<32x32xf32>
    %33 = vector.multi_reduction <maximumf>, %32, %cst_23 [1] : vector<32x16x32xf32> to vector<32x32xf32>
    %c0_24 = arith.constant 0 : index
    %c0_25 = arith.constant 0 : index
    %34 = vector.load %arg7[%c0_24, %c0_25] : memref<3x32xbf16, #tpu.memory_space<vmem>>, vector<3x32xbf16>
    %cst_26 = arith.constant dense<0.000000e+00> : vector<512x32xf32>
    %35 = tpu.matmul %5, %34, %cst_26 {dimension_numbers = #tpu.dot_dimension_numbers<[1], [0], [0], [1], [0, 0, 1, 1], [], []>} : vector<512x3xbf16>, vector<3x32xbf16>, vector<512x32xf32> -> vector<512x32xf32>
    %c0_27 = arith.constant 0 : index
    %c0_28 = arith.constant 0 : index
    %36 = vector.load %arg8[%c0_27, %c0_28] : memref<1x32xf32, #tpu.memory_space<vmem>>, vector<1x32xf32>
    %37 = vector.broadcast %36 : vector<1x32xf32> to vector<512x32xf32>
    %38 = arith.addf %35, %37 : vector<512x32xf32>
    %cst_29 = arith.constant 0.00999999977 : f32
    %39 = vector.broadcast %cst_29 : f32 to vector<512x32xf32>
    %40 = arith.mulf %39, %38 : vector<512x32xf32>
    %41 = arith.maximumf %38, %40 : vector<512x32xf32>
    %42 = arith.truncf %41 : vector<512x32xf32> to vector<512x32xbf16>
    %c0_30 = arith.constant 0 : index
    %c0_31 = arith.constant 0 : index
    %43 = vector.load %arg9[%c0_30, %c0_31] : memref<32x32xbf16, #tpu.memory_space<vmem>>, vector<32x32xbf16>
    %cst_32 = arith.constant dense<0.000000e+00> : vector<512x32xf32>
    %44 = tpu.matmul %42, %43, %cst_32 {dimension_numbers = #tpu.dot_dimension_numbers<[1], [0], [0], [1], [0, 0, 1, 1], [], []>} : vector<512x32xbf16>, vector<32x32xbf16>, vector<512x32xf32> -> vector<512x32xf32>
    %c0_33 = arith.constant 0 : index
    %c0_34 = arith.constant 0 : index
    %45 = vector.load %arg10[%c0_33, %c0_34] : memref<1x32xf32, #tpu.memory_space<vmem>>, vector<1x32xf32>
    %46 = vector.broadcast %45 : vector<1x32xf32> to vector<512x32xf32>
    %47 = arith.addf %44, %46 : vector<512x32xf32>
    %cst_35 = arith.constant 0.00999999977 : f32
    %48 = vector.broadcast %cst_35 : f32 to vector<512x32xf32>
    %49 = arith.mulf %48, %47 : vector<512x32xf32>
    %50 = arith.maximumf %47, %49 : vector<512x32xf32>
    %51 = arith.truncf %50 : vector<512x32xf32> to vector<512x32xbf16>
    %c0_36 = arith.constant 0 : index
    %c0_37 = arith.constant 0 : index
    %52 = vector.load %arg11[%c0_36, %c0_37] : memref<32x64xbf16, #tpu.memory_space<vmem>>, vector<32x64xbf16>
    %cst_38 = arith.constant dense<0.000000e+00> : vector<512x64xf32>
    %53 = tpu.matmul %51, %52, %cst_38 {dimension_numbers = #tpu.dot_dimension_numbers<[1], [0], [0], [1], [0, 0, 1, 1], [], []>} : vector<512x32xbf16>, vector<32x64xbf16>, vector<512x64xf32> -> vector<512x64xf32>
    %c0_39 = arith.constant 0 : index
    %c0_40 = arith.constant 0 : index
    %54 = vector.load %arg12[%c0_39, %c0_40] : memref<1x64xf32, #tpu.memory_space<vmem>>, vector<1x64xf32>
    %55 = vector.broadcast %54 : vector<1x64xf32> to vector<512x64xf32>
    %56 = arith.addf %53, %55 : vector<512x64xf32>
    %cst_41 = arith.constant 0.00999999977 : f32
    %57 = vector.broadcast %cst_41 : f32 to vector<512x64xf32>
    %58 = arith.mulf %57, %56 : vector<512x64xf32>
    %59 = arith.maximumf %56, %58 : vector<512x64xf32>
    %60 = vector.shape_cast %59 : vector<512x64xf32> to vector<32x16x64xf32>
    %cst_42 = arith.constant dense<0xFF800000> : vector<32x64xf32>
    %61 = vector.multi_reduction <maximumf>, %60, %cst_42 [1] : vector<32x16x64xf32> to vector<32x64xf32>
    %62 = tpu.concatenate %33, %61 in 1 : vector<32x32xf32>, vector<32x64xf32> -> vector<32x96xf32>
    %63 = arith.truncf %62 : vector<32x96xf32> to vector<32x96xbf16>
    %c0_43 = arith.constant 0 : index
    %c0_44 = arith.constant 0 : index
    %64 = vector.load %arg13[%c0_43, %c0_44] : memref<32x96xbf16, #tpu.memory_space<vmem>>, vector<32x96xbf16>
    tpu.vector_store %arg13[%c0_43, %c0_44], %63 {strides = array<i32>} : memref<32x96xbf16, #tpu.memory_space<vmem>>, vector<32x96xbf16>,
    return
  }
}

module attributes {stable_mosaic.version = 11 : i64} {
  func.func @_sa_msg_kernel(%arg0: memref<2x16x32x128xbf16, #tpu.memory_space<vmem>>, %arg1: memref<128x32xbf16, #tpu.memory_space<vmem>>, %arg2: memref<1x32xf32, #tpu.memory_space<vmem>>, %arg3: memref<32x32xbf16, #tpu.memory_space<vmem>>, %arg4: memref<1x32xf32, #tpu.memory_space<vmem>>, %arg5: memref<32x64xbf16, #tpu.memory_space<vmem>>, %arg6: memref<1x64xf32, #tpu.memory_space<vmem>>, %arg7: memref<128x64xbf16, #tpu.memory_space<vmem>>, %arg8: memref<1x64xf32, #tpu.memory_space<vmem>>, %arg9: memref<64x64xbf16, #tpu.memory_space<vmem>>, %arg10: memref<1x64xf32, #tpu.memory_space<vmem>>, %arg11: memref<64x128xbf16, #tpu.memory_space<vmem>>, %arg12: memref<1x128xf32, #tpu.memory_space<vmem>>, %arg13: memref<16x192xbf16, #tpu.memory_space<vmem>>) attributes {dimension_semantics = [], scalar_prefetch = 0 : i64, scratch_operands = 0 : i64, tpu.core_type = #tpu.core_type<tc>} {
    %c0 = arith.constant 0 : index
    %c0_0 = arith.constant 0 : index
    %c0_1 = arith.constant 0 : index
    %c0_2 = arith.constant 0 : index
    %0 = vector.load %arg0[%c0, %c0_0, %c0_1, %c0_2] : memref<2x16x32x128xbf16, #tpu.memory_space<vmem>>, vector<1x16x32x128xbf16>
    %1 = vector.shape_cast %0 : vector<1x16x32x128xbf16> to vector<16x32x128xbf16>
    %2 = vector.shape_cast %1 : vector<16x32x128xbf16> to vector<512x128xbf16>
    %c1 = arith.constant 1 : index
    %c0_3 = arith.constant 0 : index
    %c0_4 = arith.constant 0 : index
    %c0_5 = arith.constant 0 : index
    %3 = vector.load %arg0[%c1, %c0_3, %c0_4, %c0_5] : memref<2x16x32x128xbf16, #tpu.memory_space<vmem>>, vector<1x16x32x128xbf16>
    %4 = vector.shape_cast %3 : vector<1x16x32x128xbf16> to vector<16x32x128xbf16>
    %5 = vector.shape_cast %4 : vector<16x32x128xbf16> to vector<512x128xbf16>
    %c0_6 = arith.constant 0 : index
    %c0_7 = arith.constant 0 : index
    %6 = vector.load %arg1[%c0_6, %c0_7] : memref<128x32xbf16, #tpu.memory_space<vmem>>, vector<128x32xbf16>
    %cst = arith.constant dense<0.000000e+00> : vector<512x32xf32>
    %7 = tpu.matmul %2, %6, %cst {dimension_numbers = #tpu.dot_dimension_numbers<[1], [0], [0], [1], [0, 0, 1, 1], [], []>} : vector<512x128xbf16>, vector<128x32xbf16>, vector<512x32xf32> -> vector<512x32xf32>
    %c0_8 = arith.constant 0 : index
    %c0_9 = arith.constant 0 : index
    %8 = vector.load %arg2[%c0_8, %c0_9] : memref<1x32xf32, #tpu.memory_space<vmem>>, vector<1x32xf32>
    %9 = vector.broadcast %8 : vector<1x32xf32> to vector<512x32xf32>
    %10 = arith.addf %7, %9 : vector<512x32xf32>
    %cst_10 = arith.constant 0.00999999977 : f32
    %11 = vector.broadcast %cst_10 : f32 to vector<512x32xf32>
    %12 = arith.mulf %11, %10 : vector<512x32xf32>
    %13 = arith.maximumf %10, %12 : vector<512x32xf32>
    %14 = arith.truncf %13 : vector<512x32xf32> to vector<512x32xbf16>
    %c0_11 = arith.constant 0 : index
    %c0_12 = arith.constant 0 : index
    %15 = vector.load %arg3[%c0_11, %c0_12] : memref<32x32xbf16, #tpu.memory_space<vmem>>, vector<32x32xbf16>
    %cst_13 = arith.constant dense<0.000000e+00> : vector<512x32xf32>
    %16 = tpu.matmul %14, %15, %cst_13 {dimension_numbers = #tpu.dot_dimension_numbers<[1], [0], [0], [1], [0, 0, 1, 1], [], []>} : vector<512x32xbf16>, vector<32x32xbf16>, vector<512x32xf32> -> vector<512x32xf32>
    %c0_14 = arith.constant 0 : index
    %c0_15 = arith.constant 0 : index
    %17 = vector.load %arg4[%c0_14, %c0_15] : memref<1x32xf32, #tpu.memory_space<vmem>>, vector<1x32xf32>
    %18 = vector.broadcast %17 : vector<1x32xf32> to vector<512x32xf32>
    %19 = arith.addf %16, %18 : vector<512x32xf32>
    %cst_16 = arith.constant 0.00999999977 : f32
    %20 = vector.broadcast %cst_16 : f32 to vector<512x32xf32>
    %21 = arith.mulf %20, %19 : vector<512x32xf32>
    %22 = arith.maximumf %19, %21 : vector<512x32xf32>
    %23 = arith.truncf %22 : vector<512x32xf32> to vector<512x32xbf16>
    %c0_17 = arith.constant 0 : index
    %c0_18 = arith.constant 0 : index
    %24 = vector.load %arg5[%c0_17, %c0_18] : memref<32x64xbf16, #tpu.memory_space<vmem>>, vector<32x64xbf16>
    %cst_19 = arith.constant dense<0.000000e+00> : vector<512x64xf32>
    %25 = tpu.matmul %23, %24, %cst_19 {dimension_numbers = #tpu.dot_dimension_numbers<[1], [0], [0], [1], [0, 0, 1, 1], [], []>} : vector<512x32xbf16>, vector<32x64xbf16>, vector<512x64xf32> -> vector<512x64xf32>
    %c0_20 = arith.constant 0 : index
    %c0_21 = arith.constant 0 : index
    %26 = vector.load %arg6[%c0_20, %c0_21] : memref<1x64xf32, #tpu.memory_space<vmem>>, vector<1x64xf32>
    %27 = vector.broadcast %26 : vector<1x64xf32> to vector<512x64xf32>
    %28 = arith.addf %25, %27 : vector<512x64xf32>
    %cst_22 = arith.constant 0.00999999977 : f32
    %29 = vector.broadcast %cst_22 : f32 to vector<512x64xf32>
    %30 = arith.mulf %29, %28 : vector<512x64xf32>
    %31 = arith.maximumf %28, %30 : vector<512x64xf32>
    %32 = vector.shape_cast %31 : vector<512x64xf32> to vector<16x32x64xf32>
    %cst_23 = arith.constant dense<0xFF800000> : vector<16x64xf32>
    %33 = vector.multi_reduction <maximumf>, %32, %cst_23 [1] : vector<16x32x64xf32> to vector<16x64xf32>
    %c0_24 = arith.constant 0 : index
    %c0_25 = arith.constant 0 : index
    %34 = vector.load %arg7[%c0_24, %c0_25] : memref<128x64xbf16, #tpu.memory_space<vmem>>, vector<128x64xbf16>
    %cst_26 = arith.constant dense<0.000000e+00> : vector<512x64xf32>
    %35 = tpu.matmul %5, %34, %cst_26 {dimension_numbers = #tpu.dot_dimension_numbers<[1], [0], [0], [1], [0, 0, 1, 1], [], []>} : vector<512x128xbf16>, vector<128x64xbf16>, vector<512x64xf32> -> vector<512x64xf32>
    %c0_27 = arith.constant 0 : index
    %c0_28 = arith.constant 0 : index
    %36 = vector.load %arg8[%c0_27, %c0_28] : memref<1x64xf32, #tpu.memory_space<vmem>>, vector<1x64xf32>
    %37 = vector.broadcast %36 : vector<1x64xf32> to vector<512x64xf32>
    %38 = arith.addf %35, %37 : vector<512x64xf32>
    %cst_29 = arith.constant 0.00999999977 : f32
    %39 = vector.broadcast %cst_29 : f32 to vector<512x64xf32>
    %40 = arith.mulf %39, %38 : vector<512x64xf32>
    %41 = arith.maximumf %38, %40 : vector<512x64xf32>
    %42 = arith.truncf %41 : vector<512x64xf32> to vector<512x64xbf16>
    %c0_30 = arith.constant 0 : index
    %c0_31 = arith.constant 0 : index
    %43 = vector.load %arg9[%c0_30, %c0_31] : memref<64x64xbf16, #tpu.memory_space<vmem>>, vector<64x64xbf16>
    %cst_32 = arith.constant dense<0.000000e+00> : vector<512x64xf32>
    %44 = tpu.matmul %42, %43, %cst_32 {dimension_numbers = #tpu.dot_dimension_numbers<[1], [0], [0], [1], [0, 0, 1, 1], [], []>} : vector<512x64xbf16>, vector<64x64xbf16>, vector<512x64xf32> -> vector<512x64xf32>
    %c0_33 = arith.constant 0 : index
    %c0_34 = arith.constant 0 : index
    %45 = vector.load %arg10[%c0_33, %c0_34] : memref<1x64xf32, #tpu.memory_space<vmem>>, vector<1x64xf32>
    %46 = vector.broadcast %45 : vector<1x64xf32> to vector<512x64xf32>
    %47 = arith.addf %44, %46 : vector<512x64xf32>
    %cst_35 = arith.constant 0.00999999977 : f32
    %48 = vector.broadcast %cst_35 : f32 to vector<512x64xf32>
    %49 = arith.mulf %48, %47 : vector<512x64xf32>
    %50 = arith.maximumf %47, %49 : vector<512x64xf32>
    %51 = arith.truncf %50 : vector<512x64xf32> to vector<512x64xbf16>
    %c0_36 = arith.constant 0 : index
    %c0_37 = arith.constant 0 : index
    %52 = vector.load %arg11[%c0_36, %c0_37] : memref<64x128xbf16, #tpu.memory_space<vmem>>, vector<64x128xbf16>
    %cst_38 = arith.constant dense<0.000000e+00> : vector<512x128xf32>
    %53 = tpu.matmul %51, %52, %cst_38 {dimension_numbers = #tpu.dot_dimension_numbers<[1], [0], [0], [1], [0, 0, 1, 1], [], []>} : vector<512x64xbf16>, vector<64x128xbf16>, vector<512x128xf32> -> vector<512x128xf32>
    %c0_39 = arith.constant 0 : index
    %c0_40 = arith.constant 0 : index
    %54 = vector.load %arg12[%c0_39, %c0_40] : memref<1x128xf32, #tpu.memory_space<vmem>>, vector<1x128xf32>
    %55 = vector.broadcast %54 : vector<1x128xf32> to vector<512x128xf32>
    %56 = arith.addf %53, %55 : vector<512x128xf32>
    %cst_41 = arith.constant 0.00999999977 : f32
    %57 = vector.broadcast %cst_41 : f32 to vector<512x128xf32>
    %58 = arith.mulf %57, %56 : vector<512x128xf32>
    %59 = arith.maximumf %56, %58 : vector<512x128xf32>
    %60 = vector.shape_cast %59 : vector<512x128xf32> to vector<16x32x128xf32>
    %cst_42 = arith.constant dense<0xFF800000> : vector<16x128xf32>
    %61 = vector.multi_reduction <maximumf>, %60, %cst_42 [1] : vector<16x32x128xf32> to vector<16x128xf32>
    %62 = tpu.concatenate %33, %61 in 1 : vector<16x64xf32>, vector<16x128xf32> -> vector<16x192xf32>
    %63 = arith.truncf %62 : vector<16x192xf32> to vector<16x192xbf16>
    %c0_43 = arith.constant 0 : index
    %c0_44 = arith.constant 0 : index
    %64 = vector.load %arg13[%c0_43, %c0_44] : memref<16x192xbf16, #tpu.memory_space<vmem>>, vector<16x192xbf16>
    tpu.vector_store %arg13[%c0_43, %c0_44], %63 {strides = array<i32>} : memref<16x192xbf16, #tpu.memory_space<vmem>>, vector<16x192xbf16>,
    return
  }
}

module attributes {stable_mosaic.version = 11 : i64} {
  func.func @_fc_head_kernel(%arg0: memref<2x1536xbf16, #tpu.memory_space<vmem>>, %arg1: memref<1536x64xbf16, #tpu.memory_space<vmem>>, %arg2: memref<1x64xf32, #tpu.memory_space<vmem>>, %arg3: memref<64x32xbf16, #tpu.memory_space<vmem>>, %arg4: memref<1x32xf32, #tpu.memory_space<vmem>>, %arg5: memref<32x10xbf16, #tpu.memory_space<vmem>>, %arg6: memref<1x10xf32, #tpu.memory_space<vmem>>, %arg7: memref<2x10xf32, #tpu.memory_space<vmem>>) attributes {dimension_semantics = [], scalar_prefetch = 0 : i64, scratch_operands = 0 : i64, tpu.core_type = #tpu.core_type<tc>} {
    %c0 = arith.constant 0 : index
    %c0_0 = arith.constant 0 : index
    %0 = vector.load %arg0[%c0, %c0_0] : memref<2x1536xbf16, #tpu.memory_space<vmem>>, vector<2x1536xbf16>
    %c0_1 = arith.constant 0 : index
    %c0_2 = arith.constant 0 : index
    %1 = vector.load %arg1[%c0_1, %c0_2] : memref<1536x64xbf16, #tpu.memory_space<vmem>>, vector<1536x64xbf16>
    %cst = arith.constant dense<0.000000e+00> : vector<2x64xf32>
    %2 = tpu.matmul %0, %1, %cst {dimension_numbers = #tpu.dot_dimension_numbers<[1], [0], [0], [1], [0, 0, 1, 1], [], []>} : vector<2x1536xbf16>, vector<1536x64xbf16>, vector<2x64xf32> -> vector<2x64xf32>
    %c0_3 = arith.constant 0 : index
    %c0_4 = arith.constant 0 : index
    %3 = vector.load %arg2[%c0_3, %c0_4] : memref<1x64xf32, #tpu.memory_space<vmem>>, vector<1x64xf32>
    %4 = vector.broadcast %3 : vector<1x64xf32> to vector<2x64xf32>
    %5 = arith.addf %2, %4 : vector<2x64xf32>
    %cst_5 = arith.constant 0.000000e+00 : f32
    %6 = vector.broadcast %cst_5 : f32 to vector<2x64xf32>
    %7 = arith.maximumf %5, %6 : vector<2x64xf32>
    %8 = arith.truncf %7 : vector<2x64xf32> to vector<2x64xbf16>
    %c0_6 = arith.constant 0 : index
    %c0_7 = arith.constant 0 : index
    %9 = vector.load %arg3[%c0_6, %c0_7] : memref<64x32xbf16, #tpu.memory_space<vmem>>, vector<64x32xbf16>
    %cst_8 = arith.constant dense<0.000000e+00> : vector<2x32xf32>
    %10 = tpu.matmul %8, %9, %cst_8 {dimension_numbers = #tpu.dot_dimension_numbers<[1], [0], [0], [1], [0, 0, 1, 1], [], []>} : vector<2x64xbf16>, vector<64x32xbf16>, vector<2x32xf32> -> vector<2x32xf32>
    %c0_9 = arith.constant 0 : index
    %c0_10 = arith.constant 0 : index
    %11 = vector.load %arg4[%c0_9, %c0_10] : memref<1x32xf32, #tpu.memory_space<vmem>>, vector<1x32xf32>
    %12 = vector.broadcast %11 : vector<1x32xf32> to vector<2x32xf32>
    %13 = arith.addf %10, %12 : vector<2x32xf32>
    %cst_11 = arith.constant 0.000000e+00 : f32
    %14 = vector.broadcast %cst_11 : f32 to vector<2x32xf32>
    %15 = arith.maximumf %13, %14 : vector<2x32xf32>
    %16 = arith.truncf %15 : vector<2x32xf32> to vector<2x32xbf16>
    %c0_12 = arith.constant 0 : index
    %c0_13 = arith.constant 0 : index
    %17 = vector.load %arg5[%c0_12, %c0_13] : memref<32x10xbf16, #tpu.memory_space<vmem>>, vector<32x10xbf16>
    %cst_14 = arith.constant dense<0.000000e+00> : vector<2x10xf32>
    %18 = tpu.matmul %16, %17, %cst_14 {dimension_numbers = #tpu.dot_dimension_numbers<[1], [0], [0], [1], [0, 0, 1, 1], [], []>} : vector<2x32xbf16>, vector<32x10xbf16>, vector<2x10xf32> -> vector<2x10xf32>
    %c0_15 = arith.constant 0 : index
    %c0_16 = arith.constant 0 : index
    %19 = vector.load %arg6[%c0_15, %c0_16] : memref<1x10xf32, #tpu.memory_space<vmem>>, vector<1x10xf32>
    %20 = vector.broadcast %19 : vector<1x10xf32> to vector<2x10xf32>
    %21 = arith.addf %18, %20 : vector<2x10xf32>
    %cst_17 = arith.constant dense<0xFF800000> : vector<2xf32>
    %22 = vector.multi_reduction <maximumf>, %21, %cst_17 [1] : vector<2x10xf32> to vector<2xf32>
    %23 = vector.shape_cast %22 : vector<2xf32> to vector<2x1xf32>
    %24 = vector.broadcast %23 : vector<2x1xf32> to vector<2x10xf32>
    %25 = arith.subf %21, %24 : vector<2x10xf32>
    %26 = math.exp %25 : vector<2x10xf32>
    %cst_18 = arith.constant dense<0.000000e+00> : vector<2xf32>
    %27 = vector.multi_reduction <add>, %26, %cst_18 [1] : vector<2x10xf32> to vector<2xf32>
    %28 = vector.shape_cast %27 : vector<2xf32> to vector<2x1xf32>
    %29 = math.log %28 : vector<2x1xf32>
    %30 = vector.broadcast %29 : vector<2x1xf32> to vector<2x10xf32>
    %31 = arith.subf %25, %30 : vector<2x10xf32>
    %c0_19 = arith.constant 0 : index
    %c0_20 = arith.constant 0 : index
    %32 = vector.load %arg7[%c0_19, %c0_20] : memref<2x10xf32, #tpu.memory_space<vmem>>, vector<2x10xf32>
    tpu.vector_store %arg7[%c0_19, %c0_20], %31 {strides = array<i32>} : memref<2x10xf32, #tpu.memory_space<vmem>>, vector<2x10xf32>,
    return
  }
}

</mosaic_0001>

<bundles_post_ra>
// kernel: custom-call.20
= control target key start
LH: loop header
LB: loop body
LE: loop exit
PB: predicated region body
PF: predicated region fallthrough
CT: control target
= control target key end

     0   :  { %s6_s0 = inlined_call_operand.vmem [shape: f32[2,64], index: 0, kind: output, shape index: {}]  }

// kernel: custom-call.21
= control target key start
LH: loop header
LB: loop body
LE: loop exit
PB: predicated region body
PF: predicated region fallthrough
CT: control target
= control target key end

     0   :  { %s6_s0 = inlined_call_operand.vmem [shape: f32[2,16], index: 0, kind: output, shape index: {}]  }

// kernel: pointnetpp_forward.3
= control target key start
LH: loop header
LB: loop body
LE: loop exit
PB: predicated region body
PF: predicated region fallthrough
CT: control target
= control target key end

     0   :  { %vm439_vm0 = vcmask 1040384   ;;  %vm440_vm1 = vcmask 1041408   ;;  %vm342_vm2 = vcmask 23552   ;;  %v5577_v1 = vmov 65535   ;;  %s6953_s1 = inlined_call_operand.vmem [shape: bf16[3,16], index: 1, kind: input, shape index: {}]   ;;  %s6954_s0 = inlined_call_operand.vmem [shape: bf16[2,32,16,3], index: 0, kind: input, shape index: {}]   ;;  %s6955_s7 = inlined_call_operand.vmem [shape: bf16[3,32], index: 7, kind: input, shape index: {}]   ;;  %s6956_s3 = inlined_call_operand.vmem [shape: bf16[16,16], index: 3, kind: input, shape index: {}]   ;;  %s6957_s5 = inlined_call_operand.vmem [shape: bf16[16,32], index: 5, kind: input, shape index: {}]   ;;  %s6958_s2 = inlined_call_operand.vmem [shape: f32[1,16], index: 2, kind: input, shape index: {}]   ;;  %s6959_s9 = inlined_call_operand.vmem [shape: bf16[32,32], index: 9, kind: input, shape index: {}]   ;;  %s6960_s4 = inlined_call_operand.vmem [shape: f32[1,16], index: 4, kind: input, shape index: {}]   ;;  %s6961_s11 = inlined_call_operand.vmem [shape: bf16[32,64], index: 11, kind: input, shape index: {}]   ;;  %s6962_s8 = inlined_call_operand.vmem [shape: f32[1,32], index: 8, kind: input, shape index: {}]   ;;  %s6963_s6 = inlined_call_operand.vmem [shape: f32[1,32], index: 6, kind: input, shape index: {}]   ;;  %s6964_s10 = inlined_call_operand.vmem [shape: f32[1,32], index: 10, kind: input, shape index: {}]   ;;  %s6965_s12 = inlined_call_operand.vmem [shape: f32[1,64], index: 12, kind: input, shape index: {}]   ;;  %s6966_s13 = inlined_call_operand.vmem [shape: bf16[32,96], index: 13, kind: output, shape index: {}]  }
   0x1   :  { %v174_v0 = vld [vmem:[%s6953_s1] sm:$0x3]  ;;  %v441_v2 = vsel %vm439_vm0, 4294967295, %v5577_v1  ;;  %v5507_v6 = vld [vmem:[%s6954_s0 + $0x8] sm:$0xff]   ;;  %v5508_v7 = vld [vmem:[%s6954_s0 + $0x10] sm:$0xff]   ;;  %vm910_vm3 = vcmask 130048  }
   0x2   :  { %v5506_v3 = vld [vmem:[%s6954_s0] sm:$0xff]   ;;  %v442_v4 = vsel %vm440_vm1, %v441_v2, 0  ;;  %v5509_v8 = vld [vmem:[%s6954_s0 + $0x18] sm:$0xff]   ;;  %v5511_v10 = vld [vmem:[%s6954_s0 + $0x28] sm:$0xff]   ;;  %vm1984_vm4 = vcmask 261120   ;;  %vm4414_vm5 = vcmask 1041409  }
   0x3   :  { %v444_v5 = vand.u32 %v442_v4, %v174_v0  ;;  %5096 = vmatprep.mubr.msk.bf16.mxu0 %vm342_vm2, %v5506_v3  ;;  %v5510_v9 = vld [vmem:[%s6954_s0 + $0x20] sm:$0xff]   ;;  %v5512_v11 = vld [vmem:[%s6954_s0 + $0x30] sm:$0xff]   ;;  %v5513_v12 = vld [vmem:[%s6954_s0 + $0x38] sm:$0xff]   ;;  %vm4416_vm6 = vcmask 1042434   ;;  %vm4418_vm7 = vcmask 1043459   ;;  %vm4420_vm8 = vcmask 1044484  }
   0x4   :  { %v5514_v13 = vld [vmem:[%s6954_s0 + $0x40] sm:$0xff]   ;;  %v5515_v14 = vld [vmem:[%s6954_s0 + $0x48] sm:$0xff]   ;;  %v5516_v15 = vld [vmem:[%s6954_s0 + $0x50] sm:$0xff]   ;;  %vm4422_vm9 = vcmask 1045509   ;;  %vm4424_vm10 = vcmask 1046534   ;;  %vm4426_vm11 = vcmask 1047559  }
   0x5   :  { %5094 = vmatprep.subr.bf16.mxu0 %v444_v5  ;;  %v5517_v16 = vld [vmem:[%s6954_s0 + $0x58] sm:$0xff]   ;;  %v5518_v17 = vld [vmem:[%s6954_s0 + $0x60] sm:$0xff]   ;;  %v5519_v18 = vld [vmem:[%s6954_s0 + $0x68] sm:$0xff]   ;;  %vm4093_vm12 = vcmask 523264   ;;  %vm4545_vm13 = vcmask 781312  }
   0x6   :  { %5095 = vmatpush3.bf16.msra.mxu0 %v444_v5  ;;  %v5520_v19 = vld [vmem:[%s6954_s0 + $0x70] sm:$0xff]   ;;  %v5521_v20 = vld [vmem:[%s6954_s0 + $0x78] sm:$0xff]   ;;  %v5522_v21 = vld [vmem:[%s6954_s0 + $0x80] sm:$0xff]  }
   0x7   :  { %v5523_v22 = vld [vmem:[%s6954_s0 + $0x88] sm:$0xff]   ;;  %v5524_v23 = vld [vmem:[%s6954_s0 + $0x90] sm:$0xff]   ;;  %v5525_v24 = vld [vmem:[%s6954_s0 + $0x98] sm:$0xff]  }
   0x8   :  { %v5526_v25 = vld [vmem:[%s6954_s0 + $0xa0] sm:$0xff]   ;;  %v5527_v29 = vld [vmem:[%s6954_s0 + $0xa8] sm:$0xff]   ;;  %v5528_v30 = vld [vmem:[%s6954_s0 + $0xb0] sm:$0xff]  }
   0x9   :  { %5097 = vmatmul.mubr.msk.bf16.vlgmr.msra.gmra.mxu0 %vm342_vm2, %v5507_v6  ;;  %v2273_v26 = vld [vmem:[%s6955_s7] sm:$0x3]  ;;  %v5529_v31 = vld [vmem:[%s6954_s0 + $0xb8] sm:$0xff]   ;;  %v5531_v33 = vld [vmem:[%s6954_s0 + $0xc8] sm:$0xff]  }
   0xa   :  { %5100 = vmatprep.mubr.msk.bf16.mxu0 %vm342_vm2, %v5508_v7  ;;  %v5739_v27 = vand.u32 %v2273_v26, %v442_v4  ;;  %v5538_v28 = vld [vmem:[%s6956_s3] sm:$0xff]   ;;  %v5532_v34 = vld [vmem:[%s6954_s0 + $0xd0] sm:$0xff]   ;;  %v5533_v35 = vld [vmem:[%s6954_s0 + $0xd8] sm:$0xff]  }
   0xb   :  { %5160 = vmatprep.subr.bf16.mxu1 %v5538_v28  ;;  %v5530_v32 = vld [vmem:[%s6954_s0 + $0xc0] sm:$0xff]   ;;  %v5535_v37 = vld [vmem:[%s6954_s0 + $0xe8] sm:$0xff]   ;;  %v5536_v38 = vld [vmem:[%s6954_s0 + $0xf0] sm:$0xff]  }
   0xc   :  { %5161 = vmatpush3.bf16.msra.mxu1 %v5538_v28  ;;  %v5534_v36 = vld [vmem:[%s6954_s0 + $0xe0] sm:$0xff]   ;;  %v5537_v39 = vld [vmem:[%s6954_s0 + $0xf8] sm:$0xff]  }
   0xd   :  { %5292 = vmatprep.subr.bf16.mxu1 %v5739_v27  ;;  %v5539_v40 = vld [vmem:[%s6957_s5] sm:$0xff]  }
   0xe   :  { %5226 = vmatprep.subr.bf16.mxu0 %v5539_v40  ;;  %v5795_v42 = vld [vmem:[%s6958_s2] ss:$0 sm:$0xff] }
   0xf   :  { %5227 = vmatpush3.bf16.msra.mxu0 %v5539_v40 }
  0x11   :  { %5101 = vmatmul.mubr.msk.bf16.gmra.mxu0 %vm342_vm2, %v5509_v8 }
  0x12   :  { %5104 = vmatprep.mubr.msk.bf16.mxu0 %vm342_vm2, %v5510_v9 }
  0x19   :  { %5105 = vmatmul.mubr.msk.bf16.gmra.mxu0 %vm342_vm2, %v5511_v10 }
  0x1a   :  { %5108 = vmatprep.mubr.msk.bf16.mxu0 %vm342_vm2, %v5512_v11 }
  0x21   :  { %5109 = vmatmul.mubr.msk.bf16.gmra.mxu0 %vm342_vm2, %v5513_v12 }
  0x22   :  { %5112 = vmatprep.mubr.msk.bf16.mxu0 %vm342_vm2, %v5514_v13 }
  0x29   :  { %5113 = vmatmul.mubr.msk.bf16.gmra.mxu0 %vm342_vm2, %v5515_v14 }
  0x2a   :  { %5116 = vmatprep.mubr.msk.bf16.mxu0 %vm342_vm2, %v5516_v15 }
  0x31   :  { %5117 = vmatmul.mubr.msk.bf16.gmra.mxu0 %vm342_vm2, %v5517_v16 }
  0x32   :  { %5120 = vmatprep.mubr.msk.bf16.mxu0 %vm342_vm2, %v5518_v17 }
  0x39   :  { %5121 = vmatmul.mubr.msk.bf16.gmra.mxu0 %vm342_vm2, %v5519_v18 }
  0x3a   :  { %5124 = vmatprep.mubr.msk.bf16.mxu0 %vm342_vm2, %v5520_v19 }
  0x41   :  { %5125 = vmatmul.mubr.msk.bf16.gmra.mxu0 %vm342_vm2, %v5521_v20 }
  0x42   :  { %5128 = vmatprep.mubr.msk.bf16.mxu0 %vm342_vm2, %v5522_v21 }
  0x49   :  { %5129 = vmatmul.mubr.msk.bf16.gmra.mxu0 %vm342_vm2, %v5523_v22 }
  0x4a   :  { %5132 = vmatprep.mubr.msk.bf16.mxu0 %vm342_vm2, %v5524_v23 }
  0x51   :  { %5133 = vmatmul.mubr.msk.bf16.gmra.mxu0 %vm342_vm2, %v5525_v24 }
  0x52   :  { %5136 = vmatprep.mubr.msk.bf16.mxu0 %vm342_vm2, %v5526_v25 }
  0x59   :  { %5137 = vmatmul.mubr.msk.bf16.gmra.mxu0 %vm342_vm2, %v5527_v29 }
  0x5a   :  { %5140 = vmatprep.mubr.msk.bf16.mxu0 %vm342_vm2, %v5528_v30 }
  0x61   :  { %5141 = vmatmul.mubr.msk.bf16.gmra.mxu0 %vm342_vm2, %v5529_v31 }
  0x62   :  { %5144 = vmatprep.mubr.msk.bf16.mxu0 %vm342_vm2, %v5530_v32 }
  0x69   :  { %5145 = vmatmul.mubr.msk.bf16.gmra.mxu0 %vm342_vm2, %v5531_v33 }
  0x6a   :  { %5148 = vmatprep.mubr.msk.bf16.mxu0 %vm342_vm2, %v5532_v34 }
  0x71   :  { %5149 = vmatmul.mubr.msk.bf16.gmra.mxu0 %vm342_vm2, %v5533_v35 }
  0x72   :  { %5152 = vmatprep.mubr.msk.bf16.mxu0 %vm342_vm2, %v5534_v36 }
  0x79   :  { %5153 = vmatmul.mubr.msk.bf16.gmra.mxu0 %vm342_vm2, %v5535_v37 }
  0x7a   :  { %5156 = vmatprep.mubr.msk.bf16.mxu0 %vm342_vm2, %v5536_v38 }
  0x81   :  { %5157 = vmatmul.mubr.msk.bf16.gmra.mxu0 %vm342_vm2, %v5537_v39 }
  0xc9   :  { %v5098_v41 = vpop.f32.mrf.mxu0 }
  0xca   :  { %v489_v45 = vadd.f32 %v5098_v41, %v5795_v42 }
  0xcb   :  { %v480_v43 = vpop.f32.mrf.mxu0 }
  0xcc   :  { %v481_v44 = vadd.f32 %v5795_v42, %v480_v43  ;;  %v737_v52 = vmul.f32 0.01, %v489_v45 }
  0xcd   :  { %v5099_v46 = vpop.f32.mrf.mxu0 }
  0xce   :  { %v492_v47 = vadd.f32 %v5099_v46, %v5795_v42  ;;  %v735_v49 = vmul.f32 0.01, %v481_v44  ;;  %v801_v60 = vmax.f32 %v489_v45, %v737_v52 }
  0xcf   :  { %v483_v48 = vpop.f32.mrf.mxu0 }
  0xd0   :  { %v738_v50 = vmul.f32 0.01, %v492_v47  ;;  %v484_v51 = vadd.f32 %v5795_v42, %v483_v48  ;;  %v799_v57 = vmax.f32 %v481_v44, %v735_v49 }
  0xd1   :  { %v5102_v53 = vpop.f32.mrf.mxu0 }
  0xd2   :  { %v736_v54 = vmul.f32 0.01, %v484_v51  ;;  %v802_v55 = vmax.f32 %v492_v47, %v738_v50  ;;  %v505_v61 = vadd.f32 %v5102_v53, %v5795_v42 }
  0xd3   :  { %v496_v56 = vpop.f32.mrf.mxu0 }
  0xd4   :  { %v497_v58 = vadd.f32 %v5795_v42, %v496_v56  ;;  %v800_v59 = vmax.f32 %v484_v51, %v736_v54  ;;  %v864_v1 = vpack.c.bf16 %v802_v55, %v801_v60  ;;  %v741_v6 = vmul.f32 0.01, %v505_v61 }
  0xd5   :  { %v5103_v62 = vpop.f32.mrf.mxu0 }
  0xd6   :  { %v508_v63 = vadd.f32 %v5103_v62, %v5795_v42  ;;  %v863_v0 = vpack.c.bf16 %v800_v59, %v799_v57  ;;  %v739_v3 = vmul.f32 0.01, %v497_v58  ;;  %v805_v14 = vmax.f32 %v505_v61, %v741_v6 }
  0xd7   :  { %v499_v2 = vpop.f32.mrf.mxu0 }
  0xd8   :  { %v742_v4 = vmul.f32 0.01, %v508_v63  ;;  %v500_v5 = vadd.f32 %v5795_v42, %v499_v2  ;;  %5162 = vmatprep.mubr.msk.bf16.mxu1 %vm910_vm3, %v863_v0  ;;  %v803_v11 = vmax.f32 %v497_v58, %v739_v3 }
  0xd9   :  { %v5106_v7 = vpop.f32.mrf.mxu0  ;;  %5163 = vmatmul.mubr.msk.bf16.vlgmr.msra.gmra.mxu1 %vm910_vm3, %v864_v1 }
  0xda   :  { %v740_v8 = vmul.f32 0.01, %v500_v5  ;;  %5293 = vmatpush3.bf16.msra.mxu1 %v5739_v27  ;;  %v806_v9 = vmax.f32 %v508_v63, %v742_v4  ;;  %v521_v15 = vadd.f32 %v5106_v7, %v5795_v42 }
  0xdb   :  { %v512_v10 = vpop.f32.mrf.mxu0 }
  0xdc   :  { %v804_v12 = vmax.f32 %v500_v5, %v740_v8  ;;  %v513_v13 = vadd.f32 %v5795_v42, %v512_v10  ;;  %v866_v19 = vpack.c.bf16 %v806_v9, %v805_v14  ;;  %v745_v24 = vmul.f32 0.01, %v521_v15 }
  0xdd   :  { %v5107_v16 = vpop.f32.mrf.mxu0 }
  0xde   :  { %v865_v17 = vpack.c.bf16 %v804_v12, %v803_v11  ;;  %v524_v18 = vadd.f32 %v5107_v16, %v5795_v42  ;;  %v743_v21 = vmul.f32 0.01, %v513_v13  ;;  %v809_v32 = vmax.f32 %v521_v15, %v745_v24 }
  0xdf   :  { %v515_v20 = vpop.f32.mrf.mxu0 }
  0xe0   :  { %v746_v22 = vmul.f32 0.01, %v524_v18  ;;  %v516_v23 = vadd.f32 %v5795_v42, %v515_v20  ;;  %5166 = vmatprep.mubr.msk.bf16.mxu1 %vm910_vm3, %v865_v17  ;;  %v807_v29 = vmax.f32 %v513_v13, %v743_v21 }
  0xe1   :  { %v5110_v25 = vpop.f32.mrf.mxu0  ;;  %5167 = vmatmul.mubr.msk.bf16.gmra.mxu1 %vm910_vm3, %v866_v19 }
  0xe2   :  { %v744_v26 = vmul.f32 0.01, %v516_v23  ;;  %v810_v27 = vmax.f32 %v524_v18, %v746_v22  ;;  %v537_v33 = vadd.f32 %v5110_v25, %v5795_v42 }
  0xe3   :  { %v528_v28 = vpop.f32.mrf.mxu0 }
  0xe4   :  { %v808_v30 = vmax.f32 %v516_v23, %v744_v26  ;;  %v529_v31 = vadd.f32 %v5795_v42, %v528_v28  ;;  %v868_v37 = vpack.c.bf16 %v810_v27, %v809_v32  ;;  %v749_v43 = vmul.f32 0.01, %v537_v33 }
  0xe5   :  { %v5111_v34 = vpop.f32.mrf.mxu0 }
  0xe6   :  { %v867_v35 = vpack.c.bf16 %v808_v30, %v807_v29  ;;  %v540_v36 = vadd.f32 %v5111_v34, %v5795_v42  ;;  %v747_v39 = vmul.f32 0.01, %v529_v31  ;;  %v813_v51 = vmax.f32 %v537_v33, %v749_v43 }
  0xe7   :  { %v531_v38 = vpop.f32.mrf.mxu0 }
  0xe8   :  { %v750_v40 = vmul.f32 0.01, %v540_v36  ;;  %v532_v41 = vadd.f32 %v5795_v42, %v531_v38  ;;  %5170 = vmatprep.mubr.msk.bf16.mxu1 %vm910_vm3, %v867_v35  ;;  %v811_v48 = vmax.f32 %v529_v31, %v747_v39 }
  0xe9   :  { %v5114_v44 = vpop.f32.mrf.mxu0  ;;  %5171 = vmatmul.mubr.msk.bf16.gmra.mxu1 %vm910_vm3, %v868_v37 }
  0xea   :  { %v748_v45 = vmul.f32 0.01, %v532_v41  ;;  %v814_v46 = vmax.f32 %v540_v36, %v750_v40  ;;  %v553_v52 = vadd.f32 %v5114_v44, %v5795_v42 }
  0xeb   :  { %v544_v47 = vpop.f32.mrf.mxu0 }
  0xec   :  { %v812_v49 = vmax.f32 %v532_v41, %v748_v45  ;;  %v545_v50 = vadd.f32 %v5795_v42, %v544_v47  ;;  %v870_v56 = vpack.c.bf16 %v814_v46, %v813_v51  ;;  %v753_v61 = vmul.f32 0.01, %v553_v52 }
  0xed   :  { %v5115_v53 = vpop.f32.mrf.mxu0 }
  0xee   :  { %v869_v54 = vpack.c.bf16 %v812_v49, %v811_v48  ;;  %v556_v55 = vadd.f32 %v5115_v53, %v5795_v42  ;;  %v751_v58 = vmul.f32 0.01, %v545_v50  ;;  %v817_v5 = vmax.f32 %v553_v52, %v753_v61 }
  0xef   :  { %v547_v57 = vpop.f32.mrf.mxu0 }
  0xf0   :  { %v754_v59 = vmul.f32 0.01, %v556_v55  ;;  %v548_v60 = vadd.f32 %v5795_v42, %v547_v57  ;;  %5174 = vmatprep.mubr.msk.bf16.mxu1 %vm910_vm3, %v869_v54  ;;  %v815_v2 = vmax.f32 %v545_v50, %v751_v58 }
  0xf1   :  { %v5118_v62 = vpop.f32.mrf.mxu0  ;;  %5175 = vmatmul.mubr.msk.bf16.gmra.mxu1 %vm910_vm3, %v870_v56 }
  0xf2   :  { %v752_v63 = vmul.f32 0.01, %v548_v60  ;;  %v818_v0 = vmax.f32 %v556_v55, %v754_v59  ;;  %v569_v6 = vadd.f32 %v5118_v62, %v5795_v42 }
  0xf3   :  { %v560_v1 = vpop.f32.mrf.mxu0 }
  0xf4   :  { %v816_v3 = vmax.f32 %v548_v60, %v752_v63  ;;  %v561_v4 = vadd.f32 %v5795_v42, %v560_v1  ;;  %v872_v10 = vpack.c.bf16 %v818_v0, %v817_v5  ;;  %v757_v15 = vmul.f32 0.01, %v569_v6 }
  0xf5   :  { %v5119_v7 = vpop.f32.mrf.mxu0 }
  0xf6   :  { %v871_v8 = vpack.c.bf16 %v816_v3, %v815_v2  ;;  %v572_v9 = vadd.f32 %v5119_v7, %v5795_v42  ;;  %v755_v12 = vmul.f32 0.01, %v561_v4  ;;  %v821_v23 = vmax.f32 %v569_v6, %v757_v15 }
  0xf7   :  { %v563_v11 = vpop.f32.mrf.mxu0 }
  0xf8   :  { %v758_v13 = vmul.f32 0.01, %v572_v9  ;;  %v564_v14 = vadd.f32 %v5795_v42, %v563_v11  ;;  %5178 = vmatprep.mubr.msk.bf16.mxu1 %vm910_vm3, %v871_v8  ;;  %v819_v20 = vmax.f32 %v561_v4, %v755_v12 }
  0xf9   :  { %v5122_v16 = vpop.f32.mrf.mxu0  ;;  %5179 = vmatmul.mubr.msk.bf16.gmra.mxu1 %vm910_vm3, %v872_v10 }
  0xfa   :  { %v756_v17 = vmul.f32 0.01, %v564_v14  ;;  %v822_v18 = vmax.f32 %v572_v9, %v758_v13  ;;  %v585_v24 = vadd.f32 %v5122_v16, %v5795_v42 }
  0xfb   :  { %v576_v19 = vpop.f32.mrf.mxu0 }
  0xfc   :  { %v820_v21 = vmax.f32 %v564_v14, %v756_v17  ;;  %v577_v22 = vadd.f32 %v5795_v42, %v576_v19  ;;  %v874_v28 = vpack.c.bf16 %v822_v18, %v821_v23  ;;  %v761_v33 = vmul.f32 0.01, %v585_v24 }
  0xfd   :  { %v5123_v25 = vpop.f32.mrf.mxu0 }
  0xfe   :  { %v873_v26 = vpack.c.bf16 %v820_v21, %v819_v20  ;;  %v588_v27 = vadd.f32 %v5123_v25, %v5795_v42  ;;  %v759_v30 = vmul.f32 0.01, %v577_v22  ;;  %v825_v41 = vmax.f32 %v585_v24, %v761_v33 }
  0xff   :  { %v579_v29 = vpop.f32.mrf.mxu0 }
 0x100   :  { %v762_v31 = vmul.f32 0.01, %v588_v27  ;;  %v580_v32 = vadd.f32 %v5795_v42, %v579_v29  ;;  %5182 = vmatprep.mubr.msk.bf16.mxu1 %vm910_vm3, %v873_v26  ;;  %v823_v38 = vmax.f32 %v577_v22, %v759_v30 }
 0x101   :  { %v5126_v34 = vpop.f32.mrf.mxu0  ;;  %5183 = vmatmul.mubr.msk.bf16.gmra.mxu1 %vm910_vm3, %v874_v28 }
 0x102   :  { %v760_v35 = vmul.f32 0.01, %v580_v32  ;;  %v826_v36 = vmax.f32 %v588_v27, %v762_v31  ;;  %v601_v43 = vadd.f32 %v5126_v34, %v5795_v42 }
 0x103   :  { %v592_v37 = vpop.f32.mrf.mxu0 }
 0x104   :  { %v824_v39 = vmax.f32 %v580_v32, %v760_v35  ;;  %v593_v40 = vadd.f32 %v5795_v42, %v592_v37  ;;  %v876_v47 = vpack.c.bf16 %v826_v36, %v825_v41  ;;  %v765_v52 = vmul.f32 0.01, %v601_v43 }
 0x105   :  { %v5127_v44 = vpop.f32.mrf.mxu0 }
 0x106   :  { %v875_v45 = vpack.c.bf16 %v824_v39, %v823_v38  ;;  %v604_v46 = vadd.f32 %v5127_v44, %v5795_v42  ;;  %v763_v49 = vmul.f32 0.01, %v593_v40  ;;  %v829_v60 = vmax.f32 %v601_v43, %v765_v52 }
 0x107   :  { %v595_v48 = vpop.f32.mrf.mxu0 }
 0x108   :  { %v766_v50 = vmul.f32 0.01, %v604_v46  ;;  %v596_v51 = vadd.f32 %v5795_v42, %v595_v48  ;;  %5186 = vmatprep.mubr.msk.bf16.mxu1 %vm910_vm3, %v875_v45  ;;  %v827_v57 = vmax.f32 %v593_v40, %v763_v49 }
 0x109   :  { %v5130_v53 = vpop.f32.mrf.mxu0  ;;  %5187 = vmatmul.mubr.msk.bf16.gmra.mxu1 %vm910_vm3, %v876_v47 }
 0x10a   :  { %v764_v54 = vmul.f32 0.01, %v596_v51  ;;  %v830_v55 = vmax.f32 %v604_v46, %v766_v50  ;;  %v617_v61 = vadd.f32 %v5130_v53, %v5795_v42 }
 0x10b   :  { %v608_v56 = vpop.f32.mrf.mxu0 }
 0x10c   :  { %v828_v58 = vmax.f32 %v596_v51, %v764_v54  ;;  %v609_v59 = vadd.f32 %v5795_v42, %v608_v56  ;;  %v878_v1 = vpack.c.bf16 %v830_v55, %v829_v60  ;;  %v769_v6 = vmul.f32 0.01, %v617_v61 }
 0x10d   :  { %v5131_v62 = vpop.f32.mrf.mxu0 }
 0x10e   :  { %v877_v63 = vpack.c.bf16 %v828_v58, %v827_v57  ;;  %v620_v0 = vadd.f32 %v5131_v62, %v5795_v42  ;;  %v767_v3 = vmul.f32 0.01, %v609_v59  ;;  %v833_v14 = vmax.f32 %v617_v61, %v769_v6 }
 0x10f   :  { %v611_v2 = vpop.f32.mrf.mxu0 }
 0x110   :  { %v770_v4 = vmul.f32 0.01, %v620_v0  ;;  %v612_v5 = vadd.f32 %v5795_v42, %v611_v2  ;;  %5190 = vmatprep.mubr.msk.bf16.mxu1 %vm910_vm3, %v877_v63  ;;  %v831_v11 = vmax.f32 %v609_v59, %v767_v3 }
 0x111   :  { %v5134_v7 = vpop.f32.mrf.mxu0  ;;  %5191 = vmatmul.mubr.msk.bf16.gmra.mxu1 %vm910_vm3, %v878_v1 }
 0x112   :  { %v768_v8 = vmul.f32 0.01, %v612_v5  ;;  %v834_v9 = vmax.f32 %v620_v0, %v770_v4  ;;  %v633_v15 = vadd.f32 %v5134_v7, %v5795_v42 }
 0x113   :  { %v624_v10 = vpop.f32.mrf.mxu0 }
 0x114   :  { %v832_v12 = vmax.f32 %v612_v5, %v768_v8  ;;  %v625_v13 = vadd.f32 %v5795_v42, %v624_v10  ;;  %v880_v19 = vpack.c.bf16 %v834_v9, %v833_v14  ;;  %v773_v24 = vmul.f32 0.01, %v633_v15 }
 0x115   :  { %v5135_v16 = vpop.f32.mrf.mxu0 }
 0x116   :  { %v879_v17 = vpack.c.bf16 %v832_v12, %v831_v11  ;;  %v636_v18 = vadd.f32 %v5135_v16, %v5795_v42  ;;  %v771_v21 = vmul.f32 0.01, %v625_v13  ;;  %v837_v32 = vmax.f32 %v633_v15, %v773_v24  ;;  %v5874_v12 = vld [vmem:[%s6959_s9 + $0x8] sm:$0xff]  }
 0x117   :  { %v627_v20 = vpop.f32.mrf.mxu0  ;;  %5358 = vmatprep.subr.bf16.mxu0 %v5874_v12 }
 0x118   :  { %v774_v22 = vmul.f32 0.01, %v636_v18  ;;  %v628_v23 = vadd.f32 %v5795_v42, %v627_v20  ;;  %5194 = vmatprep.mubr.msk.bf16.mxu1 %vm910_vm3, %v879_v17  ;;  %v835_v29 = vmax.f32 %v625_v13, %v771_v21 }
 0x119   :  { %v5138_v25 = vpop.f32.mrf.mxu0  ;;  %5195 = vmatmul.mubr.msk.bf16.gmra.mxu1 %vm910_vm3, %v880_v19 }
 0x11a   :  { %v772_v26 = vmul.f32 0.01, %v628_v23  ;;  %v838_v27 = vmax.f32 %v636_v18, %v774_v22  ;;  %v649_v33 = vadd.f32 %v5138_v25, %v5795_v42 }
 0x11b   :  { %v640_v28 = vpop.f32.mrf.mxu0 }
 0x11c   :  { %v836_v30 = vmax.f32 %v628_v23, %v772_v26  ;;  %v641_v31 = vadd.f32 %v5795_v42, %v640_v28  ;;  %v882_v37 = vpack.c.bf16 %v838_v27, %v837_v32  ;;  %v777_v43 = vmul.f32 0.01, %v649_v33 }
 0x11d   :  { %v5139_v34 = vpop.f32.mrf.mxu0 }
 0x11e   :  { %v881_v35 = vpack.c.bf16 %v836_v30, %v835_v29  ;;  %v652_v36 = vadd.f32 %v5139_v34, %v5795_v42  ;;  %v775_v39 = vmul.f32 0.01, %v641_v31  ;;  %v841_v51 = vmax.f32 %v649_v33, %v777_v43 }
 0x11f   :  { %v643_v38 = vpop.f32.mrf.mxu0 }
 0x120   :  { %v778_v40 = vmul.f32 0.01, %v652_v36  ;;  %v644_v41 = vadd.f32 %v5795_v42, %v643_v38  ;;  %5198 = vmatprep.mubr.msk.bf16.mxu1 %vm910_vm3, %v881_v35  ;;  %v839_v48 = vmax.f32 %v641_v31, %v775_v39 }
 0x121   :  { %v5142_v44 = vpop.f32.mrf.mxu0  ;;  %5199 = vmatmul.mubr.msk.bf16.gmra.mxu1 %vm910_vm3, %v882_v37 }
 0x122   :  { %v776_v45 = vmul.f32 0.01, %v644_v41  ;;  %v842_v46 = vmax.f32 %v652_v36, %v778_v40  ;;  %v665_v52 = vadd.f32 %v5142_v44, %v5795_v42 }
 0x123   :  { %v656_v47 = vpop.f32.mrf.mxu0 }
 0x124   :  { %v840_v49 = vmax.f32 %v644_v41, %v776_v45  ;;  %v657_v50 = vadd.f32 %v5795_v42, %v656_v47  ;;  %v884_v56 = vpack.c.bf16 %v842_v46, %v841_v51  ;;  %v781_v61 = vmul.f32 0.01, %v665_v52 }
 0x125   :  { %v5143_v53 = vpop.f32.mrf.mxu0 }
 0x126   :  { %v883_v54 = vpack.c.bf16 %v840_v49, %v839_v48  ;;  %v668_v55 = vadd.f32 %v5143_v53, %v5795_v42  ;;  %v779_v58 = vmul.f32 0.01, %v657_v50  ;;  %v845_v5 = vmax.f32 %v665_v52, %v781_v61 }
 0x127   :  { %v659_v57 = vpop.f32.mrf.mxu0 }
 0x128   :  { %v782_v59 = vmul.f32 0.01, %v668_v55  ;;  %v660_v60 = vadd.f32 %v5795_v42, %v659_v57  ;;  %5202 = vmatprep.mubr.msk.bf16.mxu1 %vm910_vm3, %v883_v54  ;;  %v843_v2 = vmax.f32 %v657_v50, %v779_v58 }
 0x129   :  { %v5146_v62 = vpop.f32.mrf.mxu0  ;;  %5203 = vmatmul.mubr.msk.bf16.gmra.mxu1 %vm910_vm3, %v884_v56 }
 0x12a   :  { %v780_v63 = vmul.f32 0.01, %v660_v60  ;;  %v846_v0 = vmax.f32 %v668_v55, %v782_v59  ;;  %v681_v6 = vadd.f32 %v5146_v62, %v5795_v42 }
 0x12b   :  { %v672_v1 = vpop.f32.mrf.mxu0 }
 0x12c   :  { %v844_v3 = vmax.f32 %v660_v60, %v780_v63  ;;  %v673_v4 = vadd.f32 %v5795_v42, %v672_v1  ;;  %v886_v10 = vpack.c.bf16 %v846_v0, %v845_v5  ;;  %v785_v16 = vmul.f32 0.01, %v681_v6 }
 0x12d   :  { %v5147_v7 = vpop.f32.mrf.mxu0 }
 0x12e   :  { %v885_v8 = vpack.c.bf16 %v844_v3, %v843_v2  ;;  %v684_v9 = vadd.f32 %v5147_v7, %v5795_v42  ;;  %v783_v13 = vmul.f32 0.01, %v673_v4  ;;  %v849_v24 = vmax.f32 %v681_v6, %v785_v16 }
 0x12f   :  { %v675_v11 = vpop.f32.mrf.mxu0 }
 0x130   :  { %v786_v14 = vmul.f32 0.01, %v684_v9  ;;  %v676_v15 = vadd.f32 %v5795_v42, %v675_v11  ;;  %5206 = vmatprep.mubr.msk.bf16.mxu1 %vm910_vm3, %v885_v8  ;;  %v847_v21 = vmax.f32 %v673_v4, %v783_v13 }
 0x131   :  { %v5150_v17 = vpop.f32.mrf.mxu0  ;;  %5207 = vmatmul.mubr.msk.bf16.gmra.mxu1 %vm910_vm3, %v886_v10 }
 0x132   :  { %v784_v18 = vmul.f32 0.01, %v676_v15  ;;  %v850_v19 = vmax.f32 %v684_v9, %v786_v14  ;;  %v697_v25 = vadd.f32 %v5150_v17, %v5795_v42  ;;  %v5542_v17 = vld [vmem:[%s6954_s0 + $0x110] sm:$0xff]  }
 0x133   :  { %v688_v20 = vpop.f32.mrf.mxu0 }
 0x134   :  { %v848_v22 = vmax.f32 %v676_v15, %v784_v18  ;;  %v689_v23 = vadd.f32 %v5795_v42, %v688_v20  ;;  %v888_v29 = vpack.c.bf16 %v850_v19, %v849_v24  ;;  %v789_v34 = vmul.f32 0.01, %v697_v25  ;;  %v5540_v15 = vld [vmem:[%s6954_s0 + $0x100] sm:$0xff]   ;;  %v5543_v18 = vld [vmem:[%s6954_s0 + $0x118] sm:$0xff]   ;;  %v5545_v20 = vld [vmem:[%s6954_s0 + $0x128] sm:$0xff]  }
 0x135   :  { %v5151_v26 = vpop.f32.mrf.mxu0  ;;  %v5544_v19 = vld [vmem:[%s6954_s0 + $0x120] sm:$0xff]   ;;  %v5549_v24 = vld [vmem:[%s6954_s0 + $0x148] sm:$0xff]  }
 0x136   :  { %v887_v27 = vpack.c.bf16 %v848_v22, %v847_v21  ;;  %v700_v28 = vadd.f32 %v5151_v26, %v5795_v42  ;;  %v787_v31 = vmul.f32 0.01, %v689_v23  ;;  %v853_v43 = vmax.f32 %v697_v25, %v789_v34  ;;  %v5546_v21 = vld [vmem:[%s6954_s0 + $0x130] sm:$0xff]   ;;  %v5547_v22 = vld [vmem:[%s6954_s0 + $0x138] sm:$0xff]  }
 0x137   :  { %v691_v30 = vpop.f32.mrf.mxu0  ;;  %v5550_v25 = vld [vmem:[%s6954_s0 + $0x150] sm:$0xff]   ;;  %v5551_v26 = vld [vmem:[%s6954_s0 + $0x158] sm:$0xff]  }
 0x138   :  { %v790_v32 = vmul.f32 0.01, %v700_v28  ;;  %v692_v33 = vadd.f32 %v5795_v42, %v691_v30  ;;  %5210 = vmatprep.mubr.msk.bf16.mxu1 %vm910_vm3, %v887_v27  ;;  %v851_v39 = vmax.f32 %v689_v23, %v787_v31  ;;  %v5548_v23 = vld [vmem:[%s6954_s0 + $0x140] sm:$0xff]   ;;  %v5555_v30 = vld [vmem:[%s6954_s0 + $0x178] sm:$0xff]  }
 0x139   :  { %v5154_v35 = vpop.f32.mrf.mxu0  ;;  %5211 = vmatmul.mubr.msk.bf16.gmra.mxu1 %vm910_vm3, %v888_v29  ;;  %v5552_v27 = vld [vmem:[%s6954_s0 + $0x160] sm:$0xff]   ;;  %v5554_v29 = vld [vmem:[%s6954_s0 + $0x170] sm:$0xff]  }
 0x13a   :  { %v788_v36 = vmul.f32 0.01, %v692_v33  ;;  %v854_v37 = vmax.f32 %v700_v28, %v790_v32  ;;  %v713_v44 = vadd.f32 %v5154_v35, %v5795_v42  ;;  %v5553_v28 = vld [vmem:[%s6954_s0 + $0x168] sm:$0xff]   ;;  %v5556_v31 = vld [vmem:[%s6954_s0 + $0x180] sm:$0xff]  }
 0x13b   :  { %v704_v38 = vpop.f32.mrf.mxu0  ;;  %v5557_v32 = vld [vmem:[%s6954_s0 + $0x188] sm:$0xff]   ;;  %v5978_v35 = vld [vmem:[%s6960_s4] ss:$0 sm:$0xff] }
 0x13c   :  { %v852_v40 = vmax.f32 %v692_v33, %v788_v36  ;;  %v705_v41 = vadd.f32 %v5795_v42, %v704_v38  ;;  %v890_v48 = vpack.c.bf16 %v854_v37, %v853_v43  ;;  %v793_v53 = vmul.f32 0.01, %v713_v44  ;;  %v5558_v33 = vld [vmem:[%s6954_s0 + $0x190] sm:$0xff]   ;;  %v5560_v43 = vld [vmem:[%s6954_s0 + $0x1a0] sm:$0xff]  }
 0x13d   :  { %v5155_v45 = vpop.f32.mrf.mxu0 }
 0x13e   :  { %v889_v46 = vpack.c.bf16 %v852_v40, %v851_v39  ;;  %v716_v47 = vadd.f32 %v5155_v45, %v5795_v42  ;;  %v791_v50 = vmul.f32 0.01, %v705_v41  ;;  %v857_v61 = vmax.f32 %v713_v44, %v793_v53  ;;  %v5559_v40 = vld [vmem:[%s6954_s0 + $0x198] sm:$0xff]  }
 0x13f   :  { %v707_v49 = vpop.f32.mrf.mxu0 }
 0x140   :  { %v794_v51 = vmul.f32 0.01, %v716_v47  ;;  %v708_v52 = vadd.f32 %v5795_v42, %v707_v49  ;;  %5214 = vmatprep.mubr.msk.bf16.mxu1 %vm910_vm3, %v889_v46  ;;  %v855_v58 = vmax.f32 %v705_v41, %v791_v50 }
 0x141   :  { %v5158_v54 = vpop.f32.mrf.mxu0  ;;  %5215 = vmatmul.mubr.msk.bf16.gmra.mxu1 %vm910_vm3, %v890_v48 }
 0x142   :  { %v792_v55 = vmul.f32 0.01, %v708_v52  ;;  %v858_v56 = vmax.f32 %v716_v47, %v794_v51  ;;  %v729_v62 = vadd.f32 %v5158_v54, %v5795_v42 }
 0x143   :  { %v720_v57 = vpop.f32.mrf.mxu0 }
 0x144   :  { %v856_v59 = vmax.f32 %v708_v52, %v792_v55  ;;  %v721_v60 = vadd.f32 %v5795_v42, %v720_v57  ;;  %v892_v2 = vpack.c.bf16 %v858_v56, %v857_v61  ;;  %v797_v7 = vmul.f32 0.01, %v729_v62 }
 0x145   :  { %v5159_v63 = vpop.f32.mrf.mxu0 }
 0x146   :  { %v891_v0 = vpack.c.bf16 %v856_v59, %v855_v58  ;;  %v732_v1 = vadd.f32 %v5159_v63, %v5795_v42  ;;  %v795_v4 = vmul.f32 0.01, %v721_v60  ;;  %v861_v13 = vmax.f32 %v729_v62, %v797_v7  ;;  %v5562_v59 = vld [vmem:[%s6954_s0 + $0x1a8] sm:$0xff]   ;;  %v5563_v62 = vld [vmem:[%s6954_s0 + $0x1b0] sm:$0xff]  }
 0x147   :  { %v723_v3 = vpop.f32.mrf.mxu0 }
 0x148   :  { %v798_v5 = vmul.f32 0.01, %v732_v1  ;;  %v724_v6 = vadd.f32 %v5795_v42, %v723_v3  ;;  %5218 = vmatprep.mubr.msk.bf16.mxu1 %vm910_vm3, %v891_v0  ;;  %v859_v10 = vmax.f32 %v721_v60, %v795_v4  ;;  %v5541_v42 = vld [vmem:[%s6954_s0 + $0x108] sm:$0xff]  }
 0x149   :  { %5219 = vmatmul.mubr.msk.bf16.gmra.mxu1 %vm910_vm3, %v892_v2 }
 0x14a   :  { %v796_v8 = vmul.f32 0.01, %v724_v6  ;;  %v862_v9 = vmax.f32 %v732_v1, %v798_v5  ;;  %v5573_v1 = vld [vmem:[%s6959_s9] sm:$0xff]  }
 0x14c   :  { %v860_v11 = vmax.f32 %v724_v6, %v796_v8  ;;  %v894_v16 = vpack.c.bf16 %v862_v9, %v861_v13 }
 0x14e   :  { %v893_v14 = vpack.c.bf16 %v860_v11, %v859_v10 }
 0x150   :  { %5222 = vmatprep.mubr.msk.bf16.mxu1 %vm910_vm3, %v893_v14 }
 0x151   :  { %5223 = vmatmul.mubr.msk.bf16.gmra.mxu1 %vm910_vm3, %v894_v16 }
 0x152   :  { %5294 = vmatprep.mubr.msk.bf16.mxu1 %vm342_vm2, %v5540_v15 }
 0x159   :  { %5295 = vmatmul.mubr.msk.bf16.vlgmr.msra.gmra.mxu1 %vm342_vm2, %v5541_v42  ;;  %v5564_v42 = vld [vmem:[%s6954_s0 + $0x1b8] sm:$0xff]  }
 0x15a   :  { %5298 = vmatprep.mubr.msk.bf16.mxu1 %vm342_vm2, %v5542_v17 }
 0x161   :  { %5299 = vmatmul.mubr.msk.bf16.gmra.mxu1 %vm342_vm2, %v5543_v18  ;;  %v5565_v18 = vld [vmem:[%s6954_s0 + $0x1c0] sm:$0xff]  }
 0x162   :  { %5302 = vmatprep.mubr.msk.bf16.mxu1 %vm342_vm2, %v5544_v19 }
 0x169   :  { %5303 = vmatmul.mubr.msk.bf16.gmra.mxu1 %vm342_vm2, %v5545_v20 }
 0x16a   :  { %5306 = vmatprep.mubr.msk.bf16.mxu1 %vm342_vm2, %v5546_v21 }
 0x171   :  { %5307 = vmatmul.mubr.msk.bf16.gmra.mxu1 %vm342_vm2, %v5547_v22 }
 0x172   :  { %5310 = vmatprep.mubr.msk.bf16.mxu1 %vm342_vm2, %v5548_v23 }
 0x179   :  { %5311 = vmatmul.mubr.msk.bf16.gmra.mxu1 %vm342_vm2, %v5549_v24 }
 0x17a   :  { %5314 = vmatprep.mubr.msk.bf16.mxu1 %vm342_vm2, %v5550_v25 }
 0x181   :  { %5315 = vmatmul.mubr.msk.bf16.gmra.mxu1 %vm342_vm2, %v5551_v26 }
 0x182   :  { %5318 = vmatprep.mubr.msk.bf16.mxu1 %vm342_vm2, %v5552_v27 }
 0x189   :  { %5319 = vmatmul.mubr.msk.bf16.gmra.mxu1 %vm342_vm2, %v5553_v28 }
 0x18a   :  { %5322 = vmatprep.mubr.msk.bf16.mxu1 %vm342_vm2, %v5554_v29 }
 0x191   :  { %5323 = vmatmul.mubr.msk.bf16.gmra.mxu1 %vm342_vm2, %v5555_v30 }
 0x192   :  { %5326 = vmatprep.mubr.msk.bf16.mxu1 %vm342_vm2, %v5556_v31 }
 0x199   :  { %v5164_v34 = vpop.f32.mrf.mxu1  ;;  %5327 = vmatmul.mubr.msk.bf16.gmra.mxu1 %vm342_vm2, %v5557_v32 }
 0x19a   :  { %5330 = vmatprep.mubr.msk.bf16.mxu1 %vm342_vm2, %v5558_v33  ;;  %v1050_v38 = vadd.f32 %v5164_v34, %v5978_v35 }
 0x19b   :  { %v1041_v36 = vpop.f32.mrf.mxu1 }
 0x19c   :  { %v1042_v37 = vadd.f32 %v5978_v35, %v1041_v36  ;;  %v1298_v48 = vmul.f32 0.01, %v1050_v38  ;;  %v5566_v36 = vld [vmem:[%s6954_s0 + $0x1c8] sm:$0xff]  }
 0x19d   :  { %v5165_v39 = vpop.f32.mrf.mxu1 }
 0x19e   :  { %v1053_v41 = vadd.f32 %v5165_v39, %v5978_v35  ;;  %v1296_v45 = vmul.f32 0.01, %v1042_v37  ;;  %v1362_v56 = vmax.f32 %v1050_v38, %v1298_v48  ;;  %v5567_v39 = vld [vmem:[%s6954_s0 + $0x1d0] sm:$0xff]  }
 0x19f   :  { %v1044_v44 = vpop.f32.mrf.mxu1 }
 0x1a0   :  { %v1299_v46 = vmul.f32 0.01, %v1053_v41  ;;  %v1045_v47 = vadd.f32 %v5978_v35, %v1044_v44  ;;  %v1360_v53 = vmax.f32 %v1042_v37, %v1296_v45 }
 0x1a1   :  { %v5168_v49 = vpop.f32.mrf.mxu1  ;;  %5331 = vmatmul.mubr.msk.bf16.gmra.mxu1 %vm342_vm2, %v5559_v40 }
 0x1a2   :  { %v1297_v50 = vmul.f32 0.01, %v1045_v47  ;;  %5334 = vmatprep.mubr.msk.bf16.mxu1 %vm342_vm2, %v5560_v43  ;;  %v1363_v51 = vmax.f32 %v1053_v41, %v1299_v46  ;;  %v1066_v57 = vadd.f32 %v5168_v49, %v5978_v35 }
 0x1a3   :  { %v1057_v52 = vpop.f32.mrf.mxu1 }
 0x1a4   :  { %v1361_v54 = vmax.f32 %v1045_v47, %v1297_v50  ;;  %v1058_v55 = vadd.f32 %v5978_v35, %v1057_v52  ;;  %v1425_v63 = vpack.c.bf16 %v1363_v51, %v1362_v56  ;;  %v1302_v5 = vmul.f32 0.01, %v1066_v57 }
 0x1a5   :  { %v5169_v58 = vpop.f32.mrf.mxu1 }
 0x1a6   :  { %v1424_v60 = vpack.c.bf16 %v1361_v54, %v1360_v53  ;;  %v1069_v61 = vadd.f32 %v5169_v58, %v5978_v35  ;;  %v1300_v2 = vmul.f32 0.01, %v1058_v55  ;;  %v1366_v14 = vmax.f32 %v1066_v57, %v1302_v5  ;;  %v5568_v57 = vld [vmem:[%s6954_s0 + $0x1d8] sm:$0xff]  }
 0x1a7   :  { %v1060_v0 = vpop.f32.mrf.mxu1 }
 0x1a8   :  { %v1303_v3 = vmul.f32 0.01, %v1069_v61  ;;  %v1061_v4 = vadd.f32 %v5978_v35, %v1060_v0  ;;  %5228 = vmatprep.mubr.msk.bf16.mxu0 %vm910_vm3, %v1424_v60  ;;  %v1364_v10 = vmax.f32 %v1058_v55, %v1300_v2  ;;  %v5569_v60 = vld [vmem:[%s6954_s0 + $0x1e0] sm:$0xff]  }
 0x1a9   :  { %v5172_v6 = vpop.f32.mrf.mxu1  ;;  %5229 = vmatmul.mubr.msk.bf16.vlgmr.msra.gmra.mxu0 %vm910_vm3, %v1425_v63  ;;  %5335 = vmatmul.mubr.msk.bf16.gmra.mxu1 %vm342_vm2, %v5562_v59 }
 0x1aa   :  { %v1301_v7 = vmul.f32 0.01, %v1061_v4  ;;  %5359 = vmatpush3.bf16.msra.mxu0 %v5874_v12  ;;  %5338 = vmatprep.mubr.msk.bf16.mxu1 %vm342_vm2, %v5563_v62  ;;  %v1367_v8 = vmax.f32 %v1069_v61, %v1303_v3  ;;  %v1082_v15 = vadd.f32 %v5172_v6, %v5978_v35 }
 0x1ab   :  { %v1073_v9 = vpop.f32.mrf.mxu1  ;;  %5360 = vmatprep.subr.bf16.mxu0 %v5573_v1 }
 0x1ac   :  { %v1365_v11 = vmax.f32 %v1061_v4, %v1301_v7  ;;  %v1074_v13 = vadd.f32 %v5978_v35, %v1073_v9  ;;  %v1427_v19 = vpack.c.bf16 %v1367_v8, %v1366_v14  ;;  %v1306_v24 = vmul.f32 0.01, %v1082_v15  ;;  %v5570_v14 = vld [vmem:[%s6954_s0 + $0x1e8] sm:$0xff]  }
 0x1ad   :  { %v5173_v16 = vpop.f32.mrf.mxu1 }
 0x1ae   :  { %v1426_v17 = vpack.c.bf16 %v1365_v11, %v1364_v10  ;;  %v1085_v12 = vadd.f32 %v5173_v16, %v5978_v35  ;;  %5361 = vmatpush3.bf16.msra.mxu0 %v5573_v1  ;;  %v1304_v21 = vmul.f32 0.01, %v1074_v13  ;;  %v1370_v32 = vmax.f32 %v1082_v15, %v1306_v24 }
 0x1af   :  { %v1076_v20 = vpop.f32.mrf.mxu1 }
 0x1b0   :  { %v1307_v22 = vmul.f32 0.01, %v1085_v12  ;;  %v1077_v23 = vadd.f32 %v5978_v35, %v1076_v20  ;;  %5232 = vmatprep.mubr.msk.bf16.mxu0 %vm910_vm3, %v1426_v17  ;;  %v1368_v29 = vmax.f32 %v1074_v13, %v1304_v21 }
 0x1b1   :  { %v5176_v25 = vpop.f32.mrf.mxu1  ;;  %5233 = vmatmul.mubr.msk.bf16.gmra.mxu0 %vm910_vm3, %v1427_v19  ;;  %5339 = vmatmul.mubr.msk.bf16.gmra.mxu1 %vm342_vm2, %v5564_v42  ;;  %v5571_v42 = vld [vmem:[%s6954_s0 + $0x1f0] sm:$0xff]  }
 0x1b2   :  { %v1305_v26 = vmul.f32 0.01, %v1077_v23  ;;  %5342 = vmatprep.mubr.msk.bf16.mxu1 %vm342_vm2, %v5565_v18  ;;  %v1371_v27 = vmax.f32 %v1085_v12, %v1307_v22  ;;  %v1098_v33 = vadd.f32 %v5176_v25, %v5978_v35 }
 0x1b3   :  { %v1089_v28 = vpop.f32.mrf.mxu1 }
 0x1b4   :  { %v1369_v30 = vmax.f32 %v1077_v23, %v1305_v26  ;;  %v1090_v31 = vadd.f32 %v5978_v35, %v1089_v28  ;;  %v1429_v40 = vpack.c.bf16 %v1371_v27, %v1370_v32  ;;  %v1310_v46 = vmul.f32 0.01, %v1098_v33  ;;  %v5572_v32 = vld [vmem:[%s6954_s0 + $0x1f8] sm:$0xff]  }
 0x1b5   :  { %v5177_v34 = vpop.f32.mrf.mxu1 }
 0x1b6   :  { %v1428_v37 = vpack.c.bf16 %v1369_v30, %v1368_v29  ;;  %v1101_v38 = vadd.f32 %v5177_v34, %v5978_v35  ;;  %v1308_v43 = vmul.f32 0.01, %v1090_v31  ;;  %v1374_v54 = vmax.f32 %v1098_v33, %v1310_v46 }
 0x1b7   :  { %v1092_v41 = vpop.f32.mrf.mxu1 }
 0x1b8   :  { %v1311_v44 = vmul.f32 0.01, %v1101_v38  ;;  %v1093_v45 = vadd.f32 %v5978_v35, %v1092_v41  ;;  %5236 = vmatprep.mubr.msk.bf16.mxu0 %vm910_vm3, %v1428_v37  ;;  %v1372_v51 = vmax.f32 %v1090_v31, %v1308_v43 }
 0x1b9   :  { %v5180_v47 = vpop.f32.mrf.mxu1  ;;  %5237 = vmatmul.mubr.msk.bf16.gmra.mxu0 %vm910_vm3, %v1429_v40  ;;  %5343 = vmatmul.mubr.msk.bf16.gmra.mxu1 %vm342_vm2, %v5566_v36 }
 0x1ba   :  { %v1309_v48 = vmul.f32 0.01, %v1093_v45  ;;  %5346 = vmatprep.mubr.msk.bf16.mxu1 %vm342_vm2, %v5567_v39  ;;  %v1375_v49 = vmax.f32 %v1101_v38, %v1311_v44  ;;  %v1114_v55 = vadd.f32 %v5180_v47, %v5978_v35 }
 0x1bb   :  { %v1105_v50 = vpop.f32.mrf.mxu1 }
 0x1bc   :  { %v1373_v52 = vmax.f32 %v1093_v45, %v1309_v48  ;;  %v1106_v53 = vadd.f32 %v5978_v35, %v1105_v50  ;;  %v1431_v61 = vpack.c.bf16 %v1375_v49, %v1374_v54  ;;  %v1314_v2 = vmul.f32 0.01, %v1114_v55 }
 0x1bd   :  { %v5181_v56 = vpop.f32.mrf.mxu1 }
 0x1be   :  { %v1430_v58 = vpack.c.bf16 %v1373_v52, %v1372_v51  ;;  %v1117_v59 = vadd.f32 %v5181_v56, %v5978_v35  ;;  %v1312_v63 = vmul.f32 0.01, %v1106_v53  ;;  %v1378_v10 = vmax.f32 %v1114_v55, %v1314_v2 }
 0x1bf   :  { %v1108_v62 = vpop.f32.mrf.mxu1 }
 0x1c0   :  { %v1315_v0 = vmul.f32 0.01, %v1117_v59  ;;  %v1109_v1 = vadd.f32 %v5978_v35, %v1108_v62  ;;  %5240 = vmatprep.mubr.msk.bf16.mxu0 %vm910_vm3, %v1430_v58  ;;  %v1376_v7 = vmax.f32 %v1106_v53, %v1312_v63 }
 0x1c1   :  { %v5184_v3 = vpop.f32.mrf.mxu1  ;;  %5241 = vmatmul.mubr.msk.bf16.gmra.mxu0 %vm910_vm3, %v1431_v61  ;;  %5347 = vmatmul.mubr.msk.bf16.gmra.mxu1 %vm342_vm2, %v5568_v57 }
 0x1c2   :  { %v1313_v4 = vmul.f32 0.01, %v1109_v1  ;;  %5350 = vmatprep.mubr.msk.bf16.mxu1 %vm342_vm2, %v5569_v60  ;;  %v1379_v5 = vmax.f32 %v1117_v59, %v1315_v0  ;;  %v1130_v11 = vadd.f32 %v5184_v3, %v5978_v35 }
 0x1c3   :  { %v1121_v6 = vpop.f32.mrf.mxu1 }
 0x1c4   :  { %v1377_v8 = vmax.f32 %v1109_v1, %v1313_v4  ;;  %v1122_v9 = vadd.f32 %v5978_v35, %v1121_v6  ;;  %v1433_v17 = vpack.c.bf16 %v1379_v5, %v1378_v10  ;;  %v1318_v21 = vmul.f32 0.01, %v1130_v11 }
 0x1c5   :  { %v5185_v13 = vpop.f32.mrf.mxu1 }
 0x1c6   :  { %v1432_v15 = vpack.c.bf16 %v1377_v8, %v1376_v7  ;;  %v1133_v16 = vadd.f32 %v5185_v13, %v5978_v35  ;;  %v1316_v18 = vmul.f32 0.01, %v1122_v9  ;;  %v1382_v29 = vmax.f32 %v1130_v11, %v1318_v21 }
 0x1c7   :  { %v1124_v12 = vpop.f32.mrf.mxu1 }
 0x1c8   :  { %v1319_v19 = vmul.f32 0.01, %v1133_v16  ;;  %v1125_v20 = vadd.f32 %v5978_v35, %v1124_v12  ;;  %5244 = vmatprep.mubr.msk.bf16.mxu0 %vm910_vm3, %v1432_v15  ;;  %v1380_v26 = vmax.f32 %v1122_v9, %v1316_v18 }
 0x1c9   :  { %v5188_v22 = vpop.f32.mrf.mxu1  ;;  %5245 = vmatmul.mubr.msk.bf16.gmra.mxu0 %vm910_vm3, %v1433_v17  ;;  %5351 = vmatmul.mubr.msk.bf16.gmra.mxu1 %vm342_vm2, %v5570_v14 }
 0x1ca   :  { %v1317_v23 = vmul.f32 0.01, %v1125_v20  ;;  %5354 = vmatprep.mubr.msk.bf16.mxu1 %vm342_vm2, %v5571_v42  ;;  %v1383_v24 = vmax.f32 %v1133_v16, %v1319_v19  ;;  %v1146_v30 = vadd.f32 %v5188_v22, %v5978_v35 }
 0x1cb   :  { %v1137_v25 = vpop.f32.mrf.mxu1 }
 0x1cc   :  { %v1381_v27 = vmax.f32 %v1125_v20, %v1317_v23  ;;  %v1138_v28 = vadd.f32 %v5978_v35, %v1137_v25  ;;  %v1435_v36 = vpack.c.bf16 %v1383_v24, %v1382_v29  ;;  %v1322_v41 = vmul.f32 0.01, %v1146_v30 }
 0x1cd   :  { %v5189_v31 = vpop.f32.mrf.mxu1 }
 0x1ce   :  { %v1434_v33 = vpack.c.bf16 %v1381_v27, %v1380_v26  ;;  %v1149_v34 = vadd.f32 %v5189_v31, %v5978_v35  ;;  %v1320_v38 = vmul.f32 0.01, %v1138_v28  ;;  %v1386_v50 = vmax.f32 %v1146_v30, %v1322_v41 }
 0x1cf   :  { %v1140_v37 = vpop.f32.mrf.mxu1 }
 0x1d0   :  { %v1323_v39 = vmul.f32 0.01, %v1149_v34  ;;  %v1141_v40 = vadd.f32 %v5978_v35, %v1140_v37  ;;  %5248 = vmatprep.mubr.msk.bf16.mxu0 %vm910_vm3, %v1434_v33  ;;  %v1384_v47 = vmax.f32 %v1138_v28, %v1320_v38 }
 0x1d1   :  { %v5192_v43 = vpop.f32.mrf.mxu1  ;;  %5249 = vmatmul.mubr.msk.bf16.gmra.mxu0 %vm910_vm3, %v1435_v36  ;;  %5355 = vmatmul.mubr.msk.bf16.gmra.mxu1 %vm342_vm2, %v5572_v32 }
 0x1d2   :  { %v1321_v44 = vmul.f32 0.01, %v1141_v40  ;;  %v1387_v45 = vmax.f32 %v1149_v34, %v1323_v39  ;;  %v1162_v51 = vadd.f32 %v5192_v43, %v5978_v35 }
 0x1d3   :  { %v1153_v46 = vpop.f32.mrf.mxu1 }
 0x1d4   :  { %v1385_v48 = vmax.f32 %v1141_v40, %v1321_v44  ;;  %v1154_v49 = vadd.f32 %v5978_v35, %v1153_v46  ;;  %v1437_v55 = vpack.c.bf16 %v1387_v45, %v1386_v50  ;;  %v1326_v60 = vmul.f32 0.01, %v1162_v51 }
 0x1d5   :  { %v5193_v52 = vpop.f32.mrf.mxu1 }
 0x1d6   :  { %v1436_v53 = vpack.c.bf16 %v1385_v48, %v1384_v47  ;;  %v1165_v54 = vadd.f32 %v5193_v52, %v5978_v35  ;;  %v1324_v57 = vmul.f32 0.01, %v1154_v49  ;;  %v1390_v4 = vmax.f32 %v1162_v51, %v1326_v60 }
 0x1d7   :  { %v1156_v56 = vpop.f32.mrf.mxu1 }
 0x1d8   :  { %v1327_v58 = vmul.f32 0.01, %v1165_v54  ;;  %v1157_v59 = vadd.f32 %v5978_v35, %v1156_v56  ;;  %5252 = vmatprep.mubr.msk.bf16.mxu0 %vm910_vm3, %v1436_v53  ;;  %v1388_v1 = vmax.f32 %v1154_v49, %v1324_v57 }
 0x1d9   :  { %v5196_v61 = vpop.f32.mrf.mxu1  ;;  %5253 = vmatmul.mubr.msk.bf16.gmra.mxu0 %vm910_vm3, %v1437_v55 }
 0x1da   :  { %v1325_v62 = vmul.f32 0.01, %v1157_v59  ;;  %v1391_v63 = vmax.f32 %v1165_v54, %v1327_v58  ;;  %v1178_v5 = vadd.f32 %v5196_v61, %v5978_v35 }
 0x1db   :  { %v1169_v0 = vpop.f32.mrf.mxu1 }
 0x1dc   :  { %v1389_v2 = vmax.f32 %v1157_v59, %v1325_v62  ;;  %v1170_v3 = vadd.f32 %v5978_v35, %v1169_v0  ;;  %v1439_v9 = vpack.c.bf16 %v1391_v63, %v1390_v4  ;;  %v1330_v15 = vmul.f32 0.01, %v1178_v5 }
 0x1dd   :  { %v5197_v6 = vpop.f32.mrf.mxu1 }
 0x1de   :  { %v1438_v7 = vpack.c.bf16 %v1389_v2, %v1388_v1  ;;  %v1181_v8 = vadd.f32 %v5197_v6, %v5978_v35  ;;  %v1328_v11 = vmul.f32 0.01, %v1170_v3  ;;  %v1394_v21 = vmax.f32 %v1178_v5, %v1330_v15 }
 0x1df   :  { %v1172_v10 = vpop.f32.mrf.mxu1 }
 0x1e0   :  { %v1331_v13 = vmul.f32 0.01, %v1181_v8  ;;  %v1173_v14 = vadd.f32 %v5978_v35, %v1172_v10  ;;  %5256 = vmatprep.mubr.msk.bf16.mxu0 %vm910_vm3, %v1438_v7  ;;  %v1392_v18 = vmax.f32 %v1170_v3, %v1328_v11 }
 0x1e1   :  { %v5200_v16 = vpop.f32.mrf.mxu1  ;;  %5257 = vmatmul.mubr.msk.bf16.gmra.mxu0 %vm910_vm3, %v1439_v9 }
 0x1e2   :  { %v1329_v42 = vmul.f32 0.01, %v1173_v14  ;;  %v1395_v17 = vmax.f32 %v1181_v8, %v1331_v13  ;;  %v1194_v22 = vadd.f32 %v5200_v16, %v5978_v35 }
 0x1e3   :  { %v1185_v12 = vpop.f32.mrf.mxu1 }
 0x1e4   :  { %v1393_v19 = vmax.f32 %v1173_v14, %v1329_v42  ;;  %v1186_v20 = vadd.f32 %v5978_v35, %v1185_v12  ;;  %v1441_v26 = vpack.c.bf16 %v1395_v17, %v1394_v21  ;;  %v1334_v31 = vmul.f32 0.01, %v1194_v22 }
 0x1e5   :  { %v5201_v23 = vpop.f32.mrf.mxu1 }
 0x1e6   :  { %v1440_v24 = vpack.c.bf16 %v1393_v19, %v1392_v18  ;;  %v1197_v25 = vadd.f32 %v5201_v23, %v5978_v35  ;;  %v1332_v28 = vmul.f32 0.01, %v1186_v20  ;;  %v1398_v40 = vmax.f32 %v1194_v22, %v1334_v31 }
 0x1e7   :  { %v1188_v27 = vpop.f32.mrf.mxu1 }
 0x1e8   :  { %v1335_v29 = vmul.f32 0.01, %v1197_v25  ;;  %v1189_v30 = vadd.f32 %v5978_v35, %v1188_v27  ;;  %5260 = vmatprep.mubr.msk.bf16.mxu0 %vm910_vm3, %v1440_v24  ;;  %v1396_v37 = vmax.f32 %v1186_v20, %v1332_v28 }
 0x1e9   :  { %v5204_v32 = vpop.f32.mrf.mxu1  ;;  %5261 = vmatmul.mubr.msk.bf16.gmra.mxu0 %vm910_vm3, %v1441_v26 }
 0x1ea   :  { %v1333_v33 = vmul.f32 0.01, %v1189_v30  ;;  %v1399_v34 = vmax.f32 %v1197_v25, %v1335_v29  ;;  %v1210_v41 = vadd.f32 %v5204_v32, %v5978_v35 }
 0x1eb   :  { %v1201_v36 = vpop.f32.mrf.mxu1 }
 0x1ec   :  { %v1397_v38 = vmax.f32 %v1189_v30, %v1333_v33  ;;  %v1202_v39 = vadd.f32 %v5978_v35, %v1201_v36  ;;  %v1443_v46 = vpack.c.bf16 %v1399_v34, %v1398_v40  ;;  %v1338_v51 = vmul.f32 0.01, %v1210_v41 }
 0x1ed   :  { %v5205_v43 = vpop.f32.mrf.mxu1 }
 0x1ee   :  { %v1442_v44 = vpack.c.bf16 %v1397_v38, %v1396_v37  ;;  %v1213_v45 = vadd.f32 %v5205_v43, %v5978_v35  ;;  %v1336_v48 = vmul.f32 0.01, %v1202_v39  ;;  %v1402_v59 = vmax.f32 %v1210_v41, %v1338_v51 }
 0x1ef   :  { %v1204_v47 = vpop.f32.mrf.mxu1 }
 0x1f0   :  { %v1339_v49 = vmul.f32 0.01, %v1213_v45  ;;  %v1205_v50 = vadd.f32 %v5978_v35, %v1204_v47  ;;  %5264 = vmatprep.mubr.msk.bf16.mxu0 %vm910_vm3, %v1442_v44  ;;  %v1400_v56 = vmax.f32 %v1202_v39, %v1336_v48 }
 0x1f1   :  { %v5208_v52 = vpop.f32.mrf.mxu1  ;;  %5265 = vmatmul.mubr.msk.bf16.gmra.mxu0 %vm910_vm3, %v1443_v46 }
 0x1f2   :  { %v1337_v53 = vmul.f32 0.01, %v1205_v50  ;;  %v1403_v54 = vmax.f32 %v1213_v45, %v1339_v49  ;;  %v1226_v60 = vadd.f32 %v5208_v52, %v5978_v35 }
 0x1f3   :  { %v1217_v55 = vpop.f32.mrf.mxu1 }
 0x1f4   :  { %v1401_v57 = vmax.f32 %v1205_v50, %v1337_v53  ;;  %v1218_v58 = vadd.f32 %v5978_v35, %v1217_v55  ;;  %v1445_v0 = vpack.c.bf16 %v1403_v54, %v1402_v59  ;;  %v1342_v5 = vmul.f32 0.01, %v1226_v60 }
 0x1f5   :  { %v5209_v61 = vpop.f32.mrf.mxu1 }
 0x1f6   :  { %v1444_v62 = vpack.c.bf16 %v1401_v57, %v1400_v56  ;;  %v1229_v63 = vadd.f32 %v5209_v61, %v5978_v35  ;;  %v1340_v2 = vmul.f32 0.01, %v1218_v58  ;;  %v1406_v14 = vmax.f32 %v1226_v60, %v1342_v5 }
 0x1f7   :  { %v1220_v1 = vpop.f32.mrf.mxu1 }
 0x1f8   :  { %v1343_v3 = vmul.f32 0.01, %v1229_v63  ;;  %v1221_v4 = vadd.f32 %v5978_v35, %v1220_v1  ;;  %5268 = vmatprep.mubr.msk.bf16.mxu0 %vm910_vm3, %v1444_v62  ;;  %v1404_v10 = vmax.f32 %v1218_v58, %v1340_v2  ;;  %v5574_v58 = vld [vmem:[%s6961_s11 + $0x8] sm:$0xff]  }
 0x1f9   :  { %v5212_v6 = vpop.f32.mrf.mxu1  ;;  %5269 = vmatmul.mubr.msk.bf16.gmra.mxu0 %vm910_vm3, %v1445_v0  ;;  %5426 = vmatprep.subr.bf16.mxu1 %v5574_v58 }
 0x1fa   :  { %v1341_v7 = vmul.f32 0.01, %v1221_v4  ;;  %v1407_v8 = vmax.f32 %v1229_v63, %v1343_v3  ;;  %v1242_v15 = vadd.f32 %v5212_v6, %v5978_v35  ;;  %5427 = vmatpush3.bf16.msra.mxu1 %v5574_v58 }
 0x1fb   :  { %v1233_v9 = vpop.f32.mrf.mxu1 }
 0x1fc   :  { %v1405_v11 = vmax.f32 %v1221_v4, %v1341_v7  ;;  %v1234_v13 = vadd.f32 %v5978_v35, %v1233_v9  ;;  %v1447_v12 = vpack.c.bf16 %v1407_v8, %v1406_v14  ;;  %v1346_v22 = vmul.f32 0.01, %v1242_v15 }
 0x1fd   :  { %v5213_v16 = vpop.f32.mrf.mxu1 }
 0x1fe   :  { %v1446_v42 = vpack.c.bf16 %v1405_v11, %v1404_v10  ;;  %v1245_v17 = vadd.f32 %v5213_v16, %v5978_v35  ;;  %v1344_v19 = vmul.f32 0.01, %v1234_v13  ;;  %v1410_v30 = vmax.f32 %v1242_v15, %v1346_v22 }
 0x1ff   :  { %v1236_v18 = vpop.f32.mrf.mxu1 }
 0x200   :  { %v1347_v20 = vmul.f32 0.01, %v1245_v17  ;;  %v1237_v21 = vadd.f32 %v5978_v35, %v1236_v18  ;;  %5272 = vmatprep.mubr.msk.bf16.mxu0 %vm910_vm3, %v1446_v42  ;;  %v1408_v27 = vmax.f32 %v1234_v13, %v1344_v19 }
 0x201   :  { %v5216_v23 = vpop.f32.mrf.mxu1  ;;  %5273 = vmatmul.mubr.msk.bf16.gmra.mxu0 %vm910_vm3, %v1447_v12  ;;  %v6137_v12 = vld [vmem:[%s6962_s8] ss:$0 sm:$0xff] }
 0x202   :  { %v1345_v24 = vmul.f32 0.01, %v1237_v21  ;;  %v1411_v25 = vmax.f32 %v1245_v17, %v1347_v20  ;;  %v1258_v31 = vadd.f32 %v5216_v23, %v5978_v35 }
 0x203   :  { %v1249_v26 = vpop.f32.mrf.mxu1 }
 0x204   :  { %v1409_v28 = vmax.f32 %v1237_v21, %v1345_v24  ;;  %v1250_v29 = vadd.f32 %v5978_v35, %v1249_v26  ;;  %v1449_v36 = vpack.c.bf16 %v1411_v25, %v1410_v30  ;;  %v1350_v41 = vmul.f32 0.01, %v1258_v31 }
 0x205   :  { %v5217_v32 = vpop.f32.mrf.mxu1 }
 0x206   :  { %v1448_v33 = vpack.c.bf16 %v1409_v28, %v1408_v27  ;;  %v1261_v34 = vadd.f32 %v5217_v32, %v5978_v35  ;;  %v1348_v38 = vmul.f32 0.01, %v1250_v29  ;;  %v1414_v50 = vmax.f32 %v1258_v31, %v1350_v41 }
 0x207   :  { %v1252_v37 = vpop.f32.mrf.mxu1 }
 0x208   :  { %v1351_v39 = vmul.f32 0.01, %v1261_v34  ;;  %v1253_v40 = vadd.f32 %v5978_v35, %v1252_v37  ;;  %5276 = vmatprep.mubr.msk.bf16.mxu0 %vm910_vm3, %v1448_v33  ;;  %v1412_v47 = vmax.f32 %v1250_v29, %v1348_v38 }
 0x209   :  { %v5220_v43 = vpop.f32.mrf.mxu1  ;;  %5277 = vmatmul.mubr.msk.bf16.gmra.mxu0 %vm910_vm3, %v1449_v36 }
 0x20a   :  { %v1349_v44 = vmul.f32 0.01, %v1253_v40  ;;  %v1415_v45 = vmax.f32 %v1261_v34, %v1351_v39  ;;  %v1274_v51 = vadd.f32 %v5220_v43, %v5978_v35 }
 0x20b   :  { %v1265_v46 = vpop.f32.mrf.mxu1 }
 0x20c   :  { %v1413_v48 = vmax.f32 %v1253_v40, %v1349_v44  ;;  %v1266_v49 = vadd.f32 %v5978_v35, %v1265_v46  ;;  %v1451_v56 = vpack.c.bf16 %v1415_v45, %v1414_v50  ;;  %v1354_v61 = vmul.f32 0.01, %v1274_v51 }
 0x20d   :  { %v5221_v52 = vpop.f32.mrf.mxu1 }
 0x20e   :  { %v1450_v53 = vpack.c.bf16 %v1413_v48, %v1412_v47  ;;  %v1352_v54 = vmul.f32 0.01, %v1266_v49  ;;  %v1277_v55 = vadd.f32 %v5221_v52, %v5978_v35  ;;  %v1418_v5 = vmax.f32 %v1274_v51, %v1354_v61 }
 0x20f   :  { %v1268_v57 = vpop.f32.mrf.mxu1 }
 0x210   :  { %v1355_v59 = vmul.f32 0.01, %v1277_v55  ;;  %v1269_v60 = vadd.f32 %v5978_v35, %v1268_v57  ;;  %5280 = vmatprep.mubr.msk.bf16.mxu0 %vm910_vm3, %v1450_v53  ;;  %v1416_v2 = vmax.f32 %v1266_v49, %v1352_v54 }
 0x211   :  { %v5224_v62 = vpop.f32.mrf.mxu1  ;;  %5281 = vmatmul.mubr.msk.bf16.gmra.mxu0 %vm910_vm3, %v1451_v56 }
 0x212   :  { %v1353_v63 = vmul.f32 0.01, %v1269_v60  ;;  %v1419_v0 = vmax.f32 %v1277_v55, %v1355_v59  ;;  %v1290_v6 = vadd.f32 %v5224_v62, %v5978_v35 }
 0x213   :  { %v1281_v1 = vpop.f32.mrf.mxu1 }
 0x214   :  { %v1417_v3 = vmax.f32 %v1269_v60, %v1353_v63  ;;  %v1282_v4 = vadd.f32 %v5978_v35, %v1281_v1  ;;  %v1453_v10 = vpack.c.bf16 %v1419_v0, %v1418_v5  ;;  %v1358_v16 = vmul.f32 0.01, %v1290_v6 }
 0x215   :  { %v5225_v7 = vpop.f32.mrf.mxu1 }
 0x216   :  { %v1452_v8 = vpack.c.bf16 %v1417_v3, %v1416_v2  ;;  %v1293_v9 = vadd.f32 %v5225_v7, %v5978_v35  ;;  %v1356_v13 = vmul.f32 0.01, %v1282_v4  ;;  %v1422_v23 = vmax.f32 %v1290_v6, %v1358_v16 }
 0x217   :  { %v1284_v11 = vpop.f32.mrf.mxu1 }
 0x218   :  { %v1359_v14 = vmul.f32 0.01, %v1293_v9  ;;  %v1285_v15 = vadd.f32 %v5978_v35, %v1284_v11  ;;  %5284 = vmatprep.mubr.msk.bf16.mxu0 %vm910_vm3, %v1452_v8  ;;  %v1420_v20 = vmax.f32 %v1282_v4, %v1356_v13 }
 0x219   :  { %5285 = vmatmul.mubr.msk.bf16.gmra.mxu0 %vm910_vm3, %v1453_v10  ;;  %v5296_v42 = vpop.f32.mrf.mxu1 }
 0x21a   :  { %v1357_v17 = vmul.f32 0.01, %v1285_v15  ;;  %v1423_v18 = vmax.f32 %v1293_v9, %v1359_v14  ;;  %v2583_v35 = vadd.f32 %v5296_v42, %v6137_v12 }
 0x21b   :  { %v2574_v19 = vpop.f32.mrf.mxu1 }
 0x21c   :  { %v1421_v21 = vmax.f32 %v1285_v15, %v1357_v17  ;;  %v2575_v22 = vadd.f32 %v6137_v12, %v2574_v19  ;;  %v1455_v27 = vpack.c.bf16 %v1423_v18, %v1422_v23  ;;  %v2831_v32 = vmul.f32 0.01, %v2583_v35 }
 0x21d   :  { %v5297_v24 = vpop.f32.mrf.mxu1 }
 0x21e   :  { %v1454_v25 = vpack.c.bf16 %v1421_v21, %v1420_v20  ;;  %v2586_v26 = vadd.f32 %v5297_v24, %v6137_v12  ;;  %v2829_v29 = vmul.f32 0.01, %v2575_v22  ;;  %v2895_v41 = vmax.f32 %v2583_v35, %v2831_v32 }
 0x21f   :  { %v2577_v28 = vpop.f32.mrf.mxu1 }
 0x220   :  { %v2832_v30 = vmul.f32 0.01, %v2586_v26  ;;  %v2578_v31 = vadd.f32 %v6137_v12, %v2577_v28  ;;  %5288 = vmatprep.mubr.msk.bf16.mxu0 %vm910_vm3, %v1454_v25  ;;  %v2893_v38 = vmax.f32 %v2575_v22, %v2829_v29 }
 0x221   :  { %5289 = vmatmul.mubr.msk.bf16.gmra.mxu0 %vm910_vm3, %v1455_v27  ;;  %v5300_v33 = vpop.f32.mrf.mxu1 }
 0x222   :  { %v2830_v34 = vmul.f32 0.01, %v2578_v31  ;;  %v2896_v36 = vmax.f32 %v2586_v26, %v2832_v30  ;;  %v2599_v43 = vadd.f32 %v5300_v33, %v6137_v12 }
 0x223   :  { %v2590_v37 = vpop.f32.mrf.mxu1 }
 0x224   :  { %v2894_v39 = vmax.f32 %v2578_v31, %v2830_v34  ;;  %v2591_v40 = vadd.f32 %v6137_v12, %v2590_v37  ;;  %v2958_v47 = vpack.c.bf16 %v2896_v36, %v2895_v41  ;;  %v2835_v52 = vmul.f32 0.01, %v2599_v43 }
 0x225   :  { %v5301_v44 = vpop.f32.mrf.mxu1 }
 0x226   :  { %v2957_v45 = vpack.c.bf16 %v2894_v39, %v2893_v38  ;;  %v2602_v46 = vadd.f32 %v5301_v44, %v6137_v12  ;;  %v2833_v49 = vmul.f32 0.01, %v2591_v40  ;;  %v2899_v60 = vmax.f32 %v2599_v43, %v2835_v52 }
 0x227   :  { %v2593_v48 = vpop.f32.mrf.mxu1 }
 0x228   :  { %v2836_v50 = vmul.f32 0.01, %v2602_v46  ;;  %v2594_v51 = vadd.f32 %v6137_v12, %v2593_v48  ;;  %5362 = vmatprep.mubr.msk.bf16.mxu0 %vm1984_vm4, %v2957_v45  ;;  %v2897_v57 = vmax.f32 %v2591_v40, %v2833_v49 }
 0x229   :  { %v5304_v53 = vpop.f32.mrf.mxu1  ;;  %5363 = vmatmul.mubr.msk.bf16.vlgmr.msra.gmra.mxu0 %vm1984_vm4, %v2958_v47 }
 0x22a   :  { %v2834_v54 = vmul.f32 0.01, %v2594_v51  ;;  %v2900_v55 = vmax.f32 %v2602_v46, %v2836_v50  ;;  %v2615_v61 = vadd.f32 %v5304_v53, %v6137_v12 }
 0x22b   :  { %v2606_v56 = vpop.f32.mrf.mxu1 }
 0x22c   :  { %v2898_v58 = vmax.f32 %v2594_v51, %v2834_v54  ;;  %v2607_v59 = vadd.f32 %v6137_v12, %v2606_v56  ;;  %v2960_v1 = vpack.c.bf16 %v2900_v55, %v2899_v60  ;;  %v2839_v6 = vmul.f32 0.01, %v2615_v61 }
 0x22d   :  { %v5305_v62 = vpop.f32.mrf.mxu1 }
 0x22e   :  { %v2959_v63 = vpack.c.bf16 %v2898_v58, %v2897_v57  ;;  %v2618_v0 = vadd.f32 %v5305_v62, %v6137_v12  ;;  %v2837_v3 = vmul.f32 0.01, %v2607_v59  ;;  %v2903_v15 = vmax.f32 %v2615_v61, %v2839_v6 }
 0x22f   :  { %v2609_v2 = vpop.f32.mrf.mxu1 }
 0x230   :  { %v2840_v4 = vmul.f32 0.01, %v2618_v0  ;;  %v2610_v5 = vadd.f32 %v6137_v12, %v2609_v2  ;;  %5366 = vmatprep.mubr.msk.bf16.mxu0 %vm1984_vm4, %v2959_v63  ;;  %v2901_v11 = vmax.f32 %v2607_v59, %v2837_v3 }
 0x231   :  { %v5308_v7 = vpop.f32.mrf.mxu1  ;;  %5367 = vmatmul.mubr.msk.bf16.gmra.mxu0 %vm1984_vm4, %v2960_v1 }
 0x232   :  { %v2838_v8 = vmul.f32 0.01, %v2610_v5  ;;  %v2904_v9 = vmax.f32 %v2618_v0, %v2840_v4  ;;  %v2631_v16 = vadd.f32 %v5308_v7, %v6137_v12 }
 0x233   :  { %v2622_v10 = vpop.f32.mrf.mxu1 }
 0x234   :  { %v2902_v13 = vmax.f32 %v2610_v5, %v2838_v8  ;;  %v2623_v14 = vadd.f32 %v6137_v12, %v2622_v10  ;;  %v2962_v19 = vpack.c.bf16 %v2904_v9, %v2903_v15  ;;  %v2843_v35 = vmul.f32 0.01, %v2631_v16 }
 0x235   :  { %v5309_v42 = vpop.f32.mrf.mxu1 }
 0x236   :  { %v2961_v17 = vpack.c.bf16 %v2902_v13, %v2901_v11  ;;  %v2634_v18 = vadd.f32 %v5309_v42, %v6137_v12  ;;  %v2841_v21 = vmul.f32 0.01, %v2623_v14  ;;  %v2907_v31 = vmax.f32 %v2631_v16, %v2843_v35 }
 0x237   :  { %v2625_v20 = vpop.f32.mrf.mxu1 }
 0x238   :  { %v2844_v22 = vmul.f32 0.01, %v2634_v18  ;;  %v2626_v23 = vadd.f32 %v6137_v12, %v2625_v20  ;;  %5370 = vmatprep.mubr.msk.bf16.mxu0 %vm1984_vm4, %v2961_v17  ;;  %v2905_v28 = vmax.f32 %v2623_v14, %v2841_v21 }
 0x239   :  { %v5312_v24 = vpop.f32.mrf.mxu1  ;;  %5371 = vmatmul.mubr.msk.bf16.gmra.mxu0 %vm1984_vm4, %v2962_v19 }
 0x23a   :  { %v2842_v25 = vmul.f32 0.01, %v2626_v23  ;;  %v2908_v26 = vmax.f32 %v2634_v18, %v2844_v22  ;;  %v2647_v32 = vadd.f32 %v5312_v24, %v6137_v12 }
 0x23b   :  { %v2638_v27 = vpop.f32.mrf.mxu1 }
 0x23c   :  { %v2906_v29 = vmax.f32 %v2626_v23, %v2842_v25  ;;  %v2639_v30 = vadd.f32 %v6137_v12, %v2638_v27  ;;  %v2964_v37 = vpack.c.bf16 %v2908_v26, %v2907_v31  ;;  %v2847_v43 = vmul.f32 0.01, %v2647_v32 }
 0x23d   :  { %v5313_v33 = vpop.f32.mrf.mxu1 }
 0x23e   :  { %v2963_v34 = vpack.c.bf16 %v2906_v29, %v2905_v28  ;;  %v2650_v36 = vadd.f32 %v5313_v33, %v6137_v12  ;;  %v2845_v39 = vmul.f32 0.01, %v2639_v30  ;;  %v2911_v51 = vmax.f32 %v2647_v32, %v2847_v43 }
 0x23f   :  { %v2641_v38 = vpop.f32.mrf.mxu1 }
 0x240   :  { %v2848_v40 = vmul.f32 0.01, %v2650_v36  ;;  %v2642_v41 = vadd.f32 %v6137_v12, %v2641_v38  ;;  %5374 = vmatprep.mubr.msk.bf16.mxu0 %vm1984_vm4, %v2963_v34  ;;  %v2909_v48 = vmax.f32 %v2639_v30, %v2845_v39  ;;  %v5575_v34 = vld [vmem:[%s6961_s11] sm:$0xff]  }
 0x241   :  { %v5316_v44 = vpop.f32.mrf.mxu1  ;;  %5375 = vmatmul.mubr.msk.bf16.gmra.mxu0 %vm1984_vm4, %v2964_v37  ;;  %5428 = vmatprep.subr.bf16.mxu1 %v5575_v34 }
 0x242   :  { %v2846_v45 = vmul.f32 0.01, %v2642_v41  ;;  %v2912_v46 = vmax.f32 %v2650_v36, %v2848_v40  ;;  %v2663_v52 = vadd.f32 %v5316_v44, %v6137_v12  ;;  %5429 = vmatpush3.bf16.msra.mxu1 %v5575_v34 }
 0x243   :  { %v2654_v47 = vpop.f32.mrf.mxu1 }
 0x244   :  { %v2910_v49 = vmax.f32 %v2642_v41, %v2846_v45  ;;  %v2655_v50 = vadd.f32 %v6137_v12, %v2654_v47  ;;  %v2966_v56 = vpack.c.bf16 %v2912_v46, %v2911_v51  ;;  %v2851_v61 = vmul.f32 0.01, %v2663_v52 }
 0x245   :  { %v5317_v53 = vpop.f32.mrf.mxu1 }
 0x246   :  { %v2965_v54 = vpack.c.bf16 %v2910_v49, %v2909_v48  ;;  %v2666_v55 = vadd.f32 %v5317_v53, %v6137_v12  ;;  %v2849_v58 = vmul.f32 0.01, %v2655_v50  ;;  %v2915_v5 = vmax.f32 %v2663_v52, %v2851_v61 }
 0x247   :  { %v2657_v57 = vpop.f32.mrf.mxu1 }
 0x248   :  { %v2852_v59 = vmul.f32 0.01, %v2666_v55  ;;  %v2658_v60 = vadd.f32 %v6137_v12, %v2657_v57  ;;  %5378 = vmatprep.mubr.msk.bf16.mxu0 %vm1984_vm4, %v2965_v54  ;;  %v2913_v2 = vmax.f32 %v2655_v50, %v2849_v58 }
 0x249   :  { %v5320_v62 = vpop.f32.mrf.mxu1  ;;  %5379 = vmatmul.mubr.msk.bf16.gmra.mxu0 %vm1984_vm4, %v2966_v56 }
 0x24a   :  { %v2850_v63 = vmul.f32 0.01, %v2658_v60  ;;  %v2916_v0 = vmax.f32 %v2666_v55, %v2852_v59  ;;  %v2679_v6 = vadd.f32 %v5320_v62, %v6137_v12 }
 0x24b   :  { %v2670_v1 = vpop.f32.mrf.mxu1 }
 0x24c   :  { %v2914_v3 = vmax.f32 %v2658_v60, %v2850_v63  ;;  %v2671_v4 = vadd.f32 %v6137_v12, %v2670_v1  ;;  %v2968_v10 = vpack.c.bf16 %v2916_v0, %v2915_v5  ;;  %v2855_v16 = vmul.f32 0.01, %v2679_v6 }
 0x24d   :  { %v5321_v7 = vpop.f32.mrf.mxu1 }
 0x24e   :  { %v2967_v8 = vpack.c.bf16 %v2914_v3, %v2913_v2  ;;  %v2682_v9 = vadd.f32 %v5321_v7, %v6137_v12  ;;  %v2853_v13 = vmul.f32 0.01, %v2671_v4  ;;  %v2919_v23 = vmax.f32 %v2679_v6, %v2855_v16 }
 0x24f   :  { %v2673_v11 = vpop.f32.mrf.mxu1 }
 0x250   :  { %v2856_v14 = vmul.f32 0.01, %v2682_v9  ;;  %v2674_v15 = vadd.f32 %v6137_v12, %v2673_v11  ;;  %5382 = vmatprep.mubr.msk.bf16.mxu0 %vm1984_vm4, %v2967_v8  ;;  %v2917_v20 = vmax.f32 %v2671_v4, %v2853_v13  ;;  %v6202_v4 = vld [vmem:[%s6963_s6] ss:$0 sm:$0xff] }
 0x251   :  { %v5324_v42 = vpop.f32.mrf.mxu1  ;;  %5383 = vmatmul.mubr.msk.bf16.gmra.mxu0 %vm1984_vm4, %v2968_v10 }
 0x252   :  { %v2854_v17 = vmul.f32 0.01, %v2674_v15  ;;  %v2920_v18 = vmax.f32 %v2682_v9, %v2856_v14  ;;  %v2695_v35 = vadd.f32 %v5324_v42, %v6137_v12 }
 0x253   :  { %v2686_v19 = vpop.f32.mrf.mxu1 }
 0x254   :  { %v2918_v21 = vmax.f32 %v2674_v15, %v2854_v17  ;;  %v2687_v22 = vadd.f32 %v6137_v12, %v2686_v19  ;;  %v2970_v27 = vpack.c.bf16 %v2920_v18, %v2919_v23  ;;  %v2859_v32 = vmul.f32 0.01, %v2695_v35 }
 0x255   :  { %v5325_v24 = vpop.f32.mrf.mxu1 }
 0x256   :  { %v2969_v25 = vpack.c.bf16 %v2918_v21, %v2917_v20  ;;  %v2698_v26 = vadd.f32 %v5325_v24, %v6137_v12  ;;  %v2857_v29 = vmul.f32 0.01, %v2687_v22  ;;  %v2923_v43 = vmax.f32 %v2695_v35, %v2859_v32 }
 0x257   :  { %v2689_v28 = vpop.f32.mrf.mxu1 }
 0x258   :  { %v2860_v30 = vmul.f32 0.01, %v2698_v26  ;;  %v2690_v31 = vadd.f32 %v6137_v12, %v2689_v28  ;;  %5386 = vmatprep.mubr.msk.bf16.mxu0 %vm1984_vm4, %v2969_v25  ;;  %v2921_v39 = vmax.f32 %v2687_v22, %v2857_v29 }
 0x259   :  { %v5328_v33 = vpop.f32.mrf.mxu1  ;;  %5387 = vmatmul.mubr.msk.bf16.gmra.mxu0 %vm1984_vm4, %v2970_v27 }
 0x25a   :  { %v2858_v36 = vmul.f32 0.01, %v2690_v31  ;;  %v2924_v37 = vmax.f32 %v2698_v26, %v2860_v30  ;;  %v2711_v44 = vadd.f32 %v5328_v33, %v6137_v12 }
 0x25b   :  { %v2702_v38 = vpop.f32.mrf.mxu1 }
 0x25c   :  { %v2922_v40 = vmax.f32 %v2690_v31, %v2858_v36  ;;  %v2703_v41 = vadd.f32 %v6137_v12, %v2702_v38  ;;  %v2972_v48 = vpack.c.bf16 %v2924_v37, %v2923_v43  ;;  %v2863_v53 = vmul.f32 0.01, %v2711_v44 }
 0x25d   :  { %v5329_v45 = vpop.f32.mrf.mxu1 }
 0x25e   :  { %v2971_v46 = vpack.c.bf16 %v2922_v40, %v2921_v39  ;;  %v2714_v47 = vadd.f32 %v5329_v45, %v6137_v12  ;;  %v2861_v50 = vmul.f32 0.01, %v2703_v41  ;;  %v2927_v62 = vmax.f32 %v2711_v44, %v2863_v53 }
 0x25f   :  { %v2705_v49 = vpop.f32.mrf.mxu1 }
 0x260   :  { %v2864_v51 = vmul.f32 0.01, %v2714_v47  ;;  %v2706_v52 = vadd.f32 %v6137_v12, %v2705_v49  ;;  %5390 = vmatprep.mubr.msk.bf16.mxu0 %vm1984_vm4, %v2971_v46  ;;  %v2925_v58 = vmax.f32 %v2703_v41, %v2861_v50 }
 0x261   :  { %v5332_v54 = vpop.f32.mrf.mxu1  ;;  %5391 = vmatmul.mubr.msk.bf16.gmra.mxu0 %vm1984_vm4, %v2972_v48 }
 0x262   :  { %v2862_v55 = vmul.f32 0.01, %v2706_v52  ;;  %v2928_v56 = vmax.f32 %v2714_v47, %v2864_v51  ;;  %v2727_v60 = vadd.f32 %v5332_v54, %v6137_v12 }
 0x263   :  { %v2718_v57 = vpop.f32.mrf.mxu1 }
 0x264   :  { %v2926_v59 = vmax.f32 %v2706_v52, %v2862_v55  ;;  %v2719_v61 = vadd.f32 %v6137_v12, %v2718_v57  ;;  %v2974_v2 = vpack.c.bf16 %v2928_v56, %v2927_v62  ;;  %v2867_v5 = vmul.f32 0.01, %v2727_v60 }
 0x265   :  { %v5333_v63 = vpop.f32.mrf.mxu1 }
 0x266   :  { %v2973_v0 = vpack.c.bf16 %v2926_v59, %v2925_v58  ;;  %v2730_v1 = vadd.f32 %v5333_v63, %v6137_v12  ;;  %v2865_v6 = vmul.f32 0.01, %v2719_v61  ;;  %v2931_v17 = vmax.f32 %v2727_v60, %v2867_v5 }
 0x267   :  { %v2721_v3 = vpop.f32.mrf.mxu1 }
 0x268   :  { %v2868_v7 = vmul.f32 0.01, %v2730_v1  ;;  %v2722_v8 = vadd.f32 %v6137_v12, %v2721_v3  ;;  %5394 = vmatprep.mubr.msk.bf16.mxu0 %vm1984_vm4, %v2973_v0  ;;  %v2929_v18 = vmax.f32 %v2719_v61, %v2865_v6 }
 0x269   :  { %v5230_v9 = vpop.f32.mrf.mxu0  ;;  %v5336_v10 = vpop.f32.mrf.mxu1  ;;  %5395 = vmatmul.mubr.msk.bf16.gmra.mxu0 %vm1984_vm4, %v2974_v2 }
 0x26a   :  { %v2932_v11 = vmax.f32 %v2730_v1, %v2868_v7  ;;  %v2866_v13 = vmul.f32 0.01, %v2722_v8  ;;  %v1610_v14 = vadd.f32 %v5230_v9, %v6202_v4  ;;  %v2743_v15 = vadd.f32 %v5336_v10, %v6137_v12 }
 0x26b   :  { %v1601_v16 = vpop.f32.mrf.mxu0  ;;  %v2734_v42 = vpop.f32.mrf.mxu1 }
 0x26c   :  { %v2930_v19 = vmax.f32 %v2722_v8, %v2866_v13  ;;  %v1858_v20 = vmul.f32 0.01, %v1610_v14  ;;  %v2871_v21 = vmul.f32 0.01, %v2743_v15  ;;  %v1602_v22 = vadd.f32 %v6202_v4, %v1601_v16 }
 0x26d   :  { %v2735_v23 = vadd.f32 %v6137_v12, %v2734_v42  ;;  %v5231_v35 = vpop.f32.mrf.mxu0  ;;  %v5337_v24 = vpop.f32.mrf.mxu1  ;;  %v2976_v25 = vpack.c.bf16 %v2932_v11, %v2931_v17 }
 0x26e   :  { %v2975_v26 = vpack.c.bf16 %v2930_v19, %v2929_v18  ;;  %v1613_v27 = vadd.f32 %v5231_v35, %v6202_v4  ;;  %v1922_v28 = vmax.f32 %v1610_v14, %v1858_v20  ;;  %v1856_v29 = vmul.f32 0.01, %v1602_v22 }
 0x26f   :  { %v2869_v30 = vmul.f32 0.01, %v2735_v23  ;;  %v2746_v31 = vadd.f32 %v5337_v24, %v6137_v12  ;;  %v1604_v32 = vpop.f32.mrf.mxu0  ;;  %v2737_v33 = vpop.f32.mrf.mxu1  ;;  %v2935_v38 = vmax.f32 %v2743_v15, %v2871_v21 }
 0x270   :  { %v1859_v34 = vmul.f32 0.01, %v1613_v27  ;;  %v1605_v36 = vadd.f32 %v6202_v4, %v1604_v32  ;;  %v2738_v37 = vadd.f32 %v6137_v12, %v2737_v33  ;;  %5398 = vmatprep.mubr.msk.bf16.mxu0 %vm1984_vm4, %v2975_v26  ;;  %v1920_v39 = vmax.f32 %v1602_v22, %v1856_v29 }
 0x271   :  { %v2872_v40 = vmul.f32 0.01, %v2746_v31  ;;  %v5234_v41 = vpop.f32.mrf.mxu0  ;;  %v5340_v43 = vpop.f32.mrf.mxu1  ;;  %5399 = vmatmul.mubr.msk.bf16.gmra.mxu0 %vm1984_vm4, %v2976_v25  ;;  %v1994_v48 = vsel %vm1984_vm4, %v1922_v28, -inf  ;;  %v2933_v49 = vmax.f32 %v2735_v23, %v2869_v30 }
 0x272   :  { %v1923_v44 = vmax.f32 %v1613_v27, %v1859_v34  ;;  %v1857_v45 = vmul.f32 0.01, %v1605_v36  ;;  %v2870_v46 = vmul.f32 0.01, %v2738_v37  ;;  %v1626_v47 = vadd.f32 %v5234_v41, %v6202_v4 }
 0x273   :  { %v2936_v50 = vmax.f32 %v2746_v31, %v2872_v40  ;;  %v6220_v51 = vadd.f32 %v5340_v43, %v6137_v12  ;;  %v1617_v52 = vpop.f32.mrf.mxu0  ;;  %v2750_v53 = vpop.f32.mrf.mxu1  ;;  %v1985_v58 = vsel %vm1984_vm4, %v1920_v39, -inf }
 0x274   :  { %v1995_v54 = vsel %vm1984_vm4, %v1923_v44, -inf  ;;  %v1921_v55 = vmax.f32 %v1605_v36, %v1857_v45  ;;  %v2934_v56 = vmax.f32 %v2738_v37, %v2870_v46  ;;  %v1862_v57 = vmul.f32 0.01, %v1626_v47 }
 0x275   :  { %v1996_v59 = vmax.f32 %v1994_v48, %v1995_v54  ;;  %v1618_v60 = vadd.f32 %v6202_v4, %v1617_v52  ;;  %v5235_v61 = vpop.f32.mrf.mxu0  ;;  %v5341_v62 = vpop.f32.mrf.mxu1  ;;  %v2978_v63 = vpack.c.bf16 %v2936_v50, %v2935_v38  ;;  %v2751_v2 = vadd.f32 %v6137_v12, %v2750_v53 }
 0x276   :  { %v1986_v0 = vsel %vm1984_vm4, %v1921_v55, -inf  ;;  %v2977_v1 = vpack.c.bf16 %v2934_v56, %v2933_v49  ;;  %v2875_v6 = vmul.f32 0.01, %v6220_v51  ;;  %v1926_v10 = vmax.f32 %v1626_v47, %v1862_v57 }
 0x277   :  { %v1997_v3 = vrot.slane %v1996_v59, 4  ;;  %v1987_v5 = vmax.f32 %v1985_v58, %v1986_v0  ;;  %v1860_v7 = vmul.f32 0.01, %v1618_v60  ;;  %v1620_v8 = vpop.f32.mrf.mxu0  ;;  %v2753_v9 = vpop.f32.mrf.mxu1  ;;  %v1629_v11 = vadd.f32 %v5235_v61, %v6202_v4 }
 0x278   :  { %v2762_v13 = vadd.f32 %v5341_v62, %v6137_v12  ;;  %5402 = vmatprep.mubr.msk.bf16.mxu0 %vm1984_vm4, %v2977_v1  ;;  %v2873_v16 = vmul.f32 0.01, %v2751_v2  ;;  %v1621_v42 = vadd.f32 %v6202_v4, %v1620_v8  ;;  %v2754_v22 = vadd.f32 %v6137_v12, %v2753_v9 }
 0x279   :  { %v1998_v14 = vmax.f32 %v1996_v59, %v1997_v3  ;;  %v1988_v15 = vrot.slane %v1987_v5, 4  ;;  %v5238_v17 = vpop.f32.mrf.mxu0  ;;  %v5344_v18 = vpop.f32.mrf.mxu1  ;;  %5403 = vmatmul.mubr.msk.bf16.gmra.mxu0 %vm1984_vm4, %v2978_v63  ;;  %v1924_v19 = vmax.f32 %v1618_v60, %v1860_v7  ;;  %v1863_v20 = vmul.f32 0.01, %v1629_v11 }
 0x27a   :  { %v2876_v21 = vmul.f32 0.01, %v2762_v13  ;;  %v2939_v24 = vmax.f32 %v6220_v51, %v2875_v6  ;;  %v1861_v25 = vmul.f32 0.01, %v1621_v42  ;;  %v2012_v28 = vsel %vm1984_vm4, %v1926_v10, -inf }
 0x27b   :  { %v1999_v23 = vrot.slane %v1998_v14, 2  ;;  %v1989_v35 = vmax.f32 %v1987_v5, %v1988_v15  ;;  %v1633_v26 = vpop.f32.mrf.mxu0  ;;  %v2766_v27 = vpop.f32.mrf.mxu1  ;;  %v1927_v29 = vmax.f32 %v1629_v11, %v1863_v20  ;;  %v2874_v30 = vmul.f32 0.01, %v2754_v22 }
 0x27c   :  { %v1642_v31 = vadd.f32 %v5238_v17, %v6202_v4  ;;  %v2940_v34 = vmax.f32 %v2762_v13, %v2876_v21  ;;  %v1925_v36 = vmax.f32 %v1621_v42, %v1861_v25  ;;  %v2003_v39 = vsel %vm1984_vm4, %v1924_v19, -inf }
 0x27d   :  { %v2000_v32 = vmax.f32 %v1998_v14, %v1999_v23  ;;  %v1990_v33 = vrot.slane %v1989_v35, 2  ;;  %v5239_v37 = vpop.f32.mrf.mxu0  ;;  %v5345_v38 = vpop.f32.mrf.mxu1  ;;  %v2937_v40 = vmax.f32 %v2751_v2, %v2873_v16  ;;  %v2013_v41 = vsel %vm1984_vm4, %v1927_v29, -inf }
 0x27e   :  { %v2938_v43 = vmax.f32 %v2754_v22, %v2874_v30  ;;  %v2014_v46 = vmax.f32 %v2012_v28, %v2013_v41  ;;  %v2004_v47 = vsel %vm1984_vm4, %v1925_v36, -inf  ;;  %v1866_v52 = vmul.f32 0.01, %v1642_v31 }
 0x27f   :  { %v2001_v44 = vrot.slane %v2000_v32, 1  ;;  %v1991_v45 = vmax.f32 %v1989_v35, %v1990_v33  ;;  %v1636_v48 = vpop.f32.mrf.mxu0  ;;  %v2769_v49 = vpop.f32.mrf.mxu1  ;;  %v2005_v50 = vmax.f32 %v2003_v39, %v2004_v47  ;;  %v2980_v54 = vpack.c.bf16 %v2940_v34, %v2939_v24 }
 0x280   :  { %v2979_v51 = vpack.c.bf16 %v2938_v43, %v2937_v40  ;;  %v1634_v55 = vadd.f32 %v6202_v4, %v1633_v26  ;;  %v2775_v60 = vadd.f32 %v5344_v18, %v6137_v12  ;;  %v2767_v63 = vadd.f32 %v6137_v12, %v2766_v27 }
 0x281   :  { %v1992_v53 = vrot.slane %v1991_v45, 1  ;;  %v5242_v56 = vpop.f32.mrf.mxu0  ;;  %v5348_v57 = vpop.f32.mrf.mxu1  ;;  %v2002_v58 = vmax.f32 %v2000_v32, %v2001_v44  ;;  %v2006_v59 = vrot.slane %v2005_v50, 4  ;;  %v1645_v0 = vadd.f32 %v5239_v37, %v6202_v4 }
 0x282   :  { %5406 = vmatprep.mubr.msk.bf16.mxu0 %vm1984_vm4, %v2979_v51  ;;  %v1864_v62 = vmul.f32 0.01, %v1634_v55  ;;  %v1930_v5 = vmax.f32 %v1642_v31, %v1866_v52  ;;  %v2778_v6 = vadd.f32 %v5345_v38, %v6137_v12  ;;  %v1637_v7 = vadd.f32 %v6202_v4, %v1636_v48 }
 0x283   :  { %v1993_v61 = vmax.f32 %v1991_v45, %v1992_v53  ;;  %5407 = vmatmul.mubr.msk.bf16.gmra.mxu0 %vm1984_vm4, %v2980_v54  ;;  %v1649_v1 = vpop.f32.mrf.mxu0  ;;  %v2782_v2 = vpop.f32.mrf.mxu1  ;;  %v2007_v3 = vmax.f32 %v2005_v50, %v2006_v59  ;;  %v2015_v9 = vrot.slane %v2014_v46, 4  ;;  %v1867_v11 = vmul.f32 0.01, %v1645_v0 }
 0x284   :  { %v1928_v10 = vmax.f32 %v1634_v55, %v1864_v62  ;;  %v2880_v16 = vmul.f32 0.01, %v2778_v6  ;;  %v1865_v42 = vmul.f32 0.01, %v1637_v7  ;;  %v2879_v17 = vmul.f32 0.01, %v2775_v60 }
 0x285   :  { %v4415_v8 = vsel %vm4414_vm5, %v2002_v58, %v1993_v61  ;;  %v5243_v13 = vpop.f32.mrf.mxu0  ;;  %v5349_v14 = vpop.f32.mrf.mxu1  ;;  %v2008_v15 = vrot.slane %v2007_v3, 2  ;;  %v2877_v18 = vmul.f32 0.01, %v2767_v63  ;;  %v1931_v19 = vmax.f32 %v1645_v0, %v1867_v11 }
 0x286   :  { %v2770_v20 = vadd.f32 %v6137_v12, %v2769_v49  ;;  %v2030_v35 = vsel %vm1984_vm4, %v1930_v5, -inf  ;;  %v1929_v24 = vmax.f32 %v1637_v7, %v1865_v42  ;;  %v1658_v25 = vadd.f32 %v5242_v56, %v6202_v4 }
 0x287   :  { %v1652_v21 = vpop.f32.mrf.mxu0  ;;  %v2785_v22 = vpop.f32.mrf.mxu1  ;;  %v2009_v23 = vmax.f32 %v2007_v3, %v2008_v15  ;;  %v2016_v26 = vmax.f32 %v2014_v46, %v2015_v9  ;;  %v2021_v27 = vsel %vm1984_vm4, %v1928_v10, -inf  ;;  %v2031_v28 = vsel %vm1984_vm4, %v1931_v19, -inf }
 0x288   :  { %v2878_v29 = vmul.f32 0.01, %v2770_v20  ;;  %v2032_v33 = vmax.f32 %v2030_v35, %v2031_v28  ;;  %v2944_v34 = vmax.f32 %v2778_v6, %v2880_v16  ;;  %v2022_v36 = vsel %vm1984_vm4, %v1929_v24, -inf }
 0x289   :  { %v5246_v30 = vpop.f32.mrf.mxu0  ;;  %v5352_v31 = vpop.f32.mrf.mxu1  ;;  %v2010_v32 = vrot.slane %v2009_v23, 1  ;;  %v2943_v37 = vmax.f32 %v2775_v60, %v2879_v17  ;;  %v2941_v38 = vmax.f32 %v2767_v63, %v2877_v18  ;;  %v2023_v39 = vmax.f32 %v2021_v27, %v2022_v36 }
 0x28a   :  { %v2942_v40 = vmax.f32 %v2770_v20, %v2878_v29  ;;  %v1870_v44 = vmul.f32 0.01, %v1658_v25  ;;  %v2791_v45 = vadd.f32 %v5348_v57, %v6137_v12  ;;  %v1650_v46 = vadd.f32 %v6202_v4, %v1649_v1 }
 0x28b   :  { %v1665_v41 = vpop.f32.mrf.mxu0  ;;  %v2011_v43 = vmax.f32 %v2009_v23, %v2010_v32  ;;  %v2798_v47 = vpop.f32.mrf.mxu1  ;;  %v2017_v48 = vrot.slane %v2016_v26, 2  ;;  %v2783_v50 = vadd.f32 %v6137_v12, %v2782_v2  ;;  %v2982_v53 = vpack.c.bf16 %v2944_v34, %v2943_v37 }
 0x28c   :  { %v2981_v49 = vpack.c.bf16 %v2942_v40, %v2941_v38  ;;  %v1868_v54 = vmul.f32 0.01, %v1650_v46  ;;  %v2033_v55 = vrot.slane %v2032_v33, 4  ;;  %v1661_v56 = vadd.f32 %v5243_v13, %v6202_v4 }
 0x28d   :  { %v5247_v51 = vpop.f32.mrf.mxu0  ;;  %v6259_v52 = vsel %vm4416_vm6, %v2011_v43, %v4415_v8  ;;  %v1934_v57 = vmax.f32 %v1658_v25, %v1870_v44  ;;  %v2883_v59 = vmul.f32 0.01, %v2791_v45  ;;  %v2794_v60 = vadd.f32 %v5349_v14, %v6137_v12  ;;  %v5353_v62 = vpop.f32.mrf.mxu1 }
 0x28e   :  { %5410 = vmatprep.mubr.msk.bf16.mxu0 %vm1984_vm4, %v2981_v49  ;;  %v1653_v61 = vadd.f32 %v6202_v4, %v1652_v21  ;;  %v6266_v63 = vmax.f32 %v2016_v26, %v2017_v48  ;;  %v2881_v0 = vmul.f32 0.01, %v2783_v50  ;;  %v1871_v1 = vmul.f32 0.01, %v1661_v56 }
 0x28f   :  { %v1668_v58 = vpop.f32.mrf.mxu0  ;;  %5411 = vmatmul.mubr.msk.bf16.gmra.mxu0 %vm1984_vm4, %v2982_v53  ;;  %v2786_v2 = vadd.f32 %v6137_v12, %v2785_v22  ;;  %v2024_v5 = vrot.slane %v2023_v39, 4  ;;  %v1932_v6 = vmax.f32 %v1650_v46, %v1868_v54  ;;  %v2884_v7 = vmul.f32 0.01, %v2794_v60  ;;  %v2801_v18 = vpop.f32.mrf.mxu1 }
 0x290   :  { %v1869_v8 = vmul.f32 0.01, %v1653_v61  ;;  %v2034_v9 = vmax.f32 %v2032_v33, %v2033_v55  ;;  %v1935_v10 = vmax.f32 %v1661_v56, %v1871_v1  ;;  %v1674_v13 = vadd.f32 %v5246_v30, %v6202_v4 }
 0x291   :  { %v5250_v3 = vpop.f32.mrf.mxu0  ;;  %v2882_v11 = vmul.f32 0.01, %v2786_v2  ;;  %v2048_v15 = vsel %vm1984_vm4, %v1934_v57, -inf  ;;  %v2947_v16 = vmax.f32 %v2791_v45, %v2883_v59  ;;  %v2948_v42 = vmax.f32 %v2794_v60, %v2884_v7  ;;  %v5356_v37 = vpop.f32.mrf.mxu1 }
 0x292   :  { %v1933_v17 = vmax.f32 %v1653_v61, %v1869_v8  ;;  %v2945_v19 = vmax.f32 %v2783_v50, %v2881_v0  ;;  %v2049_v20 = vsel %vm1984_vm4, %v1935_v10, -inf  ;;  %v1874_v22 = vmul.f32 0.01, %v1674_v13 }
 0x293   :  { %v6270_v14 = vpop.f32.mrf.mxu0  ;;  %v2946_v21 = vmax.f32 %v2786_v2, %v2882_v11  ;;  %v2039_v35 = vsel %vm1984_vm4, %v1932_v6, -inf  ;;  %v2050_v24 = vmax.f32 %v2048_v15, %v2049_v20  ;;  %v2807_v26 = vadd.f32 %v5352_v31, %v6137_v12  ;;  %v2814_v56 = vpop.f32.mrf.mxu1 }
 0x294   :  { %v2040_v25 = vsel %vm1984_vm4, %v1933_v17, -inf  ;;  %v2025_v27 = vmax.f32 %v2023_v39, %v2024_v5  ;;  %v2035_v32 = vrot.slane %v2034_v9, 2  ;;  %v2984_v33 = vpack.c.bf16 %v2948_v42, %v2947_v16 }
 0x295   :  { %v6274_v23 = vpop.f32.mrf.mxu0  ;;  %v2041_v28 = vmax.f32 %v2039_v35, %v2040_v25  ;;  %v2983_v29 = vpack.c.bf16 %v2946_v21, %v2945_v19  ;;  %v1666_v34 = vadd.f32 %v6202_v4, %v1665_v41  ;;  %v2799_v36 = vadd.f32 %v6137_v12, %v2798_v47  ;;  %v5357_v16 = vpop.f32.mrf.mxu1 }
 0x296   :  { %v1938_v38 = vmax.f32 %v1674_v13, %v1874_v22  ;;  %v1677_v40 = vadd.f32 %v5247_v51, %v6202_v4  ;;  %v2810_v43 = vadd.f32 %v5353_v62, %v6137_v12  ;;  %v2019_v39 = vrot.slane %v6266_v63, 1 }
 0x297   :  { %v6279_v30 = vpop.f32.mrf.mxu0  ;;  %5414 = vmatprep.mubr.msk.bf16.mxu0 %vm1984_vm4, %v2983_v29  ;;  %v2051_v44 = vrot.slane %v2050_v24, 4  ;;  %v2887_v45 = vmul.f32 0.01, %v2807_v26  ;;  %v1872_v46 = vmul.f32 0.01, %v1666_v34  ;;  %v2042_v41 = vrot.slane %v2041_v28, 4 }
 0x298   :  { %5415 = vmatmul.mubr.msk.bf16.gmra.mxu0 %vm1984_vm4, %v2984_v33  ;;  %v1875_v48 = vmul.f32 0.01, %v1677_v40  ;;  %v2888_v47 = vmul.f32 0.01, %v2810_v43  ;;  %v1669_v49 = vadd.f32 %v6202_v4, %v1668_v58  ;;  %v6293_v51 = vmax.f32 %v2034_v9, %v2035_v32 }
 0x299   :  { %v6286_v31 = vpop.f32.mrf.mxu0  ;;  %v2026_v53 = vrot.slane %v2025_v27, 2  ;;  %v2885_v54 = vmul.f32 0.01, %v2799_v36  ;;  %v2802_v55 = vadd.f32 %v6137_v12, %v2801_v18  ;;  %v2066_v57 = vsel %vm1984_vm4, %v1938_v38, -inf }
 0x29a   :  { %v1936_v59 = vmax.f32 %v1666_v34, %v1872_v46  ;;  %v1939_v60 = vmax.f32 %v1677_v40, %v1875_v48  ;;  %v1873_v61 = vmul.f32 0.01, %v1669_v49  ;;  %v6299_v0 = vmax.f32 %v2050_v24, %v2051_v44 }
 0x29b   :  { %v6291_v50 = vpop.f32.mrf.mxu0  ;;  %v2951_v1 = vmax.f32 %v2807_v26, %v2887_v45  ;;  %v2886_v58 = vmul.f32 0.01, %v2802_v55  ;;  %v1690_v2 = vadd.f32 %v5250_v3, %v6202_v4  ;;  %v6302_v5 = vmax.f32 %v2041_v28, %v2042_v41 }
 0x29c   :  { %v2067_v6 = vsel %vm1984_vm4, %v1939_v60, -inf  ;;  %v2952_v7 = vmax.f32 %v2810_v43, %v2888_v47  ;;  %v1937_v8 = vmax.f32 %v1669_v49, %v1873_v61  ;;  %v2949_v10 = vmax.f32 %v2799_v36, %v2885_v54  ;;  %v2817_v36 = vpop.f32.mrf.mxu1 }
 0x29d   :  { %v6297_v62 = vpop.f32.mrf.mxu0  ;;  %v2068_v11 = vmax.f32 %v2066_v57, %v2067_v6  ;;  %v2950_v13 = vmax.f32 %v2802_v55, %v2886_v58  ;;  %v1878_v15 = vmul.f32 0.01, %v1690_v2  ;;  %v2057_v42 = vsel %vm1984_vm4, %v1936_v59, -inf }
 0x29e   :  { %v2058_v17 = vsel %vm1984_vm4, %v1937_v8, -inf  ;;  %v6310_v18 = vadd.f32 %v5356_v37, %v6137_v12  ;;  %v1682_v3 = vadd.f32 %v6202_v4, %v6270_v14  ;;  %v6316_v20 = vmax.f32 %v2025_v27, %v2026_v53 }
 0x29f   :  { %v6305_v9 = vpop.f32.mrf.mxu0  ;;  %v2069_v21 = vrot.slane %v2068_v11, 4  ;;  %v2059_v22 = vmax.f32 %v2057_v42, %v2058_v17  ;;  %v2985_v35 = vpack.c.bf16 %v2950_v13, %v2949_v10  ;;  %v2037_v24 = vrot.slane %v6293_v51, 1 }
 0x2a0   :  { %v2986_v25 = vpack.c.bf16 %v2952_v7, %v2951_v1  ;;  %v1942_v26 = vmax.f32 %v1690_v2, %v1878_v15  ;;  %v1876_v28 = vmul.f32 0.01, %v1682_v3  ;;  %v2815_v34 = vadd.f32 %v6137_v12, %v2814_v56 }
 0x2a1   :  { %v6314_v19 = vpop.f32.mrf.mxu0  ;;  %v2070_v32 = vmax.f32 %v2068_v11, %v2069_v21  ;;  %v2060_v33 = vrot.slane %v2059_v22, 4  ;;  %v1693_v14 = vadd.f32 %v6274_v23, %v6202_v4  ;;  %5418 = vmatprep.mubr.msk.bf16.mxu0 %vm1984_vm4, %v2985_v35  ;;  %v2053_v27 = vrot.slane %v6299_v0, 2 }
 0x2a2   :  { %v2044_v37 = vrot.slane %v6302_v5, 2  ;;  %v2891_v38 = vmul.f32 0.01, %v6310_v18  ;;  %v2826_v40 = vadd.f32 %v5357_v16, %v6137_v12  ;;  %5419 = vmatmul.mubr.msk.bf16.gmra.mxu0 %vm1984_vm4, %v2986_v25  ;;  %v2084_v46 = vsel %vm1984_vm4, %v1942_v26, -inf }
 0x2a3   :  { %v6319_v29 = vpop.f32.mrf.mxu0  ;;  %v2071_v44 = vrot.slane %v2070_v32, 2  ;;  %v2061_v45 = vmax.f32 %v2059_v22, %v2060_v33  ;;  %v1879_v41 = vmul.f32 0.01, %v1693_v14  ;;  %v2889_v23 = vmul.f32 0.01, %v2815_v34 }
 0x2a4   :  { %v2892_v48 = vmul.f32 0.01, %v2826_v40  ;;  %v1685_v47 = vadd.f32 %v6202_v4, %v6279_v30  ;;  %v2818_v49 = vadd.f32 %v6137_v12, %v2817_v36  ;;  %v1940_v56 = vmax.f32 %v1682_v3, %v1876_v28 }
 0x2a5   :  { %v5259_v43 = vpop.f32.mrf.mxu0  ;;  %v2072_v54 = vmax.f32 %v2070_v32, %v2071_v44  ;;  %v2062_v55 = vrot.slane %v2061_v45, 2  ;;  %v1943_v57 = vmax.f32 %v1693_v14, %v1879_v41  ;;  %v1706_v1 = vadd.f32 %v6286_v31, %v6202_v4 }
 0x2a6   :  { %v2956_v59 = vmax.f32 %v2826_v40, %v2892_v48  ;;  %v1877_v60 = vmul.f32 0.01, %v1685_v47  ;;  %v2890_v61 = vmul.f32 0.01, %v2818_v49  ;;  %v1698_v12 = vadd.f32 %v6202_v4, %v6291_v50 }
 0x2a7   :  { %v1716_v53 = vpop.f32.mrf.mxu0  ;;  %v2073_v2 = vrot.slane %v2072_v54, 1  ;;  %v2063_v6 = vmax.f32 %v2061_v45, %v2062_v55  ;;  %v2085_v7 = vsel %vm1984_vm4, %v1943_v57, -inf  ;;  %v2953_v30 = vmax.f32 %v2815_v34, %v2889_v23 }
 0x2a8   :  { %v2086_v8 = vmax.f32 %v2084_v46, %v2085_v7  ;;  %v1941_v10 = vmax.f32 %v1685_v47, %v1877_v60  ;;  %v2954_v11 = vmax.f32 %v2818_v49, %v2890_v61  ;;  %v2955_v16 = vmax.f32 %v6310_v18, %v2891_v38 }
 0x2a9   :  { %v6336_v58 = vpop.f32.mrf.mxu0  ;;  %v2064_v15 = vrot.slane %v2063_v6, 1  ;;  %v2075_v31 = vsel %vm1984_vm4, %v1940_v56, -inf  ;;  %v1882_v42 = vmul.f32 0.01, %v1706_v1  ;;  %v1880_v21 = vmul.f32 0.01, %v1698_v12 }
 0x2aa   :  { %v2076_v17 = vsel %vm1984_vm4, %v1941_v10, -inf  ;;  %v2987_v3 = vpack.c.bf16 %v2954_v11, %v2953_v30  ;;  %v1709_v22 = vadd.f32 %v6297_v62, %v6202_v4  ;;  %v2074_v35 = vmax.f32 %v2072_v54, %v2073_v2 }
 0x2ab   :  { %v6341_v13 = vpop.f32.mrf.mxu0  ;;  %v2065_v25 = vmax.f32 %v2063_v6, %v2064_v15  ;;  %v2988_v26 = vpack.c.bf16 %v2956_v59, %v2955_v16  ;;  %v2077_v28 = vmax.f32 %v2075_v31, %v2076_v17  ;;  %v1946_v32 = vmax.f32 %v1706_v1, %v1882_v42 }
 0x2ac   :  { %v1883_v33 = vmul.f32 0.01, %v1709_v22  ;;  %v1701_v18 = vadd.f32 %v6202_v4, %v6305_v9  ;;  %5422 = vmatprep.mubr.msk.bf16.mxu0 %vm1984_vm4, %v2987_v3  ;;  %v1722_v34 = vadd.f32 %v6314_v19, %v6202_v4  ;;  %v6358_v62 = vmax.f32 %v6299_v0, %v2053_v27 }
 0x2ad   :  { %v6348_v50 = vpop.f32.mrf.mxu0  ;;  %v4428_v36 = vsel %vm4414_vm5, %v2074_v35, %v2065_v25  ;;  %v2087_v38 = vrot.slane %v2086_v8, 4  ;;  %v2078_v40 = vrot.slane %v2077_v28, 4  ;;  %5423 = vmatmul.mubr.msk.bf16.gmra.mxu0 %vm1984_vm4, %v2988_v26  ;;  %v1944_v44 = vmax.f32 %v1698_v12, %v1880_v21 }
 0x2ae   :  { %v1947_v45 = vmax.f32 %v1709_v22, %v1883_v33  ;;  %v1881_v46 = vmul.f32 0.01, %v1701_v18  ;;  %v1886_v9 = vmul.f32 0.01, %v1722_v34  ;;  %v1714_v19 = vadd.f32 %v6202_v4, %v6319_v29 }
 0x2af   :  { %v6355_v14 = vpop.f32.mrf.mxu0  ;;  %v2079_v23 = vmax.f32 %v2077_v28, %v2078_v40  ;;  %v1725_v48 = vadd.f32 %v5259_v43, %v6202_v4  ;;  %v1717_v0 = vadd.f32 %v6202_v4, %v1716_v53  ;;  %v2102_v27 = vsel %vm1984_vm4, %v1946_v32, -inf }
 0x2b0   :  { %v2103_v47 = vsel %vm1984_vm4, %v1947_v45, -inf  ;;  %v1945_v49 = vmax.f32 %v1701_v18, %v1881_v46  ;;  %v1950_v54 = vmax.f32 %v1722_v34, %v1886_v9  ;;  %v1884_v59 = vmul.f32 0.01, %v1714_v19 }
 0x2b1   :  { %v5266_v41 = vpop.f32.mrf.mxu0  ;;  %v2080_v56 = vrot.slane %v2079_v23, 2  ;;  %v2104_v57 = vmax.f32 %v2102_v27, %v2103_v47  ;;  %v1887_v60 = vmul.f32 0.01, %v1725_v48  ;;  %v2045_v61 = vmax.f32 %v6302_v5, %v2044_v37 }
 0x2b2   :  { %v2093_v29 = vsel %vm1984_vm4, %v1944_v44, -inf  ;;  %v2094_v43 = vsel %vm1984_vm4, %v1945_v49, -inf  ;;  %v1885_v53 = vmul.f32 0.01, %v1717_v0  ;;  %v2088_v2 = vmax.f32 %v2086_v8, %v2087_v38 }
 0x2b3   :  { %v1745_v55 = vpop.f32.mrf.mxu0  ;;  %v2081_v6 = vmax.f32 %v2079_v23, %v2080_v56  ;;  %v2095_v7 = vmax.f32 %v2093_v29, %v2094_v43  ;;  %v1948_v12 = vmax.f32 %v1714_v19, %v1884_v59  ;;  %v2105_v30 = vrot.slane %v2104_v57, 4 }
 0x2b4   :  { %v1951_v10 = vmax.f32 %v1725_v48, %v1887_v60  ;;  %v1949_v11 = vmax.f32 %v1717_v0, %v1885_v53  ;;  %v1738_v15 = vadd.f32 %v6336_v58, %v6202_v4  ;;  %v2028_v31 = vrot.slane %v6316_v20, 1 }
 0x2b5   :  { %v5267_v1 = vpop.f32.mrf.mxu0  ;;  %v2055_v5 = vrot.slane %v6358_v62, 1  ;;  %v2082_v37 = vrot.slane %v2081_v6, 1  ;;  %v2120_v42 = vsel %vm1984_vm4, %v1950_v54, -inf  ;;  %v1730_v21 = vadd.f32 %v6202_v4, %v6341_v13 }
 0x2b6   :  { %v2121_v17 = vsel %vm1984_vm4, %v1951_v10, -inf  ;;  %v2112_v8 = vsel %vm1984_vm4, %v1949_v11, -inf  ;;  %v1890_v3 = vmul.f32 0.01, %v1738_v15  ;;  %v2089_v35 = vrot.slane %v2088_v2, 2 }
 0x2b7   :  { %v1748_v16 = vpop.f32.mrf.mxu0  ;;  %v2083_v25 = vmax.f32 %v2081_v6, %v2082_v37  ;;  %v2111_v58 = vsel %vm1984_vm4, %v1948_v12, -inf  ;;  %v2122_v26 = vmax.f32 %v2120_v42, %v2121_v17  ;;  %v2046_v28 = vrot.slane %v2045_v61, 1 }
 0x2b8   :  { %v2106_v32 = vmax.f32 %v2104_v57, %v2105_v30  ;;  %v2113_v33 = vmax.f32 %v2111_v58, %v2112_v8  ;;  %v1741_v18 = vadd.f32 %v6348_v50, %v6202_v4  ;;  %v2096_v40 = vrot.slane %v2095_v7, 4 }
 0x2b9   :  { %v5270_v22 = vpop.f32.mrf.mxu0  ;;  %v6386_v38 = vsel %vm4416_vm6, %v2083_v25, %v4428_v36  ;;  %v1888_v44 = vmul.f32 0.01, %v1730_v21  ;;  %v6391_v13 = vmax.f32 %v6266_v63, %v2019_v39  ;;  %v6396_v45 = vmax.f32 %v6293_v51, %v2037_v24 }
 0x2ba   :  { %v1954_v46 = vmax.f32 %v1738_v15, %v1890_v3  ;;  %v1891_v9 = vmul.f32 0.01, %v1741_v18  ;;  %v6399_v50 = vmax.f32 %v6316_v20, %v2028_v31  ;;  %v6402_v36 = vmax.f32 %v6358_v62, %v2055_v5 }
 0x2bb   :  { %v1761_v34 = vpop.f32.mrf.mxu0  ;;  %v6404_v19 = vmax.f32 %v2088_v2, %v2089_v35  ;;  %v1733_v63 = vadd.f32 %v6202_v4, %v6355_v14  ;;  %v6408_v39 = vmax.f32 %v2045_v61, %v2046_v28  ;;  %v2107_v48 = vrot.slane %v2106_v32, 2 }
 0x2bc   :  { %v1955_v0 = vmax.f32 %v1741_v18, %v1891_v9  ;;  %v1754_v51 = vadd.f32 %v5266_v41, %v6202_v4  ;;  %v6411_v27 = vmax.f32 %v2095_v7, %v2096_v40  ;;  %v2123_v47 = vrot.slane %v2122_v26, 4 }
 0x2bd   :  { %v5271_v23 = vpop.f32.mrf.mxu0  ;;  %v1952_v20 = vmax.f32 %v1730_v21, %v1888_v44  ;;  %v1889_v49 = vmul.f32 0.01, %v1733_v63  ;;  %v2138_v62 = vsel %vm1984_vm4, %v1954_v46, -inf  ;;  %v1746_v57 = vadd.f32 %v6202_v4, %v1745_v55 }
 0x2be   :  { %v2139_v54 = vsel %vm1984_vm4, %v1955_v0, -inf  ;;  %v1894_v56 = vmul.f32 0.01, %v1754_v51  ;;  %v2091_v59 = vrot.slane %v6404_v19, 1  ;;  %v2114_v60 = vrot.slane %v2113_v33, 4 }
 0x2bf   :  { %v1764_v24 = vpop.f32.mrf.mxu0  ;;  %v2140_v61 = vmax.f32 %v2138_v62, %v2139_v54  ;;  %v1953_v29 = vmax.f32 %v1733_v63, %v1889_v49  ;;  %v6417_v41 = vmax.f32 %v2106_v32, %v2107_v48  ;;  %v1892_v53 = vmul.f32 0.01, %v1746_v57 }
 0x2c0   :  { %v1958_v43 = vmax.f32 %v1754_v51, %v1894_v56  ;;  %v1757_v2 = vadd.f32 %v5267_v1, %v6202_v4  ;;  %v2129_v7 = vsel %vm1984_vm4, %v1952_v20, -inf  ;;  %v1749_v55 = vadd.f32 %v6202_v4, %v1748_v16 }
 0x2c1   :  { %v5274_v14 = vpop.f32.mrf.mxu0  ;;  %v2141_v12 = vrot.slane %v2140_v61, 4  ;;  %v2130_v30 = vsel %vm1984_vm4, %v1953_v29, -inf  ;;  %v2098_v10 = vrot.slane %v6411_v27, 2  ;;  %v6424_v11 = vmax.f32 %v2122_v26, %v2123_v47 }
 0x2c2   :  { %v2131_v15 = vmax.f32 %v2129_v7, %v2130_v30  ;;  %v1956_v31 = vmax.f32 %v1746_v57, %v1892_v53  ;;  %v6426_v37 = vmax.f32 %v2113_v33, %v2114_v60  ;;  %v1895_v17 = vmul.f32 0.01, %v1757_v2 }
 0x2c3   :  { %v1777_v6 = vpop.f32.mrf.mxu0  ;;  %v2142_v42 = vmax.f32 %v2140_v61, %v2141_v12  ;;  %v1893_v1 = vmul.f32 0.01, %v1749_v55  ;;  %v2156_v3 = vsel %vm1984_vm4, %v1958_v43, -inf  ;;  %v1770_v35 = vadd.f32 %v5270_v22, %v6202_v4 }
 0x2c4   :  { %v2132_v8 = vrot.slane %v2131_v15, 4  ;;  %v2147_v21 = vsel %vm1984_vm4, %v1956_v31, -inf  ;;  %v1959_v58 = vmax.f32 %v1757_v2, %v1895_v17  ;;  %v1762_v28 = vadd.f32 %v6202_v4, %v1761_v34 }
 0x2c5   :  { %v5275_v5 = vpop.f32.mrf.mxu0  ;;  %v2143_v25 = vrot.slane %v2142_v42, 2  ;;  %v1957_v26 = vmax.f32 %v1749_v55, %v1893_v1  ;;  %v1898_v18 = vmul.f32 0.01, %v1770_v35  ;;  %v1773_v33 = vadd.f32 %v5271_v23, %v6202_v4 }
 0x2c6   :  { %v2133_v32 = vmax.f32 %v2131_v15, %v2132_v8  ;;  %v1765_v40 = vadd.f32 %v6202_v4, %v1764_v24  ;;  %v2157_v9 = vsel %vm1984_vm4, %v1959_v58, -inf  ;;  %v1896_v22 = vmul.f32 0.01, %v1762_v28 }
 0x2c7   :  { %v1780_v16 = vpop.f32.mrf.mxu0  ;;  %v2144_v46 = vmax.f32 %v2142_v42, %v2143_v25  ;;  %v2148_v63 = vsel %vm1984_vm4, %v1957_v26, -inf  ;;  %v2158_v0 = vmax.f32 %v2156_v3, %v2157_v9  ;;  %v1962_v47 = vmax.f32 %v1770_v35, %v1898_v18 }
 0x2c8   :  { %v2134_v48 = vrot.slane %v2133_v32, 2  ;;  %v2149_v51 = vmax.f32 %v2147_v21, %v2148_v63  ;;  %v1960_v49 = vmax.f32 %v1762_v28, %v1896_v22  ;;  %v1899_v62 = vmul.f32 0.01, %v1773_v33 }
 0x2c9   :  { %v6434_v44 = vpop.f32.mrf.mxu0  ;;  %v2145_v34 = vrot.slane %v2144_v46, 1  ;;  %v1897_v54 = vmul.f32 0.01, %v1765_v40  ;;  %v2125_v23 = vrot.slane %v6424_v11, 2  ;;  %v2159_v56 = vrot.slane %v2158_v0, 4 }
 0x2ca   :  { %v2135_v24 = vmax.f32 %v2133_v32, %v2134_v48  ;;  %v2150_v57 = vrot.slane %v2149_v51, 4  ;;  %v2174_v29 = vsel %vm1984_vm4, %v1962_v47, -inf  ;;  %v1963_v43 = vmax.f32 %v1773_v33, %v1899_v62 }
 0x2cb   :  { %v1793_v20 = vpop.f32.mrf.mxu0  ;;  %v2146_v61 = vmax.f32 %v2144_v46, %v2145_v34  ;;  %v1961_v53 = vmax.f32 %v1765_v40, %v1897_v54  ;;  %v2165_v12 = vsel %vm1984_vm4, %v1960_v49, -inf  ;;  %v1786_v30 = vadd.f32 %v5274_v14, %v6202_v4 }
 0x2cc   :  { %v2136_v2 = vrot.slane %v2135_v24, 1  ;;  %v2151_v7 = vmax.f32 %v2149_v51, %v2150_v57  ;;  %v2175_v15 = vsel %vm1984_vm4, %v1963_v43, -inf  ;;  %v1778_v42 = vadd.f32 %v6202_v4, %v1777_v6 }
 0x2cd   :  { %v5279_v60 = vpop.f32.mrf.mxu0  ;;  %v2166_v31 = vsel %vm1984_vm4, %v1961_v53, -inf  ;;  %v1789_v17 = vadd.f32 %v5275_v5, %v6202_v4  ;;  %v2160_v8 = vmax.f32 %v2158_v0, %v2159_v56  ;;  %v2176_v21 = vmax.f32 %v2174_v29, %v2175_v15 }
 0x2ce   :  { %v2137_v1 = vmax.f32 %v2135_v24, %v2136_v2  ;;  %v2152_v3 = vrot.slane %v2151_v7, 2  ;;  %v2099_v25 = vmax.f32 %v6411_v27, %v2098_v10  ;;  %v2167_v58 = vmax.f32 %v2165_v12, %v2166_v31 }
 0x2cf   :  { %v1796_v55 = vpop.f32.mrf.mxu0  ;;  %v1902_v26 = vmul.f32 0.01, %v1786_v30  ;;  %v1903_v14 = vmul.f32 0.01, %v1789_v17  ;;  %v6452_v28 = vmax.f32 %v6404_v19, %v2091_v59  ;;  %v2116_v6 = vrot.slane %v6426_v37, 2 }
 0x2d0   :  { %v4435_v5 = vsel %vm4414_vm5, %v2146_v61, %v2137_v1  ;;  %v2153_v32 = vmax.f32 %v2151_v7, %v2152_v3  ;;  %v2109_v33 = vrot.slane %v6417_v41, 1  ;;  %v1900_v46 = vmul.f32 0.01, %v1778_v42 }
 0x2d1   :  { %v6446_v35 = vpop.f32.mrf.mxu0  ;;  %v1966_v40 = vmax.f32 %v1786_v30, %v1902_v26  ;;  %v1967_v9 = vmax.f32 %v1789_v17, %v1903_v14  ;;  %v2126_v27 = vmax.f32 %v6424_v11, %v2125_v23  ;;  %v2161_v10 = vrot.slane %v2160_v8, 2 }
 0x2d2   :  { %v2154_v63 = vrot.slane %v2153_v32, 1  ;;  %v1781_v22 = vadd.f32 %v6202_v4, %v1780_v16  ;;  %v2100_v19 = vrot.slane %v2099_v25, 1  ;;  %v2177_v59 = vrot.slane %v2176_v21, 4  ;;  %v6467_v4 = vld [vmem:[%s6963_s6] ss:$0 sm:$0xff] }
 0x2d3   :  { %v1809_v18 = vpop.f32.mrf.mxu0  ;;  %v2192_v0 = vsel %vm1984_vm4, %v1966_v40, -inf  ;;  %v2193_v51 = vsel %vm1984_vm4, %v1967_v9, -inf  ;;  %v6462_v47 = vmax.f32 %v6426_v37, %v2116_v6  ;;  %v2168_v49 = vrot.slane %v2167_v58, 4 }
 0x2d4   :  { %v2155_v34 = vmax.f32 %v2153_v32, %v2154_v63  ;;  %v2194_v62 = vmax.f32 %v2192_v0, %v2193_v51  ;;  %v1964_v24 = vmax.f32 %v1778_v42, %v1900_v46  ;;  %v1901_v11 = vmul.f32 0.01, %v1781_v22 }
 0x2d5   :  { %v5283_v48 = vpop.f32.mrf.mxu0  ;;  %v1802_v16 = vadd.f32 %v6467_v4, %v6434_v44  ;;  %v1794_v23 = vadd.f32 %v6467_v4, %v1793_v20  ;;  %v2127_v56 = vrot.slane %v2126_v27, 1  ;;  %v6472_v57 = vmax.f32 %v2160_v8, %v2161_v10 }
 0x2d6   :  { %v6475_v37 = vsel %vm4416_vm6, %v2155_v34, %v4435_v5  ;;  %v1805_v61 = vadd.f32 %v6467_v4, %v5279_v60  ;;  %v2178_v43 = vmax.f32 %v2176_v21, %v2177_v59  ;;  %v1965_v53 = vmax.f32 %v1781_v22, %v1901_v11 }
 0x2d7   :  { %v1812_v54 = vpop.f32.mrf.mxu0  ;;  %v1906_v2 = vmul.f32 0.01, %v1802_v16  ;;  %v1904_v7 = vmul.f32 0.01, %v1794_v23  ;;  %v6479_v12 = vmax.f32 %v6417_v41, %v2109_v33  ;;  %v2169_v30 = vmax.f32 %v2167_v58, %v2168_v49 }
 0x2d8   :  { %v1907_v44 = vmul.f32 0.01, %v1805_v61  ;;  %v1797_v20 = vadd.f32 %v6467_v4, %v1796_v55  ;;  %v6482_v31 = vmax.f32 %v2099_v25, %v2100_v19  ;;  %v2183_v42 = vsel %vm1984_vm4, %v1964_v24, -inf }
 0x2d9   :  { %v5286_v29 = vpop.f32.mrf.mxu0  ;;  %v2184_v17 = vsel %vm1984_vm4, %v1965_v53, -inf  ;;  %v1970_v60 = vmax.f32 %v1802_v16, %v1906_v2  ;;  %v2118_v1 = vrot.slane %v6462_v47, 1  ;;  %v1968_v3 = vmax.f32 %v1794_v23, %v1904_v7 }
 0x2da   :  { %v6487_v8 = vmax.f32 %v2183_v42, %v2184_v17  ;;  %v1971_v21 = vmax.f32 %v1805_v61, %v1907_v44  ;;  %v6489_v26 = vmax.f32 %v2126_v27, %v2127_v56  ;;  %v2163_v58 = vrot.slane %v6472_v57, 1 }
 0x2db   :  { %v1825_v15 = vpop.f32.mrf.mxu0  ;;  %v2179_v55 = vrot.slane %v2178_v43, 2  ;;  %v1905_v14 = vmul.f32 0.01, %v1797_v20  ;;  %v2170_v25 = vrot.slane %v2169_v30, 2  ;;  %v2210_v6 = vsel %vm1984_vm4, %v1970_v60, -inf }
 0x2dc   :  { %v2211_v5 = vsel %vm1984_vm4, %v1971_v21, -inf  ;;  %v1818_v32 = vadd.f32 %v6467_v4, %v6446_v35  ;;  %v1810_v9 = vadd.f32 %v6467_v4, %v1809_v18  ;;  %v1821_v27 = vadd.f32 %v6467_v4, %v5283_v48 }
 0x2dd   :  { %v5287_v41 = vpop.f32.mrf.mxu0  ;;  %v2212_v40 = vmax.f32 %v2210_v6, %v2211_v5  ;;  %v1969_v46 = vmax.f32 %v1797_v20, %v1905_v14  ;;  %v2195_v10 = vrot.slane %v2194_v62, 4  ;;  %v2201_v63 = vsel %vm1984_vm4, %v1968_v3, -inf }
 0x2de   :  { %v1910_v22 = vmul.f32 0.01, %v1818_v32  ;;  %v1813_v19 = vadd.f32 %v6467_v4, %v1812_v54  ;;  %v1908_v34 = vmul.f32 0.01, %v1810_v9  ;;  %v1911_v49 = vmul.f32 0.01, %v1821_v27 }
 0x2df   :  { %v1828_v33 = vpop.f32.mrf.mxu0  ;;  %v2213_v0 = vrot.slane %v2212_v40, 4  ;;  %v2202_v51 = vsel %vm1984_vm4, %v1969_v46, -inf  ;;  %v6501_v35 = vmax.f32 %v2178_v43, %v2179_v55  ;;  %v6503_v24 = vmax.f32 %v2169_v30, %v2170_v25 }
 0x2e0   :  { %v2203_v11 = vmax.f32 %v2201_v63, %v2202_v51  ;;  %v1974_v18 = vmax.f32 %v1818_v32, %v1910_v22  ;;  %v1972_v23 = vmax.f32 %v1810_v9, %v1908_v34  ;;  %v1975_v56 = vmax.f32 %v1821_v27, %v1911_v49 }
 0x2e1   :  { %v5290_v59 = vpop.f32.mrf.mxu0  ;;  %v2214_v48 = vmax.f32 %v2212_v40, %v2213_v0  ;;  %v1909_v61 = vmul.f32 0.01, %v1813_v19  ;;  %v6505_v53 = vmax.f32 %v2194_v62, %v2195_v10  ;;  %v2186_v54 = vrot.slane %v6487_v8, 4 }
 0x2e2   :  { %v2204_v2 = vrot.slane %v2203_v11, 4  ;;  %v1834_v7 = vadd.f32 %v6467_v4, %v5286_v29  ;;  %v2228_v43 = vsel %vm1984_vm4, %v1974_v18, -inf  ;;  %v2229_v30 = vsel %vm1984_vm4, %v1975_v56, -inf }
 0x2e3   :  { %v1841_v16 = vpop.f32.mrf.mxu0  ;;  %v2215_v20 = vrot.slane %v2214_v48, 2  ;;  %v1973_v42 = vmax.f32 %v1813_v19, %v1909_v61  ;;  %v2219_v60 = vsel %vm1984_vm4, %v1972_v23, -inf  ;;  %v2230_v3 = vmax.f32 %v2228_v43, %v2229_v30 }
 0x2e4   :  { %v2205_v17 = vmax.f32 %v2203_v11, %v2204_v2  ;;  %v1914_v21 = vmul.f32 0.01, %v1834_v7  ;;  %v1826_v25 = vadd.f32 %v6467_v4, %v1825_v15  ;;  %v1837_v29 = vadd.f32 %v6467_v4, %v5287_v41 }
 0x2e5   :  { %v5291_v44 = vpop.f32.mrf.mxu0  ;;  %v2216_v62 = vmax.f32 %v2214_v48, %v2215_v20  ;;  %v2220_v14 = vsel %vm1984_vm4, %v1973_v42, -inf  ;;  %v6516_v6 = vmax.f32 %v6462_v47, %v2118_v1  ;;  %v6519_v5 = vmax.f32 %v6472_v57, %v2163_v58 }
 0x2e6   :  { %v2206_v32 = vrot.slane %v2205_v17, 2  ;;  %v2221_v40 = vmax.f32 %v2219_v60, %v2220_v14  ;;  %v2181_v9 = vrot.slane %v6501_v35, 1  ;;  %v1978_v27 = vmax.f32 %v1834_v7, %v1914_v21 }
 0x2e7   :  { %v1844_v55 = vpop.f32.mrf.mxu0  ;;  %v1912_v10 = vmul.f32 0.01, %v1826_v25  ;;  %v1915_v63 = vmul.f32 0.01, %v1837_v29  ;;  %v2217_v22 = vrot.slane %v2216_v62, 1  ;;  %v1829_v41 = vadd.f32 %v6467_v4, %v1828_v33 }
 0x2e8   :  { %v2207_v19 = vmax.f32 %v2205_v17, %v2206_v32  ;;  %v2222_v15 = vrot.slane %v2221_v40, 4  ;;  %v2172_v47 = vrot.slane %v6503_v24, 1  ;;  %v2197_v57 = vrot.slane %v6505_v53, 2 }
 0x2e9   :  { %v6521_v46 = vpop.f32.mrf.mxu0  ;;  %v6528_v1 = vmax.f32 %v6487_v8, %v2186_v54  ;;  %v1979_v58 = vmax.f32 %v1837_v29, %v1915_v63  ;;  %v2246_v49 = vsel %vm1984_vm4, %v1978_v27, -inf  ;;  %v1913_v11 = vmul.f32 0.01, %v1829_v41 }
 0x2ea   :  { %v2208_v51 = vrot.slane %v2207_v19, 1  ;;  %v2223_v34 = vmax.f32 %v2221_v40, %v2222_v15  ;;  %v1976_v48 = vmax.f32 %v1826_v25, %v1912_v10  ;;  %v1850_v33 = vadd.f32 %v6467_v4, %v5290_v59 }
 0x2eb   :  { %v3142_v0 = vpop.f32.mrf.mxu0  ;;  %v2247_v23 = vsel %vm1984_vm4, %v1979_v58, -inf  ;;  %v1842_v56 = vadd.f32 %v6467_v4, %v1841_v16  ;;  %v2218_v61 = vmax.f32 %v2216_v62, %v2217_v22  ;;  %v2231_v54 = vrot.slane %v2230_v3, 4 }
 0x2ec   :  { %v2209_v2 = vmax.f32 %v2207_v19, %v2208_v51  ;;  %v2224_v7 = vrot.slane %v2223_v34, 2  ;;  %v2248_v20 = vmax.f32 %v2246_v49, %v2247_v23  ;;  %v1977_v43 = vmax.f32 %v1829_v41, %v1913_v11  ;;  %v6548_v41 = vld [vmem:[%s6964_s10] ss:$0 sm:$0xff] }
 0x2ed   :  { %v5365_v18 = vpop.f32.mrf.mxu0  ;;  %v1918_v30 = vmul.f32 0.01, %v1850_v33  ;;  %v1853_v42 = vadd.f32 %v6467_v4, %v5291_v44  ;;  %v1916_v14 = vmul.f32 0.01, %v1842_v56  ;;  %v2237_v59 = vsel %vm1984_vm4, %v1976_v48, -inf }
 0x2ee   :  { %v4442_v17 = vsel %vm4414_vm5, %v2218_v61, %v2209_v2  ;;  %v2225_v60 = vmax.f32 %v2223_v34, %v2224_v7  ;;  %v2249_v21 = vrot.slane %v2248_v20, 4  ;;  %v2238_v16 = vsel %vm1984_vm4, %v1977_v43, -inf }
 0x2ef   :  { %v3145_v8 = vpop.f32.mrf.mxu0  ;;  %v1982_v62 = vmax.f32 %v1850_v33, %v1918_v30  ;;  %v1919_v29 = vmul.f32 0.01, %v1853_v42  ;;  %v6541_v32 = vmax.f32 %v6505_v53, %v2197_v57  ;;  %v2188_v40 = vrot.slane %v6528_v1, 2 }
 0x2f0   :  { %v2226_v27 = vrot.slane %v2225_v60, 1  ;;  %v2239_v44 = vmax.f32 %v2237_v59, %v2238_v16  ;;  %v2232_v63 = vmax.f32 %v2230_v3, %v2231_v54  ;;  %v2250_v22 = vmax.f32 %v2248_v20, %v2249_v21 }
 0x2f1   :  { %v6536_v25 = vpop.f32.mrf.mxu0  ;;  %v1983_v19 = vmax.f32 %v1853_v42, %v1919_v29  ;;  %v1845_v15 = vadd.f32 %v6467_v4, %v1844_v55  ;;  %v2264_v53 = vsel %vm1984_vm4, %v1982_v62, -inf  ;;  %v1980_v57 = vmax.f32 %v1842_v56, %v1916_v14 }
 0x2f2   :  { %v2227_v58 = vmax.f32 %v2225_v60, %v2226_v27  ;;  %v2240_v51 = vrot.slane %v2239_v44, 4  ;;  %v3143_v3 = vadd.f32 %v6548_v41, %v3142_v0  ;;  %v3154_v48 = vadd.f32 %v5365_v18, %v6548_v41 }
 0x2f3   :  { %v3158_v10 = vpop.f32.mrf.mxu0  ;;  %v2265_v49 = vsel %vm1984_vm4, %v1983_v19, -inf  ;;  %v1917_v11 = vmul.f32 0.01, %v1845_v15  ;;  %v3151_v33 = vadd.f32 %v6521_v46, %v6548_v41  ;;  %v6562_v56 = vmax.f32 %v6501_v35, %v2181_v9 }
 0x2f4   :  { %v6555_v4 = vsel %vm4416_vm6, %v2227_v58, %v4442_v17  ;;  %v2241_v55 = vmax.f32 %v2239_v44, %v2240_v51  ;;  %v2266_v23 = vmax.f32 %v2264_v53, %v2265_v49  ;;  %v2233_v2 = vrot.slane %v2232_v63, 2 }
 0x2f5   :  { %v5369_v34 = vpop.f32.mrf.mxu0  ;;  %v2251_v7 = vrot.slane %v2250_v22, 2  ;;  %v1981_v20 = vmax.f32 %v1845_v15, %v1917_v11  ;;  %v6565_v0 = vmax.f32 %v6503_v24, %v2172_v47  ;;  %v3400_v54 = vmul.f32 0.01, %v3154_v48 }
 0x2f6   :  { %v2267_v18 = vrot.slane %v2266_v23, 4  ;;  %v3146_v43 = vadd.f32 %v6548_v41, %v3145_v8  ;;  %v2199_v42 = vrot.slane %v6541_v32, 1  ;;  %v2255_v46 = vsel %vm1984_vm4, %v1980_v57, -inf }
 0x2f7   :  { %v3161_v61 = vpop.f32.mrf.mxu0  ;;  %v2256_v17 = vsel %vm1984_vm4, %v1981_v20, -inf  ;;  %v3397_v60 = vmul.f32 0.01, %v3143_v3  ;;  %v2189_v35 = vmax.f32 %v6528_v1, %v2188_v40  ;;  %v2242_v9 = vrot.slane %v2241_v55, 2 }
 0x2f8   :  { %v2257_v21 = vmax.f32 %v2255_v46, %v2256_v17  ;;  %v3399_v14 = vmul.f32 0.01, %v3151_v33  ;;  %v2234_v24 = vmax.f32 %v2232_v63, %v2233_v2  ;;  %v2252_v47 = vmax.f32 %v2250_v22, %v2251_v7 }
 0x2f9   :  { %v5372_v30 = vpop.f32.mrf.mxu0  ;;  %v3398_v16 = vmul.f32 0.01, %v3146_v43  ;;  %v3159_v62 = vadd.f32 %v6548_v41, %v3158_v10  ;;  %v2268_v8 = vmax.f32 %v2266_v23, %v2267_v18  ;;  %v3464_v27 = vmax.f32 %v3154_v48, %v3400_v54 }
 0x2fa   :  { %v2258_v29 = vrot.slane %v2257_v21, 4  ;;  %v3170_v44 = vadd.f32 %v5369_v34, %v6548_v41  ;;  %v3461_v15 = vmax.f32 %v3143_v3, %v3397_v60  ;;  %v3162_v1 = vadd.f32 %v6548_v41, %v3161_v61 }
 0x2fb   :  { %v3174_v59 = vpop.f32.mrf.mxu0  ;;  %v3462_v58 = vmax.f32 %v3146_v43, %v3398_v16  ;;  %v3401_v51 = vmul.f32 0.01, %v3159_v62  ;;  %v2243_v40 = vmax.f32 %v2241_v55, %v2242_v9  ;;  %v3463_v63 = vmax.f32 %v3151_v33, %v3399_v14 }
 0x2fc   :  { %v2259_v53 = vmax.f32 %v2257_v21, %v2258_v29  ;;  %v3167_v22 = vadd.f32 %v6536_v25, %v6548_v41  ;;  %v2190_v57 = vrot.slane %v2189_v35, 1  ;;  %v2235_v49 = vrot.slane %v2234_v24, 1 }
 0x2fd   :  { %v5373_v19 = vpop.f32.mrf.mxu0  ;;  %v3525_v11 = vpack.c.bf16 %v3462_v58, %v3461_v15  ;;  %v3402_v48 = vmul.f32 0.01, %v3162_v1  ;;  %v2269_v34 = vrot.slane %v2268_v8, 2  ;;  %v3526_v23 = vpack.c.bf16 %v3464_v27, %v3463_v63 }
 0x2fe   :  { %v2260_v3 = vrot.slane %v2259_v53, 2  ;;  %v3404_v2 = vmul.f32 0.01, %v3170_v44  ;;  %v3465_v61 = vmax.f32 %v3159_v62, %v3401_v51  ;;  %v3175_v33 = vadd.f32 %v6548_v41, %v3174_v59 }
 0x2ff   :  { %v3177_v10 = vpop.f32.mrf.mxu0  ;;  %v3466_v55 = vmax.f32 %v3162_v1, %v3402_v48  ;;  %5430 = vmatprep.mubr.msk.bf16.mxu1 %vm1984_vm4, %v3525_v11  ;;  %v2253_v20 = vrot.slane %v2252_v47, 1  ;;  %v2244_v18 = vrot.slane %v2243_v40, 1  ;;  %v3403_v54 = vmul.f32 0.01, %v3167_v22 }
 0x300   :  { %v3178_v25 = vadd.f32 %v6548_v41, %v3177_v10  ;;  %5431 = vmatmul.mubr.msk.bf16.vlgmr.msra.gmra.mxu1 %vm1984_vm4, %v3526_v23  ;;  %v6584_v43 = vadd.f32 %v5373_v19, %v6548_v41  ;;  %v2261_v17 = vmax.f32 %v2259_v53, %v2260_v3  ;;  %v3405_v9 = vmul.f32 0.01, %v3175_v33 }
 0x301   :  { %v6577_v7 = vpop.f32.mrf.mxu0  ;;  %v3527_v60 = vpack.c.bf16 %v3466_v55, %v3465_v61  ;;  %v2191_v14 = vmax.f32 %v2189_v35, %v2190_v57  ;;  %v2236_v16 = vmax.f32 %v2234_v24, %v2235_v49  ;;  %v2270_v62 = vmax.f32 %v2268_v8, %v2269_v34 }
 0x302   :  { %v3406_v21 = vmul.f32 0.01, %v3178_v25  ;;  %v3468_v59 = vmax.f32 %v3170_v44, %v3404_v2  ;;  %v3183_v27 = vadd.f32 %v5372_v30, %v6548_v41  ;;  %v3469_v15 = vmax.f32 %v3175_v33, %v3405_v9 }
 0x303   :  { %v3190_v46 = vpop.f32.mrf.mxu0  ;;  %5434 = vmatprep.mubr.msk.bf16.mxu1 %vm1984_vm4, %v3527_v60  ;;  %v2254_v19 = vmax.f32 %v2252_v47, %v2253_v20  ;;  %v2245_v1 = vmax.f32 %v2243_v40, %v2244_v18  ;;  %v3467_v63 = vmax.f32 %v3167_v22, %v3403_v54  ;;  %v4419_v35 = vsel %vm4418_vm7, %v6391_v13, %v6259_v52 }
 0x304   :  { %v3470_v58 = vmax.f32 %v3178_v25, %v3406_v21  ;;  %v3191_v51 = vadd.f32 %v6548_v41, %v3190_v46  ;;  %v2262_v24 = vrot.slane %v2261_v17, 1  ;;  %v3408_v8 = vmul.f32 0.01, %v6584_v43 }
 0x305   :  { %v5377_v29 = vpop.f32.mrf.mxu0  ;;  %v2271_v10 = vrot.slane %v2270_v62, 1  ;;  %v3528_v57 = vpack.c.bf16 %v3468_v59, %v3467_v63  ;;  %v4421_v11 = vsel %vm4420_vm8, %v6399_v50, %v4419_v35  ;;  %v4430_v47 = vsel %vm4418_vm7, %v6452_v28, %v6386_v38 }
 0x306   :  { %v3529_v44 = vpack.c.bf16 %v3470_v58, %v3469_v15  ;;  %v3407_v40 = vmul.f32 0.01, %v3183_v27  ;;  %v3409_v22 = vmul.f32 0.01, %v3191_v51  ;;  %v4423_v52 = vsel %vm4422_vm9, %v6396_v45, %v4421_v11 }
 0x307   :  { %v3193_v53 = vpop.f32.mrf.mxu0  ;;  %v4425_v34 = vsel %vm4424_vm10, %v6408_v39, %v4423_v52  ;;  %v4431_v3 = vsel %vm4420_vm8, %v6482_v31, %v4430_v47  ;;  %v4437_v50 = vsel %vm4418_vm7, %v6519_v5, %v6475_v37  ;;  %v4444_v38 = vsel %vm4418_vm7, %v2236_v16, %v6555_v4 }
 0x308   :  { %v3194_v30 = vadd.f32 %v6548_v41, %v3193_v53  ;;  %5435 = vmatmul.mubr.msk.bf16.gmra.mxu1 %vm1984_vm4, %v3528_v57  ;;  %v2263_v28 = vmax.f32 %v2261_v17, %v2262_v24  ;;  %v3472_v23 = vmax.f32 %v6584_v43, %v3408_v8  ;;  %v3202_v45 = vadd.f32 %v5377_v29, %v6548_v41 }
 0x309   :  { %v5380_v49 = vpop.f32.mrf.mxu0  ;;  %5438 = vmatprep.mubr.msk.bf16.mxu1 %vm1984_vm4, %v3529_v44  ;;  %v6616_v39 = vsel %vm4426_vm11, %v6402_v36, %v4425_v34  ;;  %v4432_v31 = vsel %vm4422_vm9, %v6479_v12, %v4431_v3  ;;  %v4438_v37 = vsel %vm4420_vm8, %v6565_v0, %v4437_v50  ;;  %v4445_v5 = vsel %vm4420_vm8, %v2245_v1, %v4444_v38 }
 0x30a   :  { %v3410_v48 = vmul.f32 0.01, %v3194_v30  ;;  %v2200_v4 = vmax.f32 %v6541_v32, %v2199_v42  ;;  %v3471_v55 = vmax.f32 %v3183_v27, %v3407_v40  ;;  %v3473_v33 = vmax.f32 %v3191_v51, %v3409_v22 }
 0x30b   :  { %v3206_v13 = vpop.f32.mrf.mxu0  ;;  %v3199_v36 = vadd.f32 %v6577_v7, %v6548_v41  ;;  %v4433_v12 = vsel %vm4424_vm10, %v6516_v6, %v4432_v31  ;;  %v4439_v0 = vsel %vm4422_vm9, %v6562_v56, %v4438_v37  ;;  %v4446_v18 = vsel %vm4422_vm9, %v2254_v19, %v4445_v5 }
 0x30c   :  { %v3474_v2 = vmax.f32 %v3194_v30, %v3410_v48  ;;  %v3207_v25 = vadd.f32 %v6548_v41, %v3206_v13  ;;  %v2272_v54 = vmax.f32 %v2270_v62, %v2271_v10  ;;  %v6637_v42 = vsel %vm4426_vm11, %v6489_v26, %v4433_v12 }
 0x30d   :  { %v5381_v61 = vpop.f32.mrf.mxu0  ;;  %v3530_v46 = vpack.c.bf16 %v3472_v23, %v3471_v55  ;;  %v3412_v17 = vmul.f32 0.01, %v3202_v45  ;;  %v4440_v60 = vsel %vm4424_vm10, %v2191_v14, %v4439_v0  ;;  %v4447_v6 = vsel %vm4424_vm10, %v2263_v28, %v4446_v18 }
 0x30e   :  { %v3531_v43 = vpack.c.bf16 %v3474_v2, %v3473_v33  ;;  %v3413_v9 = vmul.f32 0.01, %v3207_v25  ;;  %v6642_v56 = vsel %vm4426_vm11, %v2200_v4, %v4440_v60  ;;  %v3411_v16 = vmul.f32 0.01, %v3199_v36 }
 0x30f   :  { %v3209_v20 = vpop.f32.mrf.mxu0  ;;  %v6646_v59 = vsel %vm4426_vm11, %v2272_v54, %v4447_v6  ;;  %v3476_v29 = vmax.f32 %v3202_v45, %v3412_v17  ;;  %v3218_v14 = vadd.f32 %v5381_v61, %v6548_v41  ;;  %v3215_v19 = vadd.f32 %v5380_v49, %v6548_v41 }
 0x310   :  { %v3210_v32 = vadd.f32 %v6548_v41, %v3209_v20  ;;  %5439 = vmatmul.mubr.msk.bf16.gmra.mxu1 %vm1984_vm4, %v3530_v46  ;;  %v3477_v15 = vmax.f32 %v3207_v25, %v3413_v9  ;;  %v3475_v51 = vmax.f32 %v3199_v36, %v3411_v16 }
 0x311   :  { %v5384_v7 = vpop.f32.mrf.mxu0  ;;  %5442 = vmatprep.mubr.msk.bf16.mxu1 %vm1984_vm4, %v3531_v43  ;;  %v3416_v24 = vmul.f32 0.01, %v3218_v14  ;;  %v3415_v10 = vmul.f32 0.01, %v3215_v19 }
 0x312   :  { %v3414_v21 = vmul.f32 0.01, %v3210_v32  ;;  %v3532_v35 = vpack.c.bf16 %v3476_v29, %v3475_v51  ;;  %v3231_v13 = vadd.f32 %v5384_v7, %v6548_v41 }
 0x313   :  { %v3222_v62 = vpop.f32.mrf.mxu0  ;;  %v3480_v47 = vmax.f32 %v3218_v14, %v3416_v24  ;;  %v3479_v52 = vmax.f32 %v3215_v19, %v3415_v10 }
 0x314   :  { %v3478_v26 = vmax.f32 %v3210_v32, %v3414_v21  ;;  %v3223_v58 = vadd.f32 %v6548_v41, %v3222_v62  ;;  %v3419_v61 = vmul.f32 0.01, %v3231_v13 }
 0x315   :  { %v5385_v27 = vpop.f32.mrf.mxu0  ;;  %v3534_v38 = vpack.c.bf16 %v3480_v47, %v3479_v52 }
 0x316   :  { %v3533_v63 = vpack.c.bf16 %v3478_v26, %v3477_v15  ;;  %v3417_v44 = vmul.f32 0.01, %v3223_v58  ;;  %v3234_v40 = vadd.f32 %v5385_v27, %v6548_v41  ;;  %v3483_v36 = vmax.f32 %v3231_v13, %v3419_v61 }
 0x317   :  { %v3225_v1 = vpop.f32.mrf.mxu0 }
 0x318   :  { %v3226_v53 = vadd.f32 %v6548_v41, %v3225_v1  ;;  %5443 = vmatmul.mubr.msk.bf16.gmra.mxu1 %vm1984_vm4, %v3532_v35  ;;  %v3481_v22 = vmax.f32 %v3223_v58, %v3417_v44  ;;  %v3420_v28 = vmul.f32 0.01, %v3234_v40 }
 0x319   :  { %v5388_v8 = vpop.f32.mrf.mxu0  ;;  %5446 = vmatprep.mubr.msk.bf16.mxu1 %vm1984_vm4, %v3533_v63 }
 0x31a   :  { %v3418_v30 = vmul.f32 0.01, %v3226_v53  ;;  %v3484_v5 = vmax.f32 %v3234_v40, %v3420_v28  ;;  %v3247_v20 = vadd.f32 %v5388_v8, %v6548_v41 }
 0x31b   :  { %v3238_v57 = vpop.f32.mrf.mxu0 }
 0x31c   :  { %v3482_v11 = vmax.f32 %v3226_v53, %v3418_v30  ;;  %v3239_v48 = vadd.f32 %v6548_v41, %v3238_v57  ;;  %v3536_v54 = vpack.c.bf16 %v3484_v5, %v3483_v36  ;;  %v3423_v7 = vmul.f32 0.01, %v3247_v20 }
 0x31d   :  { %v5389_v49 = vpop.f32.mrf.mxu0 }
 0x31e   :  { %v3535_v3 = vpack.c.bf16 %v3482_v11, %v3481_v22  ;;  %v3421_v45 = vmul.f32 0.01, %v3239_v48  ;;  %v3250_v4 = vadd.f32 %v5389_v49, %v6548_v41  ;;  %v3487_v29 = vmax.f32 %v3247_v20, %v3423_v7 }
 0x31f   :  { %v3241_v34 = vpop.f32.mrf.mxu0 }
 0x320   :  { %v3242_v50 = vadd.f32 %v6548_v41, %v3241_v34  ;;  %5447 = vmatmul.mubr.msk.bf16.gmra.mxu1 %vm1984_vm4, %v3534_v38  ;;  %v3485_v33 = vmax.f32 %v3239_v48, %v3421_v45  ;;  %v3424_v43 = vmul.f32 0.01, %v3250_v4 }
 0x321   :  { %v5392_v23 = vpop.f32.mrf.mxu0  ;;  %5450 = vmatprep.mubr.msk.bf16.mxu1 %vm1984_vm4, %v3535_v3 }
 0x322   :  { %v3422_v2 = vmul.f32 0.01, %v3242_v50  ;;  %v3488_v9 = vmax.f32 %v3250_v4, %v3424_v43  ;;  %v3263_v14 = vadd.f32 %v5392_v23, %v6548_v41 }
 0x323   :  { %v3254_v31 = vpop.f32.mrf.mxu0 }
 0x324   :  { %v3486_v37 = vmax.f32 %v3242_v50, %v3422_v2  ;;  %v3255_v25 = vadd.f32 %v6548_v41, %v3254_v31  ;;  %v3538_v51 = vpack.c.bf16 %v3488_v9, %v3487_v29  ;;  %v3427_v35 = vmul.f32 0.01, %v3263_v14 }
 0x325   :  { %v5393_v55 = vpop.f32.mrf.mxu0 }
 0x326   :  { %v3537_v0 = vpack.c.bf16 %v3486_v37, %v3485_v33  ;;  %v3425_v46 = vmul.f32 0.01, %v3255_v25  ;;  %v3266_v21 = vadd.f32 %v5393_v55, %v6548_v41  ;;  %v3491_v47 = vmax.f32 %v3263_v14, %v3427_v35 }
 0x327   :  { %v3257_v12 = vpop.f32.mrf.mxu0 }
 0x328   :  { %v3258_v18 = vadd.f32 %v6548_v41, %v3257_v12  ;;  %5451 = vmatmul.mubr.msk.bf16.gmra.mxu1 %vm1984_vm4, %v3536_v54  ;;  %v3489_v62 = vmax.f32 %v3255_v25, %v3425_v46  ;;  %v3428_v19 = vmul.f32 0.01, %v3266_v21 }
 0x329   :  { %v5396_v32 = vpop.f32.mrf.mxu0  ;;  %5454 = vmatprep.mubr.msk.bf16.mxu1 %vm1984_vm4, %v3537_v0 }
 0x32a   :  { %v3426_v17 = vmul.f32 0.01, %v3258_v18  ;;  %v3492_v44 = vmax.f32 %v3266_v21, %v3428_v19  ;;  %v3279_v40 = vadd.f32 %v5396_v32, %v6548_v41 }
 0x32b   :  { %v3270_v60 = vpop.f32.mrf.mxu0 }
 0x32c   :  { %v3490_v6 = vmax.f32 %v3258_v18, %v3426_v17  ;;  %v3271_v26 = vadd.f32 %v6548_v41, %v3270_v60  ;;  %v3540_v52 = vpack.c.bf16 %v3492_v44, %v3491_v47  ;;  %v3431_v38 = vmul.f32 0.01, %v3279_v40 }
 0x32d   :  { %v5397_v16 = vpop.f32.mrf.mxu0 }
 0x32e   :  { %v3539_v15 = vpack.c.bf16 %v3490_v6, %v3489_v62  ;;  %v3429_v63 = vmul.f32 0.01, %v3271_v26  ;;  %v3282_v30 = vadd.f32 %v5397_v16, %v6548_v41  ;;  %v3495_v5 = vmax.f32 %v3279_v40, %v3431_v38 }
 0x32f   :  { %v3273_v27 = vpop.f32.mrf.mxu0 }
 0x330   :  { %v3274_v58 = vadd.f32 %v6548_v41, %v3273_v27  ;;  %5455 = vmatmul.mubr.msk.bf16.gmra.mxu1 %vm1984_vm4, %v3538_v51  ;;  %v3493_v57 = vmax.f32 %v3271_v26, %v3429_v63  ;;  %v3432_v13 = vmul.f32 0.01, %v3282_v30 }
 0x331   :  { %v5400_v1 = vpop.f32.mrf.mxu0  ;;  %5458 = vmatprep.mubr.msk.bf16.mxu1 %vm1984_vm4, %v3539_v15 }
 0x332   :  { %v3430_v53 = vmul.f32 0.01, %v3274_v58  ;;  %v3496_v45 = vmax.f32 %v3282_v30, %v3432_v13  ;;  %v3295_v4 = vadd.f32 %v5400_v1, %v6548_v41 }
 0x333   :  { %v3286_v24 = vpop.f32.mrf.mxu0 }
 0x334   :  { %v3494_v8 = vmax.f32 %v3274_v58, %v3430_v53  ;;  %v3287_v11 = vadd.f32 %v6548_v41, %v3286_v24  ;;  %v3542_v36 = vpack.c.bf16 %v3496_v45, %v3495_v5  ;;  %v3435_v18 = vmul.f32 0.01, %v3295_v4 }
 0x335   :  { %v5401_v10 = vpop.f32.mrf.mxu0 }
 0x336   :  { %v3541_v22 = vpack.c.bf16 %v3494_v8, %v3493_v57  ;;  %v3433_v3 = vmul.f32 0.01, %v3287_v11  ;;  %v3298_v2 = vadd.f32 %v5401_v10, %v6548_v41  ;;  %v3499_v6 = vmax.f32 %v3295_v4, %v3435_v18 }
 0x337   :  { %v3289_v49 = vpop.f32.mrf.mxu0 }
 0x338   :  { %v3290_v48 = vadd.f32 %v6548_v41, %v3289_v49  ;;  %5459 = vmatmul.mubr.msk.bf16.gmra.mxu1 %vm1984_vm4, %v3540_v52  ;;  %v3497_v31 = vmax.f32 %v3287_v11, %v3433_v3  ;;  %v3436_v20 = vmul.f32 0.01, %v3298_v2 }
 0x339   :  { %v5404_v34 = vpop.f32.mrf.mxu0  ;;  %5462 = vmatprep.mubr.msk.bf16.mxu1 %vm1984_vm4, %v3541_v22 }
 0x33a   :  { %v3434_v50 = vmul.f32 0.01, %v3290_v48  ;;  %v3500_v32 = vmax.f32 %v3298_v2, %v3436_v20  ;;  %v3311_v9 = vadd.f32 %v5404_v34, %v6548_v41 }
 0x33b   :  { %v3302_v28 = vpop.f32.mrf.mxu0 }
 0x33c   :  { %v3498_v23 = vmax.f32 %v3290_v48, %v3434_v50  ;;  %v3303_v37 = vadd.f32 %v6548_v41, %v3302_v28  ;;  %v3544_v62 = vpack.c.bf16 %v3500_v32, %v3499_v6  ;;  %v3439_v15 = vmul.f32 0.01, %v3311_v9 }
 0x33d   :  { %v5405_v61 = vpop.f32.mrf.mxu0 }
 0x33e   :  { %v3543_v33 = vpack.c.bf16 %v3498_v23, %v3497_v31  ;;  %v3437_v12 = vmul.f32 0.01, %v3303_v37  ;;  %v3314_v46 = vadd.f32 %v5405_v61, %v6548_v41  ;;  %v3503_v53 = vmax.f32 %v3311_v9, %v3439_v15 }
 0x33f   :  { %v3305_v55 = vpop.f32.mrf.mxu0 }
 0x340   :  { %v3306_v25 = vadd.f32 %v6548_v41, %v3305_v55  ;;  %5463 = vmatmul.mubr.msk.bf16.gmra.mxu1 %vm1984_vm4, %v3542_v36  ;;  %v3501_v7 = vmax.f32 %v3303_v37, %v3437_v12  ;;  %v3440_v26 = vmul.f32 0.01, %v3314_v46 }
 0x341   :  { %5466 = vmatprep.mubr.msk.bf16.mxu1 %vm1984_vm4, %v3543_v33 }
 0x342   :  { %v3438_v0 = vmul.f32 0.01, %v3306_v25  ;;  %v3504_v51 = vmax.f32 %v3314_v46, %v3440_v26 }
 0x343   :  { %v5408_v54 = vpop.f32.mrf.mxu0 }
 0x344   :  { %v3502_v43 = vmax.f32 %v3306_v25, %v3438_v0  ;;  %v3327_v35 = vadd.f32 %v5408_v54, %v6548_v41  ;;  %v3546_v44 = vpack.c.bf16 %v3504_v51, %v3503_v53 }
 0x345   :  { %v3318_v17 = vpop.f32.mrf.mxu0 }
 0x346   :  { %v3319_v60 = vadd.f32 %v6548_v41, %v3318_v17  ;;  %v3545_v16 = vpack.c.bf16 %v3502_v43, %v3501_v7  ;;  %v3443_v57 = vmul.f32 0.01, %v3327_v35 }
 0x347   :  { %v5409_v21 = vpop.f32.mrf.mxu0 }
 0x348   :  { %v3441_v14 = vmul.f32 0.01, %v3319_v60  ;;  %5467 = vmatmul.mubr.msk.bf16.gmra.mxu1 %vm1984_vm4, %v3544_v62  ;;  %v3330_v19 = vadd.f32 %v5409_v21, %v6548_v41  ;;  %v3507_v48 = vmax.f32 %v3327_v35, %v3443_v57 }
 0x349   :  { %v3321_v29 = vpop.f32.mrf.mxu0  ;;  %5470 = vmatprep.mubr.msk.bf16.mxu1 %vm1984_vm4, %v3545_v16 }
 0x34a   :  { %v3322_v27 = vadd.f32 %v6548_v41, %v3321_v29  ;;  %v3505_v1 = vmax.f32 %v3319_v60, %v3441_v14  ;;  %v3444_v30 = vmul.f32 0.01, %v3330_v19 }
 0x34c   :  { %v3442_v58 = vmul.f32 0.01, %v3322_v27  ;;  %v3508_v40 = vmax.f32 %v3330_v19, %v3444_v30 }
 0x34e   :  { %v3506_v63 = vmax.f32 %v3322_v27, %v3442_v58  ;;  %v3548_v3 = vpack.c.bf16 %v3508_v40, %v3507_v48 }
 0x34f   :  { %v5412_v8 = vpop.f32.mrf.mxu0 }
 0x350   :  { %v3547_v24 = vpack.c.bf16 %v3506_v63, %v3505_v1  ;;  %5471 = vmatmul.mubr.msk.bf16.gmra.mxu1 %vm1984_vm4, %v3546_v44  ;;  %v3343_v52 = vadd.f32 %v5412_v8, %v6548_v41 }
 0x351   :  { %v3334_v10 = vpop.f32.mrf.mxu0 }
 0x352   :  { %v3335_v11 = vadd.f32 %v6548_v41, %v3334_v10  ;;  %5474 = vmatprep.mubr.msk.bf16.mxu1 %vm1984_vm4, %v3547_v24  ;;  %v3447_v23 = vmul.f32 0.01, %v3343_v52 }
 0x353   :  { %v5413_v47 = vpop.f32.mrf.mxu0 }
 0x354   :  { %v3346_v49 = vadd.f32 %v5413_v47, %v6548_v41  ;;  %v3445_v13 = vmul.f32 0.01, %v3335_v11  ;;  %v3511_v55 = vmax.f32 %v3343_v52, %v3447_v23 }
 0x355   :  { %v3337_v22 = vpop.f32.mrf.mxu0 }
 0x356   :  { %v3338_v34 = vadd.f32 %v6548_v41, %v3337_v22  ;;  %v3448_v50 = vmul.f32 0.01, %v3346_v49  ;;  %v3509_v45 = vmax.f32 %v3335_v11, %v3445_v13 }
 0x358   :  { %v3446_v38 = vmul.f32 0.01, %v3338_v34  ;;  %v5416_v28 = vpop.f32.mrf.mxu0  ;;  %5475 = vmatmul.mubr.msk.bf16.gmra.mxu1 %vm1984_vm4, %v3548_v3  ;;  %v3512_v31 = vmax.f32 %v3346_v49, %v3448_v50 }
 0x359   :  { %v3359_v33 = vadd.f32 %v5416_v28, %v6548_v41 }
 0x35a   :  { %v3510_v2 = vmax.f32 %v3338_v34, %v3446_v38  ;;  %v3350_v61 = vpop.f32.mrf.mxu0  ;;  %v3550_v20 = vpack.c.bf16 %v3512_v31, %v3511_v55 }
 0x35b   :  { %v3351_v5 = vadd.f32 %v6548_v41, %v3350_v61  ;;  %v3451_v54 = vmul.f32 0.01, %v3359_v33 }
 0x35c   :  { %v3549_v37 = vpack.c.bf16 %v3510_v2, %v3509_v45  ;;  %v5417_v4 = vpop.f32.mrf.mxu0  ;;  %v6723_v45 = vld [vmem:[%s6965_s12] ss:$0 sm:$0xff]  ;;  %s5578_s12 = smov 32  }
 0x35d   :  { %v3362_v25 = vadd.f32 %v5417_v4, %v6548_v41  ;;  %v3449_v12 = vmul.f32 0.01, %v3351_v5  ;;  %v3515_v60 = vmax.f32 %v3359_v33, %v3451_v54 }
 0x35e   :  { %5478 = vmatprep.mubr.msk.bf16.mxu1 %vm1984_vm4, %v3549_v37  ;;  %v3353_v36 = vpop.f32.mrf.mxu0 }
 0x35f   :  { %v3452_v0 = vmul.f32 0.01, %v3362_v25  ;;  %v3354_v18 = vadd.f32 %v6548_v41, %v3353_v36  ;;  %v3513_v32 = vmax.f32 %v3351_v5, %v3449_v12 }
 0x360   :  { %5479 = vmatmul.mubr.msk.bf16.gmra.mxu1 %vm1984_vm4, %v3550_v20 }
 0x361   :  { %v3450_v43 = vmul.f32 0.01, %v3354_v18  ;;  %v3516_v46 = vmax.f32 %v3362_v25, %v3452_v0 }
 0x362   :  { %v5420_v7 = vpop.f32.mrf.mxu0 }
 0x363   :  { %v3514_v17 = vmax.f32 %v3354_v18, %v3450_v43  ;;  %v3552_v16 = vpack.c.bf16 %v3516_v46, %v3515_v60  ;;  %v3375_v62 = vadd.f32 %v5420_v7, %v6548_v41 }
 0x364   :  { %v3366_v9 = vpop.f32.mrf.mxu0 }
 0x365   :  { %v3551_v6 = vpack.c.bf16 %v3514_v17, %v3513_v32  ;;  %v3367_v21 = vadd.f32 %v6548_v41, %v3366_v9  ;;  %v3455_v51 = vmul.f32 0.01, %v3375_v62 }
 0x366   :  { %v5421_v26 = vpop.f32.mrf.mxu0 }
 0x367   :  { %5482 = vmatprep.mubr.msk.bf16.mxu1 %vm1984_vm4, %v3551_v6  ;;  %v3378_v29 = vadd.f32 %v5421_v26, %v6548_v41  ;;  %v3453_v27 = vmul.f32 0.01, %v3367_v21  ;;  %v3519_v24 = vmax.f32 %v3375_v62, %v3455_v51 }
 0x368   :  { %v3369_v14 = vpop.f32.mrf.mxu0  ;;  %5483 = vmatmul.mubr.msk.bf16.gmra.mxu1 %vm1984_vm4, %v3552_v16 }
 0x369   :  { %v3456_v15 = vmul.f32 0.01, %v3378_v29  ;;  %v3370_v58 = vadd.f32 %v6548_v41, %v3369_v14  ;;  %v3517_v63 = vmax.f32 %v3367_v21, %v3453_v27 }
 0x36b   :  { %v3454_v19 = vmul.f32 0.01, %v3370_v58  ;;  %v3520_v1 = vmax.f32 %v3378_v29, %v3456_v15 }
 0x36d   :  { %v3518_v53 = vmax.f32 %v3370_v58, %v3454_v19  ;;  %v5424_v35 = vpop.f32.mrf.mxu0  ;;  %v3554_v30 = vpack.c.bf16 %v3520_v1, %v3519_v24 }
 0x36e   :  { %v3391_v57 = vadd.f32 %v5424_v35, %v6548_v41 }
 0x36f   :  { %v3553_v8 = vpack.c.bf16 %v3518_v53, %v3517_v63  ;;  %v3382_v44 = vpop.f32.mrf.mxu0 }
 0x370   :  { %v3383_v10 = vadd.f32 %v6548_v41, %v3382_v44  ;;  %v3459_v52 = vmul.f32 0.01, %v3391_v57 }
 0x371   :  { %v5425_v11 = vpop.f32.mrf.mxu0  ;;  %5486 = vmatprep.mubr.msk.bf16.mxu1 %vm1984_vm4, %v3553_v8 }
 0x372   :  { %v3394_v47 = vadd.f32 %v5425_v11, %v6548_v41  ;;  %5487 = vmatmul.mubr.msk.bf16.gmra.mxu1 %vm1984_vm4, %v3554_v30  ;;  %v3457_v49 = vmul.f32 0.01, %v3383_v10  ;;  %v3523_v38 = vmax.f32 %v3391_v57, %v3459_v52 }
 0x373   :  { %v3385_v40 = vpop.f32.mrf.mxu0 }
 0x374   :  { %v3460_v22 = vmul.f32 0.01, %v3394_v47  ;;  %v3386_v48 = vadd.f32 %v6548_v41, %v3385_v40  ;;  %v3521_v3 = vmax.f32 %v3383_v10, %v3457_v49 }
 0x376   :  { %v3458_v13 = vmul.f32 0.01, %v3386_v48  ;;  %v3524_v34 = vmax.f32 %v3394_v47, %v3460_v22 }
 0x378   :  { %v3522_v50 = vmax.f32 %v3386_v48, %v3458_v13  ;;  %v3556_v23 = vpack.c.bf16 %v3524_v34, %v3523_v38 }
 0x37a   :  { %v3555_v28 = vpack.c.bf16 %v3522_v50, %v3521_v3 }
 0x37c   :  { %5490 = vmatprep.mubr.msk.bf16.mxu1 %vm1984_vm4, %v3555_v28 }
 0x37d   :  { %5491 = vmatmul.mubr.msk.bf16.gmra.mxu1 %vm1984_vm4, %v3556_v23 }
 0x3c0   :  { %v5432_v2 = vpop.f32.mrf.mxu1 }
 0x3c1   :  { %v3719_v41 = vadd.f32 %v5432_v2, %v6723_v45 }
 0x3c2   :  { %v3710_v61 = vpop.f32.mrf.mxu1 }
 0x3c3   :  { %v3711_v31 = vadd.f32 %v6723_v45, %v3710_v61  ;;  %v3967_v37 = vmul.f32 0.01, %v3719_v41 }
 0x3c4   :  { %v5433_v5 = vpop.f32.mrf.mxu1 }
 0x3c5   :  { %v3965_v4 = vmul.f32 0.01, %v3711_v31  ;;  %v3722_v55 = vadd.f32 %v5433_v5, %v6723_v45  ;;  %v4031_v20 = vmax.f32 %v3719_v41, %v3967_v37 }
 0x3c6   :  { %v3713_v33 = vpop.f32.mrf.mxu1 }
 0x3c7   :  { %v3968_v25 = vmul.f32 0.01, %v3722_v55  ;;  %v3714_v36 = vadd.f32 %v6723_v45, %v3713_v33  ;;  %v4029_v0 = vmax.f32 %v3711_v31, %v3965_v4  ;;  %v4103_v6 = vsel %vm4093_vm12, %v4031_v20, -inf }
 0x3c8   :  { %v5436_v12 = vpop.f32.mrf.mxu1 }
 0x3c9   :  { %v4032_v18 = vmax.f32 %v3722_v55, %v3968_v25  ;;  %v3966_v54 = vmul.f32 0.01, %v3714_v36  ;;  %v3735_v43 = vadd.f32 %v5436_v12, %v6723_v45  ;;  %v4094_v21 = vsel %vm4093_vm12, %v4029_v0, -inf }
 0x3ca   :  { %v3726_v32 = vpop.f32.mrf.mxu1 }
 0x3cb   :  { %v4104_v46 = vsel %vm4093_vm12, %v4032_v18, -inf  ;;  %v4030_v17 = vmax.f32 %v3714_v36, %v3966_v54  ;;  %v3971_v7 = vmul.f32 0.01, %v3735_v43  ;;  %v3727_v60 = vadd.f32 %v6723_v45, %v3726_v32 }
 0x3cc   :  { %v5437_v9 = vpop.f32.mrf.mxu1  ;;  %v4105_v16 = vmax.f32 %v4103_v6, %v4104_v46 }
 0x3cd   :  { %v4095_v62 = vsel %vm4093_vm12, %v4030_v17, -inf  ;;  %v3738_v26 = vadd.f32 %v5437_v9, %v6723_v45  ;;  %v4035_v14 = vmax.f32 %v3735_v43, %v3971_v7  ;;  %v3969_v15 = vmul.f32 0.01, %v3727_v60 }
 0x3ce   :  { %v4096_v29 = vmax.f32 %v4094_v21, %v4095_v62  ;;  %v3729_v27 = vpop.f32.mrf.mxu1  ;;  %v4106_v63 = vrot.slane %v4105_v16, 4 }
 0x3cf   :  { %v3972_v58 = vmul.f32 0.01, %v3738_v26  ;;  %v3730_v51 = vadd.f32 %v6723_v45, %v3729_v27  ;;  %v4121_v24 = vsel %vm4093_vm12, %v4035_v14, -inf  ;;  %v4033_v30 = vmax.f32 %v3727_v60, %v3969_v15 }
 0x3d0   :  { %v4097_v19 = vrot.slane %v4096_v29, 4  ;;  %v5440_v1 = vpop.f32.mrf.mxu1  ;;  %v4107_v40 = vmax.f32 %v4105_v16, %v4106_v63 }
 0x3d1   :  { %v4036_v53 = vmax.f32 %v3738_v26, %v3972_v58  ;;  %v3970_v35 = vmul.f32 0.01, %v3730_v51  ;;  %v3751_v22 = vadd.f32 %v5440_v1, %v6723_v45  ;;  %v4112_v34 = vsel %vm4093_vm12, %v4033_v30, -inf }
 0x3d2   :  { %v3742_v8 = vpop.f32.mrf.mxu1  ;;  %v4098_v44 = vmax.f32 %v4096_v29, %v4097_v19  ;;  %v4108_v2 = vrot.slane %v4107_v40, 2 }
 0x3d3   :  { %v4122_v10 = vsel %vm4093_vm12, %v4036_v53, -inf  ;;  %v4034_v57 = vmax.f32 %v3730_v51, %v3970_v35  ;;  %v3975_v41 = vmul.f32 0.01, %v3751_v22  ;;  %v3743_v61 = vadd.f32 %v6723_v45, %v3742_v8 }
 0x3d4   :  { %v4123_v11 = vmax.f32 %v4121_v24, %v4122_v10  ;;  %v5441_v47 = vpop.f32.mrf.mxu1  ;;  %v4099_v13 = vrot.slane %v4098_v44, 2  ;;  %v4109_v36 = vmax.f32 %v4107_v40, %v4108_v2 }
 0x3d5   :  { %v4113_v49 = vsel %vm4093_vm12, %v4034_v57, -inf  ;;  %v3754_v48 = vadd.f32 %v5441_v47, %v6723_v45  ;;  %v4039_v20 = vmax.f32 %v3751_v22, %v3975_v41  ;;  %v3973_v12 = vmul.f32 0.01, %v3743_v61 }
 0x3d6   :  { %v3745_v52 = vpop.f32.mrf.mxu1  ;;  %v4124_v38 = vrot.slane %v4123_v11, 4  ;;  %v4114_v28 = vmax.f32 %v4112_v34, %v4113_v49  ;;  %v4100_v37 = vmax.f32 %v4098_v44, %v4099_v13  ;;  %v4110_v60 = vrot.slane %v4109_v36, 1 }
 0x3d7   :  { %v3976_v3 = vmul.f32 0.01, %v3754_v48  ;;  %v3746_v50 = vadd.f32 %v6723_v45, %v3745_v52  ;;  %v4139_v6 = vsel %vm4093_vm12, %v4039_v20, -inf  ;;  %v4037_v9 = vmax.f32 %v3743_v61, %v3973_v12 }
 0x3d8   :  { %v5444_v23 = vpop.f32.mrf.mxu1  ;;  %v4125_v55 = vmax.f32 %v4123_v11, %v4124_v38  ;;  %v4115_v33 = vrot.slane %v4114_v28, 4  ;;  %v4101_v54 = vrot.slane %v4100_v37, 1  ;;  %v4111_v53 = vmax.f32 %v4109_v36, %v4110_v60 }
 0x3d9   :  { %v4040_v5 = vmax.f32 %v3754_v48, %v3976_v3  ;;  %v3974_v4 = vmul.f32 0.01, %v3746_v50  ;;  %v3767_v0 = vadd.f32 %v5444_v23, %v6723_v45  ;;  %v4130_v35 = vsel %vm4093_vm12, %v4037_v9, -inf }
 0x3da   :  { %v3758_v31 = vpop.f32.mrf.mxu1  ;;  %v4126_v46 = vrot.slane %v4125_v55, 2  ;;  %v4116_v17 = vmax.f32 %v4114_v28, %v4115_v33  ;;  %v4102_v14 = vmax.f32 %v4100_v37, %v4101_v54 }
 0x3db   :  { %v4140_v43 = vsel %vm4093_vm12, %v4040_v5, -inf  ;;  %v4038_v32 = vmax.f32 %v3746_v50, %v3974_v4  ;;  %v3979_v62 = vmul.f32 0.01, %v3767_v0  ;;  %v3759_v26 = vadd.f32 %v6723_v45, %v3758_v31 }
 0x3dc   :  { %v5445_v25 = vpop.f32.mrf.mxu1  ;;  %v4141_v16 = vmax.f32 %v4139_v6, %v4140_v43  ;;  %v4127_v58 = vmax.f32 %v4125_v55, %v4126_v46  ;;  %v4117_v51 = vrot.slane %v4116_v17, 2  ;;  %v6758_v22 = vsel %vm4414_vm5, %v4111_v53, %v4102_v14 }
 0x3dd   :  { %v4131_v27 = vsel %vm4093_vm12, %v4038_v32, -inf  ;;  %v3770_v19 = vadd.f32 %v5445_v25, %v6723_v45  ;;  %v4043_v10 = vmax.f32 %v3767_v0, %v3979_v62  ;;  %v3977_v57 = vmul.f32 0.01, %v3759_v26 }
 0x3de   :  { %v3761_v18 = vpop.f32.mrf.mxu1  ;;  %v4142_v44 = vrot.slane %v4141_v16, 4  ;;  %v4132_v30 = vmax.f32 %v4130_v35, %v4131_v27  ;;  %v4128_v48 = vrot.slane %v4127_v58, 1  ;;  %v4118_v52 = vmax.f32 %v4116_v17, %v4117_v51 }
 0x3df   :  { %v3762_v1 = vadd.f32 %v6723_v45, %v3761_v18  ;;  %v3980_v13 = vmul.f32 0.01, %v3770_v19  ;;  %v4157_v61 = vsel %vm4093_vm12, %v4043_v10, -inf  ;;  %v4041_v31 = vmax.f32 %v3759_v26, %v3977_v57 }
 0x3e0   :  { %v5448_v7 = vpop.f32.mrf.mxu1  ;;  %v4143_v2 = vmax.f32 %v4141_v16, %v4142_v44  ;;  %v4133_v41 = vrot.slane %v4132_v30, 4  ;;  %v6764_v25 = vmax.f32 %v4127_v58, %v4128_v48  ;;  %v4119_v46 = vrot.slane %v4118_v52, 1 }
 0x3e1   :  { %v3783_v21 = vadd.f32 %v5448_v7, %v6723_v45  ;;  %v3978_v34 = vmul.f32 0.01, %v3762_v1  ;;  %v4044_v36 = vmax.f32 %v3770_v19, %v3980_v13  ;;  %v4148_v9 = vsel %vm4093_vm12, %v4041_v31, -inf }
 0x3e2   :  { %v3774_v29 = vpop.f32.mrf.mxu1  ;;  %v4144_v17 = vrot.slane %v4143_v2, 2  ;;  %v4134_v7 = vmax.f32 %v4132_v30, %v4133_v41 }
 0x3e3   :  { %v3775_v15 = vadd.f32 %v6723_v45, %v3774_v29  ;;  %v3983_v24 = vmul.f32 0.01, %v3783_v21  ;;  %v4042_v20 = vmax.f32 %v3762_v1, %v3978_v34  ;;  %v4158_v26 = vsel %vm4093_vm12, %v4044_v36, -inf }
 0x3e4   :  { %v5449_v63 = vpop.f32.mrf.mxu1  ;;  %v6775_v53 = vmax.f32 %v4143_v2, %v4144_v17  ;;  %v4135_v35 = vrot.slane %v4134_v7, 2 }
 0x3e5   :  { %v3786_v8 = vadd.f32 %v5449_v63, %v6723_v45  ;;  %v3981_v47 = vmul.f32 0.01, %v3775_v15  ;;  %v4047_v50 = vmax.f32 %v3783_v21, %v3983_v24  ;;  %v4149_v29 = vsel %vm4093_vm12, %v4042_v20, -inf }
 0x3e6   :  { %v3777_v11 = vpop.f32.mrf.mxu1  ;;  %v4120_v63 = vmax.f32 %v4118_v52, %v4119_v46  ;;  %v4146_v41 = vrot.slane %v6775_v53, 1 }
 0x3e7   :  { %v3984_v40 = vmul.f32 0.01, %v3786_v8  ;;  %v3778_v49 = vadd.f32 %v6723_v45, %v3777_v11  ;;  %v4045_v5 = vmax.f32 %v3775_v15, %v3981_v47  ;;  %v4175_v18 = vsel %vm4093_vm12, %v4047_v50, -inf }
 0x3e8   :  { %v5452_v3 = vpop.f32.mrf.mxu1  ;;  %v4159_v11 = vmax.f32 %v4157_v61, %v4158_v26  ;;  %v4150_v47 = vmax.f32 %v4148_v9, %v4149_v29 }
 0x3e9   :  { %v4048_v38 = vmax.f32 %v3786_v8, %v3984_v40  ;;  %v3982_v28 = vmul.f32 0.01, %v3778_v49  ;;  %v3799_v23 = vadd.f32 %v5452_v3, %v6723_v45  ;;  %v4166_v21 = vsel %vm4093_vm12, %v4045_v5, -inf }
 0x3ea   :  { %v3790_v37 = vpop.f32.mrf.mxu1  ;;  %v6789_v5 = vmax.f32 %v4134_v7, %v4135_v35  ;;  %v4160_v9 = vrot.slane %v4159_v11, 4 }
 0x3eb   :  { %v4176_v4 = vsel %vm4093_vm12, %v4048_v38, -inf  ;;  %v4046_v55 = vmax.f32 %v3778_v49, %v3982_v28  ;;  %v3791_v33 = vadd.f32 %v6723_v45, %v3790_v37  ;;  %v3987_v12 = vmul.f32 0.01, %v3799_v23 }
 0x3ec   :  { %v5453_v0 = vpop.f32.mrf.mxu1  ;;  %v4177_v60 = vmax.f32 %v4175_v18, %v4176_v4  ;;  %v6787_v37 = vsel %vm4416_vm6, %v4120_v63, %v6758_v22  ;;  %v4151_v4 = vrot.slane %v4150_v47, 4 }
 0x3ed   :  { %v4167_v54 = vsel %vm4093_vm12, %v4046_v55, -inf  ;;  %v3985_v43 = vmul.f32 0.01, %v3791_v33  ;;  %v3802_v32 = vadd.f32 %v5453_v0, %v6723_v45  ;;  %v4051_v27 = vmax.f32 %v3799_v23, %v3987_v12 }
 0x3ee   :  { %v3793_v6 = vpop.f32.mrf.mxu1  ;;  %v4168_v14 = vmax.f32 %v4166_v21, %v4167_v54  ;;  %v4178_v24 = vrot.slane %v4177_v60, 4  ;;  %v4152_v21 = vmax.f32 %v4150_v47, %v4151_v4 }
 0x3ef   :  { %v3988_v16 = vmul.f32 0.01, %v3802_v32  ;;  %v3794_v62 = vadd.f32 %v6723_v45, %v3793_v6  ;;  %v4049_v58 = vmax.f32 %v3791_v33, %v3985_v43  ;;  %v4193_v49 = vsel %vm4093_vm12, %v4051_v27, -inf }
 0x3f0   :  { %v5456_v15 = vpop.f32.mrf.mxu1  ;;  %v4169_v40 = vrot.slane %v4168_v14, 4  ;;  %v4179_v50 = vmax.f32 %v4177_v60, %v4178_v24 }
 0x3f1   :  { %v4052_v51 = vmax.f32 %v3802_v32, %v3988_v16  ;;  %v3986_v19 = vmul.f32 0.01, %v3794_v62  ;;  %v3815_v1 = vadd.f32 %v5456_v15, %v6723_v45  ;;  %v4184_v13 = vsel %vm4093_vm12, %v4049_v58, -inf }
 0x3f2   :  { %v3806_v8 = vpop.f32.mrf.mxu1  ;;  %v4170_v55 = vmax.f32 %v4168_v14, %v4169_v40  ;;  %v4180_v54 = vrot.slane %v4179_v50, 2 }
 0x3f3   :  { %v4194_v44 = vsel %vm4093_vm12, %v4052_v51, -inf  ;;  %v4050_v30 = vmax.f32 %v3794_v62, %v3986_v19  ;;  %v3991_v10 = vmul.f32 0.01, %v3815_v1  ;;  %v3807_v57 = vadd.f32 %v6723_v45, %v3806_v8 }
 0x3f4   :  { %v5457_v48 = vpop.f32.mrf.mxu1  ;;  %v4195_v38 = vmax.f32 %v4193_v49, %v4194_v44  ;;  %v4171_v16 = vrot.slane %v4170_v55, 2  ;;  %v4181_v58 = vmax.f32 %v4179_v50, %v4180_v54  ;;  %v4153_v49 = vrot.slane %v4152_v21, 2 }
 0x3f5   :  { %v4185_v52 = vsel %vm4093_vm12, %v4050_v30, -inf  ;;  %v3989_v34 = vmul.f32 0.01, %v3807_v57  ;;  %v3818_v3 = vadd.f32 %v5457_v48, %v6723_v45  ;;  %v4055_v23 = vmax.f32 %v3815_v1, %v3991_v10 }
 0x3f6   :  { %v4186_v28 = vmax.f32 %v4184_v13, %v4185_v52  ;;  %v3809_v2 = vpop.f32.mrf.mxu1  ;;  %v4196_v43 = vrot.slane %v4195_v38, 4  ;;  %v4137_v30 = vrot.slane %v6789_v5, 1  ;;  %v4161_v10 = vmax.f32 %v4159_v11, %v4160_v9 }
 0x3f7   :  { %v3992_v61 = vmul.f32 0.01, %v3818_v3  ;;  %v3810_v31 = vadd.f32 %v6723_v45, %v3809_v2  ;;  %v4053_v20 = vmax.f32 %v3807_v57, %v3989_v34  ;;  %v4211_v46 = vsel %vm4093_vm12, %v4055_v23, -inf }
 0x3f8   :  { %v4187_v33 = vrot.slane %v4186_v28, 4  ;;  %v5460_v36 = vpop.f32.mrf.mxu1  ;;  %v4197_v51 = vmax.f32 %v4195_v38, %v4196_v43  ;;  %v4172_v57 = vmax.f32 %v4170_v55, %v4171_v16  ;;  %v4182_v34 = vrot.slane %v4181_v58, 1 }
 0x3f9   :  { %v4056_v12 = vmax.f32 %v3818_v3, %v3992_v61  ;;  %v3990_v0 = vmul.f32 0.01, %v3810_v31  ;;  %v3831_v18 = vadd.f32 %v5460_v36, %v6723_v45  ;;  %v4202_v29 = vsel %vm4093_vm12, %v4053_v20, -inf }
 0x3fa   :  { %v4188_v32 = vmax.f32 %v4186_v28, %v4187_v33  ;;  %v3822_v17 = vpop.f32.mrf.mxu1  ;;  %v4198_v3 = vrot.slane %v4197_v51, 2  ;;  %v4173_v4 = vrot.slane %v4172_v57, 1  ;;  %v4162_v9 = vrot.slane %v4161_v10, 2 }
 0x3fb   :  { %v4212_v22 = vsel %vm4093_vm12, %v4056_v12, -inf  ;;  %v4054_v60 = vmax.f32 %v3810_v31, %v3990_v0  ;;  %v3995_v7 = vmul.f32 0.01, %v3831_v18  ;;  %v3823_v6 = vadd.f32 %v6723_v45, %v3822_v17 }
 0x3fc   :  { %v4213_v62 = vmax.f32 %v4211_v46, %v4212_v22  ;;  %v5461_v26 = vpop.f32.mrf.mxu1  ;;  %v4189_v19 = vrot.slane %v4188_v32, 2  ;;  %v4199_v54 = vmax.f32 %v4197_v51, %v4198_v3 }
 0x3fd   :  { %v4203_v14 = vsel %vm4093_vm12, %v4054_v60, -inf  ;;  %v3993_v27 = vmul.f32 0.01, %v3823_v6  ;;  %v3834_v15 = vadd.f32 %v5461_v26, %v6723_v45  ;;  %v4059_v24 = vmax.f32 %v3831_v18, %v3995_v7 }
 0x3fe   :  { %v4204_v1 = vmax.f32 %v4202_v29, %v4203_v14  ;;  %v3825_v63 = vpop.f32.mrf.mxu1  ;;  %v4214_v35 = vrot.slane %v4213_v62, 4  ;;  %v4190_v50 = vmax.f32 %v4188_v32, %v4189_v19  ;;  %v4154_v14 = vmax.f32 %v4152_v21, %v4153_v49 }
 0x3ff   :  { %v3996_v8 = vmul.f32 0.01, %v3834_v15  ;;  %v3826_v44 = vadd.f32 %v6723_v45, %v3825_v63  ;;  %v4057_v48 = vmax.f32 %v3823_v6, %v3993_v27  ;;  %v4229_v2 = vsel %vm4093_vm12, %v4059_v24, -inf }
 0x400   :  { %v4205_v47 = vrot.slane %v4204_v1, 4  ;;  %v5464_v40 = vpop.f32.mrf.mxu1  ;;  %v4215_v23 = vmax.f32 %v4213_v62, %v4214_v35  ;;  %v4191_v43 = vrot.slane %v4190_v50, 1  ;;  %v4174_v27 = vmax.f32 %v4172_v57, %v4173_v4 }
 0x401   :  { %v4060_v13 = vmax.f32 %v3834_v15, %v3996_v8  ;;  %v3994_v52 = vmul.f32 0.01, %v3826_v44  ;;  %v4220_v20 = vsel %vm4093_vm12, %v4057_v48, -inf  ;;  %v3847_v0 = vadd.f32 %v5464_v40, %v6723_v45 }
 0x402   :  { %v4206_v38 = vmax.f32 %v4204_v1, %v4205_v47  ;;  %v3838_v28 = vpop.f32.mrf.mxu1  ;;  %v4216_v22 = vrot.slane %v4215_v23, 2  ;;  %v4183_v1 = vmax.f32 %v4181_v58, %v4182_v34  ;;  %v4200_v51 = vrot.slane %v4199_v54, 1 }
 0x403   :  { %v4230_v61 = vsel %vm4093_vm12, %v4060_v13, -inf  ;;  %v4058_v31 = vmax.f32 %v3826_v44, %v3994_v52  ;;  %v3839_v33 = vadd.f32 %v6723_v45, %v3838_v28  ;;  %v3999_v15 = vmul.f32 0.01, %v3847_v0 }
 0x404   :  { %v4207_v11 = vrot.slane %v4206_v38, 2  ;;  %v4231_v55 = vmax.f32 %v4229_v2, %v4230_v61  ;;  %v5465_v36 = vpop.f32.mrf.mxu1  ;;  %v4192_v63 = vmax.f32 %v4190_v50, %v4191_v43  ;;  %v4217_v8 = vmax.f32 %v4215_v23, %v4216_v22 }
 0x405   :  { %v4221_v12 = vsel %vm4093_vm12, %v4058_v31, -inf  ;;  %v3850_v18 = vadd.f32 %v5465_v36, %v6723_v45  ;;  %v3997_v26 = vmul.f32 0.01, %v3839_v33  ;;  %v4138_v48 = vmax.f32 %v6789_v5, %v4137_v30 }
 0x406   :  { %v4232_v32 = vrot.slane %v4231_v55, 4  ;;  %v4222_v46 = vmax.f32 %v4220_v20, %v4221_v12  ;;  %v3841_v17 = vpop.f32.mrf.mxu1  ;;  %v4208_v60 = vmax.f32 %v4206_v38, %v4207_v11  ;;  %v4063_v28 = vmax.f32 %v3847_v0, %v3999_v15 }
 0x407   :  { %v4000_v7 = vmul.f32 0.01, %v3850_v18  ;;  %v3842_v6 = vadd.f32 %v6723_v45, %v3841_v17  ;;  %v4061_v3 = vmax.f32 %v3839_v33, %v3997_v26  ;;  %v4155_v21 = vrot.slane %v4154_v14, 1 }
 0x408   :  { %v4233_v16 = vmax.f32 %v4231_v55, %v4232_v32  ;;  %v4223_v62 = vrot.slane %v4222_v46, 4  ;;  %v5468_v29 = vpop.f32.mrf.mxu1  ;;  %v4209_v44 = vrot.slane %v4208_v60, 1  ;;  %v4163_v57 = vmax.f32 %v4161_v10, %v4162_v9 }
 0x409   :  { %v3998_v19 = vmul.f32 0.01, %v3842_v6  ;;  %v4064_v47 = vmax.f32 %v3850_v18, %v4000_v7  ;;  %v4492_v49 = vsel %vm4414_vm5, %v4183_v1, %v4174_v27  ;;  %v4201_v58 = vmax.f32 %v4199_v54, %v4200_v51 }
 0x40a   :  { %v4224_v35 = vmax.f32 %v4222_v46, %v4223_v62  ;;  %v3854_v24 = vpop.f32.mrf.mxu1  ;;  %v4234_v13 = vrot.slane %v4233_v16, 2  ;;  %v4218_v61 = vrot.slane %v4217_v8, 1  ;;  %v4210_v31 = vmax.f32 %v4208_v60, %v4209_v44 }
 0x40b   :  { %v4062_v40 = vmax.f32 %v3842_v6, %v3998_v19  ;;  %v4248_v5 = vsel %vm4093_vm12, %v4064_v47, -inf  ;;  %v4493_v30 = vsel %vm4416_vm6, %v4192_v63, %v4492_v49  ;;  %v4238_v4 = vsel %vm4093_vm12, %v4061_v3, -inf }
 0x40c   :  { %v4225_v52 = vrot.slane %v4224_v35, 2  ;;  %v5469_v38 = vpop.f32.mrf.mxu1  ;;  %v3863_v11 = vadd.f32 %v5468_v29, %v6723_v45  ;;  %v4235_v33 = vmax.f32 %v4233_v16, %v4234_v13  ;;  %v4247_v36 = vsel %vm4093_vm12, %v4063_v28, -inf }
 0x40d   :  { %v4239_v50 = vsel %vm4093_vm12, %v4062_v40, -inf  ;;  %v3866_v23 = vadd.f32 %v5469_v38, %v6723_v45  ;;  %v4147_v12 = vmax.f32 %v6775_v53, %v4146_v41  ;;  %v4487_v0 = vsel %vm4418_vm7, %v6764_v25, %v6787_v37 }
 0x40e   :  { %v4226_v34 = vmax.f32 %v4224_v35, %v4225_v52  ;;  %v3857_v2 = vpop.f32.mrf.mxu1  ;;  %v4240_v20 = vmax.f32 %v4238_v4, %v4239_v50  ;;  %v4249_v18 = vmax.f32 %v4247_v36, %v4248_v5  ;;  %v4488_v32 = vsel %vm4420_vm8, %v4138_v48, %v4487_v0 }
 0x40f   :  { %v4004_v54 = vmul.f32 0.01, %v3866_v23  ;;  %v4494_v46 = vsel %vm4418_vm7, %v4201_v58, %v4493_v30  ;;  %v3858_v17 = vadd.f32 %v6723_v45, %v3857_v2  ;;  %v4156_v22 = vmax.f32 %v4154_v14, %v4155_v21 }
 0x410   :  { %v5472_v10 = vpop.f32.mrf.mxu1  ;;  %v4227_v55 = vrot.slane %v4226_v34, 1  ;;  %v4495_v7 = vsel %vm4420_vm8, %v4210_v31, %v4494_v46  ;;  %v4003_v6 = vmul.f32 0.01, %v3863_v11  ;;  %v4164_v53 = vrot.slane %v4163_v57, 1 }
 0x411   :  { %v4219_v41 = vmax.f32 %v4217_v8, %v4218_v61  ;;  %v4236_v16 = vrot.slane %v4235_v33, 1  ;;  %v4241_v62 = vrot.slane %v4240_v20, 4  ;;  %v3855_v25 = vadd.f32 %v6723_v45, %v3854_v24 }
 0x412   :  { %v3870_v43 = vpop.f32.mrf.mxu1  ;;  %v4228_v60 = vmax.f32 %v4226_v34, %v4227_v55  ;;  %v4250_v37 = vrot.slane %v4249_v18, 4  ;;  %v4068_v26 = vmax.f32 %v3866_v23, %v4004_v54  ;;  %v4489_v27 = vsel %vm4422_vm9, %v4147_v12, %v4488_v32 }
 0x413   :  { %v4496_v15 = vsel %vm4422_vm9, %v4219_v41, %v4495_v7  ;;  %v4002_v19 = vmul.f32 0.01, %v3858_v17  ;;  %v4490_v14 = vsel %vm4424_vm10, %v4156_v22, %v4489_v27  ;;  %v4067_v51 = vmax.f32 %v3863_v11, %v4003_v6 }
 0x414   :  { %v5473_v9 = vpop.f32.mrf.mxu1  ;;  %v4497_v1 = vsel %vm4424_vm10, %v4228_v60, %v4496_v15  ;;  %v4165_v35 = vmax.f32 %v4163_v57, %v4164_v53  ;;  %v4237_v8 = vmax.f32 %v4235_v33, %v4236_v16  ;;  %v4242_v44 = vmax.f32 %v4240_v20, %v4241_v62 }
 0x415   :  { %v4001_v47 = vmul.f32 0.01, %v3855_v25  ;;  %v4251_v40 = vmax.f32 %v4249_v18, %v4250_v37  ;;  %v4266_v24 = vsel %vm4093_vm12, %v4068_v26, -inf  ;;  %v4066_v3 = vmax.f32 %v3858_v17, %v4002_v19 }
 0x416   :  { %v3873_v29 = vpop.f32.mrf.mxu1  ;;  %v4491_v48 = vsel %vm4426_vm11, %v4165_v35, %v4490_v14  ;;  %v4498_v13 = vsel %vm4426_vm11, %v4237_v8, %v4497_v1  ;;  %v4265_v28 = vsel %vm4093_vm12, %v4067_v51, -inf  ;;  %v4243_v49 = vrot.slane %v4242_v44, 2 }
 0x417   :  { %v5496_v38 = vpack.i.bf16 %v4498_v13, %v4491_v48  ;;  %v4065_v58 = vmax.f32 %v3855_v25, %v4001_v47  ;;  %v4267_v57 = vmax.f32 %v4265_v28, %v4266_v24  ;;  %v3879_v34 = vadd.f32 %v5472_v10, %v6723_v45 }
 0x418   :  { %v5476_v63 = vpop.f32.mrf.mxu1  ;;  %v4252_v50 = vrot.slane %v4251_v40, 2  ;;  %v3871_v23 = vadd.f32 %v6723_v45, %v3870_v43  ;;  %v3882_v2 = vadd.f32 %v5473_v9, %v6723_v45  ;;  %v4257_v31 = vsel %vm4093_vm12, %v4066_v3, -inf }
 0x419   :  { %5497 = vrot.lane.b32.xlu0 %v5496_v38, %s5578_s12  ;;  %v4244_v30 = vmax.f32 %v4242_v44, %v4243_v49  ;;  %v4256_v4 = vsel %vm4093_vm12, %v4065_v58, -inf  ;;  %v4268_v11 = vrot.slane %v4267_v57, 4  ;;  %v4007_v55 = vmul.f32 0.01, %v3879_v34 }
 0x41a   :  { %v6835_v52 = vpop.f32.mrf.mxu1  ;;  %v4253_v33 = vmax.f32 %v4251_v40, %v4252_v50  ;;  %v4258_v36 = vmax.f32 %v4256_v4, %v4257_v31  ;;  %v4005_v10 = vmul.f32 0.01, %v3871_v23  ;;  %v4008_v20 = vmul.f32 0.01, %v3882_v2 }
 0x41b   :  { %v3874_v0 = vadd.f32 %v6723_v45, %v3873_v29  ;;  %v4245_v54 = vrot.slane %v4244_v30, 1  ;;  %v4269_v43 = vmax.f32 %v4267_v57, %v4268_v11  ;;  %v4071_v32 = vmax.f32 %v3879_v34, %v4007_v55 }
 0x41c   :  { %v5477_v21 = vpop.f32.mrf.mxu1  ;;  %v4254_v17 = vrot.slane %v4253_v33, 1  ;;  %v4259_v22 = vrot.slane %v4258_v36, 4  ;;  %v4069_v60 = vmax.f32 %v3871_v23, %v4005_v10  ;;  %v4072_v7 = vmax.f32 %v3882_v2, %v4008_v20 }
 0x41d   :  { %v4006_v9 = vmul.f32 0.01, %v3874_v0  ;;  %v6847_v53 = vadd.f32 %v5476_v63, %v6723_v45  ;;  %v4246_v37 = vmax.f32 %v4244_v30, %v4245_v54  ;;  %v4270_v26 = vrot.slane %v4269_v43, 2 }
 0x41e   :  { %v3889_v61 = vpop.f32.mrf.mxu1  ;;  %v4283_v29 = vsel %vm4093_vm12, %v4071_v32, -inf  ;;  %v4255_v15 = vmax.f32 %v4253_v33, %v4254_v17  ;;  %v4260_v19 = vmax.f32 %v4258_v36, %v4259_v22  ;;  %v4274_v14 = vsel %vm4093_vm12, %v4069_v60, -inf }
 0x41f   :  { %v4284_v63 = vsel %vm4093_vm12, %v4072_v7, -inf  ;;  %v4070_v35 = vmax.f32 %v3874_v0, %v4006_v9  ;;  %v6856_v8 = vmul.f32 0.01, %v6847_v53  ;;  %v3890_v47 = vadd.f32 %v6723_v45, %v3889_v61 }
 0x420   :  { %v5480_v5 = vpop.f32.mrf.mxu1  ;;  %v6862_v3 = vsel %vm4414_vm5, %v4255_v15, %v4246_v37  ;;  %v6864_v38 = vmax.f32 %v4269_v43, %v4270_v26  ;;  %v3887_v58 = vadd.f32 %v6723_v45, %v6835_v52  ;;  %v6870_v57 = vadd.f32 %v5477_v21, %v6723_v45 }
 0x421   :  { %v3911_v41 = vadd.f32 %v5480_v5, %v6723_v45  ;;  %v4261_v2 = vrot.slane %v4260_v19, 2  ;;  %v6873_v30 = vmax.f32 %v4283_v29, %v4284_v63  ;;  %v4010_v4 = vmul.f32 0.01, %v3890_v47 }
 0x422   :  { %v3902_v12 = vpop.f32.mrf.mxu1  ;;  %v4275_v33 = vsel %vm4093_vm12, %v4070_v35, -inf  ;;  %v4075_v10 = vmax.f32 %v6847_v53, %v6856_v8  ;;  %v4009_v20 = vmul.f32 0.01, %v3887_v58 }
 0x423   :  { %v3903_v62 = vadd.f32 %v6723_v45, %v3902_v12  ;;  %v4015_v44 = vmul.f32 0.01, %v3911_v41  ;;  %v4012_v12 = vmul.f32 0.01, %v6870_v57  ;;  %v4074_v17 = vmax.f32 %v3890_v47, %v4010_v4 }
 0x424   :  { %v5481_v18 = vpop.f32.mrf.mxu1  ;;  %v6890_v63 = vmax.f32 %v4260_v19, %v4261_v2  ;;  %v4301_v2 = vsel %vm4093_vm12, %v4075_v10, -inf }
 0x425   :  { %v3914_v46 = vadd.f32 %v5481_v18, %v6723_v45  ;;  %v4013_v40 = vmul.f32 0.01, %v3903_v62  ;;  %v4079_v61 = vmax.f32 %v3911_v41, %v4015_v44  ;;  %v4076_v35 = vmax.f32 %v6870_v57, %v4012_v12 }
 0x426   :  { %v3905_v6 = vpop.f32.mrf.mxu1  ;;  %v4293_v8 = vsel %vm4093_vm12, %v4074_v17, -inf  ;;  %v4286_v57 = vrot.slane %v6873_v30, 4 }
 0x427   :  { %v3906_v16 = vadd.f32 %v6723_v45, %v3905_v6  ;;  %v4016_v27 = vmul.f32 0.01, %v3914_v46  ;;  %v4077_v11 = vmax.f32 %v3903_v62, %v4013_v40  ;;  %v4319_v54 = vsel %vm4093_vm12, %v4079_v61, -inf }
 0x428   :  { %v5484_v25 = vpop.f32.mrf.mxu1  ;;  %v4272_v62 = vrot.slane %v6864_v38, 1  ;;  %v4302_v61 = vsel %vm4093_vm12, %v4076_v35, -inf }
 0x429   :  { %v4014_v1 = vmul.f32 0.01, %v3906_v16  ;;  %v3927_v24 = vadd.f32 %v5484_v25, %v6723_v45  ;;  %v4080_v28 = vmax.f32 %v3914_v46, %v4016_v27  ;;  %v4310_v22 = vsel %vm4093_vm12, %v4077_v11, -inf }
 0x42a   :  { %v3918_v51 = vpop.f32.mrf.mxu1  ;;  %v4276_v25 = vmax.f32 %v4274_v14, %v4275_v33  ;;  %v4073_v27 = vmax.f32 %v3887_v58, %v4009_v20 }
 0x42b   :  { %v3919_v48 = vadd.f32 %v6723_v45, %v3918_v51  ;;  %v4078_v34 = vmax.f32 %v3906_v16, %v4014_v1  ;;  %v4019_v55 = vmul.f32 0.01, %v3927_v24  ;;  %v4320_v52 = vsel %vm4093_vm12, %v4080_v28, -inf }
 0x42c   :  { %v5485_v13 = vpop.f32.mrf.mxu1  ;;  %v4321_v60 = vmax.f32 %v4319_v54, %v4320_v52 }
 0x42d   :  { %v3930_v49 = vadd.f32 %v5485_v13, %v6723_v45  ;;  %v4017_v50 = vmul.f32 0.01, %v3919_v48  ;;  %v4311_v0 = vsel %vm4093_vm12, %v4078_v34, -inf  ;;  %v4083_v7 = vmax.f32 %v3927_v24, %v4019_v55 }
 0x42e   :  { %v3921_v23 = vpop.f32.mrf.mxu1  ;;  %v4312_v9 = vmax.f32 %v4310_v22, %v4311_v0  ;;  %v4322_v44 = vrot.slane %v4321_v60, 4  ;;  %v4277_v13 = vrot.slane %v4276_v25, 4  ;;  %v4292_v34 = vsel %vm4093_vm12, %v4073_v27, -inf }
 0x42f   :  { %v4020_v31 = vmul.f32 0.01, %v3930_v49  ;;  %v3922_v5 = vadd.f32 %v6723_v45, %v3921_v23  ;;  %v4081_v36 = vmax.f32 %v3919_v48, %v4017_v50  ;;  %v4337_v14 = vsel %vm4093_vm12, %v4083_v7, -inf }
 0x430   :  { %v4313_v40 = vrot.slane %v4312_v9, 4  ;;  %v4278_v12 = vmax.f32 %v4276_v25, %v4277_v13 }
 0x431   :  { %v4018_v21 = vmul.f32 0.01, %v3922_v5  ;;  %v4084_v43 = vmax.f32 %v3930_v49, %v4020_v31  ;;  %v4328_v53 = vsel %vm4093_vm12, %v4081_v36, -inf  ;;  %v4294_v31 = vmax.f32 %v4292_v34, %v4293_v8 }
 0x432   :  { %v5488_v18 = vpop.f32.mrf.mxu1  ;;  %v4314_v4 = vmax.f32 %v4312_v9, %v4313_v40 }
 0x433   :  { %v4082_v32 = vmax.f32 %v3922_v5, %v4018_v21  ;;  %v3943_v46 = vadd.f32 %v5488_v18, %v6723_v45  ;;  %v4338_v15 = vsel %vm4093_vm12, %v4084_v43, -inf  ;;  %v4323_v5 = vmax.f32 %v4321_v60, %v4322_v44 }
 0x434   :  { %v3934_v6 = vpop.f32.mrf.mxu1  ;;  %v4339_v28 = vmax.f32 %v4337_v14, %v4338_v15  ;;  %v4263_v43 = vrot.slane %v6890_v63, 1  ;;  %v4315_v60 = vrot.slane %v4314_v4, 2 }
 0x435   :  { %v4329_v41 = vsel %vm4093_vm12, %v4082_v32, -inf  ;;  %v3935_v16 = vadd.f32 %v6723_v45, %v3934_v6  ;;  %v4023_v26 = vmul.f32 0.01, %v3943_v46  ;;  %v4303_v32 = vmax.f32 %v4301_v2, %v4302_v61 }
 0x436   :  { %v4330_v37 = vmax.f32 %v4328_v53, %v4329_v41  ;;  %v5489_v29 = vpop.f32.mrf.mxu1  ;;  %v4340_v52 = vrot.slane %v4339_v28, 4  ;;  %v4324_v22 = vrot.slane %v4323_v5, 2  ;;  %v4316_v40 = vmax.f32 %v4314_v4, %v4315_v60 }
 0x437   :  { %v4021_v1 = vmul.f32 0.01, %v3935_v16  ;;  %v3946_v51 = vadd.f32 %v5489_v29, %v6723_v45  ;;  %v4087_v58 = vmax.f32 %v3943_v46, %v4023_v26  ;;  %v4295_v46 = vrot.slane %v4294_v31, 4 }
 0x438   :  { %v3937_v47 = vpop.f32.mrf.mxu1  ;;  %v4331_v49 = vrot.slane %v4330_v37, 4  ;;  %v4341_v53 = vmax.f32 %v4339_v28, %v4340_v52  ;;  %v4279_v26 = vrot.slane %v4278_v12, 2  ;;  %v4304_v44 = vrot.slane %v4303_v32, 4 }
 0x439   :  { %v4024_v24 = vmul.f32 0.01, %v3946_v51  ;;  %v3938_v48 = vadd.f32 %v6723_v45, %v3937_v47  ;;  %v4085_v19 = vmax.f32 %v3935_v16, %v4021_v1  ;;  %v4355_v21 = vsel %vm4093_vm12, %v4087_v58, -inf }
 0x43a   :  { %v4332_v36 = vmax.f32 %v4330_v37, %v4331_v49  ;;  %v4287_v37 = vmax.f32 %v6873_v30, %v4286_v57  ;;  %v4296_v1 = vmax.f32 %v4294_v31, %v4295_v46  ;;  %v4325_v47 = vmax.f32 %v4323_v5, %v4324_v22 }
 0x43b   :  { %v4088_v50 = vmax.f32 %v3946_v51, %v4024_v24  ;;  %v4022_v23 = vmul.f32 0.01, %v3938_v48  ;;  %v4346_v0 = vsel %vm4093_vm12, %v4085_v19, -inf  ;;  %v4342_v24 = vrot.slane %v4341_v53, 2 }
 0x43c   :  { %v4333_v41 = vrot.slane %v4332_v36, 2  ;;  %v4288_v49 = vrot.slane %v4287_v37, 2  ;;  %v4280_v19 = vmax.f32 %v4278_v12, %v4279_v26  ;;  %v4305_v2 = vmax.f32 %v4303_v32, %v4304_v44 }
 0x43d   :  { %v4356_v11 = vsel %vm4093_vm12, %v4088_v50, -inf  ;;  %v4086_v55 = vmax.f32 %v3938_v48, %v4022_v23  ;;  %v5492_v33 = vpop.f32.mrf.mxu1  ;;  %v4297_v50 = vrot.slane %v4296_v1, 2  ;;  %v4317_v61 = vrot.slane %v4316_v40, 1 }
 0x43e   :  { %v3959_v20 = vadd.f32 %v5492_v33, %v6723_v45  ;;  %v4357_v18 = vmax.f32 %v4355_v21, %v4356_v11  ;;  %v4334_v48 = vmax.f32 %v4332_v36, %v4333_v41  ;;  %v4326_v4 = vrot.slane %v4325_v47, 1 }
 0x43f   :  { %v4347_v10 = vsel %vm4093_vm12, %v4086_v55, -inf  ;;  %v3950_v54 = vpop.f32.mrf.mxu1  ;;  %v4281_v12 = vrot.slane %v4280_v19, 1  ;;  %v4318_v32 = vmax.f32 %v4316_v40, %v4317_v61 }
 0x440   :  { %v4348_v17 = vmax.f32 %v4346_v0, %v4347_v10  ;;  %v4027_v7 = vmul.f32 0.01, %v3959_v20  ;;  %v3951_v6 = vadd.f32 %v6723_v45, %v3950_v54  ;;  %v4358_v29 = vrot.slane %v4357_v18, 4 }
 0x441   :  { %v5493_v9 = vpop.f32.mrf.mxu1  ;;  %v4335_v11 = vrot.slane %v4334_v48, 1  ;;  %v4298_v0 = vmax.f32 %v4296_v1, %v4297_v50  ;;  %v4289_v10 = vmax.f32 %v4287_v37, %v4288_v49  ;;  %v4306_v54 = vrot.slane %v4305_v2, 2 }
 0x442   :  { %v4349_v16 = vrot.slane %v4348_v17, 4  ;;  %v3962_v25 = vadd.f32 %v5493_v9, %v6723_v45  ;;  %v4025_v27 = vmul.f32 0.01, %v3951_v6  ;;  %v4091_v35 = vmax.f32 %v3959_v20, %v4027_v7 }
 0x443   :  { %v3953_v15 = vpop.f32.mrf.mxu1  ;;  %v4359_v58 = vmax.f32 %v4357_v18, %v4358_v29  ;;  %v4264_v20 = vmax.f32 %v6890_v63, %v4263_v43  ;;  %v4336_v22 = vmax.f32 %v4334_v48, %v4335_v11  ;;  %v4282_v43 = vmax.f32 %v4280_v19, %v4281_v12 }
 0x444   :  { %v4350_v51 = vmax.f32 %v4348_v17, %v4349_v16  ;;  %v4028_v8 = vmul.f32 0.01, %v3962_v25  ;;  %v3954_v14 = vadd.f32 %v6723_v45, %v3953_v15  ;;  %v4089_v30 = vmax.f32 %v3951_v6, %v4025_v27 }
 0x445   :  { %v4373_v23 = vsel %vm4093_vm12, %v4091_v35, -inf  ;;  %v4343_v45 = vmax.f32 %v4341_v53, %v4342_v24  ;;  %v4360_v33 = vrot.slane %v4359_v58, 2  ;;  %v4273_v17 = vmax.f32 %v6864_v38, %v4272_v62 }
 0x446   :  { %v4351_v13 = vrot.slane %v4350_v51, 2  ;;  %v4092_v28 = vmax.f32 %v3962_v25, %v4028_v8  ;;  %v4026_v34 = vmul.f32 0.01, %v3954_v14  ;;  %v4364_v52 = vsel %vm4093_vm12, %v4089_v30, -inf }
 0x447   :  { %v4327_v6 = vmax.f32 %v4325_v47, %v4326_v4  ;;  %v4344_v9 = vrot.slane %v4343_v45, 1  ;;  %v4361_v53 = vmax.f32 %v4359_v58, %v4360_v33  ;;  %v4500_v63 = vsel %vm4416_vm6, %v4264_v20, %v6862_v3 }
 0x448   :  { %v4374_v57 = vsel %vm4093_vm12, %v4092_v28, -inf  ;;  %v4090_v5 = vmax.f32 %v3954_v14, %v4026_v34  ;;  %v4352_v55 = vmax.f32 %v4350_v51, %v4351_v13  ;;  %v4299_v16 = vrot.slane %v4298_v0, 1 }
 0x449   :  { %v4375_v31 = vmax.f32 %v4373_v23, %v4374_v57  ;;  %v4290_v37 = vrot.slane %v4289_v10, 1  ;;  %v4307_v26 = vmax.f32 %v4305_v2, %v4306_v54  ;;  %v4506_v29 = vsel %vm4414_vm5, %v4327_v6, %v4318_v32 }
 0x44a   :  { %v4365_v21 = vsel %vm4093_vm12, %v4090_v5, -inf  ;;  %v4353_v60 = vrot.slane %v4352_v55, 1  ;;  %v4507_v38 = vsel %vm4416_vm6, %v4336_v22, %v4506_v29  ;;  %v4345_v1 = vmax.f32 %v4343_v45, %v4344_v9 }
 0x44b   :  { %v4376_v36 = vrot.slane %v4375_v31, 4  ;;  %v4366_v18 = vmax.f32 %v4364_v52, %v4365_v21  ;;  %v4362_v51 = vrot.slane %v4361_v53, 1  ;;  %v4501_v35 = vsel %vm4418_vm7, %v4273_v17, %v4500_v63 }
 0x44c   :  { %v4354_v62 = vmax.f32 %v4352_v55, %v4353_v60  ;;  %v4300_v8 = vmax.f32 %v4298_v0, %v4299_v16  ;;  %v4502_v3 = vsel %vm4420_vm8, %v4282_v43, %v4501_v35  ;;  %v4291_v47 = vmax.f32 %v4289_v10, %v4290_v37 }
 0x44d   :  { %v4377_v46 = vmax.f32 %v4375_v31, %v4376_v36  ;;  %v4367_v7 = vrot.slane %v4366_v18, 4  ;;  %v4308_v40 = vrot.slane %v4307_v26, 1  ;;  %v4508_v24 = vsel %vm4418_vm7, %v4345_v1, %v4507_v38 }
 0x44e   :  { %v4509_v13 = vsel %vm4420_vm8, %v4354_v62, %v4508_v24  ;;  %v4363_v28 = vmax.f32 %v4361_v53, %v4362_v51  ;;  %v4503_v49 = vsel %vm4422_vm9, %v4291_v47, %v4502_v3 }
 0x44f   :  { %v4378_v41 = vrot.slane %v4377_v46, 2  ;;  %v4368_v25 = vmax.f32 %v4366_v18, %v4367_v7  ;;  %v4504_v30 = vsel %vm4424_vm10, %v4300_v8, %v4503_v49  ;;  %v4309_v34 = vmax.f32 %v4307_v26, %v4308_v40 }
 0x450   :  { %v4510_v50 = vsel %vm4422_vm9, %v4363_v28, %v4509_v13 }
 0x451   :  { %v4379_v27 = vmax.f32 %v4377_v46, %v4378_v41  ;;  %v4369_v15 = vrot.slane %v4368_v25, 2  ;;  %v4505_v57 = vsel %vm4426_vm11, %v4309_v34, %v4504_v30 }
 0x453   :  { %v4370_v44 = vmax.f32 %v4368_v25, %v4369_v15  ;;  %v4380_v14 = vrot.slane %v4379_v27, 1 }
 0x455   :  { %v4371_v48 = vrot.slane %v4370_v44, 1  ;;  %v4381_v19 = vmax.f32 %v4379_v27, %v4380_v14 }
 0x457   :  { %v4372_v58 = vmax.f32 %v4370_v44, %v4371_v48 }
 0x459   :  { %v4511_v23 = vsel %vm4424_vm10, %v4372_v58, %v4510_v50 }
 0x45a   :  { %v4512_v2 = vsel %vm4426_vm11, %v4381_v19, %v4511_v23 }
 0x45b   :  { %v5501_v61 = vpack.i.bf16 %v4512_v2, %v4505_v57 }
 0x45d   :  { %5502 = vrot.lane.b32.xlu0 %v5501_v61, %s5578_s12 }
 0x48b   :  { %v5498_v31 = vpop.permute.xlu0 %5497 }
 0x48c   :  { %v5500_v5 = vunpack.i.h.bf16 %v5498_v31  ;;  %v5499_v4 = vunpack.i.l.bf16 %v5498_v31 }
 0x48e   :  { %v4525_v45 = vsel %vm1984_vm4, %v6616_v39, %v5499_v4  ;;  %v4526_v11 = vsel %vm1984_vm4, %v6637_v42, %v5500_v5 }
 0x48f   :  { %v4890_v55 = vpack.c.bf16 %v4525_v45, %v4525_v45  ;;  %v4891_v33 = vpack.c.bf16 %v4526_v11, %v4526_v11 }
 0x491   :  { %4546 = vst.msk [vmem:[%s6966_s13] sm:$0xf] %vm4545_vm13, %v4890_v55  ;;  %4547 = vst.msk [vmem:[%s6966_s13 + $0x4] sm:$0xf] %vm4545_vm13, %v4891_v33 }
 0x4cf   :  { %v5503_v52 = vpop.permute.xlu0 %5502 }
 0x4d0   :  { %v5505_v36 = vunpack.i.h.bf16 %v5503_v52  ;;  %v5504_v21 = vunpack.i.l.bf16 %v5503_v52 }
 0x4d2   :  { %v4527_v20 = vsel %vm1984_vm4, %v6642_v56, %v5504_v21  ;;  %v4528_v39 = vsel %vm1984_vm4, %v6646_v59, %v5505_v36 }
 0x4d3   :  { %v4892_v42 = vpack.c.bf16 %v4527_v20, %v4527_v20  ;;  %v4893_v12 = vpack.c.bf16 %v4528_v39, %v4528_v39 }
 0x4d5   :  { %4548 = vst.msk [vmem:[%s6966_s13 + $0x8] sm:$0xf] %vm4545_vm13, %v4892_v42  ;;  %4549 = vst.msk [vmem:[%s6966_s13 + $0xc] sm:$0xf] %vm4545_vm13, %v4893_v12 }

// kernel: pointnetpp_forward.4
= control target key start
LH: loop header
LB: loop body
LE: loop exit
PB: predicated region body
PF: predicated region fallthrough
CT: control target
= control target key end

     0   :  { %vm909_vm0 = vcmask 261120   ;;  %vm1991_vm1 = vcmask 523264   ;;  %vm4208_vm2 = vcmask 1041409   ;;  %vm4210_vm3 = vcmask 1042434   ;;  %s6644_s1 = inlined_call_operand.vmem [shape: bf16[128,32], index: 1, kind: input, shape index: {}]   ;;  %s6645_s0 = inlined_call_operand.vmem [shape: bf16[2,16,32,128], index: 0, kind: input, shape index: {}]   ;;  %s6646_s3 = inlined_call_operand.vmem [shape: bf16[32,32], index: 3, kind: input, shape index: {}]   ;;  %s6647_s7 = inlined_call_operand.vmem [shape: bf16[128,64], index: 7, kind: input, shape index: {}]   ;;  %s6648_s5 = inlined_call_operand.vmem [shape: bf16[32,64], index: 5, kind: input, shape index: {}]   ;;  %s6649_s2 = inlined_call_operand.vmem [shape: f32[1,32], index: 2, kind: input, shape index: {}]   ;;  %s6650_s9 = inlined_call_operand.vmem [shape: bf16[64,64], index: 9, kind: input, shape index: {}]   ;;  %s6651_s4 = inlined_call_operand.vmem [shape: f32[1,32], index: 4, kind: input, shape index: {}]   ;;  %s6652_s8 = inlined_call_operand.vmem [shape: f32[1,64], index: 8, kind: input, shape index: {}]   ;;  %s6653_s11 = inlined_call_operand.vmem [shape: bf16[64,128], index: 11, kind: input, shape index: {}]   ;;  %s6654_s6 = inlined_call_operand.vmem [shape: f32[1,64], index: 6, kind: input, shape index: {}]   ;;  %s6655_s10 = inlined_call_operand.vmem [shape: f32[1,64], index: 10, kind: input, shape index: {}]   ;;  %s6656_s12 = inlined_call_operand.vmem [shape: f32[1,128], index: 12, kind: input, shape index: {}]   ;;  %s6657_s13 = inlined_call_operand.vmem [shape: bf16[16,192], index: 13, kind: output, shape index: {}]  }
   0x1   :  { %v5258_v0 = vld [vmem:[%s6644_s1 + $0x38] sm:$0xff]   ;;  %v5259_v1 = vld [vmem:[%s6644_s1 + $0x30] sm:$0xff]   ;;  %v5260_v2 = vld [vmem:[%s6644_s1 + $0x28] sm:$0xff]   ;;  %vm4212_vm4 = vcmask 1043459   ;;  %vm4214_vm5 = vcmask 1044484   ;;  %vm4216_vm6 = vcmask 1045509  }
   0x2   :  { %4804 = vmatprep.subr.bf16.mxu0 %v5258_v0  ;;  %v5261_v3 = vld [vmem:[%s6644_s1 + $0x20] sm:$0xff]   ;;  %v5262_v5 = vld [vmem:[%s6644_s1 + $0x18] sm:$0xff]   ;;  %v5263_v6 = vld [vmem:[%s6644_s1 + $0x10] sm:$0xff]   ;;  %vm4218_vm7 = vcmask 1046534   ;;  %vm4220_vm8 = vcmask 1047559   ;;  %vm4281_vm9 = vcmask 1043456  }
   0x3   :  { %4805 = vmatpush3.bf16.msra.mxu0 %v5258_v0  ;;  %v5266_v4 = vld [vmem:[%s6645_s0] sm:$0xff]   ;;  %v5264_v7 = vld [vmem:[%s6644_s1 + $0x8] sm:$0xff]   ;;  %v5268_v10 = vld [vmem:[%s6645_s0 + $0x10] sm:$0xff]   ;;  %vm4282_vm10 = vcmask 523268  }
   0x4   :  { %4806 = vmatprep.subr.bf16.mxu0 %v5259_v1  ;;  %4820 = vmatprep.mubr.bf16.mxu0 %v5266_v4  ;;  %v5265_v8 = vld [vmem:[%s6644_s1] sm:$0xff]   ;;  %v5267_v9 = vld [vmem:[%s6645_s0 + $0x8] sm:$0xff]   ;;  %v5269_v11 = vld [vmem:[%s6645_s0 + $0x18] sm:$0xff]  }
   0x5   :  { %v5270_v12 = vld [vmem:[%s6645_s0 + $0x20] sm:$0xff]   ;;  %v5271_v13 = vld [vmem:[%s6645_s0 + $0x28] sm:$0xff]   ;;  %v5272_v14 = vld [vmem:[%s6645_s0 + $0x30] sm:$0xff]  }
   0x6   :  { %v5273_v15 = vld [vmem:[%s6645_s0 + $0x38] sm:$0xff]   ;;  %v5274_v16 = vld [vmem:[%s6645_s0 + $0x40] sm:$0xff]   ;;  %v5275_v17 = vld [vmem:[%s6645_s0 + $0x48] sm:$0xff]  }
   0x7   :  { %4807 = vmatpush3.bf16.msra.mxu0 %v5259_v1  ;;  %v5276_v18 = vld [vmem:[%s6645_s0 + $0x50] sm:$0xff]   ;;  %v5277_v19 = vld [vmem:[%s6645_s0 + $0x58] sm:$0xff]   ;;  %v5278_v20 = vld [vmem:[%s6645_s0 + $0x60] sm:$0xff]  }
   0x8   :  { %4808 = vmatprep.subr.bf16.mxu0 %v5260_v2  ;;  %v5279_v21 = vld [vmem:[%s6645_s0 + $0x68] sm:$0xff]   ;;  %v5280_v22 = vld [vmem:[%s6645_s0 + $0x70] sm:$0xff]   ;;  %v5281_v23 = vld [vmem:[%s6645_s0 + $0x78] sm:$0xff]  }
   0x9   :  { %v5282_v24 = vld [vmem:[%s6645_s0 + $0x80] sm:$0xff]   ;;  %v5283_v25 = vld [vmem:[%s6645_s0 + $0x88] sm:$0xff]   ;;  %v5284_v26 = vld [vmem:[%s6645_s0 + $0x90] sm:$0xff]  }
   0xa   :  { %v5285_v27 = vld [vmem:[%s6645_s0 + $0x98] sm:$0xff]   ;;  %v5286_v28 = vld [vmem:[%s6645_s0 + $0xa0] sm:$0xff]   ;;  %v5298_v29 = vld [vmem:[%s6646_s3 + $0x8] sm:$0xff]  }
   0xb   :  { %4809 = vmatpush3.bf16.msra.mxu0 %v5260_v2  ;;  %4884 = vmatprep.subr.bf16.mxu1 %v5298_v29  ;;  %v5299_v30 = vld [vmem:[%s6646_s3] sm:$0xff]   ;;  %v5287_v31 = vld [vmem:[%s6645_s0 + $0xa8] sm:$0xff]   ;;  %v5288_v32 = vld [vmem:[%s6645_s0 + $0xb0] sm:$0xff]  }
   0xc   :  { %4810 = vmatprep.subr.bf16.mxu0 %v5261_v3  ;;  %4885 = vmatpush3.bf16.msra.mxu1 %v5298_v29  ;;  %v5289_v33 = vld [vmem:[%s6645_s0 + $0xb8] sm:$0xff]   ;;  %v5290_v34 = vld [vmem:[%s6645_s0 + $0xc0] sm:$0xff]   ;;  %v5291_v36 = vld [vmem:[%s6645_s0 + $0xc8] sm:$0xff]  }
   0xd   :  { %4886 = vmatprep.subr.bf16.mxu1 %v5299_v30  ;;  %v5300_v35 = vld [vmem:[%s6647_s7 + $0x38] sm:$0xff]   ;;  %v5292_v37 = vld [vmem:[%s6645_s0 + $0xd0] sm:$0xff]   ;;  %v5294_v39 = vld [vmem:[%s6645_s0 + $0xe0] sm:$0xff]  }
   0xe   :  { %v5293_v38 = vld [vmem:[%s6645_s0 + $0xd8] sm:$0xff]   ;;  %v5301_v40 = vld [vmem:[%s6647_s7 + $0x30] sm:$0xff]   ;;  %v5295_v41 = vld [vmem:[%s6645_s0 + $0xe8] sm:$0xff]  }
   0xf   :  { %4811 = vmatpush3.bf16.msra.mxu0 %v5261_v3  ;;  %v5296_v42 = vld [vmem:[%s6645_s0 + $0xf0] sm:$0xff]   ;;  %v5297_v43 = vld [vmem:[%s6645_s0 + $0xf8] sm:$0xff]   ;;  %v5302_v44 = vld [vmem:[%s6647_s7 + $0x28] sm:$0xff]  }
  0x10   :  { %4812 = vmatprep.subr.bf16.mxu0 %v5262_v5  ;;  %4887 = vmatpush3.bf16.msra.mxu1 %v5299_v30  ;;  %v5303_v45 = vld [vmem:[%s6647_s7 + $0x20] sm:$0xff]   ;;  %v5304_v46 = vld [vmem:[%s6647_s7 + $0x18] sm:$0xff]   ;;  %v5306_v47 = vld [vmem:[%s6647_s7 + $0x10] sm:$0xff]  }
  0x11   :  { %v5305_v48 = vld [vmem:[%s6648_s5 + $0x8] sm:$0xff]   ;;  %v5575_v51 = vld [vmem:[%s6649_s2] ss:$0 sm:$0xff]  ;;  %v5311_v2 = vld [vmem:[%s6645_s0 + $0x110] sm:$0xff]  }
  0x12   :  { %4952 = vmatprep.subr.bf16.mxu1 %v5305_v48  ;;  %v5307_v49 = vld [vmem:[%s6647_s7 + $0x8] sm:$0xff]   ;;  %v5308_v53 = vld [vmem:[%s6647_s7] sm:$0xff]   ;;  %vm4283_vm11 = vmor %vm4282_vm10, %vm4281_vm9 }
  0x13   :  { %4813 = vmatpush3.bf16.msra.mxu0 %v5262_v5  ;;  %v5309_v58 = vld [vmem:[%s6645_s0 + $0x100] sm:$0xff]   ;;  %v5310_v60 = vld [vmem:[%s6645_s0 + $0x108] sm:$0xff]  }
  0x14   :  { %4814 = vmatprep.subr.bf16.mxu0 %v5263_v6 }
  0x17   :  { %4815 = vmatpush3.bf16.msra.mxu0 %v5263_v6 }
  0x18   :  { %4816 = vmatprep.subr.bf16.mxu0 %v5264_v7 }
  0x1b   :  { %4817 = vmatpush3.bf16.msra.mxu0 %v5264_v7 }
  0x1c   :  { %4818 = vmatprep.subr.bf16.mxu0 %v5265_v8 }
  0x1f   :  { %4819 = vmatpush3.bf16.msra.mxu0 %v5265_v8 }
  0x20   :  { %5020 = vmatprep.subr.bf16.mxu0 %v5300_v35 }
  0x22   :  { %4821 = vmatmul.mubr.bf16.vlgmr.msra.gmra.mxu0 %v5267_v9 }
  0x23   :  { %4824 = vmatprep.mubr.bf16.mxu0 %v5268_v10  ;;  %5021 = vmatpush3.bf16.msra.mxu0 %v5300_v35 }
  0x24   :  { %5022 = vmatprep.subr.bf16.mxu0 %v5301_v40 }
  0x27   :  { %5023 = vmatpush3.bf16.msra.mxu0 %v5301_v40 }
  0x28   :  { %5024 = vmatprep.subr.bf16.mxu0 %v5302_v44 }
  0x2a   :  { %4825 = vmatmul.mubr.bf16.gmra.mxu0 %v5269_v11 }
  0x2b   :  { %4828 = vmatprep.mubr.bf16.mxu0 %v5270_v12  ;;  %5025 = vmatpush3.bf16.msra.mxu0 %v5302_v44  ;;  %v5312_v12 = vld [vmem:[%s6645_s0 + $0x118] sm:$0xff]  }
  0x2c   :  { %5026 = vmatprep.subr.bf16.mxu0 %v5303_v45 }
  0x2f   :  { %5027 = vmatpush3.bf16.msra.mxu0 %v5303_v45 }
  0x30   :  { %5028 = vmatprep.subr.bf16.mxu0 %v5304_v46 }
  0x32   :  { %4829 = vmatmul.mubr.bf16.gmra.mxu0 %v5271_v13 }
  0x33   :  { %4832 = vmatprep.mubr.bf16.mxu0 %v5272_v14  ;;  %5029 = vmatpush3.bf16.msra.mxu0 %v5304_v46 }
  0x34   :  { %5030 = vmatprep.subr.bf16.mxu0 %v5306_v47 }
  0x37   :  { %5031 = vmatpush3.bf16.msra.mxu0 %v5306_v47 }
  0x38   :  { %5032 = vmatprep.subr.bf16.mxu0 %v5307_v49 }
  0x3a   :  { %4833 = vmatmul.mubr.bf16.gmra.mxu0 %v5273_v15  ;;  %v5313_v15 = vld [vmem:[%s6645_s0 + $0x120] sm:$0xff]  }
  0x3b   :  { %4836 = vmatprep.mubr.bf16.mxu0 %v5274_v16  ;;  %5033 = vmatpush3.bf16.msra.mxu0 %v5307_v49 }
  0x3c   :  { %5034 = vmatprep.subr.bf16.mxu0 %v5308_v53 }
  0x3f   :  { %5035 = vmatpush3.bf16.msra.mxu0 %v5308_v53 }
  0x42   :  { %4837 = vmatmul.mubr.bf16.gmra.mxu0 %v5275_v17 }
  0x43   :  { %4840 = vmatprep.mubr.bf16.mxu0 %v5276_v18  ;;  %v5315_v18 = vld [vmem:[%s6648_s5] sm:$0xff]  }
  0x4a   :  { %4841 = vmatmul.mubr.bf16.gmra.mxu0 %v5277_v19 }
  0x4b   :  { %4844 = vmatprep.mubr.bf16.mxu0 %v5278_v20 }
  0x52   :  { %4845 = vmatmul.mubr.bf16.gmra.mxu0 %v5279_v21 }
  0x53   :  { %4848 = vmatprep.mubr.bf16.mxu0 %v5280_v22 }
  0x5a   :  { %4849 = vmatmul.mubr.bf16.gmra.mxu0 %v5281_v23 }
  0x5b   :  { %4852 = vmatprep.mubr.bf16.mxu0 %v5282_v24 }
  0x62   :  { %4853 = vmatmul.mubr.bf16.gmra.mxu0 %v5283_v25 }
  0x63   :  { %4856 = vmatprep.mubr.bf16.mxu0 %v5284_v26 }
  0x6a   :  { %4857 = vmatmul.mubr.bf16.gmra.mxu0 %v5285_v27 }
  0x6b   :  { %4860 = vmatprep.mubr.bf16.mxu0 %v5286_v28 }
  0x72   :  { %4861 = vmatmul.mubr.bf16.gmra.mxu0 %v5287_v31 }
  0x73   :  { %4864 = vmatprep.mubr.bf16.mxu0 %v5288_v32 }
  0x7a   :  { %4865 = vmatmul.mubr.bf16.gmra.mxu0 %v5289_v33  ;;  %v5314_v33 = vld [vmem:[%s6645_s0 + $0x128] sm:$0xff]  }
  0x7b   :  { %4868 = vmatprep.mubr.bf16.mxu0 %v5290_v34 }
  0x82   :  { %4869 = vmatmul.mubr.bf16.gmra.mxu0 %v5291_v36  ;;  %v5316_v36 = vld [vmem:[%s6645_s0 + $0x130] sm:$0xff]  }
  0x83   :  { %4872 = vmatprep.mubr.bf16.mxu0 %v5292_v37 }
  0x8a   :  { %4873 = vmatmul.mubr.bf16.gmra.mxu0 %v5293_v38 }
  0x8b   :  { %4876 = vmatprep.mubr.bf16.mxu0 %v5294_v39 }
  0x92   :  { %4877 = vmatmul.mubr.bf16.gmra.mxu0 %v5295_v41 }
  0x93   :  { %4880 = vmatprep.mubr.bf16.mxu0 %v5296_v42 }
  0x9a   :  { %4881 = vmatmul.mubr.bf16.gmra.mxu0 %v5297_v43 }
  0x9b   :  { %5036 = vmatprep.mubr.bf16.mxu0 %v5309_v58 }
  0xa2   :  { %5037 = vmatmul.mubr.bf16.vlgmr.msra.gmra.mxu0 %v5310_v60 }
  0xa3   :  { %5040 = vmatprep.mubr.bf16.mxu0 %v5311_v2 }
  0xaa   :  { %5041 = vmatmul.mubr.bf16.gmra.mxu0 %v5312_v12 }
  0xab   :  { %5044 = vmatprep.mubr.bf16.mxu0 %v5313_v15 }
  0xb2   :  { %5045 = vmatmul.mubr.bf16.gmra.mxu0 %v5314_v33  ;;  %v5322_v33 = vld [vmem:[%s6645_s0 + $0x160] sm:$0xff]  }
  0xb3   :  { %5048 = vmatprep.mubr.bf16.mxu0 %v5316_v36 }
  0xe2   :  { %v4822_v50 = vpop.f32.mrf.mxu0 }
  0xe3   :  { %v480_v55 = vadd.f32 %v4822_v50, %v5575_v51 }
  0xe4   :  { %v471_v52 = vpop.f32.mrf.mxu0 }
  0xe5   :  { %v472_v54 = vadd.f32 %v5575_v51, %v471_v52  ;;  %v728_v0 = vmul.f32 0.01, %v480_v55 }
  0xe6   :  { %v4823_v56 = vpop.f32.mrf.mxu0 }
  0xe7   :  { %v483_v57 = vadd.f32 %v4823_v56, %v5575_v51  ;;  %v726_v61 = vmul.f32 0.01, %v472_v54  ;;  %v792_v9 = vmax.f32 %v480_v55, %v728_v0 }
  0xe8   :  { %v474_v59 = vpop.f32.mrf.mxu0 }
  0xe9   :  { %v729_v62 = vmul.f32 0.01, %v483_v57  ;;  %v475_v63 = vadd.f32 %v5575_v51, %v474_v59  ;;  %v790_v6 = vmax.f32 %v472_v54, %v726_v61  ;;  %v5317_v54 = vld [vmem:[%s6645_s0 + $0x138] sm:$0xff]  }
  0xea   :  { %v4826_v1 = vpop.f32.mrf.mxu0  ;;  %5049 = vmatmul.mubr.bf16.gmra.mxu0 %v5317_v54  ;;  %v5324_v54 = vld [vmem:[%s6645_s0 + $0x170] sm:$0xff]  }
  0xeb   :  { %v727_v3 = vmul.f32 0.01, %v475_v63  ;;  %v793_v4 = vmax.f32 %v483_v57, %v729_v62  ;;  %v496_v10 = vadd.f32 %v4826_v1, %v5575_v51  ;;  %v5318_v57 = vld [vmem:[%s6645_s0 + $0x140] sm:$0xff]  }
  0xec   :  { %v487_v5 = vpop.f32.mrf.mxu0  ;;  %5052 = vmatprep.mubr.bf16.mxu0 %v5318_v57 }
  0xed   :  { %v488_v7 = vadd.f32 %v5575_v51, %v487_v5  ;;  %v791_v8 = vmax.f32 %v475_v63, %v727_v3  ;;  %v855_v16 = vpack.c.bf16 %v793_v4, %v792_v9  ;;  %v732_v22 = vmul.f32 0.01, %v496_v10 }
  0xee   :  { %v4827_v11 = vpop.f32.mrf.mxu0 }
  0xef   :  { %v499_v13 = vadd.f32 %v4827_v11, %v5575_v51  ;;  %v854_v14 = vpack.c.bf16 %v791_v8, %v790_v6  ;;  %v730_v19 = vmul.f32 0.01, %v488_v7  ;;  %v796_v30 = vmax.f32 %v496_v10, %v732_v22  ;;  %v5319_v10 = vld [vmem:[%s6645_s0 + $0x148] sm:$0xff]  }
  0xf0   :  { %v490_v17 = vpop.f32.mrf.mxu0 }
  0xf1   :  { %v733_v20 = vmul.f32 0.01, %v499_v13  ;;  %v491_v21 = vadd.f32 %v5575_v51, %v490_v17  ;;  %4888 = vmatprep.mubr.msk.bf16.mxu1 %vm909_vm0, %v854_v14  ;;  %v794_v27 = vmax.f32 %v488_v7, %v730_v19 }
  0xf2   :  { %v4830_v23 = vpop.f32.mrf.mxu0  ;;  %4889 = vmatmul.mubr.msk.bf16.vlgmr.msra.gmra.mxu1 %vm909_vm0, %v855_v16  ;;  %5053 = vmatmul.mubr.bf16.gmra.mxu0 %v5319_v10  ;;  %v5326_v10 = vld [vmem:[%s6645_s0 + $0x180] sm:$0xff]  }
  0xf3   :  { %v731_v24 = vmul.f32 0.01, %v491_v21  ;;  %4953 = vmatpush3.bf16.msra.mxu1 %v5305_v48  ;;  %v797_v25 = vmax.f32 %v499_v13, %v733_v20  ;;  %v512_v31 = vadd.f32 %v4830_v23, %v5575_v51  ;;  %v5320_v13 = vld [vmem:[%s6645_s0 + $0x150] sm:$0xff]  }
  0xf4   :  { %v503_v26 = vpop.f32.mrf.mxu0  ;;  %4954 = vmatprep.subr.bf16.mxu1 %v5315_v18  ;;  %5056 = vmatprep.mubr.bf16.mxu0 %v5320_v13 }
  0xf5   :  { %v795_v28 = vmax.f32 %v491_v21, %v731_v24  ;;  %v504_v29 = vadd.f32 %v5575_v51, %v503_v26  ;;  %v857_v37 = vpack.c.bf16 %v797_v25, %v796_v30  ;;  %v736_v42 = vmul.f32 0.01, %v512_v31  ;;  %v5321_v30 = vld [vmem:[%s6645_s0 + $0x158] sm:$0xff]  }
  0xf6   :  { %v4831_v32 = vpop.f32.mrf.mxu0 }
  0xf7   :  { %v856_v34 = vpack.c.bf16 %v795_v28, %v794_v27  ;;  %v515_v35 = vadd.f32 %v4831_v32, %v5575_v51  ;;  %4955 = vmatpush3.bf16.msra.mxu1 %v5315_v18  ;;  %v734_v39 = vmul.f32 0.01, %v504_v29  ;;  %v800_v50 = vmax.f32 %v512_v31, %v736_v42 }
  0xf8   :  { %v506_v38 = vpop.f32.mrf.mxu0 }
  0xf9   :  { %v737_v40 = vmul.f32 0.01, %v515_v35  ;;  %v507_v41 = vadd.f32 %v5575_v51, %v506_v38  ;;  %4892 = vmatprep.mubr.msk.bf16.mxu1 %vm909_vm0, %v856_v34  ;;  %v798_v47 = vmax.f32 %v504_v29, %v734_v39 }
  0xfa   :  { %v4834_v43 = vpop.f32.mrf.mxu0  ;;  %4893 = vmatmul.mubr.msk.bf16.gmra.mxu1 %vm909_vm0, %v857_v37  ;;  %5057 = vmatmul.mubr.bf16.gmra.mxu0 %v5321_v30  ;;  %v5328_v30 = vld [vmem:[%s6645_s0 + $0x190] sm:$0xff]  }
  0xfb   :  { %v735_v44 = vmul.f32 0.01, %v507_v41  ;;  %v801_v45 = vmax.f32 %v515_v35, %v737_v40  ;;  %v528_v52 = vadd.f32 %v4834_v43, %v5575_v51  ;;  %5060 = vmatprep.mubr.bf16.mxu0 %v5322_v33 }
  0xfc   :  { %v519_v46 = vpop.f32.mrf.mxu0 }
  0xfd   :  { %v799_v48 = vmax.f32 %v507_v41, %v735_v44  ;;  %v520_v49 = vadd.f32 %v5575_v51, %v519_v46  ;;  %v859_v58 = vpack.c.bf16 %v801_v45, %v800_v50  ;;  %v740_v63 = vmul.f32 0.01, %v528_v52  ;;  %v5323_v50 = vld [vmem:[%s6645_s0 + $0x168] sm:$0xff]  }
  0xfe   :  { %v4835_v53 = vpop.f32.mrf.mxu0 }
  0xff   :  { %v858_v55 = vpack.c.bf16 %v799_v48, %v798_v47  ;;  %v531_v56 = vadd.f32 %v4835_v53, %v5575_v51  ;;  %v738_v60 = vmul.f32 0.01, %v520_v49  ;;  %v804_v7 = vmax.f32 %v528_v52, %v740_v63 }
 0x100   :  { %v522_v59 = vpop.f32.mrf.mxu0 }
 0x101   :  { %v741_v61 = vmul.f32 0.01, %v531_v56  ;;  %v523_v62 = vadd.f32 %v5575_v51, %v522_v59  ;;  %4896 = vmatprep.mubr.msk.bf16.mxu1 %vm909_vm0, %v858_v55  ;;  %v802_v4 = vmax.f32 %v520_v49, %v738_v60 }
 0x102   :  { %v4838_v0 = vpop.f32.mrf.mxu0  ;;  %4897 = vmatmul.mubr.msk.bf16.gmra.mxu1 %vm909_vm0, %v859_v58  ;;  %5061 = vmatmul.mubr.bf16.gmra.mxu0 %v5323_v50 }
 0x103   :  { %v739_v1 = vmul.f32 0.01, %v523_v62  ;;  %v805_v2 = vmax.f32 %v531_v56, %v741_v61  ;;  %v544_v8 = vadd.f32 %v4838_v0, %v5575_v51  ;;  %5064 = vmatprep.mubr.bf16.mxu0 %v5324_v54 }
 0x104   :  { %v535_v3 = vpop.f32.mrf.mxu0 }
 0x105   :  { %v803_v5 = vmax.f32 %v523_v62, %v739_v1  ;;  %v536_v6 = vadd.f32 %v5575_v51, %v535_v3  ;;  %v861_v14 = vpack.c.bf16 %v805_v2, %v804_v7  ;;  %v744_v19 = vmul.f32 0.01, %v544_v8  ;;  %v5325_v7 = vld [vmem:[%s6645_s0 + $0x178] sm:$0xff]  }
 0x106   :  { %v4839_v9 = vpop.f32.mrf.mxu0 }
 0x107   :  { %v860_v11 = vpack.c.bf16 %v803_v5, %v802_v4  ;;  %v547_v12 = vadd.f32 %v4839_v9, %v5575_v51  ;;  %v742_v16 = vmul.f32 0.01, %v536_v6  ;;  %v808_v27 = vmax.f32 %v544_v8, %v744_v19 }
 0x108   :  { %v538_v15 = vpop.f32.mrf.mxu0 }
 0x109   :  { %v745_v17 = vmul.f32 0.01, %v547_v12  ;;  %v539_v18 = vadd.f32 %v5575_v51, %v538_v15  ;;  %4900 = vmatprep.mubr.msk.bf16.mxu1 %vm909_vm0, %v860_v11  ;;  %v806_v24 = vmax.f32 %v536_v6, %v742_v16 }
 0x10a   :  { %v4842_v20 = vpop.f32.mrf.mxu0  ;;  %4901 = vmatmul.mubr.msk.bf16.gmra.mxu1 %vm909_vm0, %v861_v14  ;;  %5065 = vmatmul.mubr.bf16.gmra.mxu0 %v5325_v7 }
 0x10b   :  { %v743_v21 = vmul.f32 0.01, %v539_v18  ;;  %v809_v22 = vmax.f32 %v547_v12, %v745_v17  ;;  %v560_v28 = vadd.f32 %v4842_v20, %v5575_v51  ;;  %5068 = vmatprep.mubr.bf16.mxu0 %v5326_v10 }
 0x10c   :  { %v551_v23 = vpop.f32.mrf.mxu0 }
 0x10d   :  { %v807_v25 = vmax.f32 %v539_v18, %v743_v21  ;;  %v552_v26 = vadd.f32 %v5575_v51, %v551_v23  ;;  %v863_v34 = vpack.c.bf16 %v809_v22, %v808_v27  ;;  %v748_v39 = vmul.f32 0.01, %v560_v28  ;;  %v5327_v27 = vld [vmem:[%s6645_s0 + $0x188] sm:$0xff]  }
 0x10e   :  { %v4843_v29 = vpop.f32.mrf.mxu0 }
 0x10f   :  { %v862_v31 = vpack.c.bf16 %v807_v25, %v806_v24  ;;  %v563_v32 = vadd.f32 %v4843_v29, %v5575_v51  ;;  %v746_v36 = vmul.f32 0.01, %v552_v26  ;;  %v812_v47 = vmax.f32 %v560_v28, %v748_v39 }
 0x110   :  { %v554_v35 = vpop.f32.mrf.mxu0 }
 0x111   :  { %v749_v37 = vmul.f32 0.01, %v563_v32  ;;  %v555_v38 = vadd.f32 %v5575_v51, %v554_v35  ;;  %4904 = vmatprep.mubr.msk.bf16.mxu1 %vm909_vm0, %v862_v31  ;;  %v810_v44 = vmax.f32 %v552_v26, %v746_v36 }
 0x112   :  { %v4846_v40 = vpop.f32.mrf.mxu0  ;;  %4905 = vmatmul.mubr.msk.bf16.gmra.mxu1 %vm909_vm0, %v863_v34  ;;  %5069 = vmatmul.mubr.bf16.gmra.mxu0 %v5327_v27 }
 0x113   :  { %v747_v41 = vmul.f32 0.01, %v555_v38  ;;  %v813_v42 = vmax.f32 %v563_v32, %v749_v37  ;;  %v576_v48 = vadd.f32 %v4846_v40, %v5575_v51  ;;  %5072 = vmatprep.mubr.bf16.mxu0 %v5328_v30 }
 0x114   :  { %v567_v43 = vpop.f32.mrf.mxu0 }
 0x115   :  { %v811_v45 = vmax.f32 %v555_v38, %v747_v41  ;;  %v568_v46 = vadd.f32 %v5575_v51, %v567_v43  ;;  %v865_v55 = vpack.c.bf16 %v813_v42, %v812_v47  ;;  %v752_v60 = vmul.f32 0.01, %v576_v48 }
 0x116   :  { %v4847_v49 = vpop.f32.mrf.mxu0 }
 0x117   :  { %v864_v52 = vpack.c.bf16 %v811_v45, %v810_v44  ;;  %v579_v53 = vadd.f32 %v4847_v49, %v5575_v51  ;;  %v750_v57 = vmul.f32 0.01, %v568_v46  ;;  %v816_v4 = vmax.f32 %v576_v48, %v752_v60 }
 0x118   :  { %v570_v56 = vpop.f32.mrf.mxu0 }
 0x119   :  { %v753_v58 = vmul.f32 0.01, %v579_v53  ;;  %v571_v59 = vadd.f32 %v5575_v51, %v570_v56  ;;  %4908 = vmatprep.mubr.msk.bf16.mxu1 %vm909_vm0, %v864_v52  ;;  %v814_v1 = vmax.f32 %v568_v46, %v750_v57  ;;  %v5329_v52 = vld [vmem:[%s6645_s0 + $0x198] sm:$0xff]  }
 0x11a   :  { %v4850_v61 = vpop.f32.mrf.mxu0  ;;  %4909 = vmatmul.mubr.msk.bf16.gmra.mxu1 %vm909_vm0, %v865_v55  ;;  %5073 = vmatmul.mubr.bf16.gmra.mxu0 %v5329_v52 }
 0x11b   :  { %v751_v62 = vmul.f32 0.01, %v571_v59  ;;  %v817_v63 = vmax.f32 %v579_v53, %v753_v58  ;;  %v592_v5 = vadd.f32 %v4850_v61, %v5575_v51 }
 0x11c   :  { %v583_v0 = vpop.f32.mrf.mxu0 }
 0x11d   :  { %v815_v2 = vmax.f32 %v571_v59, %v751_v62  ;;  %v584_v3 = vadd.f32 %v5575_v51, %v583_v0  ;;  %v867_v11 = vpack.c.bf16 %v817_v63, %v816_v4  ;;  %v756_v16 = vmul.f32 0.01, %v592_v5 }
 0x11e   :  { %v4851_v6 = vpop.f32.mrf.mxu0 }
 0x11f   :  { %v866_v8 = vpack.c.bf16 %v815_v2, %v814_v1  ;;  %v595_v9 = vadd.f32 %v4851_v6, %v5575_v51  ;;  %v754_v13 = vmul.f32 0.01, %v584_v3  ;;  %v820_v24 = vmax.f32 %v592_v5, %v756_v16  ;;  %v5330_v5 = vld [vmem:[%s6645_s0 + $0x1a0] sm:$0xff]  }
 0x120   :  { %v586_v12 = vpop.f32.mrf.mxu0  ;;  %5076 = vmatprep.mubr.bf16.mxu0 %v5330_v5 }
 0x121   :  { %v757_v14 = vmul.f32 0.01, %v595_v9  ;;  %v587_v15 = vadd.f32 %v5575_v51, %v586_v12  ;;  %4912 = vmatprep.mubr.msk.bf16.mxu1 %vm909_vm0, %v866_v8  ;;  %v818_v21 = vmax.f32 %v584_v3, %v754_v13  ;;  %v5331_v8 = vld [vmem:[%s6645_s0 + $0x1a8] sm:$0xff]  }
 0x122   :  { %v4854_v17 = vpop.f32.mrf.mxu0  ;;  %4913 = vmatmul.mubr.msk.bf16.gmra.mxu1 %vm909_vm0, %v867_v11  ;;  %5077 = vmatmul.mubr.bf16.gmra.mxu0 %v5331_v8 }
 0x123   :  { %v755_v18 = vmul.f32 0.01, %v587_v15  ;;  %v821_v19 = vmax.f32 %v595_v9, %v757_v14  ;;  %v608_v25 = vadd.f32 %v4854_v17, %v5575_v51 }
 0x124   :  { %v599_v20 = vpop.f32.mrf.mxu0 }
 0x125   :  { %v819_v22 = vmax.f32 %v587_v15, %v755_v18  ;;  %v600_v23 = vadd.f32 %v5575_v51, %v599_v20  ;;  %v869_v31 = vpack.c.bf16 %v821_v19, %v820_v24  ;;  %v760_v36 = vmul.f32 0.01, %v608_v25 }
 0x126   :  { %v4855_v26 = vpop.f32.mrf.mxu0 }
 0x127   :  { %v868_v28 = vpack.c.bf16 %v819_v22, %v818_v21  ;;  %v611_v29 = vadd.f32 %v4855_v26, %v5575_v51  ;;  %v758_v33 = vmul.f32 0.01, %v600_v23  ;;  %v824_v44 = vmax.f32 %v608_v25, %v760_v36  ;;  %v5332_v25 = vld [vmem:[%s6645_s0 + $0x1b0] sm:$0xff]  }
 0x128   :  { %v602_v32 = vpop.f32.mrf.mxu0  ;;  %5080 = vmatprep.mubr.bf16.mxu0 %v5332_v25 }
 0x129   :  { %v761_v34 = vmul.f32 0.01, %v611_v29  ;;  %v603_v35 = vadd.f32 %v5575_v51, %v602_v32  ;;  %4916 = vmatprep.mubr.msk.bf16.mxu1 %vm909_vm0, %v868_v28  ;;  %v822_v41 = vmax.f32 %v600_v23, %v758_v33  ;;  %v5334_v28 = vld [vmem:[%s6645_s0 + $0x1b8] sm:$0xff]  }
 0x12a   :  { %v4858_v37 = vpop.f32.mrf.mxu0  ;;  %4917 = vmatmul.mubr.msk.bf16.gmra.mxu1 %vm909_vm0, %v869_v31  ;;  %5081 = vmatmul.mubr.bf16.gmra.mxu0 %v5334_v28 }
 0x12b   :  { %v759_v38 = vmul.f32 0.01, %v603_v35  ;;  %v825_v39 = vmax.f32 %v611_v29, %v761_v34  ;;  %v624_v45 = vadd.f32 %v4858_v37, %v5575_v51 }
 0x12c   :  { %v615_v40 = vpop.f32.mrf.mxu0 }
 0x12d   :  { %v823_v42 = vmax.f32 %v603_v35, %v759_v38  ;;  %v616_v43 = vadd.f32 %v5575_v51, %v615_v40  ;;  %v871_v49 = vpack.c.bf16 %v825_v39, %v824_v44  ;;  %v764_v56 = vmul.f32 0.01, %v624_v45 }
 0x12e   :  { %v4859_v46 = vpop.f32.mrf.mxu0 }
 0x12f   :  { %v870_v47 = vpack.c.bf16 %v823_v42, %v822_v41  ;;  %v627_v48 = vadd.f32 %v4859_v46, %v5575_v51  ;;  %v762_v53 = vmul.f32 0.01, %v616_v43  ;;  %v828_v0 = vmax.f32 %v624_v45, %v764_v56 }
 0x130   :  { %v618_v50 = vpop.f32.mrf.mxu0 }
 0x131   :  { %v765_v54 = vmul.f32 0.01, %v627_v48  ;;  %v619_v55 = vadd.f32 %v5575_v51, %v618_v50  ;;  %4920 = vmatprep.mubr.msk.bf16.mxu1 %vm909_vm0, %v870_v47  ;;  %v826_v61 = vmax.f32 %v616_v43, %v762_v53  ;;  %v5335_v47 = vld [vmem:[%s6645_s0 + $0x1c0] sm:$0xff]   ;;  %v5734_v50 = vld [vmem:[%s6650_s9 + $0x18] sm:$0xff]  }
 0x132   :  { %v4862_v57 = vpop.f32.mrf.mxu0  ;;  %4921 = vmatmul.mubr.msk.bf16.gmra.mxu1 %vm909_vm0, %v871_v49  ;;  %5084 = vmatprep.mubr.bf16.mxu0 %v5335_v47 }
 0x133   :  { %v763_v58 = vmul.f32 0.01, %v619_v55  ;;  %v829_v59 = vmax.f32 %v627_v48, %v765_v54  ;;  %v640_v1 = vadd.f32 %v4862_v57, %v5575_v51  ;;  %v5336_v54 = vld [vmem:[%s6645_s0 + $0x1c8] sm:$0xff]   ;;  %5100 = vmatprep.subr.bf16.mxu1 %v5734_v50 }
 0x134   :  { %v631_v60 = vpop.f32.mrf.mxu0  ;;  %5085 = vmatmul.mubr.bf16.gmra.mxu0 %v5336_v54 }
 0x135   :  { %v827_v62 = vmax.f32 %v619_v55, %v763_v58  ;;  %v632_v63 = vadd.f32 %v5575_v51, %v631_v60  ;;  %v873_v6 = vpack.c.bf16 %v829_v59, %v828_v0  ;;  %v768_v12 = vmul.f32 0.01, %v640_v1 }
 0x136   :  { %v4863_v2 = vpop.f32.mrf.mxu0 }
 0x137   :  { %v872_v3 = vpack.c.bf16 %v827_v62, %v826_v61  ;;  %v643_v4 = vadd.f32 %v4863_v2, %v5575_v51  ;;  %v766_v9 = vmul.f32 0.01, %v632_v63  ;;  %v832_v20 = vmax.f32 %v640_v1, %v768_v12 }
 0x138   :  { %v634_v7 = vpop.f32.mrf.mxu0 }
 0x139   :  { %v769_v10 = vmul.f32 0.01, %v643_v4  ;;  %v635_v11 = vadd.f32 %v5575_v51, %v634_v7  ;;  %4924 = vmatprep.mubr.msk.bf16.mxu1 %vm909_vm0, %v872_v3  ;;  %v830_v17 = vmax.f32 %v632_v63, %v766_v9  ;;  %v5337_v3 = vld [vmem:[%s6645_s0 + $0x1d0] sm:$0xff]  }
 0x13a   :  { %v4866_v13 = vpop.f32.mrf.mxu0  ;;  %4925 = vmatmul.mubr.msk.bf16.gmra.mxu1 %vm909_vm0, %v873_v6  ;;  %v5338_v6 = vld [vmem:[%s6645_s0 + $0x1d8] sm:$0xff]   ;;  %5088 = vmatprep.mubr.bf16.mxu0 %v5337_v3 }
 0x13b   :  { %v767_v14 = vmul.f32 0.01, %v635_v11  ;;  %v833_v15 = vmax.f32 %v643_v4, %v769_v10  ;;  %v656_v21 = vadd.f32 %v4866_v13, %v5575_v51 }
 0x13c   :  { %v647_v16 = vpop.f32.mrf.mxu0  ;;  %5089 = vmatmul.mubr.bf16.gmra.mxu0 %v5338_v6 }
 0x13d   :  { %v831_v18 = vmax.f32 %v635_v11, %v767_v14  ;;  %v648_v19 = vadd.f32 %v5575_v51, %v647_v16  ;;  %v875_v26 = vpack.c.bf16 %v833_v15, %v832_v20  ;;  %v772_v32 = vmul.f32 0.01, %v656_v21 }
 0x13e   :  { %v4867_v22 = vpop.f32.mrf.mxu0 }
 0x13f   :  { %v874_v23 = vpack.c.bf16 %v831_v18, %v830_v17  ;;  %v659_v24 = vadd.f32 %v4867_v22, %v5575_v51  ;;  %v770_v29 = vmul.f32 0.01, %v648_v19  ;;  %v836_v41 = vmax.f32 %v656_v21, %v772_v32 }
 0x140   :  { %v650_v27 = vpop.f32.mrf.mxu0 }
 0x141   :  { %v773_v30 = vmul.f32 0.01, %v659_v24  ;;  %v651_v31 = vadd.f32 %v5575_v51, %v650_v27  ;;  %4928 = vmatprep.mubr.msk.bf16.mxu1 %vm909_vm0, %v874_v23  ;;  %v834_v38 = vmax.f32 %v648_v19, %v770_v29  ;;  %v5339_v23 = vld [vmem:[%s6645_s0 + $0x1e0] sm:$0xff]  }
 0x142   :  { %v4870_v33 = vpop.f32.mrf.mxu0  ;;  %4929 = vmatmul.mubr.msk.bf16.gmra.mxu1 %vm909_vm0, %v875_v26  ;;  %v5340_v26 = vld [vmem:[%s6645_s0 + $0x1e8] sm:$0xff]   ;;  %5092 = vmatprep.mubr.bf16.mxu0 %v5339_v23 }
 0x143   :  { %v771_v34 = vmul.f32 0.01, %v651_v31  ;;  %v672_v35 = vadd.f32 %v4870_v33, %v5575_v51  ;;  %v837_v36 = vmax.f32 %v659_v24, %v773_v30 }
 0x144   :  { %v663_v37 = vpop.f32.mrf.mxu0  ;;  %5093 = vmatmul.mubr.bf16.gmra.mxu0 %v5340_v26 }
 0x145   :  { %v835_v39 = vmax.f32 %v651_v31, %v771_v34  ;;  %v664_v40 = vadd.f32 %v5575_v51, %v663_v37  ;;  %v776_v44 = vmul.f32 0.01, %v672_v35  ;;  %v877_v48 = vpack.c.bf16 %v837_v36, %v836_v41 }
 0x146   :  { %v4871_v42 = vpop.f32.mrf.mxu0 }
 0x147   :  { %v876_v43 = vpack.c.bf16 %v835_v39, %v834_v38  ;;  %v774_v45 = vmul.f32 0.01, %v664_v40  ;;  %v675_v46 = vadd.f32 %v4871_v42, %v5575_v51  ;;  %v840_v62 = vmax.f32 %v672_v35, %v776_v44 }
 0x148   :  { %v666_v49 = vpop.f32.mrf.mxu0 }
 0x149   :  { %v777_v52 = vmul.f32 0.01, %v675_v46  ;;  %v667_v53 = vadd.f32 %v5575_v51, %v666_v49  ;;  %4932 = vmatprep.mubr.msk.bf16.mxu1 %vm909_vm0, %v876_v43  ;;  %v838_v59 = vmax.f32 %v664_v40, %v774_v45  ;;  %v5341_v43 = vld [vmem:[%s6645_s0 + $0x1f0] sm:$0xff]  }
 0x14a   :  { %v4874_v55 = vpop.f32.mrf.mxu0  ;;  %4933 = vmatmul.mubr.msk.bf16.gmra.mxu1 %vm909_vm0, %v877_v48  ;;  %5096 = vmatprep.mubr.bf16.mxu0 %v5341_v43 }
 0x14b   :  { %v775_v56 = vmul.f32 0.01, %v667_v53  ;;  %v841_v57 = vmax.f32 %v675_v46, %v777_v52  ;;  %v688_v63 = vadd.f32 %v4874_v55, %v5575_v51  ;;  %v5343_v46 = vld [vmem:[%s6645_s0 + $0x1f8] sm:$0xff]  }
 0x14c   :  { %v679_v58 = vpop.f32.mrf.mxu0  ;;  %5097 = vmatmul.mubr.bf16.gmra.mxu0 %v5343_v46 }
 0x14d   :  { %v839_v60 = vmax.f32 %v667_v53, %v775_v56  ;;  %v680_v61 = vadd.f32 %v5575_v51, %v679_v58  ;;  %v879_v4 = vpack.c.bf16 %v841_v57, %v840_v62  ;;  %v780_v10 = vmul.f32 0.01, %v688_v63 }
 0x14e   :  { %v4875_v0 = vpop.f32.mrf.mxu0 }
 0x14f   :  { %v878_v1 = vpack.c.bf16 %v839_v60, %v838_v59  ;;  %v691_v2 = vadd.f32 %v4875_v0, %v5575_v51  ;;  %v778_v7 = vmul.f32 0.01, %v680_v61  ;;  %v844_v18 = vmax.f32 %v688_v63, %v780_v10  ;;  %v5792_v0 = vld [vmem:[%s6651_s4] ss:$0 sm:$0xff] }
 0x150   :  { %v682_v5 = vpop.f32.mrf.mxu0 }
 0x151   :  { %v781_v8 = vmul.f32 0.01, %v691_v2  ;;  %v683_v9 = vadd.f32 %v5575_v51, %v682_v5  ;;  %4936 = vmatprep.mubr.msk.bf16.mxu1 %vm909_vm0, %v878_v1  ;;  %v842_v15 = vmax.f32 %v680_v61, %v778_v7 }
 0x152   :  { %v4878_v11 = vpop.f32.mrf.mxu0  ;;  %4937 = vmatmul.mubr.msk.bf16.gmra.mxu1 %vm909_vm0, %v879_v4 }
 0x153   :  { %v779_v12 = vmul.f32 0.01, %v683_v9  ;;  %v845_v13 = vmax.f32 %v691_v2, %v781_v8  ;;  %v704_v19 = vadd.f32 %v4878_v11, %v5575_v51 }
 0x154   :  { %v695_v14 = vpop.f32.mrf.mxu0 }
 0x155   :  { %v843_v16 = vmax.f32 %v683_v9, %v779_v12  ;;  %v696_v17 = vadd.f32 %v5575_v51, %v695_v14  ;;  %v881_v24 = vpack.c.bf16 %v845_v13, %v844_v18  ;;  %v784_v30 = vmul.f32 0.01, %v704_v19 }
 0x156   :  { %v4879_v20 = vpop.f32.mrf.mxu0 }
 0x157   :  { %v880_v21 = vpack.c.bf16 %v843_v16, %v842_v15  ;;  %v707_v22 = vadd.f32 %v4879_v20, %v5575_v51  ;;  %v782_v27 = vmul.f32 0.01, %v696_v17  ;;  %v848_v38 = vmax.f32 %v704_v19, %v784_v30 }
 0x158   :  { %v698_v25 = vpop.f32.mrf.mxu0 }
 0x159   :  { %v785_v28 = vmul.f32 0.01, %v707_v22  ;;  %v699_v29 = vadd.f32 %v5575_v51, %v698_v25  ;;  %4940 = vmatprep.mubr.msk.bf16.mxu1 %vm909_vm0, %v880_v21  ;;  %v846_v35 = vmax.f32 %v696_v17, %v782_v27 }
 0x15a   :  { %v4882_v31 = vpop.f32.mrf.mxu0  ;;  %4941 = vmatmul.mubr.msk.bf16.gmra.mxu1 %vm909_vm0, %v881_v24 }
 0x15b   :  { %v783_v32 = vmul.f32 0.01, %v699_v29  ;;  %v849_v33 = vmax.f32 %v707_v22, %v785_v28  ;;  %v720_v39 = vadd.f32 %v4882_v31, %v5575_v51 }
 0x15c   :  { %v711_v34 = vpop.f32.mrf.mxu0 }
 0x15d   :  { %v847_v36 = vmax.f32 %v699_v29, %v783_v32  ;;  %v712_v37 = vadd.f32 %v5575_v51, %v711_v34  ;;  %v883_v44 = vpack.c.bf16 %v849_v33, %v848_v38  ;;  %v788_v52 = vmul.f32 0.01, %v720_v39  ;;  %v5342_v29 = vld [vmem:[%s6650_s9 + $0x10] sm:$0xff]  }
 0x15e   :  { %v4883_v40 = vpop.f32.mrf.mxu0 }
 0x15f   :  { %v882_v41 = vpack.c.bf16 %v847_v36, %v846_v35  ;;  %v723_v42 = vadd.f32 %v4883_v40, %v5575_v51  ;;  %v786_v47 = vmul.f32 0.01, %v712_v37  ;;  %v852_v57 = vmax.f32 %v720_v39, %v788_v52  ;;  %v5344_v39 = vld [vmem:[%s6650_s9 + $0x8] sm:$0xff]   ;;  %v5345_v52 = vld [vmem:[%s6650_s9] sm:$0xff]  }
 0x160   :  { %v714_v45 = vpop.f32.mrf.mxu0 }
 0x161   :  { %v789_v48 = vmul.f32 0.01, %v723_v42  ;;  %v715_v49 = vadd.f32 %v5575_v51, %v714_v45  ;;  %4944 = vmatprep.mubr.msk.bf16.mxu1 %vm909_vm0, %v882_v41  ;;  %v850_v55 = vmax.f32 %v712_v37, %v786_v47 }
 0x162   :  { %4945 = vmatmul.mubr.msk.bf16.gmra.mxu1 %vm909_vm0, %v883_v44  ;;  %v5781_v60 = vpop.f32.mrf.mxu0 }
 0x163   :  { %v787_v53 = vmul.f32 0.01, %v715_v49  ;;  %v853_v54 = vmax.f32 %v723_v42, %v789_v48 }
 0x164   :  { %v5783_v51 = vpop.f32.mrf.mxu0 }
 0x165   :  { %v851_v56 = vmax.f32 %v715_v49, %v787_v53  ;;  %v885_v59 = vpack.c.bf16 %v853_v54, %v852_v57 }
 0x166   :  { %v5785_v61 = vpop.f32.mrf.mxu0 }
 0x167   :  { %v884_v58 = vpack.c.bf16 %v851_v56, %v850_v55 }
 0x168   :  { %v5787_v62 = vpop.f32.mrf.mxu0 }
 0x169   :  { %4948 = vmatprep.mubr.msk.bf16.mxu1 %vm909_vm0, %v884_v58 }
 0x16a   :  { %4949 = vmatmul.mubr.msk.bf16.gmra.mxu1 %vm909_vm0, %v885_v59  ;;  %v5794_v1 = vpop.f32.mrf.mxu0 }
 0x16c   :  { %v5799_v7 = vpop.f32.mrf.mxu0 }
 0x16e   :  { %v5802_v15 = vpop.f32.mrf.mxu0 }
 0x170   :  { %v5807_v26 = vpop.f32.mrf.mxu0 }
 0x172   :  { %v5816_v36 = vpop.f32.mrf.mxu0 }
 0x174   :  { %v5824_v47 = vpop.f32.mrf.mxu0 }
 0x176   :  { %v5832_v59 = vpop.f32.mrf.mxu0 }
 0x1b2   :  { %v4890_v63 = vpop.f32.mrf.mxu1 }
 0x1b3   :  { %v1049_v4 = vadd.f32 %v4890_v63, %v5792_v0 }
 0x1b4   :  { %v1040_v2 = vpop.f32.mrf.mxu1 }
 0x1b5   :  { %v1041_v3 = vadd.f32 %v5792_v0, %v1040_v2  ;;  %v1297_v12 = vmul.f32 0.01, %v1049_v4 }
 0x1b6   :  { %v4891_v5 = vpop.f32.mrf.mxu1 }
 0x1b7   :  { %v1052_v6 = vadd.f32 %v4891_v5, %v5792_v0  ;;  %v1295_v9 = vmul.f32 0.01, %v1041_v3  ;;  %v1361_v21 = vmax.f32 %v1049_v4, %v1297_v12  ;;  %v5837_v12 = vpop.f32.mrf.mxu0 }
 0x1b8   :  { %v1043_v8 = vpop.f32.mrf.mxu1 }
 0x1b9   :  { %v1298_v10 = vmul.f32 0.01, %v1052_v6  ;;  %v1044_v11 = vadd.f32 %v5792_v0, %v1043_v8  ;;  %v1359_v18 = vmax.f32 %v1041_v3, %v1295_v9 }
 0x1ba   :  { %v4894_v13 = vpop.f32.mrf.mxu1 }
 0x1bb   :  { %v1296_v14 = vmul.f32 0.01, %v1044_v11  ;;  %v1362_v16 = vmax.f32 %v1052_v6, %v1298_v10  ;;  %v1065_v22 = vadd.f32 %v4894_v13, %v5792_v0 }
 0x1bc   :  { %v1056_v17 = vpop.f32.mrf.mxu1 }
 0x1bd   :  { %v1360_v19 = vmax.f32 %v1044_v11, %v1296_v14  ;;  %v1057_v20 = vadd.f32 %v5792_v0, %v1056_v17  ;;  %v1424_v27 = vpack.c.bf16 %v1362_v16, %v1361_v21  ;;  %v1301_v33 = vmul.f32 0.01, %v1065_v22 }
 0x1be   :  { %v4895_v23 = vpop.f32.mrf.mxu1 }
 0x1bf   :  { %v1423_v24 = vpack.c.bf16 %v1360_v19, %v1359_v18  ;;  %v1068_v25 = vadd.f32 %v4895_v23, %v5792_v0  ;;  %v1299_v30 = vmul.f32 0.01, %v1057_v20  ;;  %v1365_v43 = vmax.f32 %v1065_v22, %v1301_v33  ;;  %v5842_v22 = vpop.f32.mrf.mxu0 }
 0x1c0   :  { %v1059_v28 = vpop.f32.mrf.mxu1 }
 0x1c1   :  { %v1302_v31 = vmul.f32 0.01, %v1068_v25  ;;  %v1060_v32 = vadd.f32 %v5792_v0, %v1059_v28  ;;  %4956 = vmatprep.mubr.msk.bf16.mxu1 %vm909_vm0, %v1423_v24  ;;  %v1363_v40 = vmax.f32 %v1057_v20, %v1299_v30 }
 0x1c2   :  { %v4898_v34 = vpop.f32.mrf.mxu1  ;;  %4957 = vmatmul.mubr.msk.bf16.vlgmr.msra.gmra.mxu1 %vm909_vm0, %v1424_v27 }
 0x1c3   :  { %v1300_v35 = vmul.f32 0.01, %v1060_v32  ;;  %5101 = vmatpush3.bf16.msra.mxu1 %v5734_v50  ;;  %v1366_v37 = vmax.f32 %v1068_v25, %v1302_v31  ;;  %v1081_v44 = vadd.f32 %v4898_v34, %v5792_v0  ;;  %v5847_v34 = vpop.f32.mrf.mxu0 }
 0x1c4   :  { %v1072_v38 = vpop.f32.mrf.mxu1  ;;  %5102 = vmatprep.subr.bf16.mxu1 %v5342_v29 }
 0x1c5   :  { %v1364_v41 = vmax.f32 %v1060_v32, %v1300_v35  ;;  %v1073_v42 = vadd.f32 %v5792_v0, %v1072_v38  ;;  %v1426_v48 = vpack.c.bf16 %v1366_v37, %v1365_v43  ;;  %v1305_v56 = vmul.f32 0.01, %v1081_v44 }
 0x1c6   :  { %v4899_v45 = vpop.f32.mrf.mxu1 }
 0x1c7   :  { %v1425_v46 = vpack.c.bf16 %v1364_v41, %v1363_v40  ;;  %v1084_v50 = vadd.f32 %v4899_v45, %v5792_v0  ;;  %5103 = vmatpush3.bf16.msra.mxu1 %v5342_v29  ;;  %v1303_v53 = vmul.f32 0.01, %v1073_v42  ;;  %v1369_v6 = vmax.f32 %v1081_v44, %v1305_v56  ;;  %v5852_v44 = vpop.f32.mrf.mxu0 }
 0x1c8   :  { %v1075_v49 = vpop.f32.mrf.mxu1  ;;  %5104 = vmatprep.subr.bf16.mxu1 %v5344_v39 }
 0x1c9   :  { %v1306_v54 = vmul.f32 0.01, %v1084_v50  ;;  %v1076_v55 = vadd.f32 %v5792_v0, %v1075_v49  ;;  %4960 = vmatprep.mubr.msk.bf16.mxu1 %vm909_vm0, %v1425_v46  ;;  %v1367_v3 = vmax.f32 %v1073_v42, %v1303_v53 }
 0x1ca   :  { %v4902_v57 = vpop.f32.mrf.mxu1  ;;  %4961 = vmatmul.mubr.msk.bf16.gmra.mxu1 %vm909_vm0, %v1426_v48 }
 0x1cb   :  { %v1304_v58 = vmul.f32 0.01, %v1076_v55  ;;  %5105 = vmatpush3.bf16.msra.mxu1 %v5344_v39  ;;  %v1370_v63 = vmax.f32 %v1084_v50, %v1306_v54  ;;  %v1097_v8 = vadd.f32 %v4902_v57, %v5792_v0  ;;  %v5857_v57 = vpop.f32.mrf.mxu0 }
 0x1cc   :  { %v1088_v2 = vpop.f32.mrf.mxu1  ;;  %5106 = vmatprep.subr.bf16.mxu1 %v5345_v52 }
 0x1cd   :  { %v1368_v4 = vmax.f32 %v1076_v55, %v1304_v58  ;;  %v1089_v5 = vadd.f32 %v5792_v0, %v1088_v2  ;;  %v1428_v13 = vpack.c.bf16 %v1370_v63, %v1369_v6  ;;  %v1309_v19 = vmul.f32 0.01, %v1097_v8 }
 0x1ce   :  { %v4903_v9 = vpop.f32.mrf.mxu1 }
 0x1cf   :  { %v1427_v10 = vpack.c.bf16 %v1368_v4, %v1367_v3  ;;  %v1100_v11 = vadd.f32 %v4903_v9, %v5792_v0  ;;  %5107 = vmatpush3.bf16.msra.mxu1 %v5345_v52  ;;  %v1307_v16 = vmul.f32 0.01, %v1089_v5  ;;  %v1373_v29 = vmax.f32 %v1097_v8, %v1309_v19  ;;  %v5862_v9 = vpop.f32.mrf.mxu0 }
 0x1d0   :  { %v1091_v14 = vpop.f32.mrf.mxu1 }
 0x1d1   :  { %v1310_v17 = vmul.f32 0.01, %v1100_v11  ;;  %v1092_v18 = vadd.f32 %v5792_v0, %v1091_v14  ;;  %4964 = vmatprep.mubr.msk.bf16.mxu1 %vm909_vm0, %v1427_v10  ;;  %v1371_v25 = vmax.f32 %v1089_v5, %v1307_v16 }
 0x1d2   :  { %v4906_v20 = vpop.f32.mrf.mxu1  ;;  %4965 = vmatmul.mubr.msk.bf16.gmra.mxu1 %vm909_vm0, %v1428_v13 }
 0x1d3   :  { %v1308_v21 = vmul.f32 0.01, %v1092_v18  ;;  %v1374_v23 = vmax.f32 %v1100_v11, %v1310_v17  ;;  %v1113_v30 = vadd.f32 %v4906_v20, %v5792_v0 }
 0x1d4   :  { %v1104_v24 = vpop.f32.mrf.mxu1 }
 0x1d5   :  { %v1372_v27 = vmax.f32 %v1092_v18, %v1308_v21  ;;  %v1105_v28 = vadd.f32 %v5792_v0, %v1104_v24  ;;  %v1430_v35 = vpack.c.bf16 %v1374_v23, %v1373_v29  ;;  %v1313_v41 = vmul.f32 0.01, %v1113_v30  ;;  %v5867_v23 = vpop.f32.mrf.mxu0 }
 0x1d6   :  { %v4907_v31 = vpop.f32.mrf.mxu1 }
 0x1d7   :  { %v1429_v32 = vpack.c.bf16 %v1372_v27, %v1371_v25  ;;  %v1116_v33 = vadd.f32 %v4907_v31, %v5792_v0  ;;  %v1311_v38 = vmul.f32 0.01, %v1105_v28  ;;  %v1377_v52 = vmax.f32 %v1113_v30, %v1313_v41 }
 0x1d8   :  { %v1107_v37 = vpop.f32.mrf.mxu1 }
 0x1d9   :  { %v1314_v39 = vmul.f32 0.01, %v1116_v33  ;;  %v1108_v40 = vadd.f32 %v5792_v0, %v1107_v37  ;;  %4968 = vmatprep.mubr.msk.bf16.mxu1 %vm909_vm0, %v1429_v32  ;;  %v1375_v50 = vmax.f32 %v1105_v28, %v1311_v38 }
 0x1da   :  { %v4910_v42 = vpop.f32.mrf.mxu1  ;;  %4969 = vmatmul.mubr.msk.bf16.gmra.mxu1 %vm909_vm0, %v1430_v35 }
 0x1db   :  { %v1312_v43 = vmul.f32 0.01, %v1108_v40  ;;  %v1378_v45 = vmax.f32 %v1116_v33, %v1314_v39  ;;  %v1129_v53 = vadd.f32 %v4910_v42, %v5792_v0  ;;  %v5872_v33 = vpop.f32.mrf.mxu0 }
 0x1dc   :  { %v1120_v46 = vpop.f32.mrf.mxu1 }
 0x1dd   :  { %v1376_v48 = vmax.f32 %v1108_v40, %v1312_v43  ;;  %v1121_v49 = vadd.f32 %v5792_v0, %v1120_v46  ;;  %v1432_v58 = vpack.c.bf16 %v1378_v45, %v1377_v52  ;;  %v1317_v5 = vmul.f32 0.01, %v1129_v53 }
 0x1de   :  { %v4911_v54 = vpop.f32.mrf.mxu1 }
 0x1df   :  { %v1431_v55 = vpack.c.bf16 %v1376_v48, %v1375_v50  ;;  %v1132_v56 = vadd.f32 %v4911_v54, %v5792_v0  ;;  %v1315_v2 = vmul.f32 0.01, %v1121_v49  ;;  %v1381_v17 = vmax.f32 %v1129_v53, %v1317_v5  ;;  %v5877_v50 = vpop.f32.mrf.mxu0 }
 0x1e0   :  { %v1123_v63 = vpop.f32.mrf.mxu1 }
 0x1e1   :  { %v1318_v3 = vmul.f32 0.01, %v1132_v56  ;;  %v1124_v4 = vadd.f32 %v5792_v0, %v1123_v63  ;;  %4972 = vmatprep.mubr.msk.bf16.mxu1 %vm909_vm0, %v1431_v55  ;;  %v1379_v13 = vmax.f32 %v1121_v49, %v1315_v2  ;;  %v5882_v63 = vpop.f32.mrf.mxu0 }
 0x1e2   :  { %v4914_v6 = vpop.f32.mrf.mxu1  ;;  %4973 = vmatmul.mubr.msk.bf16.gmra.mxu1 %vm909_vm0, %v1432_v58 }
 0x1e3   :  { %v1316_v8 = vmul.f32 0.01, %v1124_v4  ;;  %v1382_v10 = vmax.f32 %v1132_v56, %v1318_v3  ;;  %v1145_v18 = vadd.f32 %v4914_v6, %v5792_v0 }
 0x1e4   :  { %v1136_v11 = vpop.f32.mrf.mxu1 }
 0x1e5   :  { %v1380_v14 = vmax.f32 %v1124_v4, %v1316_v8  ;;  %v1137_v16 = vadd.f32 %v5792_v0, %v1136_v11  ;;  %v1434_v24 = vpack.c.bf16 %v1382_v10, %v1381_v17  ;;  %v1321_v30 = vmul.f32 0.01, %v1145_v18 }
 0x1e6   :  { %v4915_v19 = vpop.f32.mrf.mxu1 }
 0x1e7   :  { %v1433_v20 = vpack.c.bf16 %v1380_v14, %v1379_v13  ;;  %v1148_v21 = vadd.f32 %v4915_v19, %v5792_v0  ;;  %v1319_v27 = vmul.f32 0.01, %v1137_v16  ;;  %v1385_v41 = vmax.f32 %v1145_v18, %v1321_v30 }
 0x1e8   :  { %v1139_v25 = vpop.f32.mrf.mxu1 }
 0x1e9   :  { %v1322_v28 = vmul.f32 0.01, %v1148_v21  ;;  %v1140_v29 = vadd.f32 %v5792_v0, %v1139_v25  ;;  %4976 = vmatprep.mubr.msk.bf16.mxu1 %vm909_vm0, %v1433_v20  ;;  %v1383_v38 = vmax.f32 %v1137_v16, %v1319_v27  ;;  %v5887_v16 = vpop.f32.mrf.mxu0 }
 0x1ea   :  { %v4918_v31 = vpop.f32.mrf.mxu1  ;;  %4977 = vmatmul.mubr.msk.bf16.gmra.mxu1 %vm909_vm0, %v1434_v24 }
 0x1eb   :  { %v1320_v32 = vmul.f32 0.01, %v1140_v29  ;;  %v1386_v35 = vmax.f32 %v1148_v21, %v1322_v28  ;;  %v1161_v42 = vadd.f32 %v4918_v31, %v5792_v0  ;;  %v5892_v28 = vpop.f32.mrf.mxu0 }
 0x1ec   :  { %v1152_v37 = vpop.f32.mrf.mxu1 }
 0x1ed   :  { %v1384_v39 = vmax.f32 %v1140_v29, %v1320_v32  ;;  %v1153_v40 = vadd.f32 %v5792_v0, %v1152_v37  ;;  %v1436_v48 = vpack.c.bf16 %v1386_v35, %v1385_v41  ;;  %v1325_v55 = vmul.f32 0.01, %v1161_v42 }
 0x1ee   :  { %v4919_v43 = vpop.f32.mrf.mxu1 }
 0x1ef   :  { %v1435_v45 = vpack.c.bf16 %v1384_v39, %v1383_v38  ;;  %v1164_v46 = vadd.f32 %v4919_v43, %v5792_v0  ;;  %v1323_v52 = vmul.f32 0.01, %v1153_v40  ;;  %v1389_v8 = vmax.f32 %v1161_v42, %v1325_v55  ;;  %v5897_v42 = vpop.f32.mrf.mxu0 }
 0x1f0   :  { %v1155_v49 = vpop.f32.mrf.mxu1 }
 0x1f1   :  { %v1326_v53 = vmul.f32 0.01, %v1164_v46  ;;  %v1156_v54 = vadd.f32 %v5792_v0, %v1155_v49  ;;  %4980 = vmatprep.mubr.msk.bf16.mxu1 %vm909_vm0, %v1435_v45  ;;  %v1387_v4 = vmax.f32 %v1153_v40, %v1323_v52  ;;  %v5902_v55 = vpop.f32.mrf.mxu0 }
 0x1f2   :  { %v4922_v56 = vpop.f32.mrf.mxu1  ;;  %4981 = vmatmul.mubr.msk.bf16.gmra.mxu1 %vm909_vm0, %v1436_v48 }
 0x1f3   :  { %v1324_v58 = vmul.f32 0.01, %v1156_v54  ;;  %v1390_v2 = vmax.f32 %v1164_v46, %v1326_v53  ;;  %v1177_v10 = vadd.f32 %v4922_v56, %v5792_v0 }
 0x1f4   :  { %v1168_v3 = vpop.f32.mrf.mxu1 }
 0x1f5   :  { %v1388_v5 = vmax.f32 %v1156_v54, %v1324_v58  ;;  %v1169_v6 = vadd.f32 %v5792_v0, %v1168_v3  ;;  %v1438_v17 = vpack.c.bf16 %v1390_v2, %v1389_v8  ;;  %v1329_v24 = vmul.f32 0.01, %v1177_v10 }
 0x1f6   :  { %v4923_v11 = vpop.f32.mrf.mxu1 }
 0x1f7   :  { %v1437_v13 = vpack.c.bf16 %v1388_v5, %v1387_v4  ;;  %v1180_v14 = vadd.f32 %v4923_v11, %v5792_v0  ;;  %v1327_v19 = vmul.f32 0.01, %v1169_v6  ;;  %v1393_v37 = vmax.f32 %v1177_v10, %v1329_v24 }
 0x1f8   :  { %v1171_v18 = vpop.f32.mrf.mxu1 }
 0x1f9   :  { %v1330_v20 = vmul.f32 0.01, %v1180_v14  ;;  %v1172_v21 = vadd.f32 %v5792_v0, %v1171_v18  ;;  %4984 = vmatprep.mubr.msk.bf16.mxu1 %vm909_vm0, %v1437_v13  ;;  %v1391_v31 = vmax.f32 %v1169_v6, %v1327_v19  ;;  %v5907_v13 = vpop.f32.mrf.mxu0 }
 0x1fa   :  { %v4926_v25 = vpop.f32.mrf.mxu1  ;;  %4985 = vmatmul.mubr.msk.bf16.gmra.mxu1 %vm909_vm0, %v1438_v17 }
 0x1fb   :  { %v1328_v27 = vmul.f32 0.01, %v1172_v21  ;;  %v1394_v29 = vmax.f32 %v1180_v14, %v1330_v20  ;;  %v1193_v38 = vadd.f32 %v4926_v25, %v5792_v0 }
 0x1fc   :  { %v1184_v30 = vpop.f32.mrf.mxu1 }
 0x1fd   :  { %v1392_v32 = vmax.f32 %v1172_v21, %v1328_v27  ;;  %v1185_v35 = vadd.f32 %v5792_v0, %v1184_v30  ;;  %v1440_v43 = vpack.c.bf16 %v1394_v29, %v1393_v37  ;;  %v1333_v52 = vmul.f32 0.01, %v1193_v38  ;;  %v5912_v27 = vpop.f32.mrf.mxu0 }
 0x1fe   :  { %v4927_v39 = vpop.f32.mrf.mxu1 }
 0x1ff   :  { %v1439_v40 = vpack.c.bf16 %v1392_v32, %v1391_v31  ;;  %v1196_v41 = vadd.f32 %v4927_v39, %v5792_v0  ;;  %v1331_v46 = vmul.f32 0.01, %v1185_v35  ;;  %v1397_v5 = vmax.f32 %v1193_v38, %v1333_v52 }
 0x200   :  { %v1187_v45 = vpop.f32.mrf.mxu1 }
 0x201   :  { %v1334_v48 = vmul.f32 0.01, %v1196_v41  ;;  %v1188_v49 = vadd.f32 %v5792_v0, %v1187_v45  ;;  %4988 = vmatprep.mubr.msk.bf16.mxu1 %vm909_vm0, %v1439_v40  ;;  %v1395_v2 = vmax.f32 %v1185_v35, %v1331_v46 }
 0x202   :  { %v4930_v53 = vpop.f32.mrf.mxu1  ;;  %4989 = vmatmul.mubr.msk.bf16.gmra.mxu1 %vm909_vm0, %v1440_v43  ;;  %v5917_v43 = vpop.f32.mrf.mxu0 }
 0x203   :  { %v1332_v54 = vmul.f32 0.01, %v1188_v49  ;;  %v1398_v56 = vmax.f32 %v1196_v41, %v1334_v48  ;;  %v1209_v6 = vadd.f32 %v4930_v53, %v5792_v0 }
 0x204   :  { %v1200_v58 = vpop.f32.mrf.mxu1 }
 0x205   :  { %v1396_v3 = vmax.f32 %v1188_v49, %v1332_v54  ;;  %v1201_v4 = vadd.f32 %v5792_v0, %v1200_v58  ;;  %v1442_v14 = vpack.c.bf16 %v1398_v56, %v1397_v5  ;;  %v1337_v21 = vmul.f32 0.01, %v1209_v6  ;;  %v5922_v58 = vpop.f32.mrf.mxu0 }
 0x206   :  { %v4931_v8 = vpop.f32.mrf.mxu1 }
 0x207   :  { %v1441_v10 = vpack.c.bf16 %v1396_v3, %v1395_v2  ;;  %v1212_v11 = vadd.f32 %v4931_v8, %v5792_v0  ;;  %v1335_v18 = vmul.f32 0.01, %v1201_v4  ;;  %v1401_v37 = vmax.f32 %v1209_v6, %v1337_v21 }
 0x208   :  { %v1203_v17 = vpop.f32.mrf.mxu1 }
 0x209   :  { %v1338_v19 = vmul.f32 0.01, %v1212_v11  ;;  %v1204_v20 = vadd.f32 %v5792_v0, %v1203_v17  ;;  %4992 = vmatprep.mubr.msk.bf16.mxu1 %vm909_vm0, %v1441_v10  ;;  %v1399_v31 = vmax.f32 %v1201_v4, %v1335_v18  ;;  %v5927_v18 = vpop.f32.mrf.mxu0 }
 0x20a   :  { %v4934_v24 = vpop.f32.mrf.mxu1  ;;  %4993 = vmatmul.mubr.msk.bf16.gmra.mxu1 %vm909_vm0, %v1442_v14 }
 0x20b   :  { %v1336_v25 = vmul.f32 0.01, %v1204_v20  ;;  %v1402_v29 = vmax.f32 %v1212_v11, %v1338_v19  ;;  %v1225_v38 = vadd.f32 %v4934_v24, %v5792_v0 }
 0x20c   :  { %v1216_v30 = vpop.f32.mrf.mxu1 }
 0x20d   :  { %v1400_v32 = vmax.f32 %v1204_v20, %v1336_v25  ;;  %v1217_v35 = vadd.f32 %v5792_v0, %v1216_v30  ;;  %v1444_v45 = vpack.c.bf16 %v1402_v29, %v1401_v37  ;;  %v1341_v53 = vmul.f32 0.01, %v1225_v38 }
 0x20e   :  { %v4935_v39 = vpop.f32.mrf.mxu1 }
 0x20f   :  { %v1443_v40 = vpack.c.bf16 %v1400_v32, %v1399_v31  ;;  %v1228_v41 = vadd.f32 %v4935_v39, %v5792_v0  ;;  %v1339_v48 = vmul.f32 0.01, %v1217_v35  ;;  %v1405_v8 = vmax.f32 %v1225_v38, %v1341_v53  ;;  %v5932_v32 = vpop.f32.mrf.mxu0 }
 0x210   :  { %v1219_v46 = vpop.f32.mrf.mxu1 }
 0x211   :  { %v1342_v49 = vmul.f32 0.01, %v1228_v41  ;;  %v1220_v52 = vadd.f32 %v5792_v0, %v1219_v46  ;;  %4996 = vmatprep.mubr.msk.bf16.mxu1 %vm909_vm0, %v1443_v40  ;;  %v1403_v4 = vmax.f32 %v1217_v35, %v1339_v48 }
 0x212   :  { %v4938_v54 = vpop.f32.mrf.mxu1  ;;  %4997 = vmatmul.mubr.msk.bf16.gmra.mxu1 %vm909_vm0, %v1444_v45 }
 0x213   :  { %v1340_v56 = vmul.f32 0.01, %v1220_v52  ;;  %v1406_v2 = vmax.f32 %v1228_v41, %v1342_v49  ;;  %v1241_v10 = vadd.f32 %v4938_v54, %v5792_v0 }
 0x214   :  { %v1232_v3 = vpop.f32.mrf.mxu1 }
 0x215   :  { %v1404_v5 = vmax.f32 %v1220_v52, %v1340_v56  ;;  %v1233_v6 = vadd.f32 %v5792_v0, %v1232_v3  ;;  %v1446_v19 = vpack.c.bf16 %v1406_v2, %v1405_v8  ;;  %v1345_v29 = vmul.f32 0.01, %v1241_v10  ;;  %v5937_v52 = vpop.f32.mrf.mxu0 }
 0x216   :  { %v4939_v11 = vpop.f32.mrf.mxu1 }
 0x217   :  { %v1445_v14 = vpack.c.bf16 %v1404_v5, %v1403_v4  ;;  %v1244_v17 = vadd.f32 %v4939_v11, %v5792_v0  ;;  %v1343_v21 = vmul.f32 0.01, %v1233_v6  ;;  %v1409_v41 = vmax.f32 %v1241_v10, %v1345_v29  ;;  %v5942_v8 = vpop.f32.mrf.mxu0 }
 0x218   :  { %v1235_v20 = vpop.f32.mrf.mxu1 }
 0x219   :  { %v1346_v24 = vmul.f32 0.01, %v1244_v17  ;;  %v1236_v25 = vadd.f32 %v5792_v0, %v1235_v20  ;;  %5000 = vmatprep.mubr.msk.bf16.mxu1 %vm909_vm0, %v1445_v14  ;;  %v1407_v38 = vmax.f32 %v1233_v6, %v1343_v21 }
 0x21a   :  { %v4942_v30 = vpop.f32.mrf.mxu1  ;;  %5001 = vmatmul.mubr.msk.bf16.gmra.mxu1 %vm909_vm0, %v1446_v19 }
 0x21b   :  { %v1344_v31 = vmul.f32 0.01, %v1236_v25  ;;  %v1410_v35 = vmax.f32 %v1244_v17, %v1346_v24  ;;  %v1257_v45 = vadd.f32 %v4942_v30, %v5792_v0  ;;  %v5947_v30 = vpop.f32.mrf.mxu0 }
 0x21c   :  { %v1248_v37 = vpop.f32.mrf.mxu1 }
 0x21d   :  { %v1408_v39 = vmax.f32 %v1236_v25, %v1344_v31  ;;  %v1249_v40 = vadd.f32 %v5792_v0, %v1248_v37  ;;  %v1448_v53 = vpack.c.bf16 %v1410_v35, %v1409_v41  ;;  %v1349_v4 = vmul.f32 0.01, %v1257_v45  ;;  %v5952_v37 = vld [vmem:[%s6652_s8] ss:$0 sm:$0xff] }
 0x21e   :  { %v4943_v46 = vpop.f32.mrf.mxu1 }
 0x21f   :  { %v1447_v48 = vpack.c.bf16 %v1408_v39, %v1407_v38  ;;  %v1260_v49 = vadd.f32 %v4943_v46, %v5792_v0  ;;  %v1347_v56 = vmul.f32 0.01, %v1249_v40  ;;  %v1413_v20 = vmax.f32 %v1257_v45, %v1349_v4 }
 0x220   :  { %v1251_v54 = vpop.f32.mrf.mxu1 }
 0x221   :  { %v1350_v2 = vmul.f32 0.01, %v1260_v49  ;;  %v1252_v3 = vadd.f32 %v5792_v0, %v1251_v54  ;;  %5004 = vmatprep.mubr.msk.bf16.mxu1 %vm909_vm0, %v1447_v48  ;;  %v1411_v14 = vmax.f32 %v1249_v40, %v1347_v56  ;;  %v2498_v48 = vadd.f32 %v5952_v37, %v5783_v51 }
 0x222   :  { %v4946_v5 = vpop.f32.mrf.mxu1  ;;  %5005 = vmatmul.mubr.msk.bf16.gmra.mxu1 %vm909_vm0, %v1448_v53 }
 0x223   :  { %v1348_v6 = vmul.f32 0.01, %v1252_v3  ;;  %v1414_v10 = vmax.f32 %v1260_v49, %v1350_v2  ;;  %v1273_v21 = vadd.f32 %v4946_v5, %v5792_v0  ;;  %v5959_v49 = vpop.f32.mrf.mxu0  ;;  %v2501_v2 = vadd.f32 %v5952_v37, %v5787_v62 }
 0x224   :  { %v1264_v11 = vpop.f32.mrf.mxu1 }
 0x225   :  { %v1412_v17 = vmax.f32 %v1252_v3, %v1348_v6  ;;  %v1265_v19 = vadd.f32 %v5792_v0, %v1264_v11  ;;  %v1450_v31 = vpack.c.bf16 %v1414_v10, %v1413_v20  ;;  %v1353_v41 = vmul.f32 0.01, %v1273_v21  ;;  %v5966_v51 = vpop.f32.mrf.mxu0 }
 0x226   :  { %v4947_v24 = vpop.f32.mrf.mxu1 }
 0x227   :  { %v1449_v25 = vpack.c.bf16 %v1412_v17, %v1411_v14  ;;  %v1276_v29 = vadd.f32 %v4947_v24, %v5792_v0  ;;  %v1351_v38 = vmul.f32 0.01, %v1265_v19  ;;  %v1417_v6 = vmax.f32 %v1273_v21, %v1353_v41 }
 0x228   :  { %v1267_v35 = vpop.f32.mrf.mxu1  ;;  %v2752_v14 = vmul.f32 0.01, %v2498_v48  ;;  %v2506_v21 = vadd.f32 %v5781_v60, %v5952_v37 }
 0x229   :  { %v1354_v39 = vmul.f32 0.01, %v1276_v29  ;;  %v1268_v40 = vadd.f32 %v5792_v0, %v1267_v35  ;;  %5008 = vmatprep.mubr.msk.bf16.mxu1 %vm909_vm0, %v1449_v25  ;;  %v1415_v3 = vmax.f32 %v1265_v19, %v1351_v38  ;;  %v5346_v19 = vld [vmem:[%s6653_s11 + $0x18] sm:$0xff]   ;;  %v2509_v38 = vadd.f32 %v5785_v61, %v5952_v37 }
 0x22a   :  { %v4950_v45 = vpop.f32.mrf.mxu1  ;;  %5009 = vmatmul.mubr.msk.bf16.gmra.mxu1 %vm909_vm0, %v1450_v31  ;;  %v2753_v31 = vmul.f32 0.01, %v2501_v2  ;;  %v2816_v41 = vmax.f32 %v2498_v48, %v2752_v14  ;;  %5172 = vmatprep.subr.bf16.mxu0 %v5346_v19 }
 0x22b   :  { %v1352_v46 = vmul.f32 0.01, %v1268_v40  ;;  %v1418_v53 = vmax.f32 %v1276_v29, %v1354_v39  ;;  %v1289_v54 = vadd.f32 %v4950_v45, %v5792_v0  ;;  %5244 = vmatprep.subr.bf16.mxu1 %v5346_v19  ;;  %5173 = vmatpush3.bf16.msra.mxu0 %v5346_v19  ;;  %v2755_v48 = vmul.f32 0.01, %v2509_v38 }
 0x22c   :  { %v1280_v56 = vpop.f32.mrf.mxu1 }
 0x22d   :  { %v1416_v4 = vmax.f32 %v1268_v40, %v1352_v46  ;;  %v1281_v5 = vadd.f32 %v5792_v0, %v1280_v56  ;;  %v1452_v20 = vpack.c.bf16 %v1418_v53, %v1417_v6  ;;  %v1357_v24 = vmul.f32 0.01, %v1289_v54  ;;  %v5978_v40 = vpop.f32.mrf.mxu0 }
 0x22e   :  { %v4951_v10 = vpop.f32.mrf.mxu1  ;;  %v2514_v56 = vadd.f32 %v5952_v37, %v5799_v7  ;;  %v2754_v6 = vmul.f32 0.01, %v2506_v21 }
 0x22f   :  { %v1451_v11 = vpack.c.bf16 %v1416_v4, %v1415_v3  ;;  %v1292_v17 = vadd.f32 %v4951_v10, %v5792_v0  ;;  %v1355_v25 = vmul.f32 0.01, %v1281_v5  ;;  %v2517_v3 = vadd.f32 %v5952_v37, %v5807_v26  ;;  %v5984_v61 = vpop.f32.mrf.mxu0 }
 0x230   :  { %v1283_v29 = vpop.f32.mrf.mxu1  ;;  %v1421_v60 = vmax.f32 %v1289_v54, %v1357_v24  ;;  %v2818_v26 = vmax.f32 %v2506_v21, %v2754_v6  ;;  %v2819_v54 = vmax.f32 %v2509_v38, %v2755_v48 }
 0x231   :  { %v1358_v35 = vmul.f32 0.01, %v1292_v17  ;;  %v1284_v62 = vadd.f32 %v5792_v0, %v1283_v29  ;;  %5012 = vmatprep.mubr.msk.bf16.mxu1 %vm909_vm0, %v1451_v11  ;;  %v2817_v0 = vmax.f32 %v2501_v2, %v2753_v31  ;;  %v1419_v46 = vmax.f32 %v1281_v5, %v1355_v25  ;;  %v5989_v7 = vpop.f32.mrf.mxu0 }
 0x232   :  { %5013 = vmatmul.mubr.msk.bf16.gmra.mxu1 %vm909_vm0, %v1452_v20  ;;  %v2756_v11 = vmul.f32 0.01, %v2514_v56  ;;  %v2757_v14 = vmul.f32 0.01, %v2517_v3  ;;  %v2522_v5 = vadd.f32 %v5794_v1, %v5952_v37  ;;  %v2530_v25 = vadd.f32 %v5952_v37, %v5824_v47 }
 0x233   :  { %v1356_v39 = vmul.f32 0.01, %v1284_v62  ;;  %v1422_v45 = vmax.f32 %v1292_v17, %v1358_v35  ;;  %v2880_v2 = vpack.c.bf16 %v2817_v0, %v2816_v41  ;;  %v2525_v17 = vadd.f32 %v5802_v15, %v5952_v37  ;;  %v5999_v31 = vpop.f32.mrf.mxu0 }
 0x234   :  { %v2820_v20 = vmax.f32 %v2514_v56, %v2756_v11  ;;  %v2821_v24 = vmax.f32 %v2517_v3, %v2757_v14  ;;  %v2533_v29 = vadd.f32 %v5952_v37, %v5837_v12  ;;  %v2881_v35 = vpack.c.bf16 %v2819_v54, %v2818_v26  ;;  %v5347_v11 = vld [vmem:[%s6653_s11 + $0x10] sm:$0xff]  }
 0x235   :  { %v1420_v53 = vmax.f32 %v1284_v62, %v1356_v39  ;;  %v1454_v10 = vpack.c.bf16 %v1422_v45, %v1421_v60  ;;  %v2758_v62 = vmul.f32 0.01, %v2522_v5  ;;  %v2759_v21 = vmul.f32 0.01, %v2525_v17  ;;  %v6003_v1 = vpop.f32.mrf.mxu0  ;;  %5174 = vmatprep.subr.bf16.mxu0 %v5347_v11 }
 0x236   :  { %v2882_v38 = vpack.c.bf16 %v2821_v24, %v2820_v20  ;;  %v2760_v39 = vmul.f32 0.01, %v2530_v25  ;;  %v2761_v41 = vmul.f32 0.01, %v2533_v29  ;;  %v2538_v12 = vadd.f32 %v5816_v36, %v5952_v37  ;;  %5175 = vmatpush3.bf16.msra.mxu0 %v5347_v11 }
 0x237   :  { %v1453_v4 = vpack.c.bf16 %v1420_v53, %v1419_v46  ;;  %v2822_v15 = vmax.f32 %v2522_v5, %v2758_v62  ;;  %v2823_v47 = vmax.f32 %v2525_v17, %v2759_v21  ;;  %v2541_v45 = vadd.f32 %v5832_v59, %v5952_v37  ;;  %v6013_v3 = vpop.f32.mrf.mxu0 }
 0x238   :  { %v2824_v0 = vmax.f32 %v2530_v25, %v2760_v39  ;;  %v2825_v46 = vmax.f32 %v2533_v29, %v2761_v41  ;;  %v2546_v53 = vadd.f32 %v5952_v37, %v5847_v34  ;;  %v2549_v56 = vadd.f32 %v5952_v37, %v5857_v57 }
 0x239   :  { %5016 = vmatprep.mubr.msk.bf16.mxu1 %vm909_vm0, %v1453_v4  ;;  %v2883_v60 = vpack.c.bf16 %v2823_v47, %v2822_v15  ;;  %v2763_v4 = vmul.f32 0.01, %v2541_v45  ;;  %v6017_v36 = vpop.f32.mrf.mxu0  ;;  %v2554_v34 = vadd.f32 %v5842_v22, %v5952_v37  ;;  %v2557_v57 = vadd.f32 %v5852_v44, %v5952_v37 }
 0x23a   :  { %5017 = vmatmul.mubr.msk.bf16.gmra.mxu1 %vm909_vm0, %v1454_v10  ;;  %v2884_v6 = vpack.c.bf16 %v2825_v46, %v2824_v0  ;;  %v2764_v10 = vmul.f32 0.01, %v2546_v53  ;;  %v2765_v48 = vmul.f32 0.01, %v2549_v56  ;;  %v2562_v54 = vadd.f32 %v5952_v37, %v5867_v23 }
 0x23b   :  { %5108 = vmatprep.mubr.msk.bf16.mxu1 %vm1991_vm1, %v2880_v2  ;;  %v2827_v2 = vmax.f32 %v2541_v45, %v2763_v4  ;;  %v2565_v5 = vadd.f32 %v5952_v37, %v5877_v50  ;;  %v6030_v17 = vpop.f32.mrf.mxu0  ;;  %v2766_v44 = vmul.f32 0.01, %v2554_v34  ;;  %v2767_v20 = vmul.f32 0.01, %v2557_v57 }
 0x23c   :  { %v2828_v14 = vmax.f32 %v2546_v53, %v2764_v10  ;;  %v2829_v26 = vmax.f32 %v2549_v56, %v2765_v48  ;;  %v2768_v25 = vmul.f32 0.01, %v2562_v54  ;;  %v2570_v62 = vadd.f32 %v5862_v9, %v5952_v37 }
 0x23d   :  { %v2769_v29 = vmul.f32 0.01, %v2565_v5  ;;  %v6034_v23 = vpop.f32.mrf.mxu0  ;;  %v2831_v50 = vmax.f32 %v2557_v57, %v2767_v20  ;;  %v2573_v21 = vadd.f32 %v5872_v33, %v5952_v37  ;;  %v2578_v41 = vadd.f32 %v5952_v37, %v5887_v16 }
 0x23e   :  { %v2886_v24 = vpack.c.bf16 %v2829_v26, %v2828_v14  ;;  %v2581_v15 = vadd.f32 %v5952_v37, %v5897_v42  ;;  %v2770_v45 = vmul.f32 0.01, %v2570_v62  ;;  %v2586_v16 = vadd.f32 %v5882_v63, %v5952_v37 }
 0x23f   :  { %v2833_v39 = vmax.f32 %v2565_v5, %v2769_v29  ;;  %v6044_v47 = vpop.f32.mrf.mxu0  ;;  %v2771_v0 = vmul.f32 0.01, %v2573_v21  ;;  %v2772_v53 = vmul.f32 0.01, %v2578_v41  ;;  %v2589_v42 = vadd.f32 %v5892_v28, %v5952_v37 }
 0x240   :  { %v2773_v56 = vmul.f32 0.01, %v2581_v15  ;;  %v2834_v33 = vmax.f32 %v2570_v62, %v2770_v45  ;;  %v2597_v10 = vadd.f32 %v5952_v37, %v5917_v43  ;;  %v2605_v43 = vadd.f32 %v5912_v27, %v5952_v37 }
 0x241   :  { %v6048_v9 = vpop.f32.mrf.mxu0 }
 0x242   :  { %5109 = vmatmul.mubr.msk.bf16.vlgmr.msra.gmra.mxu1 %vm1991_vm1, %v2881_v35  ;;  %v2830_v35 = vmax.f32 %v2554_v34, %v2766_v44  ;;  %v2837_v4 = vmax.f32 %v2581_v15, %v2773_v56  ;;  %v2775_v34 = vmul.f32 0.01, %v2589_v42  ;;  %v2777_v14 = vmul.f32 0.01, %v2597_v10 }
 0x243   :  { %5112 = vmatprep.mubr.msk.bf16.mxu1 %vm1991_vm1, %v2882_v38  ;;  %5248 = vmatpush3.bf16.msra.mxu1 %v5346_v19  ;;  %v2762_v19 = vmul.f32 0.01, %v2538_v12  ;;  %v2832_v38 = vmax.f32 %v2562_v54, %v2768_v25  ;;  %v6058_v48 = vpop.f32.mrf.mxu0  ;;  %v2613_v44 = vadd.f32 %v5952_v37, %v5937_v52  ;;  %v2779_v29 = vmul.f32 0.01, %v2605_v43 }
 0x244   :  { %5245 = vmatprep.subr.bf16.mxu1 %v5347_v11  ;;  %v2839_v26 = vmax.f32 %v2589_v42, %v2775_v34  ;;  %v2841_v5 = vmax.f32 %v2597_v10, %v2777_v14  ;;  %v2621_v52 = vadd.f32 %v5932_v32, %v5952_v37  ;;  %v2629_v15 = vadd.f32 %v5952_v37, %v5966_v51 }
 0x245   :  { %v2826_v59 = vmax.f32 %v2538_v12, %v2762_v19  ;;  %v2887_v12 = vpack.c.bf16 %v2831_v50, %v2830_v35  ;;  %v2888_v46 = vpack.c.bf16 %v2833_v39, %v2832_v38  ;;  %v2836_v19 = vmax.f32 %v2578_v41, %v2772_v53  ;;  %v6062_v63 = vpop.f32.mrf.mxu0 }
 0x246   :  { %v2781_v62 = vmul.f32 0.01, %v2613_v44  ;;  %v2626_v41 = vadd.f32 %v5952_v37, %v5947_v30  ;;  %v2785_v32 = vmul.f32 0.01, %v2629_v15  ;;  %v2653_v14 = vadd.f32 %v5989_v7, %v5952_v37 }
 0x247   :  { %5249 = vmatpush3.bf16.msra.mxu1 %v5347_v11  ;;  %v2885_v22 = vpack.c.bf16 %v2827_v2, %v2826_v59  ;;  %v2774_v2 = vmul.f32 0.01, %v2586_v16  ;;  %v2890_v57 = vpack.c.bf16 %v2837_v4, %v2836_v19  ;;  %v6072_v20 = vpop.f32.mrf.mxu0  ;;  %v2642_v4 = vadd.f32 %v5952_v37, %v5984_v61 }
 0x248   :  { %v2845_v39 = vmax.f32 %v2613_v44, %v2781_v62  ;;  %v2784_v56 = vmul.f32 0.01, %v2626_v41  ;;  %v2849_v19 = vmax.f32 %v2629_v15, %v2785_v32  ;;  %v2666_v61 = vadd.f32 %v6003_v1, %v5952_v37 }
 0x249   :  { %v2838_v28 = vmax.f32 %v2586_v16, %v2774_v2  ;;  %v2637_v16 = vadd.f32 %v5959_v49, %v5952_v37  ;;  %v2788_v49 = vmul.f32 0.01, %v2642_v4  ;;  %v2682_v1 = vadd.f32 %v6034_v23, %v5952_v37 }
 0x24a   :  { %5113 = vmatmul.mubr.msk.bf16.gmra.mxu1 %vm1991_vm1, %v2883_v60  ;;  %v2835_v60 = vmax.f32 %v2573_v21, %v2771_v0  ;;  %v2843_v21 = vmax.f32 %v2605_v43, %v2779_v29  ;;  %v2848_v42 = vmax.f32 %v2626_v41, %v2784_v56  ;;  %v6125_v44 = vadd.f32 %v5952_v37, %v6044_v47 }
 0x24b   :  { %5116 = vmatprep.mubr.msk.bf16.mxu1 %vm1991_vm1, %v2884_v6  ;;  %v2594_v6 = vadd.f32 %v5952_v37, %v5907_v13  ;;  %v2602_v13 = vadd.f32 %v5902_v55, %v5952_v37  ;;  %v6076_v55 = vpop.f32.mrf.mxu0  ;;  %v2787_v34 = vmul.f32 0.01, %v2637_v16  ;;  %v6135_v23 = vadd.f32 %v5952_v37, %v6072_v20 }
 0x24c   :  { %v2889_v59 = vpack.c.bf16 %v2835_v60, %v2834_v33  ;;  %v2634_v60 = vadd.f32 %v5942_v8, %v5952_v37  ;;  %v2650_v8 = vadd.f32 %v5978_v40, %v5952_v37  ;;  %v2669_v40 = vadd.f32 %v6017_v36, %v5952_v37 }
 0x24d   :  { %v2776_v11 = vmul.f32 0.01, %v2594_v6  ;;  %v2778_v25 = vmul.f32 0.01, %v2602_v13  ;;  %v2677_v36 = vadd.f32 %v5952_v37, %v6058_v48  ;;  %v2798_v48 = vmul.f32 0.01, %v2682_v1 }
 0x24e   :  { %v2786_v2 = vmul.f32 0.01, %v2634_v60  ;;  %v2790_v43 = vmul.f32 0.01, %v2650_v8  ;;  %v2800_v32 = vmul.f32 0.01, %v6135_v23 }
 0x24f   :  { %v2840_v54 = vmax.f32 %v2594_v6, %v2776_v11  ;;  %v2842_v27 = vmax.f32 %v2602_v13, %v2778_v25  ;;  %v2645_v6 = vadd.f32 %v5952_v37, %v5999_v31  ;;  %v2658_v13 = vadd.f32 %v5952_v37, %v6013_v3 }
 0x250   :  { %v2685_v3 = vadd.f32 %v6048_v9, %v5952_v37  ;;  %v6140_v9 = vld [vmem:[%s6654_s6] ss:$0 sm:$0xff] }
 0x251   :  { %v2892_v35 = vpack.c.bf16 %v2841_v5, %v2840_v54  ;;  %v2893_v45 = vpack.c.bf16 %v2843_v21, %v2842_v27  ;;  %v2789_v11 = vmul.f32 0.01, %v2645_v6  ;;  %v2852_v54 = vmax.f32 %v2642_v4, %v2788_v49 }
 0x252   :  { %5117 = vmatmul.mubr.msk.bf16.gmra.mxu1 %vm1991_vm1, %v2885_v22  ;;  %v2610_v22 = vadd.f32 %v5952_v37, %v5927_v18  ;;  %v2618_v18 = vadd.f32 %v5922_v58, %v5952_v37  ;;  %v5348_v58 = vld [vmem:[%s6653_s11 + $0x8] sm:$0xff]   ;;  %v2661_v5 = vadd.f32 %v5952_v37, %v6030_v17  ;;  %v2795_v17 = vmul.f32 0.01, %v2669_v40 }
 0x253   :  { %5120 = vmatprep.mubr.msk.bf16.mxu1 %vm1991_vm1, %v2886_v24  ;;  %v2891_v24 = vpack.c.bf16 %v2839_v26, %v2838_v28  ;;  %5176 = vmatprep.subr.bf16.mxu0 %v5348_v58  ;;  %v2850_v28 = vmax.f32 %v2634_v60, %v2786_v2  ;;  %v2851_v26 = vmax.f32 %v2637_v16, %v2787_v34  ;;  %v2799_v20 = vmul.f32 0.01, %v2685_v3 }
 0x254   :  { %v2780_v50 = vmul.f32 0.01, %v2610_v22  ;;  %v2782_v0 = vmul.f32 0.01, %v2618_v18  ;;  %5177 = vmatpush3.bf16.msra.mxu0 %v5348_v58  ;;  %5246 = vmatprep.subr.bf16.mxu1 %v5348_v58  ;;  %v2853_v7 = vmax.f32 %v2645_v6, %v2789_v11  ;;  %v2793_v27 = vmul.f32 0.01, %v2661_v5 }
 0x255   :  { %5250 = vmatpush3.bf16.msra.mxu1 %v5348_v58  ;;  %v2897_v29 = vpack.c.bf16 %v2851_v26, %v2850_v28  ;;  %v6155_v58 = vadd.f32 %v6076_v55, %v5952_v37  ;;  %v2863_v55 = vmax.f32 %v2685_v3, %v2799_v20  ;;  %v5349_v3 = vld [vmem:[%s6653_s11] sm:$0xff]  }
 0x256   :  { %v2844_v38 = vmax.f32 %v2610_v22, %v2780_v50  ;;  %v2846_v51 = vmax.f32 %v2618_v18, %v2782_v0  ;;  %v2791_v22 = vmul.f32 0.01, %v2653_v14  ;;  %v2854_v50 = vmax.f32 %v2650_v8, %v2790_v43  ;;  %5178 = vmatprep.subr.bf16.mxu0 %v5349_v3  ;;  %5247 = vmatprep.subr.bf16.mxu1 %v5349_v3 }
 0x257   :  { %v2898_v62 = vpack.c.bf16 %v2853_v7, %v2852_v54  ;;  %v2796_v18 = vmul.f32 0.01, %v6125_v44 }
 0x258   :  { %v2894_v53 = vpack.c.bf16 %v2845_v39, %v2844_v38  ;;  %v2855_v47 = vmax.f32 %v2653_v14, %v2791_v22  ;;  %v2797_v39 = vmul.f32 0.01, %v2677_v36  ;;  %5179 = vmatpush3.bf16.msra.mxu0 %v5349_v3 }
 0x259   :  { %v2860_v60 = vmax.f32 %v6125_v44, %v2796_v18  ;;  %5251 = vmatpush3.bf16.msra.mxu1 %v5349_v3 }
 0x25a   :  { %5121 = vmatmul.mubr.msk.bf16.gmra.mxu1 %vm1991_vm1, %v2887_v12  ;;  %v6086_v12 = vpop.f32.mrf.mxu0  ;;  %v2861_v4 = vmax.f32 %v2677_v36, %v2797_v39 }
 0x25b   :  { %5124 = vmatprep.mubr.msk.bf16.mxu1 %vm1991_vm1, %v2888_v46  ;;  %v2783_v46 = vmul.f32 0.01, %v2621_v52 }
 0x25c   :  { %v6093_v30 = vpop.f32.mrf.mxu0 }
 0x25d   :  { %v2847_v33 = vmax.f32 %v2621_v52, %v2783_v46  ;;  %v2693_v52 = vadd.f32 %v5952_v37, %v6086_v12  ;;  %v6151_v46 = vadd.f32 %v6062_v63, %v5952_v37  ;;  %v6174_v8 = vadd.f32 %v6093_v30, %v5952_v37 }
 0x25e   :  { %v6103_v10 = vpop.f32.mrf.mxu0 }
 0x25f   :  { %v6167_v34 = vmul.f32 0.01, %v6151_v46 }
 0x260   :  { %v6113_v31 = vpop.f32.mrf.mxu0 }
 0x261   :  { %v6186_v30 = vadd.f32 %v6113_v31, %v5952_v37 }
 0x262   :  { %5125 = vmatmul.mubr.msk.bf16.gmra.mxu1 %vm1991_vm1, %v2889_v59  ;;  %v2895_v59 = vpack.c.bf16 %v2847_v33, %v2846_v51  ;;  %v6131_v25 = vpop.f32.mrf.mxu0  ;;  %v2899_v51 = vpack.c.bf16 %v2855_v47, %v2854_v50  ;;  %v2862_v33 = vmax.f32 %v2682_v1, %v2798_v48  ;;  %v2866_v1 = vmax.f32 %v6151_v46, %v6167_v34 }
 0x263   :  { %5128 = vmatprep.mubr.msk.bf16.mxu1 %vm1991_vm1, %v2890_v57  ;;  %v2896_v57 = vpack.c.bf16 %v2849_v19, %v2848_v42  ;;  %v2801_v42 = vmul.f32 0.01, %v2693_v52  ;;  %v6201_v31 = vadd.f32 %v5952_v37, %v6131_v25  ;;  %v6216_v25 = vmul.f32 0.01, %v6186_v30 }
 0x264   :  { %v6147_v41 = vpop.f32.mrf.mxu0  ;;  %v6189_v54 = vpack.c.bf16 %v2863_v55, %v2862_v33 }
 0x265   :  { %v6222_v39 = vmul.f32 0.01, %v6201_v31 }
 0x266   :  { %v2721_v6 = vpop.f32.mrf.mxu0 }
 0x268   :  { %v5095_v22 = vpop.f32.mrf.mxu0 }
 0x26a   :  { %5129 = vmatmul.mubr.msk.bf16.gmra.mxu1 %vm1991_vm1, %v2891_v24  ;;  %v2794_v24 = vmul.f32 0.01, %v2666_v61 }
 0x26b   :  { %5132 = vmatprep.mubr.msk.bf16.mxu1 %vm1991_vm1, %v2892_v35  ;;  %v2792_v35 = vmul.f32 0.01, %v2658_v13 }
 0x26c   :  { %v2858_v38 = vmax.f32 %v2666_v61, %v2794_v24  ;;  %v2864_v61 = vmax.f32 %v6135_v23, %v2800_v32  ;;  %v6197_v24 = vmul.f32 0.01, %v6174_v8 }
 0x26d   :  { %v2856_v15 = vmax.f32 %v2658_v13, %v2792_v35  ;;  %v2865_v13 = vmax.f32 %v2693_v52, %v2801_v42  ;;  %v2724_v52 = vpop.f32.mrf.mxu0 }
 0x26f   :  { %v6242_v55 = vpop.f32.mrf.mxu0 }
 0x272   :  { %5133 = vmatmul.mubr.msk.bf16.gmra.mxu1 %vm1991_vm1, %v2893_v45  ;;  %v2859_v45 = vmax.f32 %v2669_v40, %v2795_v17  ;;  %v6182_v40 = vadd.f32 %v5952_v37, %v6103_v10 }
 0x273   :  { %5136 = vmatprep.mubr.msk.bf16.mxu1 %vm1991_vm1, %v2894_v53  ;;  %v2857_v53 = vmax.f32 %v2661_v5, %v2793_v27  ;;  %v2902_v5 = vpack.c.bf16 %v2861_v4, %v2860_v60  ;;  %v6210_v27 = vpack.c.bf16 %v2865_v13, %v2864_v61  ;;  %v2733_v60 = vadd.f32 %v5095_v22, %v5952_v37 }
 0x274   :  { %v6213_v23 = vmul.f32 0.01, %v6182_v40 }
 0x275   :  { %v2900_v49 = vpack.c.bf16 %v2857_v53, %v2856_v15  ;;  %v6226_v15 = vadd.f32 %v6147_v41, %v5952_v37  ;;  %v2725_v41 = vadd.f32 %v5952_v37, %v2724_v52 }
 0x27a   :  { %5137 = vmatmul.mubr.msk.bf16.gmra.mxu1 %vm1991_vm1, %v2895_v59  ;;  %v2901_v59 = vpack.c.bf16 %v2859_v45, %v2858_v38  ;;  %v6229_v45 = vadd.f32 %v5952_v37, %v2721_v6 }
 0x27b   :  { %5140 = vmatprep.mubr.msk.bf16.mxu1 %vm1991_vm1, %v2896_v57  ;;  %v6170_v57 = vmul.f32 0.01, %v6155_v58 }
 0x27d   :  { %v2867_v10 = vmax.f32 %v6155_v58, %v6170_v57 }
 0x282   :  { %v4958_v21 = vpop.f32.mrf.mxu1  ;;  %5141 = vmatmul.mubr.msk.bf16.gmra.mxu1 %vm1991_vm1, %v2897_v29 }
 0x283   :  { %5144 = vmatprep.mubr.msk.bf16.mxu1 %vm1991_vm1, %v2898_v62  ;;  %v6158_v12 = vadd.f32 %v4958_v21, %v6140_v9 }
 0x284   :  { %v1608_v0 = vpop.f32.mrf.mxu1 }
 0x285   :  { %v1609_v56 = vadd.f32 %v6140_v9, %v1608_v0  ;;  %v1865_v11 = vmul.f32 0.01, %v6158_v12 }
 0x286   :  { %v4959_v16 = vpop.f32.mrf.mxu1 }
 0x287   :  { %v1863_v63 = vmul.f32 0.01, %v1609_v56  ;;  %v6164_v19 = vadd.f32 %v4959_v16, %v6140_v9  ;;  %v1929_v36 = vmax.f32 %v6158_v12, %v1865_v11 }
 0x288   :  { %v1611_v2 = vpop.f32.mrf.mxu1 }
 0x289   :  { %v1612_v14 = vadd.f32 %v6140_v9, %v1611_v2  ;;  %v1927_v28 = vmax.f32 %v1609_v56, %v1863_v63  ;;  %v1866_v43 = vmul.f32 0.01, %v6164_v19  ;;  %v1995_v0 = vsel %vm1991_vm1, %v1929_v36, -inf }
 0x28a   :  { %v4962_v26 = vpop.f32.mrf.mxu1  ;;  %5145 = vmatmul.mubr.msk.bf16.gmra.mxu1 %vm1991_vm1, %v2899_v51  ;;  %v2870_v56 = vmax.f32 %v6174_v8, %v6197_v24  ;;  %v2810_v2 = vmul.f32 0.01, %v6226_v15  ;;  %v2808_v8 = vmul.f32 0.01, %v6229_v45 }
 0x28b   :  { %v1864_v7 = vmul.f32 0.01, %v1612_v14  ;;  %5148 = vmatprep.mubr.msk.bf16.mxu1 %vm1991_vm1, %v2900_v49  ;;  %v1633_v35 = vadd.f32 %v4962_v26, %v6140_v9  ;;  %v1992_v50 = vsel %vm1991_vm1, %v1927_v28, -inf  ;;  %v1930_v47 = vmax.f32 %v6164_v19, %v1866_v43 }
 0x28c   :  { %v1624_v44 = vpop.f32.mrf.mxu1  ;;  %v2868_v19 = vmax.f32 %v6182_v40, %v6213_v23  ;;  %v2811_v40 = vmul.f32 0.01, %v2733_v60  ;;  %v2809_v43 = vmul.f32 0.01, %v2725_v41  ;;  %v2872_v23 = vmax.f32 %v6229_v45, %v2808_v8 }
 0x28d   :  { %v1928_v29 = vmax.f32 %v1612_v14, %v1864_v7  ;;  %v1625_v17 = vadd.f32 %v6140_v9, %v1624_v44  ;;  %v1869_v53 = vmul.f32 0.01, %v1633_v35  ;;  %v1997_v16 = vsel %vm1991_vm1, %v1930_v47, -inf  ;;  %v2737_v44 = vpop.f32.mrf.mxu0 }
 0x28e   :  { %v4963_v62 = vpop.f32.mrf.mxu1  ;;  %v6290_v8 = vadd.f32 %v6242_v55, %v5952_v37 }
 0x28f   :  { %v1993_v21 = vsel %vm1991_vm1, %v1928_v29, -inf  ;;  %v1867_v48 = vmul.f32 0.01, %v1625_v17  ;;  %v1636_v18 = vadd.f32 %v4963_v62, %v6140_v9  ;;  %v1933_v49 = vmax.f32 %v1633_v35, %v1869_v53 }
 0x290   :  { %v1994_v38 = vmax.f32 %v1992_v50, %v1993_v21  ;;  %v1627_v20 = vpop.f32.mrf.mxu1  ;;  %v2869_v29 = vmax.f32 %v6201_v31, %v6222_v39  ;;  %v2874_v35 = vmax.f32 %v6226_v15, %v2810_v2  ;;  %v2905_v31 = vpack.c.bf16 %v2867_v10, %v2866_v1  ;;  %v6270_v39 = vpop.f32.mrf.mxu0 }
 0x291   :  { %v1628_v12 = vadd.f32 %v6140_v9, %v1627_v20  ;;  %v1931_v51 = vmax.f32 %v1625_v17, %v1867_v48  ;;  %v1870_v42 = vmul.f32 0.01, %v1636_v18  ;;  %v2008_v17 = vsel %vm1991_vm1, %v1933_v49, -inf }
 0x292   :  { %v1996_v32 = vmax.f32 %v1994_v38, %v1995_v0  ;;  %v4966_v33 = vpop.f32.mrf.mxu1  ;;  %5149 = vmatmul.mubr.msk.bf16.gmra.mxu1 %vm1991_vm1, %v2901_v59  ;;  %v2871_v59 = vmax.f32 %v6186_v30, %v6216_v25  ;;  %v2875_v48 = vmax.f32 %v2733_v60, %v2811_v40  ;;  %v2906_v0 = vpack.c.bf16 %v2869_v29, %v2868_v19 }
 0x293   :  { %v1868_v63 = vmul.f32 0.01, %v1628_v12  ;;  %5152 = vmatprep.mubr.msk.bf16.mxu1 %vm1991_vm1, %v2902_v5  ;;  %v1649_v14 = vadd.f32 %v4966_v33, %v6140_v9  ;;  %v2005_v26 = vsel %vm1991_vm1, %v1931_v51, -inf  ;;  %v1934_v7 = vmax.f32 %v1636_v18, %v1870_v42 }
 0x294   :  { %v1998_v4 = vmax.f32 %v1996_v32, %v1997_v16  ;;  %v1640_v6 = vpop.f32.mrf.mxu1  ;;  %v2873_v18 = vmax.f32 %v2725_v41, %v2809_v43  ;;  %v6272_v45 = vpack.c.bf16 %v2871_v59, %v2870_v56  ;;  %v6277_v10 = vpack.c.bf16 %v2875_v48, %v2874_v35  ;;  %v2740_v41 = vpop.f32.mrf.mxu0 }
 0x295   :  { %v1932_v11 = vmax.f32 %v1628_v12, %v1868_v63  ;;  %v1641_v61 = vadd.f32 %v6140_v9, %v1640_v6  ;;  %v1873_v50 = vmul.f32 0.01, %v1649_v14  ;;  %v2010_v52 = vsel %vm1991_vm1, %v1934_v7, -inf }
 0x296   :  { %v1999_v28 = vrot.slane %v1998_v4, 4  ;;  %v4967_v13 = vpop.f32.mrf.mxu1 }
 0x297   :  { %v2006_v5 = vsel %vm1991_vm1, %v1932_v11, -inf  ;;  %v1871_v30 = vmul.f32 0.01, %v1641_v61  ;;  %v1652_v22 = vadd.f32 %v4967_v13, %v6140_v9  ;;  %v1937_v12 = vmax.f32 %v1649_v14, %v1873_v50 }
 0x298   :  { %v2000_v24 = vmax.f32 %v1998_v4, %v1999_v28  ;;  %v2007_v3 = vmax.f32 %v2005_v26, %v2006_v5  ;;  %v1643_v36 = vpop.f32.mrf.mxu1  ;;  %v6284_v4 = vadd.f32 %v5952_v37, %v2737_v44  ;;  %v6294_v28 = vadd.f32 %v5952_v37, %v2740_v41 }
 0x299   :  { %v1644_v62 = vadd.f32 %v6140_v9, %v1643_v36  ;;  %v1935_v47 = vmax.f32 %v1641_v61, %v1871_v30  ;;  %v1874_v38 = vmul.f32 0.01, %v1652_v22  ;;  %v2021_v6 = vsel %vm1991_vm1, %v1937_v12, -inf }
 0x29a   :  { %v2009_v25 = vmax.f32 %v2007_v3, %v2008_v17  ;;  %v4970_v21 = vpop.f32.mrf.mxu1  ;;  %5153 = vmatmul.mubr.msk.bf16.gmra.mxu1 %vm1991_vm1, %v6189_v54  ;;  %v2001_v15 = vrot.slane %v2000_v24, 2  ;;  %v2812_v30 = vmul.f32 0.01, %v6284_v4  ;;  %v2813_v50 = vmul.f32 0.01, %v6294_v28 }
 0x29b   :  { %v1872_v20 = vmul.f32 0.01, %v1644_v62  ;;  %5156 = vmatprep.mubr.msk.bf16.mxu1 %vm1991_vm1, %v6210_v27  ;;  %v1665_v46 = vadd.f32 %v4970_v21, %v6140_v9  ;;  %v2018_v57 = vsel %vm1991_vm1, %v1935_v47, -inf  ;;  %v6279_v27 = vpack.c.bf16 %v2873_v18, %v2872_v23 }
 0x29c   :  { %v2011_v54 = vmax.f32 %v2009_v25, %v2010_v52  ;;  %v1656_v53 = vpop.f32.mrf.mxu1  ;;  %v1938_v51 = vmax.f32 %v1652_v22, %v1874_v38  ;;  %v2002_v16 = vmax.f32 %v2000_v24, %v2001_v15  ;;  %v6307_v15 = vmul.f32 0.01, %v6290_v8 }
 0x29d   :  { %v1936_v32 = vmax.f32 %v1644_v62, %v1872_v20  ;;  %v1657_v58 = vadd.f32 %v6140_v9, %v1656_v53  ;;  %v1877_v59 = vmul.f32 0.01, %v1665_v46 }
 0x29e   :  { %v2012_v34 = vrot.slane %v2011_v54, 4  ;;  %v4971_v1 = vpop.f32.mrf.mxu1  ;;  %v2023_v26 = vsel %vm1991_vm1, %v1938_v51, -inf  ;;  %v2003_v43 = vrot.slane %v2002_v16, 1 }
 0x29f   :  { %v2019_v56 = vsel %vm1991_vm1, %v1936_v32, -inf  ;;  %v1875_v33 = vmul.f32 0.01, %v1657_v58  ;;  %v1668_v60 = vadd.f32 %v4971_v1, %v6140_v9  ;;  %v1941_v22 = vmax.f32 %v1665_v46, %v1877_v59 }
 0x2a0   :  { %v2013_v42 = vmax.f32 %v2011_v54, %v2012_v34  ;;  %v2020_v63 = vmax.f32 %v2018_v57, %v2019_v56  ;;  %v1659_v19 = vpop.f32.mrf.mxu1  ;;  %v2004_v21 = vmax.f32 %v2002_v16, %v2003_v43  ;;  %v2749_v57 = vadd.f32 %v6270_v39, %v5952_v37 }
 0x2a1   :  { %v1660_v2 = vadd.f32 %v6140_v9, %v1659_v19  ;;  %v1939_v14 = vmax.f32 %v1657_v58, %v1875_v33  ;;  %v1878_v13 = vmul.f32 0.01, %v1668_v60  ;;  %v2034_v38 = vsel %vm1991_vm1, %v1941_v22, -inf }
 0x2a2   :  { %v2014_v49 = vrot.slane %v2013_v42, 2  ;;  %v2022_v11 = vmax.f32 %v2020_v63, %v2021_v6  ;;  %v4974_v61 = vpop.f32.mrf.mxu1  ;;  %5157 = vmatmul.mubr.msk.bf16.gmra.mxu1 %vm1991_vm1, %v2905_v31  ;;  %v2876_v33 = vmax.f32 %v6284_v4, %v2812_v30 }
 0x2a3   :  { %v1876_v40 = vmul.f32 0.01, %v1660_v2  ;;  %5160 = vmatprep.mubr.msk.bf16.mxu1 %vm1991_vm1, %v2906_v0  ;;  %v1681_v24 = vadd.f32 %v4974_v61, %v6140_v9  ;;  %v2031_v35 = vsel %vm1991_vm1, %v1939_v14, -inf  ;;  %v1942_v62 = vmax.f32 %v1668_v60, %v1878_v13 }
 0x2a4   :  { %v2015_v7 = vmax.f32 %v2013_v42, %v2014_v49  ;;  %v2024_v55 = vmax.f32 %v2022_v11, %v2023_v26  ;;  %v1672_v5 = vpop.f32.mrf.mxu1  ;;  %v2877_v60 = vmax.f32 %v6294_v28, %v2813_v50  ;;  %v2815_v14 = vmul.f32 0.01, %v2749_v57 }
 0x2a5   :  { %v1940_v44 = vmax.f32 %v1660_v2, %v1876_v40  ;;  %v1673_v3 = vadd.f32 %v6140_v9, %v1672_v5  ;;  %v1881_v20 = vmul.f32 0.01, %v1681_v24  ;;  %v2036_v58 = vsel %vm1991_vm1, %v1942_v62, -inf }
 0x2a6   :  { %v2016_v36 = vrot.slane %v2015_v7, 1  ;;  %v2025_v29 = vrot.slane %v2024_v55, 4  ;;  %v4975_v17 = vpop.f32.mrf.mxu1  ;;  %v2910_v13 = vpack.c.bf16 %v2877_v60, %v2876_v33 }
 0x2a7   :  { %v2032_v23 = vsel %vm1991_vm1, %v1940_v44, -inf  ;;  %v1879_v25 = vmul.f32 0.01, %v1673_v3  ;;  %v1684_v47 = vadd.f32 %v4975_v17, %v6140_v9 }
 0x2a8   :  { %v2017_v48 = vmax.f32 %v2015_v7, %v2016_v36  ;;  %v2026_v18 = vmax.f32 %v2024_v55, %v2025_v29  ;;  %v2033_v52 = vmax.f32 %v2031_v35, %v2032_v23  ;;  %v1675_v31 = vpop.f32.mrf.mxu1  ;;  %v2878_v29 = vmax.f32 %v6290_v8, %v6307_v15 }
 0x2a9   :  { %v1676_v54 = vadd.f32 %v6140_v9, %v1675_v31  ;;  %v1943_v12 = vmax.f32 %v1673_v3, %v1879_v25  ;;  %v1882_v34 = vmul.f32 0.01, %v1684_v47  ;;  %v2879_v35 = vmax.f32 %v2749_v57, %v2815_v14 }
 0x2aa   :  { %v2027_v0 = vrot.slane %v2026_v18, 2  ;;  %v2035_v53 = vmax.f32 %v2033_v52, %v2034_v38  ;;  %v4978_v32 = vpop.f32.mrf.mxu1  ;;  %5161 = vmatmul.mubr.msk.bf16.gmra.mxu1 %vm1991_vm1, %v6272_v45  ;;  %v4209_v46 = vsel %vm4208_vm2, %v2017_v48, %v2004_v21  ;;  %v1945_v45 = vmax.f32 %v1681_v24, %v1881_v20 }
 0x2ab   :  { %v1880_v1 = vmul.f32 0.01, %v1676_v54  ;;  %5164 = vmatprep.mubr.msk.bf16.mxu1 %vm1991_vm1, %v6279_v27  ;;  %v1697_v42 = vadd.f32 %v4978_v32, %v6140_v9  ;;  %v2044_v37 = vsel %vm1991_vm1, %v1943_v12, -inf  ;;  %v1946_v27 = vmax.f32 %v1684_v47, %v1882_v34 }
 0x2ac   :  { %v2028_v51 = vmax.f32 %v2026_v18, %v2027_v0  ;;  %v2037_v56 = vmax.f32 %v2035_v53, %v2036_v58  ;;  %v1688_v41 = vpop.f32.mrf.mxu1  ;;  %v2047_v26 = vsel %vm1991_vm1, %v1945_v45, -inf  ;;  %v2911_v15 = vpack.c.bf16 %v2879_v35, %v2878_v29 }
 0x2ad   :  { %v1944_v16 = vmax.f32 %v1676_v54, %v1880_v1  ;;  %v1689_v63 = vadd.f32 %v6140_v9, %v1688_v41  ;;  %v1885_v40 = vmul.f32 0.01, %v1697_v42  ;;  %v2049_v44 = vsel %vm1991_vm1, %v1946_v27, -inf }
 0x2ae   :  { %v2029_v19 = vrot.slane %v2028_v51, 1  ;;  %v2038_v6 = vrot.slane %v2037_v56, 4  ;;  %v4979_v39 = vpop.f32.mrf.mxu1 }
 0x2af   :  { %v2045_v59 = vsel %vm1991_vm1, %v1944_v16, -inf  ;;  %v1883_v2 = vmul.f32 0.01, %v1689_v63  ;;  %v1700_v4 = vadd.f32 %v4979_v39, %v6140_v9  ;;  %v1949_v62 = vmax.f32 %v1697_v42, %v1885_v40 }
 0x2b0   :  { %v2030_v49 = vmax.f32 %v2028_v51, %v2029_v19  ;;  %v2039_v11 = vmax.f32 %v2037_v56, %v2038_v6  ;;  %v2046_v61 = vmax.f32 %v2044_v37, %v2045_v59  ;;  %v1691_v28 = vpop.f32.mrf.mxu1 }
 0x2b1   :  { %v1692_v43 = vadd.f32 %v6140_v9, %v1691_v28  ;;  %v1947_v5 = vmax.f32 %v1689_v63, %v1883_v2  ;;  %v1886_v24 = vmul.f32 0.01, %v1700_v4  ;;  %v2060_v12 = vsel %vm1991_vm1, %v1949_v62, -inf }
 0x2b2   :  { %v2040_v7 = vrot.slane %v2039_v11, 2  ;;  %v2048_v55 = vmax.f32 %v2046_v61, %v2047_v26  ;;  %v4982_v30 = vpop.f32.mrf.mxu1  ;;  %5165 = vmatmul.mubr.msk.bf16.gmra.mxu1 %vm1991_vm1, %v6277_v10  ;;  %v4211_v22 = vsel %vm4210_vm3, %v2030_v49, %v4209_v46 }
 0x2b3   :  { %v1884_v3 = vmul.f32 0.01, %v1692_v43  ;;  %5168 = vmatprep.mubr.msk.bf16.mxu1 %vm1991_vm1, %v2910_v13  ;;  %v1713_v25 = vadd.f32 %v4982_v30, %v6140_v9  ;;  %v2057_v48 = vsel %vm1991_vm1, %v1947_v5, -inf  ;;  %v1950_v52 = vmax.f32 %v1700_v4, %v1886_v24 }
 0x2b4   :  { %v2041_v36 = vmax.f32 %v2039_v11, %v2040_v7  ;;  %v2050_v17 = vmax.f32 %v2048_v55, %v2049_v44  ;;  %v1704_v50 = vpop.f32.mrf.mxu1 }
 0x2b5   :  { %v1948_v23 = vmax.f32 %v1692_v43, %v1884_v3  ;;  %v1705_v10 = vadd.f32 %v6140_v9, %v1704_v50  ;;  %v1889_v32 = vmul.f32 0.01, %v1713_v25  ;;  %v2062_v56 = vsel %vm1991_vm1, %v1950_v52, -inf }
 0x2b6   :  { %v2042_v47 = vrot.slane %v2041_v36, 1  ;;  %v2051_v21 = vrot.slane %v2050_v17, 4  ;;  %v4983_v18 = vpop.f32.mrf.mxu1 }
 0x2b7   :  { %v2058_v31 = vsel %vm1991_vm1, %v1948_v23, -inf  ;;  %v1887_v38 = vmul.f32 0.01, %v1705_v10  ;;  %v1716_v8 = vadd.f32 %v4983_v18, %v6140_v9  ;;  %v1953_v42 = vmax.f32 %v1713_v25, %v1889_v32 }
 0x2b8   :  { %v2043_v20 = vmax.f32 %v2041_v36, %v2042_v47  ;;  %v2052_v54 = vmax.f32 %v2050_v17, %v2051_v21  ;;  %v2059_v0 = vmax.f32 %v2057_v48, %v2058_v31  ;;  %v1707_v53 = vpop.f32.mrf.mxu1 }
 0x2b9   :  { %v1708_v46 = vadd.f32 %v6140_v9, %v1707_v53  ;;  %v1951_v57 = vmax.f32 %v1705_v10, %v1887_v38  ;;  %v1890_v33 = vmul.f32 0.01, %v1716_v8  ;;  %v2073_v13 = vsel %vm1991_vm1, %v1953_v42, -inf }
 0x2ba   :  { %v2053_v58 = vrot.slane %v2052_v54, 2  ;;  %v2061_v34 = vmax.f32 %v2059_v0, %v2060_v12  ;;  %v4986_v1 = vpop.f32.mrf.mxu1  ;;  %5169 = vmatmul.mubr.msk.bf16.gmra.mxu1 %vm1991_vm1, %v2911_v15  ;;  %v4213_v51 = vsel %vm4212_vm4, %v2043_v20, %v4211_v22 }
 0x2bb   :  { %v1888_v60 = vmul.f32 0.01, %v1708_v46  ;;  %v1729_v19 = vadd.f32 %v4986_v1, %v6140_v9  ;;  %v2070_v27 = vsel %vm1991_vm1, %v1951_v57, -inf  ;;  %v1954_v2 = vmax.f32 %v1716_v8, %v1890_v33 }
 0x2bc   :  { %v2054_v41 = vmax.f32 %v2052_v54, %v2053_v58  ;;  %v2063_v45 = vmax.f32 %v2061_v34, %v2062_v56  ;;  %v1720_v16 = vpop.f32.mrf.mxu1 }
 0x2bd   :  { %v1952_v63 = vmax.f32 %v1708_v46, %v1888_v60  ;;  %v1721_v6 = vadd.f32 %v6140_v9, %v1720_v16  ;;  %v1893_v40 = vmul.f32 0.01, %v1729_v19  ;;  %v2075_v44 = vsel %vm1991_vm1, %v1954_v2, -inf }
 0x2be   :  { %v2055_v37 = vrot.slane %v2054_v41, 1  ;;  %v2064_v39 = vrot.slane %v2063_v45, 4  ;;  %v4987_v59 = vpop.f32.mrf.mxu1 }
 0x2bf   :  { %v2071_v4 = vsel %vm1991_vm1, %v1952_v63, -inf  ;;  %v1891_v49 = vmul.f32 0.01, %v1721_v6  ;;  %v1732_v11 = vadd.f32 %v4987_v59, %v6140_v9  ;;  %v1957_v17 = vmax.f32 %v1729_v19, %v1893_v40 }
 0x2c0   :  { %v2056_v14 = vmax.f32 %v2054_v41, %v2055_v37  ;;  %v2065_v61 = vmax.f32 %v2063_v45, %v2064_v39  ;;  %v2072_v28 = vmax.f32 %v2070_v27, %v2071_v4  ;;  %v1723_v26 = vpop.f32.mrf.mxu1 }
 0x2c1   :  { %v1724_v43 = vadd.f32 %v6140_v9, %v1723_v26  ;;  %v1955_v5 = vmax.f32 %v1721_v6, %v1891_v49  ;;  %v1894_v24 = vmul.f32 0.01, %v1732_v11  ;;  %v2086_v54 = vsel %vm1991_vm1, %v1957_v17, -inf }
 0x2c2   :  { %v2066_v7 = vrot.slane %v2065_v61, 2  ;;  %v2074_v55 = vmax.f32 %v2072_v28, %v2073_v13  ;;  %v4990_v30 = vpop.f32.mrf.mxu1  ;;  %v4215_v22 = vsel %vm4214_vm5, %v2056_v14, %v4213_v51 }
 0x2c3   :  { %v1892_v3 = vmul.f32 0.01, %v1724_v43  ;;  %v1745_v62 = vadd.f32 %v4990_v30, %v6140_v9  ;;  %v2083_v47 = vsel %vm1991_vm1, %v1955_v5, -inf  ;;  %v1958_v48 = vmax.f32 %v1732_v11, %v1894_v24 }
 0x2c4   :  { %v2067_v36 = vmax.f32 %v2065_v61, %v2066_v7  ;;  %v2076_v29 = vmax.f32 %v2074_v55, %v2075_v44  ;;  %v1736_v35 = vpop.f32.mrf.mxu1 }
 0x2c5   :  { %v1956_v50 = vmax.f32 %v1724_v43, %v1892_v3  ;;  %v1737_v23 = vadd.f32 %v6140_v9, %v1736_v35  ;;  %v1897_v0 = vmul.f32 0.01, %v1745_v62  ;;  %v2088_v57 = vsel %vm1991_vm1, %v1958_v48, -inf }
 0x2c6   :  { %v2068_v25 = vrot.slane %v2067_v36, 1  ;;  %v2077_v10 = vrot.slane %v2076_v29, 4  ;;  %v4991_v21 = vpop.f32.mrf.mxu1 }
 0x2c7   :  { %v2084_v18 = vsel %vm1991_vm1, %v1956_v50, -inf  ;;  %v1895_v52 = vmul.f32 0.01, %v1737_v23  ;;  %v1748_v31 = vadd.f32 %v4991_v21, %v6140_v9  ;;  %v1961_v41 = vmax.f32 %v1745_v62, %v1897_v0 }
 0x2c8   :  { %v2078_v38 = vmax.f32 %v2076_v29, %v2077_v10  ;;  %v2085_v8 = vmax.f32 %v2083_v47, %v2084_v18  ;;  %v1739_v20 = vpop.f32.mrf.mxu1  ;;  %v2069_v15 = vmax.f32 %v2067_v36, %v2068_v25 }
 0x2c9   :  { %v1740_v53 = vadd.f32 %v6140_v9, %v1739_v20  ;;  %v1959_v46 = vmax.f32 %v1737_v23, %v1895_v52  ;;  %v1898_v1 = vmul.f32 0.01, %v1748_v31  ;;  %v2099_v61 = vsel %vm1991_vm1, %v1961_v41, -inf }
 0x2ca   :  { %v2079_v12 = vrot.slane %v2078_v38, 2  ;;  %v2087_v32 = vmax.f32 %v2085_v8, %v2086_v54  ;;  %v4994_v58 = vpop.f32.mrf.mxu1  ;;  %v4217_v34 = vsel %vm4216_vm6, %v2069_v15, %v4215_v22 }
 0x2cb   :  { %v1896_v51 = vmul.f32 0.01, %v1740_v53  ;;  %v1761_v16 = vadd.f32 %v4994_v58, %v6140_v9  ;;  %v2096_v19 = vsel %vm1991_vm1, %v1959_v46, -inf  ;;  %v1962_v39 = vmax.f32 %v1748_v31, %v1898_v1 }
 0x2cc   :  { %v2080_v56 = vmax.f32 %v2078_v38, %v2079_v12  ;;  %v2089_v33 = vmax.f32 %v2087_v32, %v2088_v57  ;;  %v1752_v60 = vpop.f32.mrf.mxu1 }
 0x2cd   :  { %v1960_v45 = vmax.f32 %v1740_v53, %v1896_v51  ;;  %v1753_v42 = vadd.f32 %v6140_v9, %v1752_v60  ;;  %v1901_v28 = vmul.f32 0.01, %v1761_v16  ;;  %v2101_v5 = vsel %vm1991_vm1, %v1962_v39, -inf }
 0x2ce   :  { %v2090_v63 = vrot.slane %v2089_v33, 4  ;;  %v4995_v6 = vpop.f32.mrf.mxu1  ;;  %v2081_v37 = vrot.slane %v2080_v56, 1 }
 0x2cf   :  { %v2097_v27 = vsel %vm1991_vm1, %v1960_v45, -inf  ;;  %v1899_v59 = vmul.f32 0.01, %v1753_v42  ;;  %v1764_v2 = vadd.f32 %v4995_v6, %v6140_v9  ;;  %v1965_v36 = vmax.f32 %v1761_v16, %v1901_v28 }
 0x2d0   :  { %v2091_v4 = vmax.f32 %v2089_v33, %v2090_v63  ;;  %v2098_v49 = vmax.f32 %v2096_v19, %v2097_v27  ;;  %v1755_v11 = vpop.f32.mrf.mxu1  ;;  %v2082_v14 = vmax.f32 %v2080_v56, %v2081_v37 }
 0x2d1   :  { %v1756_v26 = vadd.f32 %v6140_v9, %v1755_v11  ;;  %v1963_v43 = vmax.f32 %v1753_v42, %v1899_v59  ;;  %v1902_v30 = vmul.f32 0.01, %v1764_v2  ;;  %v2112_v8 = vsel %vm1991_vm1, %v1965_v36, -inf }
 0x2d2   :  { %v2092_v13 = vrot.slane %v2091_v4, 2  ;;  %v2100_v40 = vmax.f32 %v2098_v49, %v2099_v61  ;;  %v4998_v7 = vpop.f32.mrf.mxu1  ;;  %v4219_v55 = vsel %vm4218_vm7, %v2082_v14, %v4217_v34 }
 0x2d3   :  { %v1900_v22 = vmul.f32 0.01, %v1756_v26  ;;  %v1777_v35 = vadd.f32 %v4998_v7, %v6140_v9  ;;  %v2109_v62 = vsel %vm1991_vm1, %v1963_v43, -inf  ;;  %v1966_v10 = vmax.f32 %v1764_v2, %v1902_v30 }
 0x2d4   :  { %v2102_v44 = vmax.f32 %v2100_v40, %v2101_v5  ;;  %v1768_v24 = vpop.f32.mrf.mxu1  ;;  %v2093_v3 = vmax.f32 %v2091_v4, %v2092_v13 }
 0x2d5   :  { %v1964_v29 = vmax.f32 %v1756_v26, %v1900_v22  ;;  %v1769_v17 = vadd.f32 %v6140_v9, %v1768_v24  ;;  %v1905_v20 = vmul.f32 0.01, %v1777_v35  ;;  %v2114_v32 = vsel %vm1991_vm1, %v1966_v10, -inf }
 0x2d6   :  { %v2103_v50 = vrot.slane %v2102_v44, 4  ;;  %v4999_v23 = vpop.f32.mrf.mxu1  ;;  %v2094_v25 = vrot.slane %v2093_v3, 1 }
 0x2d7   :  { %v2110_v47 = vsel %vm1991_vm1, %v1964_v29, -inf  ;;  %v1903_v21 = vmul.f32 0.01, %v1769_v17  ;;  %v1780_v48 = vadd.f32 %v4999_v23, %v6140_v9  ;;  %v1969_v51 = vmax.f32 %v1777_v35, %v1905_v20 }
 0x2d8   :  { %v2104_v18 = vmax.f32 %v2102_v44, %v2103_v50  ;;  %v2111_v52 = vmax.f32 %v2109_v62, %v2110_v47  ;;  %v1771_v31 = vpop.f32.mrf.mxu1  ;;  %v2095_v38 = vmax.f32 %v2093_v3, %v2094_v25 }
 0x2d9   :  { %v1772_v15 = vadd.f32 %v6140_v9, %v1771_v31  ;;  %v1967_v0 = vmax.f32 %v1769_v17, %v1903_v21  ;;  %v1906_v46 = vmul.f32 0.01, %v1780_v48  ;;  %v2125_v2 = vsel %vm1991_vm1, %v1969_v51, -inf }
 0x2da   :  { %v2113_v54 = vmax.f32 %v2111_v52, %v2112_v8  ;;  %v5002_v53 = vpop.f32.mrf.mxu1  ;;  %v6379_v12 = vsel %vm4220_vm8, %v2095_v38, %v4219_v55  ;;  %v2105_v34 = vrot.slane %v2104_v18, 2 }
 0x2db   :  { %v1904_v58 = vmul.f32 0.01, %v1772_v15  ;;  %v1793_v33 = vadd.f32 %v5002_v53, %v6140_v9  ;;  %v2122_v45 = vsel %vm1991_vm1, %v1967_v0, -inf  ;;  %v1970_v42 = vmax.f32 %v1780_v48, %v1906_v46 }
 0x2dc   :  { %v2115_v57 = vmax.f32 %v2113_v54, %v2114_v32  ;;  %v1784_v1 = vpop.f32.mrf.mxu1  ;;  %v2106_v37 = vmax.f32 %v2104_v18, %v2105_v34 }
 0x2dd   :  { %v1968_v56 = vmax.f32 %v1772_v15, %v1904_v58  ;;  %v1785_v60 = vadd.f32 %v6140_v9, %v1784_v1  ;;  %v1909_v4 = vmul.f32 0.01, %v1793_v33  ;;  %v2127_v26 = vsel %vm1991_vm1, %v1970_v42, -inf }
 0x2de   :  { %v2116_v41 = vrot.slane %v2115_v57, 4  ;;  %v5003_v16 = vpop.f32.mrf.mxu1  ;;  %v2107_v43 = vrot.slane %v2106_v37, 1 }
 0x2df   :  { %v2123_v63 = vsel %vm1991_vm1, %v1968_v56, -inf  ;;  %v1907_v19 = vmul.f32 0.01, %v1785_v60  ;;  %v1796_v6 = vadd.f32 %v5003_v16, %v6140_v9  ;;  %v1973_v30 = vmax.f32 %v1793_v33, %v1909_v4 }
 0x2e0   :  { %v2117_v39 = vmax.f32 %v2115_v57, %v2116_v41  ;;  %v2124_v27 = vmax.f32 %v2122_v45, %v2123_v63  ;;  %v1787_v59 = vpop.f32.mrf.mxu1  ;;  %v2108_v25 = vmax.f32 %v2106_v37, %v2107_v43 }
 0x2e1   :  { %v1788_v49 = vadd.f32 %v6140_v9, %v1787_v59  ;;  %v1971_v61 = vmax.f32 %v1785_v60, %v1907_v19  ;;  %v1910_v13 = vmul.f32 0.01, %v1796_v6  ;;  %v2138_v18 = vsel %vm1991_vm1, %v1973_v30, -inf }
 0x2e2   :  { %v2118_v11 = vrot.slane %v2117_v39, 2  ;;  %v2126_v14 = vmax.f32 %v2124_v27, %v2125_v2  ;;  %v5006_v28 = vpop.f32.mrf.mxu1 }
 0x2e3   :  { %v1908_v40 = vmul.f32 0.01, %v1788_v49  ;;  %v1809_v44 = vadd.f32 %v5006_v28, %v6140_v9  ;;  %v2135_v29 = vsel %vm1991_vm1, %v1971_v61, -inf  ;;  %v1974_v17 = vmax.f32 %v1796_v6, %v1910_v13 }
 0x2e4   :  { %v2119_v7 = vmax.f32 %v2117_v39, %v2118_v11  ;;  %v2128_v55 = vmax.f32 %v2126_v14, %v2127_v26  ;;  %v1800_v5 = vpop.f32.mrf.mxu1 }
 0x2e5   :  { %v1972_v22 = vmax.f32 %v1788_v49, %v1908_v40  ;;  %v1801_v24 = vadd.f32 %v6140_v9, %v1800_v5  ;;  %v1913_v52 = vmul.f32 0.01, %v1809_v44  ;;  %v2140_v0 = vsel %vm1991_vm1, %v1974_v17, -inf }
 0x2e6   :  { %v2120_v3 = vrot.slane %v2119_v7, 1  ;;  %v2129_v36 = vrot.slane %v2128_v55, 4  ;;  %v5007_v35 = vpop.f32.mrf.mxu1 }
 0x2e7   :  { %v2136_v50 = vsel %vm1991_vm1, %v1972_v22, -inf  ;;  %v1911_v62 = vmul.f32 0.01, %v1801_v24  ;;  %v1812_v23 = vadd.f32 %v5007_v35, %v6140_v9  ;;  %v1977_v57 = vmax.f32 %v1809_v44, %v1913_v52 }
 0x2e8   :  { %v2121_v10 = vmax.f32 %v2119_v7, %v2120_v3  ;;  %v2130_v47 = vmax.f32 %v2128_v55, %v2129_v36  ;;  %v2137_v21 = vmax.f32 %v2135_v29, %v2136_v50  ;;  %v1803_v48 = vpop.f32.mrf.mxu1 }
 0x2e9   :  { %v1804_v31 = vadd.f32 %v6140_v9, %v1803_v48  ;;  %v1975_v20 = vmax.f32 %v1801_v24, %v1911_v62  ;;  %v1914_v53 = vmul.f32 0.01, %v1812_v23  ;;  %v2151_v59 = vsel %vm1991_vm1, %v1977_v57, -inf }
 0x2ea   :  { %v2131_v38 = vrot.slane %v2130_v47, 2  ;;  %v2139_v8 = vmax.f32 %v2137_v21, %v2138_v18  ;;  %v5010_v15 = vpop.f32.mrf.mxu1  ;;  %v4222_v54 = vsel %vm4208_vm2, %v2121_v10, %v2108_v25  ;;  %v5350_v18 = vld [vmem:[%s6654_s6] ss:$0 sm:$0xff] }
 0x2eb   :  { %v1912_v32 = vmul.f32 0.01, %v1804_v31  ;;  %v1825_v51 = vadd.f32 %v5010_v15, %v6140_v9  ;;  %v2148_v41 = vsel %vm1991_vm1, %v1975_v20, -inf  ;;  %v1978_v16 = vmax.f32 %v1812_v23, %v1914_v53 }
 0x2ec   :  { %v2132_v46 = vmax.f32 %v2130_v47, %v2131_v38  ;;  %v2141_v58 = vmax.f32 %v2139_v8, %v2140_v0  ;;  %v1816_v34 = vpop.f32.mrf.mxu1 }
 0x2ed   :  { %v1976_v1 = vmax.f32 %v1804_v31, %v1912_v32  ;;  %v1817_v56 = vadd.f32 %v6140_v9, %v1816_v34  ;;  %v1917_v2 = vmul.f32 0.01, %v1825_v51  ;;  %v2153_v26 = vsel %vm1991_vm1, %v1978_v16, -inf }
 0x2ee   :  { %v2133_v33 = vrot.slane %v2132_v46, 1  ;;  %v2142_v60 = vrot.slane %v2141_v58, 4  ;;  %v5011_v45 = vpop.f32.mrf.mxu1 }
 0x2ef   :  { %v2149_v42 = vsel %vm1991_vm1, %v1976_v1, -inf  ;;  %v1915_v63 = vmul.f32 0.01, %v1817_v56  ;;  %v1828_v19 = vadd.f32 %v5011_v45, %v6140_v9  ;;  %v1981_v5 = vmax.f32 %v1825_v51, %v1917_v2 }
 0x2f0   :  { %v2134_v6 = vmax.f32 %v2132_v46, %v2133_v33  ;;  %v2143_v37 = vmax.f32 %v2141_v58, %v2142_v60  ;;  %v2150_v39 = vmax.f32 %v2148_v41, %v2149_v42  ;;  %v1819_v27 = vpop.f32.mrf.mxu1 }
 0x2f1   :  { %v1820_v4 = vadd.f32 %v6140_v9, %v1819_v27  ;;  %v1979_v14 = vmax.f32 %v1817_v56, %v1915_v63  ;;  %v1918_v13 = vmul.f32 0.01, %v1828_v19  ;;  %v2164_v21 = vsel %vm1991_vm1, %v1981_v5, -inf }
 0x2f2   :  { %v2144_v49 = vrot.slane %v2143_v37, 2  ;;  %v2152_v11 = vmax.f32 %v2150_v39, %v2151_v59  ;;  %v5014_v61 = vpop.f32.mrf.mxu1  ;;  %v4223_v28 = vsel %vm4210_vm3, %v2134_v6, %v4222_v54 }
 0x2f3   :  { %v1916_v40 = vmul.f32 0.01, %v1820_v4  ;;  %v1841_v22 = vadd.f32 %v5014_v61, %v6140_v9  ;;  %v2161_v36 = vsel %vm1991_vm1, %v1979_v14, -inf  ;;  %v1982_v35 = vmax.f32 %v1828_v19, %v1918_v13 }
 0x2f4   :  { %v2145_v43 = vmax.f32 %v2143_v37, %v2144_v49  ;;  %v2154_v7 = vmax.f32 %v2152_v11, %v2153_v26  ;;  %v1832_v55 = vpop.f32.mrf.mxu1  ;;  %v6425_v11 = vld [vmem:[%s6655_s10] ss:$0 sm:$0xff] }
 0x2f5   :  { %v1980_v30 = vmax.f32 %v1820_v4, %v1916_v40  ;;  %v1833_v44 = vadd.f32 %v6140_v9, %v1832_v55  ;;  %v1921_v48 = vmul.f32 0.01, %v1841_v22 }
 0x2f6   :  { %v2146_v24 = vrot.slane %v2145_v43, 1  ;;  %v2155_v3 = vrot.slane %v2154_v7, 4  ;;  %v5015_v29 = vpop.f32.mrf.mxu1 }
 0x2f7   :  { %v2162_v17 = vsel %vm1991_vm1, %v1980_v30, -inf  ;;  %v1919_v50 = vmul.f32 0.01, %v1833_v44  ;;  %v1844_v62 = vadd.f32 %v5015_v29, %v6140_v9  ;;  %v2166_v9 = vsel %vm1991_vm1, %v1982_v35, -inf }
 0x2f8   :  { %v2147_v23 = vmax.f32 %v2145_v43, %v2146_v24  ;;  %v2156_v25 = vmax.f32 %v2154_v7, %v2155_v3  ;;  %v2163_v10 = vmax.f32 %v2161_v36, %v2162_v17  ;;  %v1835_v47 = vpop.f32.mrf.mxu1  ;;  %v1985_v58 = vmax.f32 %v1841_v22, %v1921_v48 }
 0x2f9   :  { %v1836_v52 = vadd.f32 %v5350_v18, %v1835_v47  ;;  %v1983_v8 = vmax.f32 %v1833_v44, %v1919_v50  ;;  %v1922_v54 = vmul.f32 0.01, %v1844_v62 }
 0x2fa   :  { %v2157_v31 = vrot.slane %v2156_v25, 2  ;;  %v2165_v38 = vmax.f32 %v2163_v10, %v2164_v21  ;;  %v5018_v20 = vpop.f32.mrf.mxu1  ;;  %v4224_v15 = vsel %vm4212_vm4, %v2147_v23, %v4223_v28  ;;  %v2177_v39 = vsel %vm1991_vm1, %v1985_v58, -inf }
 0x2fb   :  { %v1920_v0 = vmul.f32 0.01, %v1836_v52  ;;  %v1857_v57 = vadd.f32 %v5350_v18, %v5018_v20  ;;  %v2174_v33 = vsel %vm1991_vm1, %v1983_v8, -inf  ;;  %v1986_v41 = vmax.f32 %v1844_v62, %v1922_v54 }
 0x2fc   :  { %v2158_v53 = vmax.f32 %v2156_v25, %v2157_v31  ;;  %v2167_v32 = vmax.f32 %v2165_v38, %v2166_v9  ;;  %v1848_v46 = vpop.f32.mrf.mxu1 }
 0x2fd   :  { %v1984_v34 = vmax.f32 %v1836_v52, %v1920_v0  ;;  %v1849_v1 = vadd.f32 %v5350_v18, %v1848_v46  ;;  %v1925_v27 = vmul.f32 0.01, %v1857_v57  ;;  %v2179_v61 = vsel %vm1991_vm1, %v1986_v41, -inf }
 0x2fe   :  { %v2159_v51 = vrot.slane %v2158_v53, 1  ;;  %v2168_v56 = vrot.slane %v2167_v32, 4  ;;  %v5019_v60 = vpop.f32.mrf.mxu1 }
 0x2ff   :  { %v2175_v45 = vsel %vm1991_vm1, %v1984_v34, -inf  ;;  %v1923_v16 = vmul.f32 0.01, %v1849_v1  ;;  %v1860_v42 = vadd.f32 %v5350_v18, %v5019_v60  ;;  %v1989_v55 = vmax.f32 %v1857_v57, %v1925_v27 }
 0x300   :  { %v2160_v63 = vmax.f32 %v2158_v53, %v2159_v51  ;;  %v2169_v19 = vmax.f32 %v2167_v32, %v2168_v56  ;;  %v2176_v6 = vmax.f32 %v2174_v33, %v2175_v45  ;;  %v1851_v37 = vpop.f32.mrf.mxu1 }
 0x301   :  { %v1852_v59 = vadd.f32 %v5350_v18, %v1851_v37  ;;  %v1987_v28 = vmax.f32 %v1849_v1, %v1923_v16  ;;  %v1926_v26 = vmul.f32 0.01, %v1860_v42  ;;  %v2190_v10 = vsel %vm1991_vm1, %v1989_v55, -inf }
 0x302   :  { %v2170_v2 = vrot.slane %v2169_v19, 2  ;;  %v2178_v4 = vmax.f32 %v2176_v6, %v2177_v39  ;;  %v5110_v49 = vpop.f32.mrf.mxu1  ;;  %v4225_v14 = vsel %vm4214_vm5, %v2160_v63, %v4224_v15 }
 0x303   :  { %v1924_v13 = vmul.f32 0.01, %v1852_v59  ;;  %v3090_v24 = vadd.f32 %v5110_v49, %v6425_v11  ;;  %v2187_v36 = vsel %vm1991_vm1, %v1987_v28, -inf  ;;  %v1990_v29 = vmax.f32 %v1860_v42, %v1926_v26 }
 0x304   :  { %v2171_v40 = vmax.f32 %v2169_v19, %v2170_v2  ;;  %v2180_v43 = vmax.f32 %v2178_v4, %v2179_v61  ;;  %v3081_v7 = vpop.f32.mrf.mxu1 }
 0x305   :  { %v1988_v5 = vmax.f32 %v1852_v59, %v1924_v13  ;;  %v3082_v30 = vadd.f32 %v6425_v11, %v3081_v7  ;;  %v3338_v31 = vmul.f32 0.01, %v3090_v24  ;;  %v2192_v20 = vsel %vm1991_vm1, %v1990_v29, -inf }
 0x306   :  { %v2172_v22 = vrot.slane %v2171_v40, 1  ;;  %v2181_v44 = vrot.slane %v2180_v43, 4  ;;  %v5111_v3 = vpop.f32.mrf.mxu1 }
 0x307   :  { %v2188_v35 = vsel %vm1991_vm1, %v1988_v5, -inf  ;;  %v3093_v17 = vadd.f32 %v5111_v3, %v6425_v11  ;;  %v3336_v47 = vmul.f32 0.01, %v3082_v30  ;;  %v3402_v57 = vmax.f32 %v3090_v24, %v3338_v31 }
 0x308   :  { %v2182_v50 = vmax.f32 %v2180_v43, %v2181_v44  ;;  %v2189_v62 = vmax.f32 %v2187_v36, %v2188_v35  ;;  %v3084_v23 = vpop.f32.mrf.mxu1  ;;  %v2173_v25 = vmax.f32 %v2171_v40, %v2172_v22 }
 0x309   :  { %v3339_v21 = vmul.f32 0.01, %v3093_v17  ;;  %v3085_v48 = vadd.f32 %v6425_v11, %v3084_v23  ;;  %v3400_v32 = vmax.f32 %v3082_v30, %v3336_v47 }
 0x30a   :  { %v2183_v18 = vrot.slane %v2182_v50, 2  ;;  %v2191_v52 = vmax.f32 %v2189_v62, %v2190_v10  ;;  %v5114_v38 = vpop.f32.mrf.mxu1  ;;  %v4226_v8 = vsel %vm4216_vm6, %v2173_v25, %v4225_v14 }
 0x30b   :  { %v3337_v15 = vmul.f32 0.01, %v3085_v48  ;;  %v3403_v0 = vmax.f32 %v3093_v17, %v3339_v21  ;;  %v3106_v1 = vadd.f32 %v5114_v38, %v6425_v11 }
 0x30c   :  { %v2184_v9 = vmax.f32 %v2182_v50, %v2183_v18  ;;  %v2193_v54 = vmax.f32 %v2191_v52, %v2192_v20  ;;  %v3097_v53 = vpop.f32.mrf.mxu1 }
 0x30d   :  { %v3401_v46 = vmax.f32 %v3085_v48, %v3337_v15  ;;  %v3098_v58 = vadd.f32 %v6425_v11, %v3097_v53  ;;  %v3465_v45 = vpack.c.bf16 %v3403_v0, %v3402_v57  ;;  %v3342_v39 = vmul.f32 0.01, %v3106_v1 }
 0x30e   :  { %v2194_v34 = vrot.slane %v2193_v54, 4  ;;  %v5115_v51 = vpop.f32.mrf.mxu1  ;;  %v2185_v56 = vrot.slane %v2184_v9, 1 }
 0x30f   :  { %v3464_v33 = vpack.c.bf16 %v3401_v46, %v3400_v32  ;;  %v3109_v60 = vadd.f32 %v5115_v51, %v6425_v11  ;;  %v3340_v63 = vmul.f32 0.01, %v3098_v58  ;;  %v3406_v13 = vmax.f32 %v3106_v1, %v3342_v39 }
 0x310   :  { %v2195_v41 = vmax.f32 %v2193_v54, %v2194_v34  ;;  %v3100_v16 = vpop.f32.mrf.mxu1  ;;  %v2186_v42 = vmax.f32 %v2184_v9, %v2185_v56 }
 0x311   :  { %v3343_v19 = vmul.f32 0.01, %v3109_v60  ;;  %v3101_v6 = vadd.f32 %v6425_v11, %v3100_v16  ;;  %5180 = vmatprep.mubr.msk.bf16.mxu0 %vm1991_vm1, %v3464_v33  ;;  %v3404_v61 = vmax.f32 %v3098_v58, %v3340_v63 }
 0x312   :  { %v2196_v37 = vrot.slane %v2195_v41, 2  ;;  %v5118_v27 = vpop.f32.mrf.mxu1  ;;  %5181 = vmatmul.mubr.msk.bf16.vlgmr.msra.gmra.mxu0 %vm1991_vm1, %v3465_v45  ;;  %v4227_v59 = vsel %vm4218_vm7, %v2186_v42, %v4226_v8 }
 0x313   :  { %v3341_v2 = vmul.f32 0.01, %v3101_v6  ;;  %v3407_v4 = vmax.f32 %v3109_v60, %v3343_v19  ;;  %v3122_v40 = vadd.f32 %v5118_v27, %v6425_v11 }
 0x314   :  { %v3113_v49 = vpop.f32.mrf.mxu1  ;;  %v2197_v14 = vmax.f32 %v2195_v41, %v2196_v37 }
 0x315   :  { %v3405_v28 = vmax.f32 %v3101_v6, %v3341_v2  ;;  %v3114_v26 = vadd.f32 %v6425_v11, %v3113_v49  ;;  %v3467_v30 = vpack.c.bf16 %v3407_v4, %v3406_v13  ;;  %v3346_v29 = vmul.f32 0.01, %v3122_v40 }
 0x316   :  { %v5119_v43 = vpop.f32.mrf.mxu1  ;;  %v2198_v7 = vrot.slane %v2197_v14, 1 }
 0x317   :  { %v3466_v55 = vpack.c.bf16 %v3405_v28, %v3404_v61  ;;  %v3125_v5 = vadd.f32 %v5119_v43, %v6425_v11  ;;  %v3344_v24 = vmul.f32 0.01, %v3114_v26  ;;  %v3410_v21 = vmax.f32 %v3122_v40, %v3346_v29 }
 0x318   :  { %v3116_v22 = vpop.f32.mrf.mxu1  ;;  %v2199_v44 = vmax.f32 %v2197_v14, %v2198_v7 }
 0x319   :  { %v3347_v3 = vmul.f32 0.01, %v3125_v5  ;;  %v3117_v36 = vadd.f32 %v6425_v11, %v3116_v22  ;;  %5184 = vmatprep.mubr.msk.bf16.mxu0 %vm1991_vm1, %v3466_v55  ;;  %v3408_v25 = vmax.f32 %v3114_v26, %v3344_v24 }
 0x31a   :  { %v5122_v35 = vpop.f32.mrf.mxu1  ;;  %5185 = vmatmul.mubr.msk.bf16.gmra.mxu0 %vm1991_vm1, %v3467_v30  ;;  %v6452_v17 = vsel %vm4220_vm8, %v2199_v44, %v4227_v59 }
 0x31b   :  { %v3345_v50 = vmul.f32 0.01, %v3117_v36  ;;  %v3411_v62 = vmax.f32 %v3125_v5, %v3347_v3  ;;  %v3138_v48 = vadd.f32 %v5122_v35, %v6425_v11 }
 0x31c   :  { %v3129_v23 = vpop.f32.mrf.mxu1 }
 0x31d   :  { %v3409_v10 = vmax.f32 %v3117_v36, %v3345_v50  ;;  %v3130_v47 = vadd.f32 %v6425_v11, %v3129_v23  ;;  %v3469_v38 = vpack.c.bf16 %v3411_v62, %v3410_v21  ;;  %v3350_v54 = vmul.f32 0.01, %v3138_v48 }
 0x31e   :  { %v5123_v18 = vpop.f32.mrf.mxu1 }
 0x31f   :  { %v3468_v52 = vpack.c.bf16 %v3409_v10, %v3408_v25  ;;  %v3141_v31 = vadd.f32 %v5123_v18, %v6425_v11  ;;  %v3348_v20 = vmul.f32 0.01, %v3130_v47  ;;  %v3414_v1 = vmax.f32 %v3138_v48, %v3350_v54 }
 0x320   :  { %v3132_v8 = vpop.f32.mrf.mxu1 }
 0x321   :  { %v3351_v15 = vmul.f32 0.01, %v3141_v31  ;;  %v3133_v9 = vadd.f32 %v6425_v11, %v3132_v8  ;;  %5188 = vmatprep.mubr.msk.bf16.mxu0 %vm1991_vm1, %v3468_v52  ;;  %v3412_v58 = vmax.f32 %v3130_v47, %v3348_v20 }
 0x322   :  { %v5126_v0 = vpop.f32.mrf.mxu1  ;;  %5189 = vmatmul.mubr.msk.bf16.gmra.mxu0 %vm1991_vm1, %v3469_v38 }
 0x323   :  { %v3349_v53 = vmul.f32 0.01, %v3133_v9  ;;  %v3415_v32 = vmax.f32 %v3141_v31, %v3351_v15  ;;  %v3154_v51 = vadd.f32 %v5126_v0, %v6425_v11 }
 0x324   :  { %v3145_v46 = vpop.f32.mrf.mxu1 }
 0x325   :  { %v3413_v34 = vmax.f32 %v3133_v9, %v3349_v53  ;;  %v3146_v57 = vadd.f32 %v6425_v11, %v3145_v46  ;;  %v3471_v41 = vpack.c.bf16 %v3415_v32, %v3414_v1  ;;  %v3354_v19 = vmul.f32 0.01, %v3154_v51 }
 0x326   :  { %v5127_v56 = vpop.f32.mrf.mxu1 }
 0x327   :  { %v3470_v33 = vpack.c.bf16 %v3413_v34, %v3412_v58  ;;  %v3157_v60 = vadd.f32 %v5127_v56, %v6425_v11  ;;  %v3352_v16 = vmul.f32 0.01, %v3146_v57  ;;  %v3418_v49 = vmax.f32 %v3154_v51, %v3354_v19 }
 0x328   :  { %v3148_v45 = vpop.f32.mrf.mxu1 }
 0x329   :  { %v3355_v42 = vmul.f32 0.01, %v3157_v60  ;;  %v3149_v63 = vadd.f32 %v6425_v11, %v3148_v45  ;;  %5192 = vmatprep.mubr.msk.bf16.mxu0 %vm1991_vm1, %v3470_v33  ;;  %v3416_v59 = vmax.f32 %v3146_v57, %v3352_v16 }
 0x32a   :  { %v5130_v6 = vpop.f32.mrf.mxu1  ;;  %5193 = vmatmul.mubr.msk.bf16.gmra.mxu0 %vm1991_vm1, %v3471_v41 }
 0x32b   :  { %v3353_v37 = vmul.f32 0.01, %v3149_v63  ;;  %v3419_v39 = vmax.f32 %v3157_v60, %v3355_v42  ;;  %v3170_v14 = vadd.f32 %v5130_v6, %v6425_v11 }
 0x32c   :  { %v3161_v27 = vpop.f32.mrf.mxu1 }
 0x32d   :  { %v3417_v2 = vmax.f32 %v3149_v63, %v3353_v37  ;;  %v3162_v4 = vadd.f32 %v6425_v11, %v3161_v27  ;;  %v3473_v13 = vpack.c.bf16 %v3419_v39, %v3418_v49  ;;  %v3358_v5 = vmul.f32 0.01, %v3170_v14 }
 0x32e   :  { %v5131_v61 = vpop.f32.mrf.mxu1 }
 0x32f   :  { %v3472_v28 = vpack.c.bf16 %v3417_v2, %v3416_v59  ;;  %v3173_v26 = vadd.f32 %v5131_v61, %v6425_v11  ;;  %v3356_v43 = vmul.f32 0.01, %v3162_v4  ;;  %v3422_v35 = vmax.f32 %v3170_v14, %v3358_v5 }
 0x330   :  { %v3164_v40 = vpop.f32.mrf.mxu1 }
 0x331   :  { %v3359_v7 = vmul.f32 0.01, %v3173_v26  ;;  %v3165_v55 = vadd.f32 %v6425_v11, %v3164_v40  ;;  %5196 = vmatprep.mubr.msk.bf16.mxu0 %vm1991_vm1, %v3472_v28  ;;  %v3420_v3 = vmax.f32 %v3162_v4, %v3356_v43 }
 0x332   :  { %v5134_v30 = vpop.f32.mrf.mxu1  ;;  %5197 = vmatmul.mubr.msk.bf16.gmra.mxu0 %vm1991_vm1, %v3473_v13 }
 0x333   :  { %v3357_v22 = vmul.f32 0.01, %v3165_v55  ;;  %v3423_v44 = vmax.f32 %v3173_v26, %v3359_v7  ;;  %v3186_v50 = vadd.f32 %v5134_v30, %v6425_v11 }
 0x334   :  { %v3177_v24 = vpop.f32.mrf.mxu1 }
 0x335   :  { %v3421_v36 = vmax.f32 %v3165_v55, %v3357_v22  ;;  %v3178_v29 = vadd.f32 %v6425_v11, %v3177_v24  ;;  %v3475_v10 = vpack.c.bf16 %v3423_v44, %v3422_v35  ;;  %v3362_v52 = vmul.f32 0.01, %v3186_v50 }
 0x336   :  { %v5135_v62 = vpop.f32.mrf.mxu1 }
 0x337   :  { %v3474_v23 = vpack.c.bf16 %v3421_v36, %v3420_v3  ;;  %v3189_v25 = vadd.f32 %v5135_v62, %v6425_v11  ;;  %v3360_v21 = vmul.f32 0.01, %v3178_v29  ;;  %v3426_v0 = vmax.f32 %v3186_v50, %v3362_v52 }
 0x338   :  { %v3180_v47 = vpop.f32.mrf.mxu1 }
 0x339   :  { %v3363_v48 = vmul.f32 0.01, %v3189_v25  ;;  %v3181_v18 = vadd.f32 %v6425_v11, %v3180_v47  ;;  %5200 = vmatprep.mubr.msk.bf16.mxu0 %vm1991_vm1, %v3474_v23  ;;  %v3424_v15 = vmax.f32 %v3178_v29, %v3360_v21 }
 0x33a   :  { %v5138_v31 = vpop.f32.mrf.mxu1  ;;  %5201 = vmatmul.mubr.msk.bf16.gmra.mxu0 %vm1991_vm1, %v3475_v10 }
 0x33b   :  { %v3361_v38 = vmul.f32 0.01, %v3181_v18  ;;  %v3427_v8 = vmax.f32 %v3189_v25, %v3363_v48  ;;  %v3202_v53 = vadd.f32 %v5138_v31, %v6425_v11 }
 0x33c   :  { %v3193_v20 = vpop.f32.mrf.mxu1 }
 0x33d   :  { %v3425_v9 = vmax.f32 %v3181_v18, %v3361_v38  ;;  %v3194_v54 = vadd.f32 %v6425_v11, %v3193_v20  ;;  %v3477_v34 = vpack.c.bf16 %v3427_v8, %v3426_v0  ;;  %v3366_v33 = vmul.f32 0.01, %v3202_v53 }
 0x33e   :  { %v5139_v32 = vpop.f32.mrf.mxu1 }
 0x33f   :  { %v3476_v46 = vpack.c.bf16 %v3425_v9, %v3424_v15  ;;  %v3205_v58 = vadd.f32 %v5139_v32, %v6425_v11  ;;  %v3364_v1 = vmul.f32 0.01, %v3194_v54  ;;  %v3430_v6 = vmax.f32 %v3202_v53, %v3366_v33 }
 0x340   :  { %v3196_v57 = vpop.f32.mrf.mxu1 }
 0x341   :  { %v3367_v51 = vmul.f32 0.01, %v3205_v58  ;;  %v3197_v56 = vadd.f32 %v6425_v11, %v3196_v57  ;;  %5204 = vmatprep.mubr.msk.bf16.mxu0 %vm1991_vm1, %v3476_v46  ;;  %v3428_v42 = vmax.f32 %v3194_v54, %v3364_v1 }
 0x342   :  { %v5142_v60 = vpop.f32.mrf.mxu1  ;;  %5205 = vmatmul.mubr.msk.bf16.gmra.mxu0 %vm1991_vm1, %v3477_v34 }
 0x343   :  { %v3365_v41 = vmul.f32 0.01, %v3197_v56  ;;  %v3431_v45 = vmax.f32 %v3205_v58, %v3367_v51  ;;  %v3218_v37 = vadd.f32 %v5142_v60, %v6425_v11 }
 0x344   :  { %v3209_v16 = vpop.f32.mrf.mxu1 }
 0x345   :  { %v3429_v63 = vmax.f32 %v3197_v56, %v3365_v41  ;;  %v3210_v19 = vadd.f32 %v6425_v11, %v3209_v16  ;;  %v3479_v2 = vpack.c.bf16 %v3431_v45, %v3430_v6  ;;  %v3370_v28 = vmul.f32 0.01, %v3218_v37 }
 0x346   :  { %v5143_v39 = vpop.f32.mrf.mxu1 }
 0x347   :  { %v3478_v27 = vpack.c.bf16 %v3429_v63, %v3428_v42  ;;  %v3221_v59 = vadd.f32 %v5143_v39, %v6425_v11  ;;  %v3368_v49 = vmul.f32 0.01, %v3210_v19  ;;  %v3434_v30 = vmax.f32 %v3218_v37, %v3370_v28 }
 0x348   :  { %v3212_v4 = vpop.f32.mrf.mxu1 }
 0x349   :  { %v3371_v14 = vmul.f32 0.01, %v3221_v59  ;;  %v3213_v61 = vadd.f32 %v6425_v11, %v3212_v4  ;;  %5208 = vmatprep.mubr.msk.bf16.mxu0 %vm1991_vm1, %v3478_v27  ;;  %v3432_v7 = vmax.f32 %v3210_v19, %v3368_v49 }
 0x34a   :  { %v5146_v26 = vpop.f32.mrf.mxu1  ;;  %5209 = vmatmul.mubr.msk.bf16.gmra.mxu0 %vm1991_vm1, %v3479_v2 }
 0x34b   :  { %v3369_v13 = vmul.f32 0.01, %v3213_v61  ;;  %v3435_v40 = vmax.f32 %v3221_v59, %v3371_v14  ;;  %v3234_v22 = vadd.f32 %v5146_v26, %v6425_v11 }
 0x34c   :  { %v3225_v43 = vpop.f32.mrf.mxu1 }
 0x34d   :  { %v3433_v55 = vmax.f32 %v3213_v61, %v3369_v13  ;;  %v3226_v5 = vadd.f32 %v6425_v11, %v3225_v43  ;;  %v3481_v36 = vpack.c.bf16 %v3435_v40, %v3434_v30  ;;  %v3374_v23 = vmul.f32 0.01, %v3234_v22 }
 0x34e   :  { %v5147_v44 = vpop.f32.mrf.mxu1 }
 0x34f   :  { %v3480_v24 = vpack.c.bf16 %v3433_v55, %v3432_v7  ;;  %v3237_v3 = vadd.f32 %v5147_v44, %v6425_v11  ;;  %v3372_v35 = vmul.f32 0.01, %v3226_v5  ;;  %v3438_v31 = vmax.f32 %v3234_v22, %v3374_v23 }
 0x350   :  { %v3228_v29 = vpop.f32.mrf.mxu1 }
 0x351   :  { %v3375_v50 = vmul.f32 0.01, %v3237_v3  ;;  %v3229_v62 = vadd.f32 %v6425_v11, %v3228_v29  ;;  %5212 = vmatprep.mubr.msk.bf16.mxu0 %vm1991_vm1, %v3480_v24  ;;  %v3436_v48 = vmax.f32 %v3226_v5, %v3372_v35 }
 0x352   :  { %v5150_v25 = vpop.f32.mrf.mxu1  ;;  %5213 = vmatmul.mubr.msk.bf16.gmra.mxu0 %vm1991_vm1, %v3481_v36 }
 0x353   :  { %v3373_v10 = vmul.f32 0.01, %v3229_v62  ;;  %v3439_v47 = vmax.f32 %v3237_v3, %v3375_v50  ;;  %v3250_v38 = vadd.f32 %v5150_v25, %v6425_v11 }
 0x354   :  { %v3241_v21 = vpop.f32.mrf.mxu1 }
 0x355   :  { %v3437_v18 = vmax.f32 %v3229_v62, %v3373_v10  ;;  %v3242_v52 = vadd.f32 %v6425_v11, %v3241_v21  ;;  %v3483_v9 = vpack.c.bf16 %v3439_v47, %v3438_v31  ;;  %v3378_v46 = vmul.f32 0.01, %v3250_v38 }
 0x356   :  { %v5151_v8 = vpop.f32.mrf.mxu1 }
 0x357   :  { %v3482_v20 = vpack.c.bf16 %v3437_v18, %v3436_v48  ;;  %v3253_v15 = vadd.f32 %v5151_v8, %v6425_v11  ;;  %v3376_v0 = vmul.f32 0.01, %v3242_v52  ;;  %v3442_v60 = vmax.f32 %v3250_v38, %v3378_v46 }
 0x358   :  { %v3244_v54 = vpop.f32.mrf.mxu1 }
 0x359   :  { %v3379_v53 = vmul.f32 0.01, %v3253_v15  ;;  %v3245_v32 = vadd.f32 %v6425_v11, %v3244_v54  ;;  %5216 = vmatprep.mubr.msk.bf16.mxu0 %vm1991_vm1, %v3482_v20  ;;  %v3440_v51 = vmax.f32 %v3242_v52, %v3376_v0 }
 0x35a   :  { %v5154_v58 = vpop.f32.mrf.mxu1  ;;  %5217 = vmatmul.mubr.msk.bf16.gmra.mxu0 %vm1991_vm1, %v3483_v9 }
 0x35b   :  { %v3377_v34 = vmul.f32 0.01, %v3245_v32  ;;  %v3443_v57 = vmax.f32 %v3253_v15, %v3379_v53  ;;  %v3266_v41 = vadd.f32 %v5154_v58, %v6425_v11 }
 0x35c   :  { %v3257_v1 = vpop.f32.mrf.mxu1 }
 0x35d   :  { %v3441_v56 = vmax.f32 %v3245_v32, %v3377_v34  ;;  %v3258_v33 = vadd.f32 %v6425_v11, %v3257_v1  ;;  %v3485_v63 = vpack.c.bf16 %v3443_v57, %v3442_v60  ;;  %v3382_v27 = vmul.f32 0.01, %v3266_v41 }
 0x35e   :  { %v5155_v45 = vpop.f32.mrf.mxu1 }
 0x35f   :  { %v3484_v16 = vpack.c.bf16 %v3441_v56, %v3440_v51  ;;  %v3269_v42 = vadd.f32 %v5155_v45, %v6425_v11  ;;  %v3380_v6 = vmul.f32 0.01, %v3258_v33  ;;  %v3446_v26 = vmax.f32 %v3266_v41, %v3382_v27 }
 0x360   :  { %v3260_v19 = vpop.f32.mrf.mxu1 }
 0x361   :  { %v3383_v37 = vmul.f32 0.01, %v3269_v42  ;;  %v3261_v39 = vadd.f32 %v6425_v11, %v3260_v19  ;;  %5220 = vmatprep.mubr.msk.bf16.mxu0 %vm1991_vm1, %v3484_v16  ;;  %v3444_v14 = vmax.f32 %v3258_v33, %v3380_v6 }
 0x362   :  { %v5158_v59 = vpop.f32.mrf.mxu1  ;;  %5221 = vmatmul.mubr.msk.bf16.gmra.mxu0 %vm1991_vm1, %v3485_v63 }
 0x363   :  { %v3381_v2 = vmul.f32 0.01, %v3261_v39  ;;  %v3447_v4 = vmax.f32 %v3269_v42, %v3383_v37  ;;  %v3282_v13 = vadd.f32 %v5158_v59, %v6425_v11 }
 0x364   :  { %v3273_v49 = vpop.f32.mrf.mxu1 }
 0x365   :  { %v3445_v61 = vmax.f32 %v3261_v39, %v3381_v2  ;;  %v3274_v28 = vadd.f32 %v6425_v11, %v3273_v49  ;;  %v3487_v55 = vpack.c.bf16 %v3447_v4, %v3446_v26  ;;  %v3386_v24 = vmul.f32 0.01, %v3282_v13 }
 0x366   :  { %v5159_v40 = vpop.f32.mrf.mxu1 }
 0x367   :  { %v3486_v43 = vpack.c.bf16 %v3445_v61, %v3444_v14  ;;  %v3285_v7 = vadd.f32 %v5159_v40, %v6425_v11  ;;  %v3384_v30 = vmul.f32 0.01, %v3274_v28  ;;  %v3450_v25 = vmax.f32 %v3282_v13, %v3386_v24 }
 0x368   :  { %v3276_v5 = vpop.f32.mrf.mxu1 }
 0x369   :  { %v3387_v22 = vmul.f32 0.01, %v3285_v7  ;;  %v3277_v44 = vadd.f32 %v6425_v11, %v3276_v5  ;;  %5224 = vmatprep.mubr.msk.bf16.mxu0 %vm1991_vm1, %v3486_v43  ;;  %v3448_v50 = vmax.f32 %v3274_v28, %v3384_v30 }
 0x36a   :  { %v5162_v3 = vpop.f32.mrf.mxu1  ;;  %5225 = vmatmul.mubr.msk.bf16.gmra.mxu0 %vm1991_vm1, %v3487_v55 }
 0x36b   :  { %v3385_v36 = vmul.f32 0.01, %v3277_v44  ;;  %v3451_v29 = vmax.f32 %v3285_v7, %v3387_v22  ;;  %v3298_v10 = vadd.f32 %v5162_v3, %v6425_v11 }
 0x36c   :  { %v3289_v35 = vpop.f32.mrf.mxu1 }
 0x36d   :  { %v3449_v62 = vmax.f32 %v3277_v44, %v3385_v36  ;;  %v3290_v23 = vadd.f32 %v6425_v11, %v3289_v35  ;;  %v3489_v18 = vpack.c.bf16 %v3451_v29, %v3450_v25  ;;  %v3390_v20 = vmul.f32 0.01, %v3298_v10 }
 0x36e   :  { %v5163_v47 = vpop.f32.mrf.mxu1 }
 0x36f   :  { %v3488_v21 = vpack.c.bf16 %v3449_v62, %v3448_v50  ;;  %v3301_v48 = vadd.f32 %v5163_v47, %v6425_v11  ;;  %v3388_v31 = vmul.f32 0.01, %v3290_v23  ;;  %v3454_v58 = vmax.f32 %v3298_v10, %v3390_v20 }
 0x370   :  { %v3292_v52 = vpop.f32.mrf.mxu1 }
 0x371   :  { %v3391_v38 = vmul.f32 0.01, %v3301_v48  ;;  %v3293_v8 = vadd.f32 %v6425_v11, %v3292_v52  ;;  %5228 = vmatprep.mubr.msk.bf16.mxu0 %vm1991_vm1, %v3488_v21  ;;  %v3452_v53 = vmax.f32 %v3290_v23, %v3388_v31 }
 0x372   :  { %v5166_v15 = vpop.f32.mrf.mxu1  ;;  %5229 = vmatmul.mubr.msk.bf16.gmra.mxu0 %vm1991_vm1, %v3489_v18 }
 0x373   :  { %v3389_v9 = vmul.f32 0.01, %v3293_v8  ;;  %v3455_v54 = vmax.f32 %v3301_v48, %v3391_v38  ;;  %v3314_v34 = vadd.f32 %v5166_v15, %v6425_v11 }
 0x374   :  { %v3305_v0 = vpop.f32.mrf.mxu1 }
 0x375   :  { %v3453_v32 = vmax.f32 %v3293_v8, %v3389_v9  ;;  %v3306_v46 = vadd.f32 %v6425_v11, %v3305_v0  ;;  %v3491_v56 = vpack.c.bf16 %v3455_v54, %v3454_v58  ;;  %v3394_v16 = vmul.f32 0.01, %v3314_v34 }
 0x376   :  { %v5167_v57 = vpop.f32.mrf.mxu1 }
 0x377   :  { %v3490_v1 = vpack.c.bf16 %v3453_v32, %v3452_v53  ;;  %v3317_v51 = vadd.f32 %v5167_v57, %v6425_v11  ;;  %v3392_v60 = vmul.f32 0.01, %v3306_v46  ;;  %v3458_v59 = vmax.f32 %v3314_v34, %v3394_v16 }
 0x378   :  { %v3308_v33 = vpop.f32.mrf.mxu1 }
 0x379   :  { %v3395_v41 = vmul.f32 0.01, %v3317_v51  ;;  %v3309_v45 = vadd.f32 %v6425_v11, %v3308_v33  ;;  %5232 = vmatprep.mubr.msk.bf16.mxu0 %vm1991_vm1, %v3490_v1  ;;  %v3456_v37 = vmax.f32 %v3306_v46, %v3392_v60 }
 0x37a   :  { %v5170_v42 = vpop.f32.mrf.mxu1  ;;  %5233 = vmatmul.mubr.msk.bf16.gmra.mxu0 %vm1991_vm1, %v3491_v56 }
 0x37b   :  { %v3393_v63 = vmul.f32 0.01, %v3309_v45  ;;  %v3459_v19 = vmax.f32 %v3317_v51, %v3395_v41  ;;  %v3330_v2 = vadd.f32 %v5170_v42, %v6425_v11 }
 0x37c   :  { %v3321_v6 = vpop.f32.mrf.mxu1 }
 0x37d   :  { %v3457_v39 = vmax.f32 %v3309_v45, %v3393_v63  ;;  %v3322_v27 = vadd.f32 %v6425_v11, %v3321_v6  ;;  %v3493_v61 = vpack.c.bf16 %v3459_v19, %v3458_v59  ;;  %v3398_v43 = vmul.f32 0.01, %v3330_v2 }
 0x37e   :  { %v5171_v4 = vpop.f32.mrf.mxu1 }
 0x37f   :  { %v3492_v49 = vpack.c.bf16 %v3457_v39, %v3456_v37  ;;  %v3333_v14 = vadd.f32 %v5171_v4, %v6425_v11  ;;  %v3396_v26 = vmul.f32 0.01, %v3322_v27  ;;  %v3462_v22 = vmax.f32 %v3330_v2, %v3398_v43 }
 0x380   :  { %v3324_v28 = vpop.f32.mrf.mxu1 }
 0x381   :  { %v3399_v13 = vmul.f32 0.01, %v3333_v14  ;;  %v3325_v40 = vadd.f32 %v6425_v11, %v3324_v28  ;;  %5236 = vmatprep.mubr.msk.bf16.mxu0 %vm1991_vm1, %v3492_v49  ;;  %v3460_v5 = vmax.f32 %v3322_v27, %v3396_v26  ;;  %v6537_v11 = vld [vmem:[%s6656_s12] ss:$0 sm:$0xff]  ;;  %s5351_s12 = smov 64  }
 0x382   :  { %5237 = vmatmul.mubr.msk.bf16.gmra.mxu0 %vm1991_vm1, %v3493_v61 }
 0x383   :  { %v3397_v7 = vmul.f32 0.01, %v3325_v40  ;;  %v3463_v55 = vmax.f32 %v3333_v14, %v3399_v13 }
 0x385   :  { %v3461_v30 = vmax.f32 %v3325_v40, %v3397_v7  ;;  %v3495_v24 = vpack.c.bf16 %v3463_v55, %v3462_v22 }
 0x387   :  { %v3494_v44 = vpack.c.bf16 %v3461_v30, %v3460_v5 }
 0x389   :  { %5240 = vmatprep.mubr.msk.bf16.mxu1 %vm1991_vm1, %v3494_v44 }
 0x38a   :  { %5241 = vmatmul.mubr.msk.bf16.vlgmr.msra.gmra.mxu1 %vm1991_vm1, %v3495_v24 }
 0x3d2   :  { %v5182_v3 = vpop.f32.mrf.mxu0 }
 0x3d3   :  { %v3674_v50 = vadd.f32 %v5182_v3, %v6537_v11 }
 0x3d4   :  { %v3665_v36 = vpop.f32.mrf.mxu0 }
 0x3d5   :  { %v3666_v29 = vadd.f32 %v6537_v11, %v3665_v36  ;;  %v3922_v21 = vmul.f32 0.01, %v3674_v50 }
 0x3d6   :  { %v5183_v35 = vpop.f32.mrf.mxu0 }
 0x3d7   :  { %v3920_v23 = vmul.f32 0.01, %v3666_v29  ;;  %v3677_v25 = vadd.f32 %v5183_v35, %v6537_v11  ;;  %v3986_v15 = vmax.f32 %v3674_v50, %v3922_v21 }
 0x3d8   :  { %v3668_v62 = vpop.f32.mrf.mxu0 }
 0x3d9   :  { %v3669_v10 = vadd.f32 %v6537_v11, %v3668_v62  ;;  %v3984_v52 = vmax.f32 %v3666_v29, %v3920_v23  ;;  %v3923_v31 = vmul.f32 0.01, %v3677_v25 }
 0x3da   :  { %v5186_v47 = vpop.f32.mrf.mxu0 }
 0x3db   :  { %v3921_v48 = vmul.f32 0.01, %v3669_v10  ;;  %v3690_v54 = vadd.f32 %v5186_v47, %v6537_v11  ;;  %v3987_v32 = vmax.f32 %v3677_v25, %v3923_v31 }
 0x3dc   :  { %v3681_v18 = vpop.f32.mrf.mxu0 }
 0x3dd   :  { %v3985_v38 = vmax.f32 %v3669_v10, %v3921_v48  ;;  %v3682_v8 = vadd.f32 %v6537_v11, %v3681_v18  ;;  %v3926_v51 = vmul.f32 0.01, %v3690_v54 }
 0x3de   :  { %v5187_v20 = vpop.f32.mrf.mxu0 }
 0x3df   :  { %v4048_v9 = vmax.f32 %v3984_v52, %v3985_v38  ;;  %v3924_v0 = vmul.f32 0.01, %v3682_v8  ;;  %v3693_v58 = vadd.f32 %v5187_v20, %v6537_v11  ;;  %v3990_v6 = vmax.f32 %v3690_v54, %v3926_v51 }
 0x3e0   :  { %v3684_v53 = vpop.f32.mrf.mxu0 }
 0x3e1   :  { %v4049_v46 = vmax.f32 %v4048_v9, %v3986_v15  ;;  %v3685_v34 = vadd.f32 %v6537_v11, %v3684_v53  ;;  %v3988_v33 = vmax.f32 %v3682_v8, %v3924_v0  ;;  %v3927_v45 = vmul.f32 0.01, %v3693_v58 }
 0x3e2   :  { %v5190_v57 = vpop.f32.mrf.mxu0 }
 0x3e3   :  { %v4050_v1 = vmax.f32 %v4049_v46, %v3987_v32  ;;  %v3925_v56 = vmul.f32 0.01, %v3685_v34  ;;  %v3706_v39 = vadd.f32 %v5190_v57, %v6537_v11  ;;  %v3991_v2 = vmax.f32 %v3693_v58, %v3927_v45 }
 0x3e4   :  { %v3697_v60 = vpop.f32.mrf.mxu0 }
 0x3e5   :  { %v4051_v41 = vrot.slane %v4050_v1, 4  ;;  %v3989_v16 = vmax.f32 %v3685_v34, %v3925_v56  ;;  %v3698_v42 = vadd.f32 %v6537_v11, %v3697_v60  ;;  %v3930_v13 = vmul.f32 0.01, %v3706_v39 }
 0x3e6   :  { %v5191_v63 = vpop.f32.mrf.mxu0 }
 0x3e7   :  { %v4052_v19 = vmax.f32 %v4050_v1, %v4051_v41  ;;  %v4057_v37 = vmax.f32 %v3988_v33, %v3989_v16  ;;  %v3709_v27 = vadd.f32 %v5191_v63, %v6537_v11  ;;  %v3928_v49 = vmul.f32 0.01, %v3698_v42 }
 0x3e8   :  { %v3700_v59 = vpop.f32.mrf.mxu0  ;;  %v3994_v29 = vmax.f32 %v3706_v39, %v3930_v13 }
 0x3e9   :  { %v4058_v4 = vmax.f32 %v4057_v37, %v3990_v6  ;;  %v3701_v14 = vadd.f32 %v6537_v11, %v3700_v59  ;;  %v4053_v61 = vrot.slane %v4052_v19, 2  ;;  %v3931_v43 = vmul.f32 0.01, %v3709_v27 }
 0x3ea   :  { %v5194_v28 = vpop.f32.mrf.mxu0  ;;  %v3992_v5 = vmax.f32 %v3698_v42, %v3928_v49 }
 0x3eb   :  { %v4059_v26 = vmax.f32 %v4058_v4, %v3991_v2  ;;  %v3929_v40 = vmul.f32 0.01, %v3701_v14  ;;  %v4054_v22 = vmax.f32 %v4052_v19, %v4053_v61  ;;  %v3722_v44 = vadd.f32 %v5194_v28, %v6537_v11 }
 0x3ec   :  { %v3713_v7 = vpop.f32.mrf.mxu0  ;;  %v3995_v50 = vmax.f32 %v3709_v27, %v3931_v43 }
 0x3ed   :  { %v4060_v55 = vrot.slane %v4059_v26, 4  ;;  %v3993_v30 = vmax.f32 %v3701_v14, %v3929_v40  ;;  %v3714_v24 = vadd.f32 %v6537_v11, %v3713_v7  ;;  %v4055_v48 = vrot.slane %v4054_v22, 1 }
 0x3ee   :  { %v5195_v3 = vpop.f32.mrf.mxu0  ;;  %v3934_v18 = vmul.f32 0.01, %v3722_v44 }
 0x3ef   :  { %v4061_v36 = vmax.f32 %v4059_v26, %v4060_v55  ;;  %v4066_v35 = vmax.f32 %v3992_v5, %v3993_v30  ;;  %v3725_v62 = vadd.f32 %v5195_v3, %v6537_v11  ;;  %v3932_v47 = vmul.f32 0.01, %v3714_v24 }
 0x3f0   :  { %v3716_v23 = vpop.f32.mrf.mxu0  ;;  %v4056_v32 = vmax.f32 %v4054_v22, %v4055_v48  ;;  %v3998_v46 = vmax.f32 %v3722_v44, %v3934_v18 }
 0x3f1   :  { %v4062_v25 = vrot.slane %v4061_v36, 2  ;;  %v4067_v10 = vmax.f32 %v4066_v35, %v3994_v29  ;;  %v3717_v21 = vadd.f32 %v6537_v11, %v3716_v23  ;;  %v3935_v20 = vmul.f32 0.01, %v3725_v62 }
 0x3f2   :  { %v5198_v52 = vpop.f32.mrf.mxu0  ;;  %v3996_v0 = vmax.f32 %v3714_v24, %v3932_v47 }
 0x3f3   :  { %v4063_v31 = vmax.f32 %v4061_v36, %v4062_v25  ;;  %v4068_v38 = vmax.f32 %v4067_v10, %v3995_v50  ;;  %v3933_v8 = vmul.f32 0.01, %v3717_v21  ;;  %v3738_v56 = vadd.f32 %v5198_v52, %v6537_v11 }
 0x3f4   :  { %v3729_v15 = vpop.f32.mrf.mxu0  ;;  %v3999_v33 = vmax.f32 %v3725_v62, %v3935_v20 }
 0x3f5   :  { %v4064_v9 = vrot.slane %v4063_v31, 1  ;;  %v4069_v54 = vrot.slane %v4068_v38, 4  ;;  %v3997_v53 = vmax.f32 %v3717_v21, %v3933_v8  ;;  %v3730_v58 = vadd.f32 %v6537_v11, %v3729_v15 }
 0x3f6   :  { %v5199_v34 = vpop.f32.mrf.mxu0  ;;  %v3938_v27 = vmul.f32 0.01, %v3738_v56 }
 0x3f7   :  { %v4065_v57 = vmax.f32 %v4063_v31, %v4064_v9  ;;  %v4070_v1 = vmax.f32 %v4068_v38, %v4069_v54  ;;  %v4075_v51 = vmax.f32 %v3996_v0, %v3997_v53  ;;  %v3936_v60 = vmul.f32 0.01, %v3730_v58 }
 0x3f8   :  { %v3741_v41 = vadd.f32 %v5199_v34, %v6537_v11  ;;  %v3732_v45 = vpop.f32.mrf.mxu0  ;;  %v4002_v55 = vmax.f32 %v3738_v56, %v3938_v27 }
 0x3f9   :  { %v4071_v16 = vrot.slane %v4070_v1, 2  ;;  %v4076_v42 = vmax.f32 %v4075_v51, %v3998_v46  ;;  %v3733_v63 = vadd.f32 %v6537_v11, %v3732_v45  ;;  %v4247_v19 = vsel %vm4208_vm2, %v4065_v57, %v4056_v32 }
 0x3fa   :  { %v5202_v6 = vpop.f32.mrf.mxu0  ;;  %v3939_v2 = vmul.f32 0.01, %v3741_v41  ;;  %v4000_v61 = vmax.f32 %v3730_v58, %v3936_v60 }
 0x3fb   :  { %v4072_v37 = vmax.f32 %v4070_v1, %v4071_v16  ;;  %v4077_v39 = vmax.f32 %v4076_v42, %v3999_v33  ;;  %v3937_v59 = vmul.f32 0.01, %v3733_v63  ;;  %v3754_v26 = vadd.f32 %v5202_v6, %v6537_v11 }
 0x3fc   :  { %v3745_v4 = vpop.f32.mrf.mxu0  ;;  %v4003_v30 = vmax.f32 %v3741_v41, %v3939_v2 }
 0x3fd   :  { %v4073_v49 = vrot.slane %v4072_v37, 1  ;;  %v4078_v14 = vrot.slane %v4077_v39, 4  ;;  %v4001_v28 = vmax.f32 %v3733_v63, %v3937_v59  ;;  %v3746_v13 = vadd.f32 %v6537_v11, %v3745_v4 }
 0x3fe   :  { %v5203_v40 = vpop.f32.mrf.mxu0  ;;  %v3942_v50 = vmul.f32 0.01, %v3754_v26 }
 0x3ff   :  { %v4074_v43 = vmax.f32 %v4072_v37, %v4073_v49  ;;  %v4079_v7 = vmax.f32 %v4077_v39, %v4078_v14  ;;  %v4084_v5 = vmax.f32 %v4000_v61, %v4001_v28  ;;  %v3940_v22 = vmul.f32 0.01, %v3746_v13 }
 0x400   :  { %v3757_v44 = vadd.f32 %v5203_v40, %v6537_v11  ;;  %v3748_v24 = vpop.f32.mrf.mxu0  ;;  %v4006_v38 = vmax.f32 %v3754_v26, %v3942_v50 }
 0x401   :  { %v4080_v3 = vrot.slane %v4079_v7, 2  ;;  %v4085_v36 = vmax.f32 %v4084_v5, %v4002_v55  ;;  %v3749_v29 = vadd.f32 %v6537_v11, %v3748_v24  ;;  %v4248_v35 = vsel %vm4210_vm3, %v4074_v43, %v4247_v19 }
 0x402   :  { %v5206_v62 = vpop.f32.mrf.mxu0  ;;  %v3943_v47 = vmul.f32 0.01, %v3757_v44  ;;  %v4004_v52 = vmax.f32 %v3746_v13, %v3940_v22 }
 0x403   :  { %v4081_v23 = vmax.f32 %v4079_v7, %v4080_v3  ;;  %v4086_v25 = vmax.f32 %v4085_v36, %v4003_v30  ;;  %v3941_v10 = vmul.f32 0.01, %v3749_v29  ;;  %v3770_v0 = vadd.f32 %v5206_v62, %v6537_v11 }
 0x404   :  { %v3761_v21 = vpop.f32.mrf.mxu0  ;;  %v4007_v53 = vmax.f32 %v3757_v44, %v3943_v47 }
 0x405   :  { %v4082_v48 = vrot.slane %v4081_v23, 1  ;;  %v4087_v18 = vrot.slane %v4086_v25, 4  ;;  %v4005_v31 = vmax.f32 %v3749_v29, %v3941_v10  ;;  %v3762_v8 = vadd.f32 %v6537_v11, %v3761_v21 }
 0x406   :  { %v5207_v20 = vpop.f32.mrf.mxu0  ;;  %v3946_v41 = vmul.f32 0.01, %v3770_v0 }
 0x407   :  { %v4083_v15 = vmax.f32 %v4081_v23, %v4082_v48  ;;  %v4088_v9 = vmax.f32 %v4086_v25, %v4087_v18  ;;  %v4093_v54 = vmax.f32 %v4004_v52, %v4005_v31  ;;  %v3944_v32 = vmul.f32 0.01, %v3762_v8 }
 0x408   :  { %v3773_v46 = vadd.f32 %v5207_v20, %v6537_v11  ;;  %v3764_v58 = vpop.f32.mrf.mxu0  ;;  %v4010_v2 = vmax.f32 %v3770_v0, %v3946_v41 }
 0x409   :  { %v4089_v34 = vrot.slane %v4088_v9, 2  ;;  %v4094_v57 = vmax.f32 %v4093_v54, %v4006_v38  ;;  %v3765_v1 = vadd.f32 %v6537_v11, %v3764_v58  ;;  %v4249_v51 = vsel %vm4212_vm4, %v4083_v15, %v4248_v35 }
 0x40a   :  { %v5210_v56 = vpop.f32.mrf.mxu0  ;;  %v3947_v16 = vmul.f32 0.01, %v3773_v46  ;;  %v4008_v6 = vmax.f32 %v3762_v8, %v3944_v32 }
 0x40b   :  { %v4090_v33 = vmax.f32 %v4088_v9, %v4089_v34  ;;  %v4095_v60 = vmax.f32 %v4094_v57, %v4007_v53  ;;  %v3945_v45 = vmul.f32 0.01, %v3765_v1  ;;  %v3786_v49 = vadd.f32 %v5210_v56, %v6537_v11 }
 0x40c   :  { %v3777_v42 = vpop.f32.mrf.mxu0  ;;  %v4011_v14 = vmax.f32 %v3773_v46, %v3947_v16 }
 0x40d   :  { %v4091_v63 = vrot.slane %v4090_v33, 1  ;;  %v4096_v19 = vrot.slane %v4095_v60, 4  ;;  %v4009_v37 = vmax.f32 %v3765_v1, %v3945_v45  ;;  %v3778_v39 = vadd.f32 %v6537_v11, %v3777_v42 }
 0x40e   :  { %v5211_v27 = vpop.f32.mrf.mxu0  ;;  %v3950_v44 = vmul.f32 0.01, %v3786_v49 }
 0x40f   :  { %v4097_v59 = vmax.f32 %v4095_v60, %v4096_v19  ;;  %v4102_v4 = vmax.f32 %v4008_v6, %v4009_v37  ;;  %v3789_v61 = vadd.f32 %v5211_v27, %v6537_v11  ;;  %v4092_v26 = vmax.f32 %v4090_v33, %v4091_v63 }
 0x410   :  { %v3780_v28 = vpop.f32.mrf.mxu0  ;;  %v3948_v43 = vmul.f32 0.01, %v3778_v39  ;;  %v4014_v10 = vmax.f32 %v3786_v49, %v3950_v44 }
 0x411   :  { %v4098_v13 = vrot.slane %v4097_v59, 2  ;;  %v4103_v40 = vmax.f32 %v4102_v4, %v4010_v2  ;;  %v3781_v7 = vadd.f32 %v6537_v11, %v3780_v28  ;;  %v4250_v5 = vsel %vm4214_vm5, %v4092_v26, %v4249_v51 }
 0x412   :  { %v5214_v55 = vpop.f32.mrf.mxu0  ;;  %v3951_v3 = vmul.f32 0.01, %v3789_v61  ;;  %v4012_v35 = vmax.f32 %v3778_v39, %v3948_v43 }
 0x413   :  { %v4099_v30 = vmax.f32 %v4097_v59, %v4098_v13  ;;  %v4104_v22 = vmax.f32 %v4103_v40, %v4011_v14  ;;  %v3949_v24 = vmul.f32 0.01, %v3781_v7  ;;  %v6581_v6 = vadd.f32 %v5214_v55, %v6537_v11 }
 0x414   :  { %v3793_v36 = vpop.f32.mrf.mxu0  ;;  %v4015_v52 = vmax.f32 %v3789_v61, %v3951_v3 }
 0x415   :  { %v4105_v29 = vrot.slane %v4104_v22, 4  ;;  %v4013_v50 = vmax.f32 %v3781_v7, %v3949_v24  ;;  %v4100_v62 = vrot.slane %v4099_v30, 1  ;;  %v3794_v37 = vadd.f32 %v6537_v11, %v3793_v36 }
 0x416   :  { %v5215_v23 = vpop.f32.mrf.mxu0  ;;  %v6591_v14 = vmul.f32 0.01, %v6581_v6 }
 0x417   :  { %v4106_v25 = vmax.f32 %v4104_v22, %v4105_v29  ;;  %v4111_v47 = vmax.f32 %v4012_v35, %v4013_v50  ;;  %v4101_v48 = vmax.f32 %v4099_v30, %v4100_v62  ;;  %v6587_v2 = vadd.f32 %v5215_v23, %v6537_v11 }
 0x418   :  { %v3796_v21 = vpop.f32.mrf.mxu0  ;;  %v3952_v26 = vmul.f32 0.01, %v3794_v37  ;;  %v4018_v24 = vmax.f32 %v6581_v6, %v6591_v14 }
 0x419   :  { %v4107_v18 = vrot.slane %v4106_v25, 2  ;;  %v4112_v31 = vmax.f32 %v4111_v47, %v4014_v10  ;;  %v4251_v8 = vsel %vm4216_vm6, %v4101_v48, %v4250_v5  ;;  %v3797_v39 = vadd.f32 %v6537_v11, %v3796_v21 }
 0x41a   :  { %v5218_v38 = vpop.f32.mrf.mxu0  ;;  %v6598_v5 = vmul.f32 0.01, %v6587_v2  ;;  %v4016_v35 = vmax.f32 %v3794_v37, %v3952_v26 }
 0x41b   :  { %v4113_v20 = vmax.f32 %v4112_v31, %v4015_v52  ;;  %v4108_v15 = vmax.f32 %v4106_v25, %v4107_v18  ;;  %v3818_v4 = vadd.f32 %v5218_v38, %v6537_v11  ;;  %v3953_v13 = vmul.f32 0.01, %v3797_v39 }
 0x41c   :  { %v3809_v9 = vpop.f32.mrf.mxu0  ;;  %v4019_v18 = vmax.f32 %v6587_v2, %v6598_v5 }
 0x41d   :  { %v4114_v54 = vrot.slane %v4113_v20, 4  ;;  %v4109_v0 = vrot.slane %v4108_v15, 1  ;;  %v3810_v61 = vadd.f32 %v6537_v11, %v3809_v9  ;;  %v3958_v30 = vmul.f32 0.01, %v3818_v4 }
 0x41e   :  { %v5219_v53 = vpop.f32.mrf.mxu0  ;;  %v4017_v50 = vmax.f32 %v3797_v39, %v3953_v13 }
 0x41f   :  { %v4115_v32 = vmax.f32 %v4113_v20, %v4114_v54  ;;  %v4110_v58 = vmax.f32 %v4108_v15, %v4109_v0  ;;  %v3956_v3 = vmul.f32 0.01, %v3810_v61  ;;  %v4022_v52 = vmax.f32 %v3818_v4, %v3958_v30 }
 0x420   :  { %v3812_v46 = vpop.f32.mrf.mxu0  ;;  %v3821_v31 = vadd.f32 %v5219_v53, %v6537_v11  ;;  %v4120_v0 = vmax.f32 %v4016_v35, %v4017_v50 }
 0x421   :  { %v4116_v34 = vrot.slane %v4115_v32, 2  ;;  %v4252_v1 = vsel %vm4218_vm7, %v4110_v58, %v4251_v8  ;;  %v3813_v59 = vadd.f32 %v6537_v11, %v3812_v46  ;;  %v4020_v20 = vmax.f32 %v3810_v61, %v3956_v3 }
 0x422   :  { %v5222_v57 = vpop.f32.mrf.mxu0 }
 0x423   :  { %v4117_v51 = vmax.f32 %v4115_v32, %v4116_v34  ;;  %v3957_v7 = vmul.f32 0.01, %v3813_v59  ;;  %v3834_v36 = vadd.f32 %v5222_v57, %v6537_v11 }
 0x424   :  { %v3825_v56 = vpop.f32.mrf.mxu0 }
 0x425   :  { %v4118_v33 = vrot.slane %v4117_v51, 1  ;;  %v3826_v55 = vadd.f32 %v6537_v11, %v3825_v56  ;;  %v4021_v10 = vmax.f32 %v3813_v59, %v3957_v7  ;;  %v3962_v15 = vmul.f32 0.01, %v3834_v36 }
 0x426   :  { %v5223_v60 = vpop.f32.mrf.mxu0  ;;  %v4121_v7 = vmax.f32 %v4120_v0, %v4018_v24 }
 0x427   :  { %v4119_v45 = vmax.f32 %v4117_v51, %v4118_v33  ;;  %v3960_v47 = vmul.f32 0.01, %v3826_v55  ;;  %v4129_v57 = vmax.f32 %v4020_v20, %v4021_v10  ;;  %v3837_v51 = vadd.f32 %v5223_v60, %v6537_v11 }
 0x428   :  { %v3828_v41 = vpop.f32.mrf.mxu0  ;;  %v4026_v6 = vmax.f32 %v3834_v36, %v3962_v15 }
 0x429   :  { %v6578_v42 = vsel %vm4220_vm8, %v4119_v45, %v4252_v1  ;;  %v3829_v28 = vadd.f32 %v6537_v11, %v3828_v41  ;;  %v4024_v1 = vmax.f32 %v3826_v55, %v3960_v47  ;;  %v4130_v60 = vmax.f32 %v4129_v57, %v4022_v52 }
 0x42a   :  { %v5226_v16 = vpop.f32.mrf.mxu0  ;;  %v4122_v52 = vmax.f32 %v4121_v7, %v4019_v18 }
 0x42b   :  { %v3961_v29 = vmul.f32 0.01, %v3829_v28  ;;  %v3850_v21 = vadd.f32 %v5226_v16, %v6537_v11 }
 0x42c   :  { %v3841_v63 = vpop.f32.mrf.mxu0 }
 0x42d   :  { %v3842_v22 = vadd.f32 %v6537_v11, %v3841_v63  ;;  %v4025_v9 = vmax.f32 %v3829_v28, %v3961_v29  ;;  %v3966_v56 = vmul.f32 0.01, %v3850_v21  ;;  %v3959_v63 = vmul.f32 0.01, %v3821_v31 }
 0x42e   :  { %v5227_v19 = vpop.f32.mrf.mxu0  ;;  %v3963_v28 = vmul.f32 0.01, %v3837_v51 }
 0x42f   :  { %v3964_v38 = vmul.f32 0.01, %v3842_v22  ;;  %v3853_v53 = vadd.f32 %v5227_v19, %v6537_v11  ;;  %v4138_v37 = vmax.f32 %v4024_v1, %v4025_v9  ;;  %v4030_v26 = vmax.f32 %v3850_v21, %v3966_v56 }
 0x430   :  { %v3844_v27 = vpop.f32.mrf.mxu0  ;;  %v4023_v55 = vmax.f32 %v3821_v31, %v3959_v63 }
 0x431   :  { %v3845_v40 = vadd.f32 %v6537_v11, %v3844_v27  ;;  %v4028_v33 = vmax.f32 %v3842_v22, %v3964_v38  ;;  %v3967_v13 = vmul.f32 0.01, %v3853_v53  ;;  %v4139_v22 = vmax.f32 %v4138_v37, %v4026_v6 }
 0x432   :  { %v5230_v49 = vpop.f32.mrf.mxu0  ;;  %v4131_v35 = vmax.f32 %v4130_v60, %v4023_v55 }
 0x433   :  { %v3965_v62 = vmul.f32 0.01, %v3845_v40  ;;  %v3866_v46 = vadd.f32 %v5230_v49, %v6537_v11  ;;  %v4031_v10 = vmax.f32 %v3853_v53, %v3967_v13 }
 0x434   :  { %v3857_v43 = vpop.f32.mrf.mxu0 }
 0x435   :  { %v3858_v23 = vadd.f32 %v6537_v11, %v3857_v43  ;;  %v4029_v32 = vmax.f32 %v3845_v40, %v3965_v62  ;;  %v3970_v59 = vmul.f32 0.01, %v3866_v46 }
 0x436   :  { %v5231_v44 = vpop.f32.mrf.mxu0 }
 0x437   :  { %v3968_v58 = vmul.f32 0.01, %v3858_v23  ;;  %v4147_v27 = vmax.f32 %v4028_v33, %v4029_v32  ;;  %v3869_v4 = vadd.f32 %v5231_v44, %v6537_v11  ;;  %v4034_v36 = vmax.f32 %v3866_v46, %v3970_v59 }
 0x438   :  { %v3860_v25 = vpop.f32.mrf.mxu0  ;;  %v4123_v33 = vrot.slane %v4122_v52, 4 }
 0x439   :  { %v3861_v48 = vadd.f32 %v6537_v11, %v3860_v25  ;;  %v4032_v2 = vmax.f32 %v3858_v23, %v3968_v58  ;;  %v4148_v3 = vmax.f32 %v4147_v27, %v4030_v26  ;;  %v3971_v44 = vmul.f32 0.01, %v3869_v4 }
 0x43a   :  { %v5234_v8 = vpop.f32.mrf.mxu0  ;;  %v4027_v25 = vmax.f32 %v3837_v51, %v3963_v28 }
 0x43b   :  { %v3969_v54 = vmul.f32 0.01, %v3861_v48  ;;  %v3882_v39 = vadd.f32 %v5234_v8, %v6537_v11  ;;  %v4149_v20 = vmax.f32 %v4148_v3, %v4031_v10  ;;  %v4035_v15 = vmax.f32 %v3869_v4, %v3971_v44 }
 0x43c   :  { %v3873_v34 = vpop.f32.mrf.mxu0  ;;  %v4140_v8 = vmax.f32 %v4139_v22, %v4027_v25 }
 0x43d   :  { %v4033_v41 = vmax.f32 %v3861_v48, %v3969_v54  ;;  %v3874_v45 = vadd.f32 %v6537_v11, %v3873_v34  ;;  %v3974_v5 = vmul.f32 0.01, %v3882_v39  ;;  %v4132_v34 = vrot.slane %v4131_v35, 4 }
 0x43e   :  { %v5235_v16 = vpop.f32.mrf.mxu0  ;;  %v4141_v53 = vrot.slane %v4140_v8, 4 }
 0x43f   :  { %v3972_v14 = vmul.f32 0.01, %v3874_v45  ;;  %v3885_v61 = vadd.f32 %v5235_v16, %v6537_v11  ;;  %v4156_v40 = vmax.f32 %v4032_v2, %v4033_v41  ;;  %v4038_v24 = vmax.f32 %v3882_v39, %v3974_v5 }
 0x440   :  { %v3876_v49 = vpop.f32.mrf.mxu0  ;;  %v4150_v41 = vrot.slane %v4149_v20, 4  ;;  %v4133_v37 = vmax.f32 %v4131_v35, %v4132_v34 }
 0x441   :  { %v3877_v19 = vadd.f32 %v6537_v11, %v3876_v49  ;;  %v4036_v50 = vmax.f32 %v3874_v45, %v3972_v14  ;;  %v3975_v62 = vmul.f32 0.01, %v3885_v61  ;;  %v4157_v47 = vmax.f32 %v4156_v40, %v4034_v36 }
 0x442   :  { %v5238_v43 = vpop.f32.mrf.mxu0  ;;  %v4124_v14 = vmax.f32 %v4122_v52, %v4123_v33  ;;  %v4134_v55 = vrot.slane %v4133_v37, 2 }
 0x443   :  { %v3973_v30 = vmul.f32 0.01, %v3877_v19  ;;  %v3898_v38 = vadd.f32 %v5238_v43, %v6537_v11  ;;  %v4039_v0 = vmax.f32 %v3885_v61, %v3975_v62  ;;  %v4158_v57 = vmax.f32 %v4157_v47, %v4035_v15 }
 0x444   :  { %v3889_v29 = vpop.f32.mrf.mxu0  ;;  %v4142_v61 = vmax.f32 %v4140_v8, %v4141_v53  ;;  %v4125_v44 = vrot.slane %v4124_v14, 2  ;;  %v4135_v10 = vmax.f32 %v4133_v37, %v4134_v55 }
 0x445   :  { %v4037_v23 = vmax.f32 %v3877_v19, %v3973_v30  ;;  %v3890_v21 = vadd.f32 %v6537_v11, %v3889_v29  ;;  %v3978_v18 = vmul.f32 0.01, %v3898_v38  ;;  %v4159_v39 = vrot.slane %v4158_v57, 4 }
 0x446   :  { %v5239_v48 = vpop.f32.mrf.mxu0  ;;  %v4151_v19 = vmax.f32 %v4149_v20, %v4150_v41  ;;  %v4143_v29 = vrot.slane %v4142_v61, 2 }
 0x447   :  { %v4165_v31 = vmax.f32 %v4036_v50, %v4037_v23  ;;  %v3901_v9 = vadd.f32 %v5239_v48, %v6537_v11  ;;  %v3976_v46 = vmul.f32 0.01, %v3890_v21  ;;  %v4042_v4 = vmax.f32 %v3898_v38, %v3978_v18 }
 0x448   :  { %v3892_v54 = vpop.f32.mrf.mxu0  ;;  %v4160_v5 = vmax.f32 %v4158_v57, %v4159_v39  ;;  %v4152_v35 = vrot.slane %v4151_v19, 2 }
 0x449   :  { %v4166_v32 = vmax.f32 %v4165_v31, %v4038_v24  ;;  %v3893_v58 = vadd.f32 %v6537_v11, %v3892_v54  ;;  %v3979_v45 = vmul.f32 0.01, %v3901_v9  ;;  %v4040_v63 = vmax.f32 %v3890_v21, %v3976_v46 }
 0x44a   :  { %v5242_v1 = vpop.f32.mrf.mxu1  ;;  %v4161_v47 = vrot.slane %v4160_v5, 2  ;;  %v4144_v31 = vmax.f32 %v4142_v61, %v4143_v29  ;;  %v4153_v38 = vmax.f32 %v4151_v19, %v4152_v35  ;;  %v4136_v54 = vrot.slane %v4135_v10, 1 }
 0x44b   :  { %v4167_v51 = vmax.f32 %v4166_v32, %v4039_v0  ;;  %v3977_v56 = vmul.f32 0.01, %v3893_v58  ;;  %v3914_v60 = vadd.f32 %v5242_v1, %v6537_v11  ;;  %v4043_v28 = vmax.f32 %v3901_v9, %v3979_v45 }
 0x44c   :  { %v3905_v16 = vpop.f32.mrf.mxu1  ;;  %v4162_v9 = vmax.f32 %v4160_v5, %v4161_v47  ;;  %v4145_v46 = vrot.slane %v4144_v31, 1  ;;  %v4154_v57 = vrot.slane %v4153_v38, 1  ;;  %v4137_v18 = vmax.f32 %v4135_v10, %v4136_v54 }
 0x44d   :  { %v4041_v6 = vmax.f32 %v3893_v58, %v3977_v56  ;;  %v3906_v27 = vadd.f32 %v6537_v11, %v3905_v16  ;;  %v4168_v2 = vrot.slane %v4167_v51, 4  ;;  %v3982_v3 = vmul.f32 0.01, %v3914_v60 }
 0x44e   :  { %v5243_v59 = vpop.f32.mrf.mxu1  ;;  %v4146_v53 = vmax.f32 %v4144_v31, %v4145_v46  ;;  %v4155_v16 = vmax.f32 %v4153_v38, %v4154_v57 }
 0x44f   :  { %v4174_v49 = vmax.f32 %v4040_v63, %v4041_v6  ;;  %v3980_v40 = vmul.f32 0.01, %v3906_v27  ;;  %v3917_v43 = vadd.f32 %v5243_v59, %v6537_v11  ;;  %v4169_v30 = vmax.f32 %v4167_v51, %v4168_v2 }
 0x450   :  { %v3908_v26 = vpop.f32.mrf.mxu1  ;;  %v4046_v52 = vmax.f32 %v3914_v60, %v3982_v3  ;;  %v4163_v51 = vrot.slane %v4162_v9, 1 }
 0x451   :  { %v4175_v13 = vmax.f32 %v4174_v49, %v4042_v4  ;;  %v3909_v7 = vadd.f32 %v6537_v11, %v3908_v26  ;;  %v4044_v62 = vmax.f32 %v3906_v27, %v3980_v40  ;;  %v3983_v23 = vmul.f32 0.01, %v3917_v43 }
 0x452   :  { %v4170_v21 = vrot.slane %v4169_v30, 2  ;;  %v4126_v11 = vmax.f32 %v4124_v14, %v4125_v44  ;;  %v4164_v6 = vmax.f32 %v4162_v9, %v4163_v51 }
 0x453   :  { %v4176_v22 = vmax.f32 %v4175_v13, %v4043_v28  ;;  %v3981_v36 = vmul.f32 0.01, %v3909_v7  ;;  %v4047_v20 = vmax.f32 %v3917_v43, %v3983_v23 }
 0x454   :  { %v4171_v0 = vmax.f32 %v4169_v30, %v4170_v21  ;;  %v4127_v34 = vrot.slane %v4126_v11, 1 }
 0x455   :  { %v4177_v50 = vrot.slane %v4176_v22, 4  ;;  %v4045_v25 = vmax.f32 %v3909_v7, %v3981_v36 }
 0x456   :  { %v4172_v33 = vrot.slane %v4171_v0, 1  ;;  %v4128_v45 = vmax.f32 %v4126_v11, %v4127_v34 }
 0x457   :  { %v4178_v48 = vmax.f32 %v4176_v22, %v4177_v50  ;;  %v4183_v24 = vmax.f32 %v4044_v62, %v4045_v25 }
 0x458   :  { %v4173_v37 = vmax.f32 %v4171_v0, %v4172_v33  ;;  %v4254_v27 = vsel %vm4208_vm2, %v4137_v18, %v4128_v45 }
 0x459   :  { %v4179_v8 = vrot.slane %v4178_v48, 2  ;;  %v4184_v15 = vmax.f32 %v4183_v24, %v4046_v52  ;;  %v4255_v2 = vsel %vm4210_vm3, %v4146_v53, %v4254_v27 }
 0x45a   :  { %v4256_v49 = vsel %vm4212_vm4, %v4155_v16, %v4255_v2 }
 0x45b   :  { %v4185_v32 = vmax.f32 %v4184_v15, %v4047_v20  ;;  %v4180_v58 = vmax.f32 %v4178_v48, %v4179_v8  ;;  %v4257_v60 = vsel %vm4214_vm5, %v4164_v6, %v4256_v49 }
 0x45c   :  { %v4258_v61 = vsel %vm4216_vm6, %v4173_v37, %v4257_v60 }
 0x45d   :  { %v4186_v1 = vrot.slane %v4185_v32, 4  ;;  %v4181_v41 = vrot.slane %v4180_v58, 1 }
 0x45f   :  { %v4187_v56 = vmax.f32 %v4185_v32, %v4186_v1  ;;  %v4182_v59 = vmax.f32 %v4180_v58, %v4181_v41 }
 0x461   :  { %v4188_v63 = vrot.slane %v4187_v56, 2  ;;  %v4259_v19 = vsel %vm4218_vm7, %v4182_v59, %v4258_v61 }
 0x463   :  { %v4189_v39 = vmax.f32 %v4187_v56, %v4188_v63 }
 0x465   :  { %v4190_v4 = vrot.slane %v4189_v39, 1 }
 0x467   :  { %v4191_v14 = vmax.f32 %v4189_v39, %v4190_v4 }
 0x469   :  { %v4260_v28 = vsel %vm4220_vm8, %v4191_v14, %v4259_v19 }
 0x46a   :  { %v5253_v26 = vpack.i.bf16 %v4260_v28, %v6578_v42 }
 0x46c   :  { %5254 = vrot.lane.b32.xlu0 %v5253_v26, %s5351_s12 }
 0x4de   :  { %v5255_v13 = vpop.permute.xlu0 %5254 }
 0x4df   :  { %v5257_v40 = vunpack.i.h.bf16 %v5255_v13  ;;  %v5256_v43 = vunpack.i.l.bf16 %v5255_v13 }
 0x4e1   :  { %v4267_v7 = vsel %vm1991_vm1, %v6379_v12, %v5256_v43  ;;  %v4268_v55 = vsel %vm1991_vm1, %v6452_v17, %v5257_v40 }
 0x4e2   :  { %v4582_v5 = vpack.c.bf16 %v5256_v43, %v4267_v7  ;;  %v4583_v30 = vpack.c.bf16 %v5257_v40, %v4268_v55 }
 0x4e4   :  { %4284 = vst.msk [vmem:[%s6657_s13] sm:$0xff] %vm4283_vm11, %v4582_v5  ;;  %4285 = vst.msk [vmem:[%s6657_s13 + $0x8] sm:$0xff] %vm4283_vm11, %v4583_v30 }

// kernel: pointnetpp_forward.5
= control target key start
LH: loop header
LB: loop body
LE: loop exit
PB: predicated region body
PF: predicated region fallthrough
CT: control target
= control target key end

     0   :  { %v235_v28 = vlaneseq  ;;  %v1715_v36 = vmov 1966171168   ;;  %s2101_s0 = inlined_call_operand.vmem [shape: bf16[2,1536], index: 0, kind: input, shape index: {}]   ;;  %s2102_s1 = inlined_call_operand.vmem [shape: bf16[1536,64], index: 1, kind: input, shape index: {}]   ;;  %s2103_s2 = inlined_call_operand.vmem [shape: f32[1,64], index: 2, kind: input, shape index: {}]   ;;  %s2104_s3 = inlined_call_operand.vmem [shape: bf16[64,32], index: 3, kind: input, shape index: {}]   ;;  %s2105_s4 = inlined_call_operand.vmem [shape: f32[1,32], index: 4, kind: input, shape index: {}]   ;;  %s2106_s5 = inlined_call_operand.vmem [shape: bf16[32,10], index: 5, kind: input, shape index: {}]   ;;  %s2107_s6 = inlined_call_operand.vmem [shape: f32[1,10], index: 6, kind: input, shape index: {}]   ;;  %s2108_s7 = inlined_call_operand.hbm [shape: f32[2,10], index: 7, kind: output, shape index: {}]  }
   0x1   :  { %v1586_v0 = vld [vmem:[%s2102_s1 + $0x78] sm:$0xff]   ;;  %v1590_v4 = vld [vmem:[%s2102_s1 + $0x70] sm:$0xff]   ;;  %v1594_v8 = vld [vmem:[%s2102_s1 + $0x68] sm:$0xff]   ;;  %v233_v37 = vunpack.c.l.s4 %v1715_v36 }
   0x2   :  { %v1587_v1 = vld [vmem:[%s2102_s1 + $0xf8] sm:$0xff]   ;;  %1422 = vmatprep.subr.bf16.mxu0 %v1586_v0  ;;  %v1591_v5 = vld [vmem:[%s2102_s1 + $0xf0] sm:$0xff]   ;;  %v1595_v9 = vld [vmem:[%s2102_s1 + $0xe8] sm:$0xff]   ;;  %v236_v33 = vshrl.u32 %v235_v28, 7 }
   0x3   :  { %v1588_v2 = vld [vmem:[%s2102_s1 + $0x38] sm:$0xff]   ;;  %1444 = vmatprep.subr.bf16.mxu1 %v1587_v1  ;;  %v1592_v6 = vld [vmem:[%s2102_s1 + $0x30] sm:$0xff]   ;;  %v1596_v10 = vld [vmem:[%s2102_s1 + $0x28] sm:$0xff]   ;;  %v234_v40 = vunpack.c.0.s8 %v233_v37 }
   0x4   :  { %v1589_v3 = vld [vmem:[%s2102_s1 + $0xb8] sm:$0xff]   ;;  %1423 = vmatpush3.bf16.msra.mxu0 %v1588_v2  ;;  %v1593_v7 = vld [vmem:[%s2102_s1 + $0xb0] sm:$0xff]   ;;  %v1597_v11 = vld [vmem:[%s2102_s1 + $0xa8] sm:$0xff]  }
   0x5   :  { %1445 = vmatpush3.bf16.msra.mxu1 %v1589_v3  ;;  %1424 = vmatprep.subr.bf16.mxu0 %v1590_v4  ;;  %v1598_v12 = vld [vmem:[%s2102_s1 + $0x60] sm:$0xff]   ;;  %v1602_v16 = vld [vmem:[%s2102_s1 + $0x58] sm:$0xff]   ;;  %v1606_v20 = vld [vmem:[%s2102_s1 + $0x50] sm:$0xff]   ;;  %v1864_v41 = vsub.s32 %v234_v40, %v236_v33 }
   0x6   :  { %1446 = vmatprep.subr.bf16.mxu1 %v1591_v5  ;;  %v1599_v13 = vld [vmem:[%s2102_s1 + $0xe0] sm:$0xff]   ;;  %v1603_v17 = vld [vmem:[%s2102_s1 + $0xd8] sm:$0xff]   ;;  %v1607_v21 = vld [vmem:[%s2102_s1 + $0xd0] sm:$0xff]  }
   0x7   :  { %v1600_v14 = vld [vmem:[%s2102_s1 + $0x20] sm:$0xff]   ;;  %v1604_v18 = vld [vmem:[%s2102_s1 + $0x18] sm:$0xff]   ;;  %v1608_v22 = vld [vmem:[%s2102_s1 + $0x10] sm:$0xff]  }
   0x8   :  { %1425 = vmatpush3.bf16.msra.mxu0 %v1592_v6  ;;  %v1601_v15 = vld [vmem:[%s2102_s1 + $0xa0] sm:$0xff]   ;;  %v1605_v19 = vld [vmem:[%s2102_s1 + $0x98] sm:$0xff]   ;;  %v1609_v23 = vld [vmem:[%s2102_s1 + $0x90] sm:$0xff]  }
   0x9   :  { %1447 = vmatpush3.bf16.msra.mxu1 %v1593_v7  ;;  %1426 = vmatprep.subr.bf16.mxu0 %v1594_v8  ;;  %v1610_v24 = vld [vmem:[%s2102_s1 + $0x48] sm:$0xff]   ;;  %v1614_v29 = vld [vmem:[%s2102_s1 + $0x40] sm:$0xff]   ;;  %v1619_v35 = vld [vmem:[%s2102_s1 + $0x178] sm:$0xff]  }
   0xa   :  { %1448 = vmatprep.subr.bf16.mxu1 %v1595_v9  ;;  %v1611_v25 = vld [vmem:[%s2102_s1 + $0xc8] sm:$0xff]   ;;  %v1615_v30 = vld [vmem:[%s2102_s1 + $0xc0] sm:$0xff]   ;;  %v1620_v38 = vld [vmem:[%s2102_s1 + $0x1f8] sm:$0xff]  }
   0xb   :  { %v1612_v26 = vld [vmem:[%s2102_s1 + $0x8] sm:$0xff]   ;;  %v1616_v31 = vld [vmem:[%s2102_s1] sm:$0xff]   ;;  %v1621_v47 = vld [vmem:[%s2102_s1 + $0x138] sm:$0xff]  }
   0xc   :  { %1427 = vmatpush3.bf16.msra.mxu0 %v1596_v10  ;;  %v1613_v27 = vld [vmem:[%s2102_s1 + $0x88] sm:$0xff]   ;;  %v1617_v32 = vld [vmem:[%s2102_s1 + $0x80] sm:$0xff]   ;;  %v1622_v49 = vld [vmem:[%s2102_s1 + $0x1b8] sm:$0xff]  }
   0xd   :  { %1449 = vmatpush3.bf16.msra.mxu1 %v1597_v11  ;;  %1428 = vmatprep.subr.bf16.mxu0 %v1598_v12  ;;  %v28_v34 = vld [vmem:[%s2101_s0] sm:$0xff]  ;;  %v1623_v52 = vld [vmem:[%s2102_s1 + $0x170] sm:$0xff]   ;;  %v1627_v58 = vld [vmem:[%s2102_s1 + $0x168] sm:$0xff]  }
   0xe   :  { %1450 = vmatprep.subr.bf16.mxu1 %v1599_v13  ;;  %v231_v39 = vcombine.high %v28_v34, %v28_v34  ;;  %v238_v42 = vrot.slane %v28_v34, %v1864_v41  ;;  %v1624_v54 = vld [vmem:[%s2102_s1 + $0x1f0] sm:$0xff]   ;;  %v1628_v59 = vld [vmem:[%s2102_s1 + $0x1e8] sm:$0xff]   ;;  %v1631_v62 = vld [vmem:[%s2102_s1 + $0x160] sm:$0xff]  }
   0xf   :  { %v1625_v55 = vld [vmem:[%s2102_s1 + $0x130] sm:$0xff]   ;;  %v1629_v60 = vld [vmem:[%s2102_s1 + $0x128] sm:$0xff]   ;;  %v1632_v63 = vld [vmem:[%s2102_s1 + $0x1e0] sm:$0xff]  }
  0x10   :  { %1429 = vmatpush3.bf16.msra.mxu0 %v1600_v14  ;;  %v1868_v43 = vrot.slane %v231_v39, %v1864_v41  ;;  %v246_v44 = vcombine.high %v238_v42, %v238_v42  ;;  %v254_v45 = vrot.slane %v238_v42, %v1864_v41  ;;  %v1626_v57 = vld [vmem:[%s2102_s1 + $0x1b0] sm:$0xff]   ;;  %v1630_v61 = vld [vmem:[%s2102_s1 + $0x1a8] sm:$0xff]   ;;  %v1633_v0 = vld [vmem:[%s2102_s1 + $0x120] sm:$0xff]  }
  0x11   :  { %1451 = vmatpush3.bf16.msra.mxu1 %v1601_v15  ;;  %1430 = vmatprep.subr.bf16.mxu0 %v1602_v16  ;;  %v1634_v1 = vld [vmem:[%s2102_s1 + $0x1a0] sm:$0xff]   ;;  %v1635_v2 = vld [vmem:[%s2102_s1 + $0x158] sm:$0xff]   ;;  %v1639_v6 = vld [vmem:[%s2102_s1 + $0x150] sm:$0xff]  }
  0x12   :  { %1452 = vmatprep.subr.bf16.mxu1 %v1603_v17  ;;  %v247_v46 = vcombine.high %v1868_v43, %v1868_v43  ;;  %v268_v48 = vrot.slane %v246_v44, %v1864_v41  ;;  %v276_v51 = vcombine.high %v254_v45, %v254_v45  ;;  %v1636_v3 = vld [vmem:[%s2102_s1 + $0x1d8] sm:$0xff]   ;;  %v1640_v7 = vld [vmem:[%s2102_s1 + $0x1d0] sm:$0xff]   ;;  %v1643_v10 = vld [vmem:[%s2102_s1 + $0x148] sm:$0xff]  }
  0x13   :  { %v1637_v4 = vld [vmem:[%s2102_s1 + $0x118] sm:$0xff]   ;;  %v1641_v8 = vld [vmem:[%s2102_s1 + $0x110] sm:$0xff]   ;;  %v1644_v11 = vld [vmem:[%s2102_s1 + $0x1c8] sm:$0xff]  }
  0x14   :  { %1431 = vmatpush3.bf16.msra.mxu0 %v1604_v18  ;;  %v275_v50 = vrot.slane %v247_v46, %v1864_v41  ;;  %924 = vmatprep.mubr.bf16.mxu0 %v268_v48  ;;  %v278_v53 = vcombine.high %v268_v48, %v268_v48  ;;  %v1638_v5 = vld [vmem:[%s2102_s1 + $0x198] sm:$0xff]   ;;  %v1642_v9 = vld [vmem:[%s2102_s1 + $0x190] sm:$0xff]   ;;  %v1645_v12 = vld [vmem:[%s2102_s1 + $0x108] sm:$0xff]   ;;  %v261_v18 = vrot.slane %v1868_v43, %v1864_v41 }
  0x15   :  { %1453 = vmatpush3.bf16.msra.mxu1 %v1605_v19  ;;  %1432 = vmatprep.subr.bf16.mxu0 %v1606_v20  ;;  %v1646_v13 = vld [vmem:[%s2102_s1 + $0x188] sm:$0xff]   ;;  %v1647_v14 = vld [vmem:[%s2102_s1 + $0x140] sm:$0xff]   ;;  %v1651_v19 = vld [vmem:[%s2102_s1 + $0x278] sm:$0xff]  }
  0x16   :  { %1454 = vmatprep.subr.bf16.mxu1 %v1607_v21  ;;  %v279_v56 = vcombine.high %v275_v50, %v275_v50  ;;  %964 = vmatprep.mubr.bf16.mxu1 %v278_v53  ;;  %v1648_v15 = vld [vmem:[%s2102_s1 + $0x1c0] sm:$0xff]   ;;  %v1652_v20 = vld [vmem:[%s2102_s1 + $0x2f8] sm:$0xff]   ;;  %v1659_v28 = vld [vmem:[%s2102_s1 + $0x268] sm:$0xff]  }
  0x17   :  { %v1649_v16 = vld [vmem:[%s2102_s1 + $0x100] sm:$0xff]   ;;  %v1653_v21 = vld [vmem:[%s2102_s1 + $0x238] sm:$0xff]   ;;  %v1671_v40 = vld [vmem:[%s2102_s1 + $0x250] sm:$0xff]  }
  0x18   :  { %1433 = vmatpush3.bf16.msra.mxu0 %v1608_v22  ;;  %v1650_v17 = vld [vmem:[%s2102_s1 + $0x180] sm:$0xff]   ;;  %v1654_v22 = vld [vmem:[%s2102_s1 + $0x2b8] sm:$0xff]   ;;  %v1672_v42 = vld [vmem:[%s2102_s1 + $0x2d0] sm:$0xff]  }
  0x19   :  { %1455 = vmatpush3.bf16.msra.mxu1 %v1609_v23  ;;  %1434 = vmatprep.subr.bf16.mxu0 %v1610_v24  ;;  %v277_v23 = vcombine.high %v261_v18, %v261_v18  ;;  %v1655_v24 = vld [vmem:[%s2102_s1 + $0x270] sm:$0xff]   ;;  %v1664_v33 = vld [vmem:[%s2102_s1 + $0x2e0] sm:$0xff]   ;;  %v1667_v36 = vld [vmem:[%s2102_s1 + $0x258] sm:$0xff]  }
  0x1a   :  { %1456 = vmatprep.subr.bf16.mxu1 %v1611_v25  ;;  %v1656_v25 = vld [vmem:[%s2102_s1 + $0x2f0] sm:$0xff]   ;;  %v1665_v34 = vld [vmem:[%s2102_s1 + $0x220] sm:$0xff]   ;;  %v1668_v37 = vld [vmem:[%s2102_s1 + $0x2d8] sm:$0xff]  }
  0x1b   :  { %v1670_v39 = vld [vmem:[%s2102_s1 + $0x298] sm:$0xff]   ;;  %v1673_v43 = vld [vmem:[%s2102_s1 + $0x210] sm:$0xff]   ;;  %v1676_v46 = vld [vmem:[%s2102_s1 + $0x2c8] sm:$0xff]  }
  0x1c   :  { %1435 = vmatpush3.bf16.msra.mxu0 %v1612_v26  ;;  %v1657_v26 = vld [vmem:[%s2102_s1 + $0x230] sm:$0xff]   ;;  %v1677_v48 = vld [vmem:[%s2102_s1 + $0x208] sm:$0xff]  }
  0x1d   :  { %1457 = vmatpush3.bf16.msra.mxu1 %v1613_v27  ;;  %1436 = vmatprep.subr.bf16.mxu0 %v1614_v29  ;;  %v1658_v27 = vld [vmem:[%s2102_s1 + $0x2b0] sm:$0xff]   ;;  %v1660_v29 = vld [vmem:[%s2102_s1 + $0x2e8] sm:$0xff]  }
  0x1e   :  { %1458 = vmatprep.subr.bf16.mxu1 %v1615_v30  ;;  %v1661_v30 = vld [vmem:[%s2102_s1 + $0x228] sm:$0xff]   ;;  %v1674_v44 = vld [vmem:[%s2102_s1 + $0x290] sm:$0xff]  }
  0x20   :  { %1437 = vmatpush3.bf16.msra.mxu0 %v1616_v31  ;;  %v1662_v31 = vld [vmem:[%s2102_s1 + $0x2a8] sm:$0xff]  }
  0x21   :  { %1459 = vmatpush3.bf16.msra.mxu1 %v1617_v32  ;;  %1466 = vmatprep.subr.bf16.mxu0 %v1619_v35  ;;  %v1663_v32 = vld [vmem:[%s2102_s1 + $0x260] sm:$0xff]  }
  0x22   :  { %1488 = vmatprep.subr.bf16.mxu1 %v1620_v38  ;;  %v1666_v35 = vld [vmem:[%s2102_s1 + $0x2a0] sm:$0xff]   ;;  %v1669_v38 = vld [vmem:[%s2102_s1 + $0x218] sm:$0xff]  }
  0x23   :  { %925 = vmatmul.mubr.bf16.vlgmr.msra.gmra.mxu0 %v254_v45  ;;  %v1675_v45 = vld [vmem:[%s2102_s1 + $0x248] sm:$0xff]  }
  0x24   :  { %1467 = vmatpush3.bf16.msra.mxu0 %v1621_v47  ;;  %965 = vmatmul.mubr.bf16.vlgmr.msra.gmra.mxu1 %v276_v51  ;;  %v1315_v47 = vld.sshfl [vmem:[%s2101_s0 + $0x8] sm:$0x33 pattern:$0x75316420] }
  0x25   :  { %1468 = vmatprep.subr.bf16.mxu0 %v1623_v52  ;;  %1489 = vmatpush3.bf16.msra.mxu1 %v1622_v49  ;;  %v287_v49 = vcombine.high %v1315_v47, %v1315_v47  ;;  %v1678_v52 = vld [vmem:[%s2102_s1 + $0x288] sm:$0xff]  }
  0x26   :  { %1004 = vmatprep.mubr.bf16.mxu0 %v275_v50  ;;  %1490 = vmatprep.subr.bf16.mxu1 %v1624_v54  ;;  %v1679_v50 = vld [vmem:[%s2102_s1 + $0x240] sm:$0xff]  }
  0x27   :  { %1044 = vmatprep.mubr.bf16.mxu1 %v279_v56  ;;  %v301_v51 = vrot.slane %v287_v49, %v1864_v41 }
  0x28   :  { %1469 = vmatpush3.bf16.msra.mxu0 %v1625_v55 }
  0x29   :  { %1470 = vmatprep.subr.bf16.mxu0 %v1627_v58  ;;  %1491 = vmatpush3.bf16.msra.mxu1 %v1626_v57  ;;  %v303_v53 = vcombine.high %v301_v51, %v301_v51 }
  0x2a   :  { %1492 = vmatprep.subr.bf16.mxu1 %v1628_v59 }
  0x2c   :  { %1471 = vmatpush3.bf16.msra.mxu0 %v1629_v60 }
  0x2d   :  { %1472 = vmatprep.subr.bf16.mxu0 %v1631_v62  ;;  %1493 = vmatpush3.bf16.msra.mxu1 %v1630_v61 }
  0x2e   :  { %1494 = vmatprep.subr.bf16.mxu1 %v1632_v63 }
  0x30   :  { %1473 = vmatpush3.bf16.msra.mxu0 %v1633_v0 }
  0x31   :  { %1474 = vmatprep.subr.bf16.mxu0 %v1635_v2  ;;  %1495 = vmatpush3.bf16.msra.mxu1 %v1634_v1 }
  0x32   :  { %1496 = vmatprep.subr.bf16.mxu1 %v1636_v3 }
  0x34   :  { %1475 = vmatpush3.bf16.msra.mxu0 %v1637_v4 }
  0x35   :  { %1476 = vmatprep.subr.bf16.mxu0 %v1639_v6  ;;  %1497 = vmatpush3.bf16.msra.mxu1 %v1638_v5 }
  0x36   :  { %1498 = vmatprep.subr.bf16.mxu1 %v1640_v7 }
  0x38   :  { %1477 = vmatpush3.bf16.msra.mxu0 %v1641_v8 }
  0x39   :  { %1478 = vmatprep.subr.bf16.mxu0 %v1643_v10  ;;  %1499 = vmatpush3.bf16.msra.mxu1 %v1642_v9 }
  0x3a   :  { %1500 = vmatprep.subr.bf16.mxu1 %v1644_v11 }
  0x3c   :  { %1479 = vmatpush3.bf16.msra.mxu0 %v1645_v12 }
  0x3d   :  { %1480 = vmatprep.subr.bf16.mxu0 %v1647_v14  ;;  %1501 = vmatpush3.bf16.msra.mxu1 %v1646_v13 }
  0x3e   :  { %1502 = vmatprep.subr.bf16.mxu1 %v1648_v15 }
  0x40   :  { %1481 = vmatpush3.bf16.msra.mxu0 %v1649_v16 }
  0x41   :  { %1510 = vmatprep.subr.bf16.mxu0 %v1651_v19  ;;  %1503 = vmatpush3.bf16.msra.mxu1 %v1650_v17 }
  0x42   :  { %1532 = vmatprep.subr.bf16.mxu1 %v1652_v20 }
  0x43   :  { %1005 = vmatmul.mubr.bf16.vlgmr.msra.gmra.mxu0 %v261_v18 }
  0x44   :  { %1511 = vmatpush3.bf16.msra.mxu0 %v1653_v21  ;;  %1045 = vmatmul.mubr.bf16.vlgmr.msra.gmra.mxu1 %v277_v23 }
  0x45   :  { %1512 = vmatprep.subr.bf16.mxu0 %v1655_v24  ;;  %1533 = vmatpush3.bf16.msra.mxu1 %v1654_v22 }
  0x46   :  { %1534 = vmatprep.subr.bf16.mxu1 %v1656_v25  ;;  %1084 = vmatprep.mubr.bf16.mxu0 %v301_v51 }
  0x48   :  { %1513 = vmatpush3.bf16.msra.mxu0 %v1657_v26 }
  0x49   :  { %1514 = vmatprep.subr.bf16.mxu0 %v1659_v28  ;;  %1535 = vmatpush3.bf16.msra.mxu1 %v1658_v27 }
  0x4a   :  { %1536 = vmatprep.subr.bf16.mxu1 %v1660_v29 }
  0x4c   :  { %1515 = vmatpush3.bf16.msra.mxu0 %v1661_v30 }
  0x4d   :  { %1516 = vmatprep.subr.bf16.mxu0 %v1663_v32  ;;  %1537 = vmatpush3.bf16.msra.mxu1 %v1662_v31 }
  0x4e   :  { %1538 = vmatprep.subr.bf16.mxu1 %v1664_v33 }
  0x50   :  { %1517 = vmatpush3.bf16.msra.mxu0 %v1665_v34 }
  0x51   :  { %1518 = vmatprep.subr.bf16.mxu0 %v1667_v36  ;;  %1539 = vmatpush3.bf16.msra.mxu1 %v1666_v35 }
  0x52   :  { %1540 = vmatprep.subr.bf16.mxu1 %v1668_v37 }
  0x54   :  { %1519 = vmatpush3.bf16.msra.mxu0 %v1669_v38 }
  0x55   :  { %1520 = vmatprep.subr.bf16.mxu0 %v1671_v40  ;;  %1541 = vmatpush3.bf16.msra.mxu1 %v1670_v39 }
  0x56   :  { %1542 = vmatprep.subr.bf16.mxu1 %v1672_v42 }
  0x58   :  { %1521 = vmatpush3.bf16.msra.mxu0 %v1673_v43 }
  0x59   :  { %1522 = vmatprep.subr.bf16.mxu0 %v1675_v45  ;;  %1543 = vmatpush3.bf16.msra.mxu1 %v1674_v44 }
  0x5a   :  { %12 = vsyncpa [#allocation3], 0  ;;  %1544 = vmatprep.subr.bf16.mxu1 %v1676_v46  ;;  %v1680_v54 = vld [vmem:[%s2102_s1 + $0x2c0] sm:$0xff]   ;;  %1124 = vmatprep.mubr.bf16.mxu1 %v303_v53  ;;  %v294_v56 = vrot.slane %v1315_v47, %v1864_v41  ;;  %v1683_v59 = vld [vmem:[%s2104_s3 + $0x18] sm:$0xff]   ;;  %v1716_v60 = vmov 0.0   ;;  %vm1717_vm0 = vmmov 0  }
  0x5b   :  { %v1681_v55 = vld [vmem:[%s2102_s1 + $0x200] sm:$0xff]   ;;  %v1684_v41 = vld [vmem:[%s2104_s3 + $0x10] sm:$0xff]   ;;  %v1685_v61 = vld [vmem:[%s2104_s3 + $0x8] sm:$0xff]   ;;  %vm1173_vm1 = vcmask 523264   ;;  %vm1242_vm2 = vcmask 261120   ;;  %vm1286_vm3 = vcmask 74752  }
  0x5c   :  { %1523 = vmatpush3.bf16.msra.mxu0 %v1677_v48  ;;  %v1682_v57 = vld [vmem:[%s2102_s1 + $0x280] sm:$0xff]   ;;  %v302_v58 = vcombine.high %v294_v56, %v294_v56  ;;  %v1687_v63 = vld [vmem:[%s2106_s5 + $0x8] sm:$0xff]  }
  0x5d   :  { %1524 = vmatprep.subr.bf16.mxu0 %v1679_v50  ;;  %1545 = vmatpush3.bf16.msra.mxu1 %v1678_v52  ;;  %v1686_v62 = vld [vmem:[%s2104_s3] sm:$0xff]  }
  0x5e   :  { %1546 = vmatprep.subr.bf16.mxu1 %v1680_v54  ;;  %v1314_v17 = vld [vmem:[%s2103_s2] ss:$0 sm:$0xff] }
  0x5f   :  { %v1688_v39 = vld [vmem:[%s2106_s5] sm:$0xff]  }
  0x60   :  { %1525 = vmatpush3.bf16.msra.mxu0 %v1681_v55  ;;  %v1412_v40 = vld [vmem:[%s2105_s4] ss:$0 sm:$0xff]  ;;  %s1718_s4 = smov [#allocation2]  }
  0x61   :  { %1547 = vmatpush3.bf16.msra.mxu1 %v1682_v57  ;;  %1562 = vmatprep.subr.bf16.mxu0 %v1716_v60  ;;  %v1418_v49 = vld [vmem:[%s2107_s6] ss:$0 sm:$0xff]  ;;  %s1306_s5 = sshll.u32 %s1718_s4, 4  ;;  %s1307_s5 = int_to_ptr.vmem [resolvable:$true] %s1306_s5 }
  0x62   :  { %1574 = vmatprep.subr.bf16.mxu1 %v1716_v60  ;;  %s1693_s6 = scalar_lea.vmem %s1307_s5, 32  ;;  %p1698_p1 = scmp.lt.s32.totalorder %s1307_s5, %s1307_s5 }
  0x63   :  { %1085 = vmatmul.mubr.bf16.vlgmr.msra.gmra.mxu0 %v294_v56  ;;  %p1694_p0 = scmp.ne.s32.totalorder %s1307_s5, %s1693_s6  ;;  %p1699_p2 = scmp.lt.s32.totalorder %s1693_s6, %s1693_s6 }
  0x64   :  { %1125 = vmatmul.mubr.bf16.vlgmr.msra.gmra.mxu1 %v302_v58  ;;  %1563 = vmatpush3.bf16.msra.mxu0 %v1683_v59 }
  0x65   :  { %1564 = vmatprep.subr.bf16.mxu0 %v1716_v60  ;;  %1570 = vmatprep.mubr.msk.bf16.mxu0 %vm1717_vm0, %v1716_v60  ;;  %p1700_p3 = por %p1699_p2, %p1698_p1 }
  0x66   :  { %1578 = vmatprep.mubr.msk.bf16.mxu1 %vm1717_vm0, %v1716_v60  ;;  %1575 = vmatpush3.bf16.msra.mxu1 %v1687_v63 }
  0x67   :  { %1576 = vmatprep.subr.bf16.mxu1 %v1716_v60  ;;  %p1701_p4 = pnand %p1700_p3, %p1694_p0 }
  0x68   :  { %1565 = vmatpush3.bf16.msra.mxu0 %v1684_v41 }
  0x69   :  { %1566 = vmatprep.subr.bf16.mxu0 %v1716_v60 }
  0x6a   :  { %1577 = vmatpush3.bf16.msra.mxu1 %v1688_v39 }
  0x6c   :  { %1567 = vmatpush3.bf16.msra.mxu0 %v1685_v61 }
  0x6d   :  { %1568 = vmatprep.subr.bf16.mxu0 %v1716_v60 }
  0x70   :  { %1569 = vmatpush3.bf16.msra.mxu0 %v1686_v62 }
  0xe3   :  { %v1438_v0 = vpop.f32.mrf.mxu0 }
  0xe4   :  { %v1460_v1 = vpop.f32.mrf.mxu1 }
  0xe5   :  { %v1439_v2 = vpop.f32.mrf.mxu0 }
  0xe6   :  { %v1461_v3 = vpop.f32.mrf.mxu1  ;;  %v1440_v16 = vadd.f32 %v1439_v2, %v1438_v0 }
  0xe7   :  { %v1441_v4 = vpop.f32.mrf.mxu0  ;;  %v1462_v19 = vadd.f32 %v1461_v3, %v1460_v1 }
  0xe8   :  { %v1463_v5 = vpop.f32.mrf.mxu1  ;;  %v927_v18 = vadd.f32 %v1440_v16, %v1314_v17 }
  0xe9   :  { %v1442_v6 = vpop.f32.mrf.mxu0 }
  0xea   :  { %v1464_v7 = vpop.f32.mrf.mxu1  ;;  %v967_v21 = vadd.f32 %v1462_v19, %v927_v18 }
 0x103   :  { %v1482_v8 = vpop.f32.mrf.mxu0 }
 0x104   :  { %v1504_v9 = vpop.f32.mrf.mxu1 }
 0x105   :  { %v1483_v10 = vpop.f32.mrf.mxu0 }
 0x106   :  { %v1505_v11 = vpop.f32.mrf.mxu1  ;;  %v1484_v20 = vadd.f32 %v1483_v10, %v1482_v8 }
 0x107   :  { %v1485_v12 = vpop.f32.mrf.mxu0  ;;  %v1506_v23 = vadd.f32 %v1505_v11, %v1504_v9 }
 0x108   :  { %v1507_v13 = vpop.f32.mrf.mxu1  ;;  %v1007_v22 = vadd.f32 %v1484_v20, %v967_v21 }
 0x109   :  { %v1486_v14 = vpop.f32.mrf.mxu0 }
 0x10a   :  { %v1508_v15 = vpop.f32.mrf.mxu1  ;;  %v1047_v27 = vadd.f32 %v1506_v23, %v1007_v22 }
 0x123   :  { %v1526_v24 = vpop.f32.mrf.mxu0 }
 0x124   :  { %v1548_v25 = vpop.f32.mrf.mxu1 }
 0x125   :  { %v1527_v26 = vpop.f32.mrf.mxu0 }
 0x126   :  { %v1528_v28 = vadd.f32 %v1527_v26, %v1526_v24  ;;  %v1549_v29 = vpop.f32.mrf.mxu1 }
 0x127   :  { %v1529_v30 = vpop.f32.mrf.mxu0  ;;  %v1550_v32 = vadd.f32 %v1549_v29, %v1548_v25 }
 0x128   :  { %v1087_v31 = vadd.f32 %v1528_v28, %v1047_v27  ;;  %v1551_v33 = vpop.f32.mrf.mxu1 }
 0x129   :  { %v1530_v34 = vpop.f32.mrf.mxu0 }
 0x12a   :  { %v1127_v35 = vadd.f32 %v1550_v32, %v1087_v31  ;;  %v1552_v36 = vpop.f32.mrf.mxu1 }
 0x12c   :  { %v1132_v37 = vmax.f32 %v1127_v35, 0.0 }
 0x12e   :  { %v1133_v38 = vpack.c.bf16 %v1132_v37, %v1132_v37 }
 0x130   :  { %1571 = vmatmul.mubr.msk.bf16.vlgmr.msra.gmra.mxu0 %vm1173_vm1, %v1133_v38 }
 0x1f0   :  { %v1211_v42 = vpop.f32.mrf.mxu0 }
 0x1f1   :  { %v1212_v43 = vadd.f32 %v1412_v40, %v1211_v42 }
 0x1f2   :  { %v1572_v44 = vpop.f32.mrf.mxu0 }
 0x1f3   :  { %v1217_v45 = vmax.f32 %v1212_v43, 0.0 }
 0x1f4   :  { %v1214_v46 = vpop.f32.mrf.mxu0 }
 0x1f5   :  { %v1218_v47 = vpack.c.bf16 %v1217_v45, %v1217_v45 }
 0x1f6   :  { %v1573_v48 = vpop.f32.mrf.mxu0 }
 0x1f7   :  { %1579 = vmatmul.mubr.msk.bf16.vlgmr.msra.gmra.mxu1 %vm1242_vm2, %v1218_v47 }
 0x2b7   :  { %v1280_v50 = vpop.f32.mrf.mxu1 }
 0x2b8   :  { %v1281_v51 = vadd.f32 %v1418_v49, %v1280_v50 }
 0x2b9   :  { %v1580_v52 = vpop.f32.mrf.mxu1 }
 0x2ba   :  { %v1287_v53 = vsel %vm1286_vm3, %v1281_v51, -inf }
 0x2bb   :  { %1288 = vmax.xlane.f32.xlu0 %v1287_v53  ;;  %v1283_v54 = vpop.f32.mrf.mxu1 }
 0x2bd   :  { %v1581_v55 = vpop.f32.mrf.mxu1 }
 0x344   :  { %v1289_v56 = vpop.xlane.xlu0 %1288 }
 0x345   :  { %v1290_v57 = vsub.f32 %v1281_v51, %v1289_v56 }
 0x347   :  { %v1291_v58 = vmul.f32 1.442695, %v1290_v57 }
 0x349   :  { %1689 = vpow2.f32 %v1291_v58 }
 0x356   :  { %v1690_v59 = vpop.eup %1689 }
 0x357   :  { %v1293_v60 = vsel %vm1286_vm3, %v1690_v59, 0.0 }
 0x358   :  { %1294 = vadd.xlane.f32.xlu0 %v1293_v60 }
 0x3e1   :  { %v1295_v41 = vpop.xlane.xlu0 %1294 }
 0x3e2   :  { %1691 = vlog2.f32 %v1295_v41 }
 0x3ef   :  { %v1692_v61 = vpop.eup %1691 }
 0x3f0   :  { %v1297_v62 = vmul.f32 0.6931472, %v1692_v61 }
 0x3f2   :  { %v1298_v63 = vsub.f32 %v1290_v57, %v1297_v62 }
 0x3f4   :  { %1299 = vst.msk [vmem:[#allocation2] sm:$0x3] %vm1286_vm3, %v1298_v63 }
 0x3f5   :  { %1704 = shalt.err (!%p1701_p4)
}
 0x3f6   :  { %1309 = dma.vmem_to_hbm [thread:$0]  %s1307_s5, 32, %s2108_s7, [#allocation3]  }
 0x3f7   :  { %1713 = dma.done.wait [#allocation3], 32  }
 0x3f8   :  { %1714 = vsyncadd [#allocation3], 4294967264 }
 0x3f9   :  { %1313 = vsyncpa [#allocation3], 1 }

</bundles_post_ra>
